<compile_context>
chip_gen: v7x
topology: tpu7x:2x2x1
jax: 0.10.0
libtpu: 0.0.40
codegen_flags: <defaults>
</compile_context>

<pallas_src>
import jax
import jax.numpy as jnp
from jax.experimental import pallas as pl
from jax.experimental.pallas import tpu as pltpu

IN_FEATURES = 4
OUT_FEATURES = 1024

_MAX_TM = 1024   # 2 x (1024,1024) f32 double-buffered output tiles ~ 8.4 MiB VMEM
_MIN_TM = 256    # below this the ~0.35 us per-grid-step overhead dominates


def _choose_tm(M: int) -> int:
    """Row-tile size: multiple of 8, <= _MAX_TM, preferring an exact divisor of
    M (no padding, no post-kernel slice/copy) and a grid length >= 2 (v7x)."""
    Mr = ((max(M, 1) + 7) // 8) * 8                  # round up to sublane multiple
    if Mr <= _MAX_TM:
        half = Mr // 2
        if half >= _MIN_TM and half % 8 == 0 and M % half == 0:
            return half                              # exact split over 2 grid steps
        return Mr                                    # single tile (tiny pad at most)
    # Large problem: biggest multiple-of-8 divisor of M in [_MIN_TM, _MAX_TM].
    for cand in range((_MAX_TM // 8) * 8, _MIN_TM - 1, -8):
        if M % cand == 0:
            return cand
    return _MAX_TM                                   # fall back: pad + tail slice


def linear_kernel(x_ref, wt_ref, b_ref, o_ref):
    # x_ref: (tm, 4), wt_ref: (4, 1024), b_ref: (1, 1024), o_ref: (tm, 1024)
    x = x_ref[...]
    w = wt_ref[...]
    # K = 4 -> four VPU broadcast-FMAs (MXU would use ~3% of its contraction rows).
    acc = x[:, 0:1] * w[0:1, :] + b_ref[...]
    acc = acc + x[:, 1:2] * w[1:2, :]
    acc = acc + x[:, 2:3] * w[2:3, :]
    acc = acc + x[:, 3:4] * w[3:4, :]
    o_ref[...] = acc.astype(o_ref.dtype)


def model_forward(x, weight, bias, *, tm=None):
    # x: arbitrary shape with total elements divisible by 4 (e.g. NCHW),
    # same assumption as torch .view(-1, 4).
    x2d = x.reshape(-1, IN_FEATURES)                 # torch .view(-1, 4)
    M = x2d.shape[0]
    if tm is None:
        tm = _choose_tm(M)

    n_blocks = pl.cdiv(M, tm)
    M_pad = n_blocks * tm
    if M_pad != M:                                   # rare fallback path only
        x2d = jnp.pad(x2d, ((0, M_pad - M), (0, 0)))

    wt = weight.T                                    # (4, 1024), resident in VMEM
    b2d = bias.reshape(1, OUT_FEATURES)              # (1, 1024)

    # Double-buffered input + output tiles, plus resident weight/bias, with headroom.
    vmem_need = (2 * (tm * OUT_FEATURES * 4 + tm * IN_FEATURES * 4)
                 + 2 * ((IN_FEATURES + 1) * OUT_FEATURES * 4))
    vmem_limit = int(min(max(2 * vmem_need, 16 << 20), 32 << 20))

    y = pl.pallas_call(
        linear_kernel,
        out_shape=jax.ShapeDtypeStruct((M_pad, OUT_FEATURES), x.dtype),
        grid_spec=pltpu.PrefetchScalarGridSpec(
            num_scalar_prefetch=0,
            grid=(n_blocks,),
            in_specs=[
                pl.BlockSpec((tm, IN_FEATURES), lambda i: (i, 0)),
                pl.BlockSpec((IN_FEATURES, OUT_FEATURES), lambda i: (0, 0)),
                pl.BlockSpec((1, OUT_FEATURES), lambda i: (0, 0)),
            ],
            out_specs=pl.BlockSpec((tm, OUT_FEATURES), lambda i: (i, 0)),
        ),
        compiler_params=pltpu.CompilerParams(
            dimension_semantics=("parallel",),
            vmem_limit_bytes=vmem_limit,
        ),
        cost_estimate=pl.CostEstimate(
            flops=2 * M_pad * IN_FEATURES * OUT_FEATURES,
            transcendentals=0,
            bytes_accessed=(M_pad * OUT_FEATURES + M_pad * IN_FEATURES
                            + (IN_FEATURES + 1) * OUT_FEATURES) * 4,
        ),
    )(x2d, wt, b2d)

    if M_pad != M:
        y = y[:M]                                    # drop padding rows (fallback only)
    return y.reshape(-1, 4, 256)                     # torch .view(-1, 4, 256)


def init_params(key):
    # Deterministic init mimicking nn.Linear default: U(-1/sqrt(fan_in), 1/sqrt(fan_in))
    kw, kb = jax.random.split(key)
    bound = 1.0 / jnp.sqrt(jnp.float32(IN_FEATURES))
    weight = jax.random.uniform(kw, (OUT_FEATURES, IN_FEATURES),
                                minval=-bound, maxval=bound, dtype=jnp.float32)
    bias = jax.random.uniform(kb, (OUT_FEATURES,),
                              minval=-bound, maxval=bound, dtype=jnp.float32)
    return weight, bias


if __name__ == "__main__":
    key = jax.random.PRNGKey(0)
    kx, kx2, kp = jax.random.split(key, 3)

    weight, bias = init_params(kp)

    # Small NCHW input consistent with the module (PixelDefend operates on images).
    x = jax.random.normal(kx, (2, 4, 16, 16), dtype=jnp.float32)   # M = 512 (divisor path)
    out = jax.block_until_ready(model_forward(x, weight, bias))
    ref = (x.reshape(-1, 4) @ weight.T + bias).reshape(-1, 4, 256)
    assert out.shape == ref.shape, (out.shape, ref.shape)
    assert jnp.allclose(out, ref, atol=1e-4, rtol=1e-4)

    # Second check exercising the padded tail fallback (M = 105, not a multiple of 8).
    x2 = jax.random.normal(kx2, (3, 4, 5, 7), dtype=jnp.float32)
    out2 = jax.block_until_ready(model_forward(x2, weight, bias))
    ref2 = (x2.reshape(-1, 4) @ weight.T + bias).reshape(-1, 4, 256)
    assert out2.shape == ref2.shape, (out2.shape, ref2.shape)
    assert jnp.allclose(out2, ref2, atol=1e-4, rtol=1e-4)

    print("KERNEL_OK")
</pallas_src>

<mosaic_0001>
module attributes {stable_mosaic.version = 11 : i64} {
  func.func @linear_kernel(%arg0: i32, %arg1: memref<256x4xf32, #tpu.memory_space<vmem>>, %arg2: memref<4x1024xf32, #tpu.memory_space<vmem>>, %arg3: memref<1x1024xf32, #tpu.memory_space<vmem>>, %arg4: memref<256x1024xf32, #tpu.memory_space<vmem>>) attributes {dimension_semantics = [#tpu.dimension_semantics<parallel>], iteration_bounds = array<i64: 2>, scalar_prefetch = 0 : i64, scratch_operands = 0 : i64, tpu.core_type = #tpu.core_type<tc>, window_params = [{transform_indices = @transform_0, window_bounds = array<i64: 256, 4>}, {pipeline_mode = #tpu.pipeline_mode<synchronous>, transform_indices = @transform_1, window_bounds = array<i64: 4, 1024>}, {pipeline_mode = #tpu.pipeline_mode<synchronous>, transform_indices = @transform_2, window_bounds = array<i64: 1, 1024>}, {transform_indices = @transform_3, window_bounds = array<i64: 256, 1024>}]} {
    %c0 = arith.constant 0 : index
    %c0_0 = arith.constant 0 : index
    %0 = vector.load %arg1[%c0, %c0_0] : memref<256x4xf32, #tpu.memory_space<vmem>>, vector<256x4xf32>
    %c0_1 = arith.constant 0 : index
    %c0_2 = arith.constant 0 : index
    %1 = vector.load %arg2[%c0_1, %c0_2] : memref<4x1024xf32, #tpu.memory_space<vmem>>, vector<4x1024xf32>
    %2 = vector.extract_strided_slice %0 {offsets = [0, 0], sizes = [256, 1], strides = [1, 1]} : vector<256x4xf32> to vector<256x1xf32>
    %3 = vector.extract_strided_slice %1 {offsets = [0, 0], sizes = [1, 1024], strides = [1, 1]} : vector<4x1024xf32> to vector<1x1024xf32>
    %4 = vector.broadcast %2 : vector<256x1xf32> to vector<256x1024xf32>
    %5 = vector.broadcast %3 : vector<1x1024xf32> to vector<256x1024xf32>
    %6 = arith.mulf %4, %5 : vector<256x1024xf32>
    %c0_3 = arith.constant 0 : index
    %c0_4 = arith.constant 0 : index
    %7 = vector.load %arg3[%c0_3, %c0_4] : memref<1x1024xf32, #tpu.memory_space<vmem>>, vector<1x1024xf32>
    %8 = vector.broadcast %7 : vector<1x1024xf32> to vector<256x1024xf32>
    %9 = arith.addf %6, %8 : vector<256x1024xf32>
    %10 = vector.extract_strided_slice %0 {offsets = [0, 1], sizes = [256, 1], strides = [1, 1]} : vector<256x4xf32> to vector<256x1xf32>
    %11 = vector.extract_strided_slice %1 {offsets = [1, 0], sizes = [1, 1024], strides = [1, 1]} : vector<4x1024xf32> to vector<1x1024xf32>
    %12 = vector.broadcast %10 : vector<256x1xf32> to vector<256x1024xf32>
    %13 = vector.broadcast %11 : vector<1x1024xf32> to vector<256x1024xf32>
    %14 = arith.mulf %12, %13 : vector<256x1024xf32>
    %15 = arith.addf %9, %14 : vector<256x1024xf32>
    %16 = vector.extract_strided_slice %0 {offsets = [0, 2], sizes = [256, 1], strides = [1, 1]} : vector<256x4xf32> to vector<256x1xf32>
    %17 = vector.extract_strided_slice %1 {offsets = [2, 0], sizes = [1, 1024], strides = [1, 1]} : vector<4x1024xf32> to vector<1x1024xf32>
    %18 = vector.broadcast %16 : vector<256x1xf32> to vector<256x1024xf32>
    %19 = vector.broadcast %17 : vector<1x1024xf32> to vector<256x1024xf32>
    %20 = arith.mulf %18, %19 : vector<256x1024xf32>
    %21 = arith.addf %15, %20 : vector<256x1024xf32>
    %22 = vector.extract_strided_slice %0 {offsets = [0, 3], sizes = [256, 1], strides = [1, 1]} : vector<256x4xf32> to vector<256x1xf32>
    %23 = vector.extract_strided_slice %1 {offsets = [3, 0], sizes = [1, 1024], strides = [1, 1]} : vector<4x1024xf32> to vector<1x1024xf32>
    %24 = vector.broadcast %22 : vector<256x1xf32> to vector<256x1024xf32>
    %25 = vector.broadcast %23 : vector<1x1024xf32> to vector<256x1024xf32>
    %26 = arith.mulf %24, %25 : vector<256x1024xf32>
    %27 = arith.addf %21, %26 : vector<256x1024xf32>
    %c0_5 = arith.constant 0 : index
    %c0_6 = arith.constant 0 : index
    %28 = vector.load %arg4[%c0_5, %c0_6] : memref<256x1024xf32, #tpu.memory_space<vmem>>, vector<256x1024xf32>
    tpu.vector_store %arg4[%c0_5, %c0_6], %27 {strides = array<i32>} : memref<256x1024xf32, #tpu.memory_space<vmem>>, vector<256x1024xf32>,
    return
  }
  func.func @transform_0(%arg0: i32) -> (i32, i32) {
    %c0_i32 = arith.constant 0 : i32
    %c0_i32_0 = arith.constant 0 : i32
    return %arg0, %c0_i32 : i32, i32
  }
  func.func @transform_1(%arg0: i32) -> (i32, i32) {
    %c0_i32 = arith.constant 0 : i32
    %c0_i32_0 = arith.constant 0 : i32
    %c0_i32_1 = arith.constant 0 : i32
    return %c0_i32, %c0_i32_0 : i32, i32
  }
  func.func @transform_2(%arg0: i32) -> (i32, i32) {
    %c0_i32 = arith.constant 0 : i32
    %c0_i32_0 = arith.constant 0 : i32
    %c0_i32_1 = arith.constant 0 : i32
    return %c0_i32, %c0_i32_0 : i32, i32
  }
  func.func @transform_3(%arg0: i32) -> (i32, i32) {
    %c0_i32 = arith.constant 0 : i32
    %c0_i32_0 = arith.constant 0 : i32
    return %arg0, %c0_i32 : i32, i32
  }
}

</mosaic_0001>

<bundles_post_ra>
// kernel: tpu_custom_call.1
= control target key start
LH: loop header
LB: loop body
LE: loop exit
PB: predicated region body
PF: predicated region fallthrough
CT: control target
= control target key end

     0   :  { %8 = vsyncpa [#allocation3], 0  ;;  %s8174_s0 = inlined_call_operand.vmem [shape: f32[512,4], index: 0, kind: input, shape index: {}]   ;;  %s8175_s1 = inlined_call_operand.hbm [shape: f32[4,1024], index: 1, kind: input, shape index: {}]   ;;  %s8176_s2 = inlined_call_operand.hbm [shape: f32[1,1024], index: 2, kind: input, shape index: {}]   ;;  %s8177_s3 = inlined_call_operand.hbm [shape: f32[512,1024], index: 3, kind: output, shape index: {}]  }
   0x1   :  { %9 = vsyncpa [#allocation6], 0 }
   0x2   :  { %10 = vsyncpa [#allocation4], 0 }
   0x3   :  { %12 = vsyncpa [#allocation4 + $0x1], 0  ;;  %s3803_s12 = smov 0   ;;  %s3805_s13 = smov 0  }
   0x4   :  { %s3807_s14 = smov 0   ;;  %s3809_s15 = smov 0  }
   0x5 LB: > { %s3824_s16 = sadd.s32 4294967295, %s3772_s15   ;;  %s3515_s17 = sadd.s32 4294967294, %s3772_s15   ;;  %s3772_s15 = sphi %s3809_s15, %s9606_s15   ;;  %s3768_s14 = sphi %s3807_s14, %s9605_s14   ;;  %s3764_s13 = sphi %s3805_s13, %s9604_s13   ;;  %s3760_s12 = sphi %s3803_s12, %s9603_s12  }
   0x6   : > { %s3828_s18 = sadd.s32 1, %s3772_s15   ;;  %s93_s19 = sadd.s32 1, %s3768_s14 }
   0x7   : > { %s90_s20 = ssub.s32 %s3772_s15, %s3828_s18  ;;  %p103_p0 = scmp.ne.s32.totalorder %s3768_s14, %s3764_s13 }
   0x8   : > { %p91_p1 = scmp.eq.s32.totalorder %s90_s20, 0  ;;  %p104_p2 = scmp.eq.s32.totalorder %s3824_s16, 1 }
   0x9   : > { %p109_p3 = scmp.ne.s32.totalorder %s3764_s13, %s3760_s12  ;;  %p110_p4 = scmp.eq.s32.totalorder %s3515_s17, 1 }
   0xa   : > { %s3839_s21 = scalar_select %p91_p1, %s3768_s14, %s93_s19  }
   0xb   : > { %p3841_p5 = por %p104_p2, %p103_p0  ;;  %p3845_p6 = por %p110_p4, %p109_p3 }
   0xc   : > { %p3516_p7 = scmp.ge.s32.totalorder %s3772_s15, 1  ;;  %p117_p8 = scmp.lt.s32.totalorder %s3772_s15, 3 }
   0xd   : > { %s8203_s22 = scalar_select %p3841_p5, 1, 0 }
   0xe   : > { %s8204_s23 = scalar_select %p3845_p6, 1, 0 }
   0xf   : > { %p8178_p9 = scmp.eq.s32.totalorder %s3824_s16, 0  ;;  %p3852_p10 = pnand %p3516_p7, %p117_p8 }
  0x10   : > { %s3774_s25 = smov [#allocation2]   ;;  %s3775_s27 = smov [#allocation5]  }
  0x11   : > { %s8205_s24 = scalar_select %p3852_p10, 1, 0 }
  0x12   : > { %s130_s26 = sshll.u32 %s3774_s25, 4  ;;  %p3544_p11 = pneg %p3852_p10  ;;  %s131_s26 = int_to_ptr.vmem [resolvable:$true] %s130_s26 }
  0x13   : > { %s141_s28 = sshll.u32 %s3775_s27, 4  ;;  %s3646_s5 = scalar_lea.hbm %s8175_s1, 512  ;;  %s3864_s28 = int_to_ptr.vmem [resolvable:$true] %s141_s28 }
  0x14   : > { %p3860_p12 = pnand %p8178_p9, %p3544_p11  ;;  %p3647_p13 = scmp.ne.s32.totalorder %s8175_s1, %s3646_s5 }
  0x15   : > { %p3653_p3 = scmp.lt.u32.totalorder %s3646_s5, %s8175_s1 }
  0x16   : > { %p3648_p0 = pneg %p3860_p12 }
  0x18   : > { %p3649_p1 = pnand %p3648_p0, %p3647_p13 }
  0x1a   : > { %p3650_p2 = pneg %p3649_p1 }
  0x1c   : > { %p3655_p4 = pnand %p3653_p3, %p3650_p2 }
  0x1e   : > { %3658 = shalt.err (!%p3655_p4)
}
  0x1f   : > { %s3659_s10 = scalar_lea.vmem %s131_s26, 512  ;;  %p3667_p9 = scmp.lt.s32.totalorder %s131_s26, %s131_s26 }
  0x20   : > { %p3660_p7 = scmp.ne.s32.totalorder %s131_s26, %s3659_s10  ;;  %p3668_p6 = scmp.lt.s32.totalorder %s3659_s10, %s3659_s10 }
  0x22   : > { %p3662_p8 = pnand %p3660_p7, %p3648_p0  ;;  %p3669_p5 = por %p3668_p6, %p3667_p9 }
  0x24   : > { %p3663_p11 = pneg %p3662_p8 }
  0x26   : > { %p3670_p10 = pnand %p3669_p5, %p3663_p11 }
  0x28   : > { %3673 = shalt.err (!%p3670_p10)
}
  0x29   : > { %3547 = dma.hbm_to_vmem [thread:$0]  (!%p3860_p12), %s8175_s1, 512, %s131_s26, [#allocation3]  }
  0x2a   : > { %s3674_s25 = scalar_lea.hbm %s8176_s2, 128 }
  0x2b   : > { %p3675_p13 = scmp.ne.s32.totalorder %s8176_s2, %s3674_s25  ;;  %p3681_p9 = scmp.lt.u32.totalorder %s3674_s25, %s8176_s2 }
  0x2d   : > { %p3677_p6 = pnand %p3675_p13, %p3648_p0 }
  0x2f   : > { %p3678_p5 = pneg %p3677_p6 }
  0x31   : > { %p3683_p10 = pnand %p3681_p9, %p3678_p5 }
  0x33   : > { %3686 = shalt.err (!%p3683_p10)
}
  0x34   : > { %s3687_s26 = scalar_lea.vmem %s3864_s28, 128  ;;  %p3695_p4 = scmp.lt.s32.totalorder %s3864_s28, %s3864_s28 }
  0x35   : > { %p3688_p1 = scmp.ne.s32.totalorder %s3864_s28, %s3687_s26  ;;  %p3696_p7 = scmp.lt.s32.totalorder %s3687_s26, %s3687_s26 }
  0x37   : > { %p3690_p2 = pnand %p3688_p1, %p3648_p0  ;;  %p3697_p8 = por %p3696_p7, %p3695_p4 }
  0x39   : > { %p3691_p3 = pneg %p3690_p2 }
  0x3b   : > { %p3698_p11 = pnand %p3697_p8, %p3691_p3 }
  0x3d   : > { %3701 = shalt.err (!%p3698_p11)
}
  0x3e   : > { %3550 = dma.hbm_to_vmem [thread:$0]  (!%p3860_p12), %s8176_s2, 128, %s3864_s28, [#allocation6]  }
  0x3f   : > { %p8207_p13 = scmp.ne.s32.totalorder %s8205_s24, 0 }
  0x41   : > { %163 = sbr.rel (%p8207_p13) target bundleno = 883 (0x373), region = 32 }
  0x48   : > { %p8208_p6 = scmp.eq.s32.totalorder %s3824_s16, 0 }
  0x4a   : > { %3747 = dma.done.wait (%p8208_p6), [#allocation3], 512   ;;  %p8209_p0 = pmov %p8208_p6 }
  0x4c   : > { %3749 = vsyncadd (%p8209_p0), [#allocation3], 4294966784  ;;  %p8210_p5 = pmov %p8209_p0 }
  0x4d   : > { %p8211_p9 = pmov %p8209_p0 }
  0x4e   : > { %3751 = dma.done.wait (%p8210_p5), [#allocation6], 128  }
  0x4f   : > { %3753 = vsyncadd (%p8211_p9), [#allocation6], 4294967168  ;;  %s3524_s29 = sshll.u32 %s3824_s16, 5  ;;  %v3776_v0 = vmov 0   ;;  %v3777_v33 = vmov 1   ;;  %v398_v34 = vlaneseq  ;;  %v230_v38 = vld [vmem:[#allocation2] sm:$0xff] }
  0x50   : > { %3601 = vset.pattern.permute.xlu1 %v3776_v0  ;;  %3600 = vset.pattern.permute.xlu0 %v3776_v0  ;;  %p192_p12 = scmp.lt.s32.totalorder %s3524_s29, 63  ;;  %v231_v39 = vld [vmem:[#allocation2 + $0x8] sm:$0xff]  ;;  %v232_v40 = vld [vmem:[#allocation2 + $0x10] sm:$0xff]  ;;  %v233_v41 = vld [vmem:[#allocation2 + $0x18] sm:$0xff]  ;;  %s188_s10 = sand.u32 1, %s3764_s13  }
  0x51   : > { %v399_v35 = vshrl.u32 %v398_v34, 7  ;;  %v726_v50 = vld [vmem:[#allocation5] sm:$0xff]  ;;  %s3523_s11 = sshll.u32 %s188_s10, 11  ;;  %s3533_s19 = sshll.u32 %s3824_s16, 15 }
  0x52   : > { %s9608_s29 = smov (!%p192_p12, %s3524_s29), 63  ;;  %s7304_s17 = scalar_lea.vmem [#allocation7], %s3523_s11 }
  0x53   : > { %s3525_s24 = sshll.u32 %s9608_s29, 3  ;;  %v400_v36 = vsub.s32 0, %v399_v35  ;;  %v404_v37 = vsub.s32 4, %v399_v35  ;;  %v734_v51 = vsub.s32 1, %v399_v35  ;;  %v4085_v52 = vsub.s32 2, %v399_v35  ;;  %s3431_s20 = sshll.u32 %s7304_s17, 4  ;;  %s8121_s20 = int_to_ptr.vmem [resolvable:$true] %s3431_s20 }
  0x54   : > { %s3927_s9 = scalar_lea.vmem %s8174_s0, %s3525_s24  ;;  %v4087_v53 = vsub.s32 3, %v399_v35  ;;  %v750_v56 = vsub.s32 5, %v399_v35  ;;  %v4093_v57 = vsub.s32 6, %v399_v35  ;;  %s8119_s27 = scalar_lea.hbm %s8177_s3, %s3533_s19 }
  0x55   : > { %v3930_v1 = vld [vmem:[%s3927_s9 + $0x10] sm:$0xff]  ;;  %v3933_v2 = vld [vmem:[%s3927_s9] sm:$0xff]  ;;  %v3938_v3 = vld [vmem:[%s3927_s9 + $0x18] sm:$0xff]  ;;  %v401_v42 = vrot.slane %v230_v38, %v400_v36  ;;  %v405_v43 = vrot.slane %v230_v38, %v404_v37  ;;  %v409_v44 = vrot.slane %v231_v39, %v400_v36  ;;  %v413_v45 = vrot.slane %v231_v39, %v404_v37  ;;  %8216 = vst [vmem:[#allocation15_spill] sm:$0xff] %v4085_v52  ;;  %s8133_s30 = scalar_lea.sflag [#allocation4], %s188_s10  ;;  %s3702_s4 = scalar_lea.vmem %s8121_s20, 32768 }
  0x56   : > { %246 = vperm.xlu1 %3601, %v3930_v1   ;;  %236 = vperm.xlu0 %3600, %v3933_v2   ;;  %v3941_v4 = vld [vmem:[%s3927_s9 + $0x8] sm:$0xff]  ;;  %v3949_v6 = vld [vmem:[%s3927_s9 + $0x20] sm:$0xff]  ;;  %v3954_v7 = vld [vmem:[%s3927_s9 + $0x38] sm:$0xff]  ;;  %v417_v46 = vrot.slane %v232_v40, %v400_v36  ;;  %v421_v47 = vrot.slane %v232_v40, %v404_v37  ;;  %v425_v48 = vrot.slane %v233_v41, %v400_v36  ;;  %p3703_p10 = scmp.ne.s32.totalorder %s8121_s20, %s3702_s4  ;;  %p9601_p1 = scmp.ne.s32.totalorder %s8203_s22, 0 }
  0x57   : > { %v3946_v5 = vld [vmem:[%s3927_s9 + $0x28] sm:$0xff]  ;;  %v3957_v8 = vld [vmem:[%s3927_s9 + $0x30] sm:$0xff]  ;;  %v3965_v10 = vld [vmem:[%s3927_s9 + $0x40] sm:$0xff]  ;;  %v429_v49 = vrot.slane %v233_v41, %v404_v37  ;;  %8217 = vst [vmem:[#allocation16_spill] sm:$0xff] %v4087_v53  ;;  %v4089_v54 = vrot.slane %v401_v42, %v400_v36  ;;  %v4091_v55 = vrot.slane %v405_v43, %v400_v36  ;;  %v4095_v58 = vrot.slane %v409_v44, %v400_v36  ;;  %s3780_s5 = smov [#allocation7]  }
  0x58   : > { %v3962_v9 = vld [vmem:[%s3927_s9 + $0x48] sm:$0xff]  ;;  %v3970_v11 = vld [vmem:[%s3927_s9 + $0x58] sm:$0xff]  ;;  %v3973_v12 = vld [vmem:[%s3927_s9 + $0x50] sm:$0xff]  ;;  %8218 = vst [vmem:[#allocation17_spill] sm:$0xff] %v4093_v57  ;;  %v4097_v59 = vrot.slane %v413_v45, %v400_v36  ;;  %v4099_v60 = vrot.slane %v417_v46, %v400_v36  ;;  %v4101_v61 = vrot.slane %v421_v47, %v400_v36  ;;  %v4105_v62 = vrot.slane %v425_v48, %v400_v36  ;;  %p3704_p2 = pnand %p3703_p10, %p9601_p1  ;;  %s3706_s26 = sshll.u32 %s3780_s5, 4  ;;  %s3707_s26 = int_to_ptr.vmem [resolvable:$false] %s3706_s26 }
  0x59   : > { %v3978_v13 = vld [vmem:[%s3927_s9 + $0x68] sm:$0xff]  ;;  %v3981_v14 = vld [vmem:[%s3927_s9 + $0x60] sm:$0xff]  ;;  %v3986_v15 = vld [vmem:[%s3927_s9 + $0x78] sm:$0xff]  ;;  %v4107_v63 = vrot.slane %v429_v49, %v400_v36  ;;  %v4109_v0 = vrot.slane %v726_v50, %v400_v36  ;;  %v1155_v34 = vrot.slane %v230_v38, %v734_v51  ;;  %v1159_v42 = vrot.slane %v230_v38, %v750_v56  ;;  %s3708_s6 = scalar_lea.vmem %s3707_s26, 65536  ;;  %p3709_p4 = scmp.lt.s32.totalorder %s8121_s20, %s3707_s26 }
  0x5a   : > { %251 = vperm.xlu1 %3601, %v3938_v3   ;;  %241 = vperm.xlu0 %3600, %v3941_v4   ;;  %v3989_v16 = vld [vmem:[%s3927_s9 + $0x70] sm:$0xff]  ;;  %v3994_v17 = vld [vmem:[%s3927_s9 + $0x88] sm:$0xff]  ;;  %v3997_v18 = vld [vmem:[%s3927_s9 + $0x80] sm:$0xff]  ;;  %v1163_v43 = vrot.slane %v231_v39, %v734_v51  ;;  %v1167_v44 = vrot.slane %v231_v39, %v750_v56  ;;  %v1171_v45 = vrot.slane %v232_v40, %v734_v51  ;;  %p3705_p3 = pneg %p3704_p2  ;;  %p3710_p7 = scmp.lt.s32.totalorder %s3708_s6, %s3702_s4 }
  0x5b   : > { %v4002_v19 = vld [vmem:[%s3927_s9 + $0x98] sm:$0xff]  ;;  %v4005_v20 = vld [vmem:[%s3927_s9 + $0x90] sm:$0xff]  ;;  %v4010_v21 = vld [vmem:[%s3927_s9 + $0xa8] sm:$0xff]  ;;  %8219 = vst [vmem:[#allocation18_spill] sm:$0xff] %v4109_v0  ;;  %v1175_v46 = vrot.slane %v232_v40, %v750_v56  ;;  %v1179_v47 = vrot.slane %v233_v41, %v734_v51  ;;  %v4119_v48 = vrot.slane %v726_v50, %v4087_v53  ;;  %v4121_v36 = vrot.slane %v726_v50, %v404_v37 }
  0x5c   : > { %v4013_v22 = vld [vmem:[%s3927_s9 + $0xa0] sm:$0xff]  ;;  %v4018_v23 = vld [vmem:[%s3927_s9 + $0xb8] sm:$0xff]  ;;  %v4021_v24 = vld [vmem:[%s3927_s9 + $0xb0] sm:$0xff]  ;;  %v4128_v38 = vrot.slane %v726_v50, %v4093_v57  ;;  %v4133_v40 = vrot.slane %v1155_v34, %v734_v51  ;;  %v4137_v49 = vrot.slane %v1163_v43, %v734_v51  ;;  %v4139_v37 = vrot.slane %v1167_v44, %v734_v51  ;;  %p3711_p8 = por %p3710_p7, %p3709_p4 }
  0x5d   : > { %v4026_v25 = vld [vmem:[%s3927_s9 + $0xc8] sm:$0xff]  ;;  %v4029_v26 = vld [vmem:[%s3927_s9 + $0xc0] sm:$0xff]  ;;  %v4034_v27 = vld [vmem:[%s3927_s9 + $0xd8] sm:$0xff]  ;;  %8223 = vst [vmem:[#allocation22_spill] sm:$0xff] %v4119_v48 }
  0x5e   : > { %261 = vperm.xlu1 %3601, %v3946_v5   ;;  %256 = vperm.xlu0 %3600, %v3949_v6   ;;  %8212 = vst [vmem:[#allocation11_spill] sm:$0xff] %v4026_v25  ;;  %8213 = vst [vmem:[#allocation12_spill] sm:$0xff] %v4034_v27  ;;  %v4037_v28 = vld [vmem:[%s3927_s9 + $0xd0] sm:$0xff]  ;;  %v4042_v29 = vld [vmem:[%s3927_s9 + $0xe8] sm:$0xff]  ;;  %p3712_p11 = pnand %p3711_p8, %p3705_p3 }
  0x5f   : > { %8214 = vst [vmem:[#allocation13_spill] sm:$0xff] %v4042_v29  ;;  %v4045_v30 = vld [vmem:[%s3927_s9 + $0xe0] sm:$0xff]  ;;  %v4050_v31 = vld [vmem:[%s3927_s9 + $0xf8] sm:$0xff]  ;;  %v4053_v32 = vld [vmem:[%s3927_s9 + $0xf0] sm:$0xff] }
  0x60   : > { %8215 = vst [vmem:[#allocation14_spill] sm:$0xff] %v4050_v31  ;;  %8224 = vst [vmem:[#allocation23_spill] sm:$0xff] %v4121_v36  ;;  %v4141_v36 = vrot.slane %v1171_v45, %v734_v51 }
  0x61   : > { %8226 = vst [vmem:[#allocation25_spill] sm:$0xff] %v4128_v38 }
  0x62   : > { %271 = vperm.xlu1 %3601, %v3954_v7   ;;  %266 = vperm.xlu0 %3600, %v3957_v8  }
  0x66   : > { %281 = vperm.xlu1 %3601, %v3962_v9   ;;  %276 = vperm.xlu0 %3600, %v3965_v10  }
  0x6a   : > { %291 = vperm.xlu1 %3601, %v3970_v11   ;;  %286 = vperm.xlu0 %3600, %v3973_v12  }
  0x6e   : > { %301 = vperm.xlu1 %3601, %v3978_v13   ;;  %296 = vperm.xlu0 %3600, %v3981_v14  }
  0x72   : > { %311 = vperm.xlu1 %3601, %v3986_v15   ;;  %306 = vperm.xlu0 %3600, %v3989_v16  }
  0x76   : > { %321 = vperm.xlu1 %3601, %v3994_v17   ;;  %316 = vperm.xlu0 %3600, %v3997_v18  }
  0x7a   : > { %331 = vperm.xlu1 %3601, %v4002_v19   ;;  %326 = vperm.xlu0 %3600, %v4005_v20  }
  0x7e   : > { %341 = vperm.xlu1 %3601, %v4010_v21   ;;  %336 = vperm.xlu0 %3600, %v4013_v22  }
  0x82   : > { %351 = vperm.xlu1 %3601, %v4018_v23   ;;  %346 = vperm.xlu0 %3600, %v4021_v24  }
  0x86   : > { %361 = vperm.xlu1 %3601, %v4026_v25   ;;  %356 = vperm.xlu0 %3600, %v4029_v26  }
  0x8a   : > { %371 = vperm.xlu1 %3601, %v4034_v27   ;;  %366 = vperm.xlu0 %3600, %v4037_v28  }
  0x8e   : > { %381 = vperm.xlu1 %3601, %v4042_v29   ;;  %376 = vperm.xlu0 %3600, %v4045_v30  }
  0x92   : > { %391 = vperm.xlu1 %3601, %v4050_v31   ;;  %386 = vperm.xlu0 %3600, %v4053_v32  }
  0x96   : > { %3603 = vset.pattern.permute.xlu1 %v3777_v33  ;;  %3602 = vset.pattern.permute.xlu0 %v3777_v33  ;;  %v4111_v33 = vsub.s32 7, %v399_v35  ;;  %v4125_v35 = vrot.slane %v726_v50, %v750_v56 }
  0x97   : > { %1029 = vperm.xlu1 %3603, %v3941_v4   ;;  %1025 = vperm.xlu0 %3602, %v3933_v2  }
  0x98   : > { %8220 = vst [vmem:[#allocation19_spill] sm:$0xff] %v4111_v33  ;;  %8225 = vst [vmem:[#allocation24_spill] sm:$0xff] %v4125_v35  ;;  %v4131_v39 = vrot.slane %v726_v50, %v4111_v33 }
  0x9a   : > { %8227 = vst [vmem:[#allocation26_spill] sm:$0xff] %v4131_v39 }
  0x9b   : > { %1033 = vperm.xlu1 %3603, %v3930_v1   ;;  %1037 = vperm.xlu0 %3602, %v3938_v3  }
  0x9f   : > { %1041 = vperm.xlu1 %3603, %v3949_v6   ;;  %1045 = vperm.xlu0 %3602, %v3946_v5  }
  0xa3   : > { %1049 = vperm.xlu1 %3603, %v3957_v8   ;;  %1053 = vperm.xlu0 %3602, %v3954_v7  }
  0xa7   : > { %1057 = vperm.xlu1 %3603, %v3965_v10   ;;  %1061 = vperm.xlu0 %3602, %v3962_v9  }
  0xab   : > { %1065 = vperm.xlu1 %3603, %v3973_v12   ;;  %1069 = vperm.xlu0 %3602, %v3970_v11  }
  0xaf   : > { %1073 = vperm.xlu1 %3603, %v3981_v14   ;;  %1077 = vperm.xlu0 %3602, %v3978_v13  }
  0xb3   : > { %1081 = vperm.xlu1 %3603, %v3989_v16   ;;  %1085 = vperm.xlu0 %3602, %v3986_v15  }
  0xb7   : > { %1089 = vperm.xlu1 %3603, %v3997_v18   ;;  %1093 = vperm.xlu0 %3602, %v3994_v17  }
  0xbb   : > { %1097 = vperm.xlu1 %3603, %v4005_v20   ;;  %1101 = vperm.xlu0 %3602, %v4002_v19  }
  0xbf   : > { %1105 = vperm.xlu1 %3603, %v4013_v22   ;;  %1109 = vperm.xlu0 %3602, %v4010_v21  }
  0xc3   : > { %1113 = vperm.xlu1 %3603, %v4021_v24   ;;  %1117 = vperm.xlu0 %3602, %v4018_v23  }
  0xc7   : > { %1121 = vperm.xlu1 %3603, %v4029_v26   ;;  %1125 = vperm.xlu0 %3602, %v4026_v25   ;;  %v4113_v25 = vrot.slane %v726_v50, %v734_v51 }
  0xc9   : > { %8221 = vst [vmem:[#allocation20_spill] sm:$0xff] %v4113_v25 }
  0xcb   : > { %1129 = vperm.xlu1 %3603, %v4037_v28   ;;  %1133 = vperm.xlu0 %3602, %v4034_v27   ;;  %v1183_v27 = vrot.slane %v233_v41, %v750_v56  ;;  %v4135_v41 = vrot.slane %v1159_v42, %v734_v51  ;;  %v4143_v56 = vrot.slane %v1175_v46, %v734_v51  ;;  %v3778_v46 = vmov 2  }
  0xcd   : > { %v4147_v57 = vrot.slane %v1183_v27, %v734_v51 }
  0xcf   : > { %1137 = vperm.xlu1 %3603, %v4045_v30   ;;  %1141 = vperm.xlu0 %3602, %v4042_v29   ;;  %v4116_v29 = vrot.slane %v726_v50, %v4085_v52  ;;  %8228 = vst [vmem:[#allocation27_spill] sm:$0xff] %v4147_v57 }
  0xd1   : > { %8222 = vst [vmem:[#allocation21_spill] sm:$0xff] %v4116_v29 }
  0xd3   : > { %1145 = vperm.xlu1 %3603, %v4053_v32   ;;  %1149 = vperm.xlu0 %3602, %v4050_v31   ;;  %v4145_v31 = vrot.slane %v1179_v47, %v734_v51 }
  0xd5   : > { %v247_v53 = vpop.permute.xlu1 %246  ;;  %v237_v52 = vpop.permute.xlu0 %236 }
  0xd6   : > { %v4150_v50 = vmul.f32 %v4089_v54, %v247_v53  ;;  %v4153_v34 = vmul.f32 %v4091_v55, %v247_v53  ;;  %v4156_v42 = vmul.f32 %v4095_v58, %v247_v53  ;;  %v4159_v43 = vmul.f32 %v4097_v59, %v247_v53 }
  0xd7   : > { %v4162_v44 = vmul.f32 %v4099_v60, %v247_v53  ;;  %v4165_v45 = vmul.f32 %v4101_v61, %v247_v53  ;;  %v4168_v27 = vmul.f32 %v4105_v62, %v247_v53  ;;  %v4171_v51 = vmul.f32 %v4107_v63, %v247_v53  ;;  %3604 = vset.pattern.permute.xlu1 %v3778_v46 }
  0xd8   : > { %8229 = vst [vmem:[#allocation28_spill] sm:$0xff] %v4150_v50  ;;  %8230 = vst [vmem:[#allocation29_spill] sm:$0xff] %v4153_v34  ;;  %v4174_v47 = vmul.f32 %v4089_v54, %v237_v52  ;;  %v4177_v33 = vmul.f32 %v4091_v55, %v237_v52  ;;  %3605 = vset.pattern.permute.xlu0 %v3778_v46  ;;  %v4189_v53 = vmul.f32 %v4101_v61, %v237_v52 }
  0xd9   : > { %8231 = vst [vmem:[#allocation30_spill] sm:$0xff] %v4156_v42  ;;  %8232 = vst [vmem:[#allocation31_spill] sm:$0xff] %v4159_v43  ;;  %v4180_v43 = vmul.f32 %v4095_v58, %v237_v52  ;;  %1737 = vperm.xlu1 %3604, %v3933_v2   ;;  %v252_v42 = vpop.permute.xlu1 %251  ;;  %v242_v34 = vpop.permute.xlu0 %241  ;;  %1741 = vperm.xlu0 %3605, %v3941_v4  }
  0xda   : > { %8233 = vst [vmem:[#allocation32_spill] sm:$0xff] %v4162_v44  ;;  %8234 = vst [vmem:[#allocation33_spill] sm:$0xff] %v4165_v45  ;;  %v4183_v44 = vmul.f32 %v4097_v59, %v237_v52  ;;  %v4195_v45 = vmul.f32 %v4107_v63, %v237_v52  ;;  %v4200_v46 = vmul.f32 %v4089_v54, %v252_v42 }
  0xdb   : > { %8235 = vst [vmem:[#allocation34_spill] sm:$0xff] %v4168_v27  ;;  %8236 = vst [vmem:[#allocation35_spill] sm:$0xff] %v4171_v51  ;;  %v4186_v27 = vmul.f32 %v4099_v60, %v237_v52  ;;  %v4192_v51 = vmul.f32 %v4105_v62, %v237_v52  ;;  %v4203_v50 = vmul.f32 %v4091_v55, %v252_v42 }
  0xdc   : > { %8237 = vst [vmem:[#allocation36_spill] sm:$0xff] %v4174_v47  ;;  %8238 = vst [vmem:[#allocation37_spill] sm:$0xff] %v4177_v33  ;;  %v4212_v52 = vmul.f32 %v4099_v60, %v252_v42  ;;  %v4218_v4 = vmul.f32 %v4105_v62, %v252_v42 }
  0xdd   : > { %8239 = vst [vmem:[#allocation38_spill] sm:$0xff] %v4180_v43  ;;  %8240 = vst [vmem:[#allocation39_spill] sm:$0xff] %v4183_v44  ;;  %1745 = vperm.xlu1 %3604, %v3930_v1   ;;  %v257_v44 = vpop.permute.xlu0 %256  ;;  %1753 = vperm.xlu0 %3605, %v3949_v6  }
  0xde   : > { %8241 = vst [vmem:[#allocation40_spill] sm:$0xff] %v4186_v27  ;;  %8242 = vst [vmem:[#allocation41_spill] sm:$0xff] %v4189_v53  ;;  %v4206_v53 = vmul.f32 %v4095_v58, %v252_v42  ;;  %v262_v27 = vpop.permute.xlu1 %261 }
  0xdf   : > { %8243 = vst [vmem:[#allocation42_spill] sm:$0xff] %v4192_v51  ;;  %8244 = vst [vmem:[#allocation43_spill] sm:$0xff] %v4195_v45  ;;  %v4209_v51 = vmul.f32 %v4097_v59, %v252_v42  ;;  %v4215_v45 = vmul.f32 %v4101_v61, %v252_v42  ;;  %v4250_v43 = vmul.f32 %v4089_v54, %v262_v27 }
  0xe0   : > { %8245 = vst [vmem:[#allocation44_spill] sm:$0xff] %v4200_v46  ;;  %8246 = vst [vmem:[#allocation45_spill] sm:$0xff] %v4203_v50  ;;  %v4221_v46 = vmul.f32 %v4107_v63, %v252_v42  ;;  %v4224_v50 = vmul.f32 %v4089_v54, %v242_v34  ;;  %v4242_v42 = vmul.f32 %v4105_v62, %v242_v34 }
  0xe1   : > { %8247 = vst [vmem:[#allocation46_spill] sm:$0xff] %v4206_v53  ;;  %8248 = vst [vmem:[#allocation47_spill] sm:$0xff] %v4209_v51  ;;  %v4227_v53 = vmul.f32 %v4091_v55, %v242_v34  ;;  %v4230_v51 = vmul.f32 %v4095_v58, %v242_v34  ;;  %v4253_v33 = vmul.f32 %v4091_v55, %v262_v27  ;;  %1749 = vperm.xlu1 %3604, %v3938_v3  }
  0xe2   : > { %8249 = vst [vmem:[#allocation48_spill] sm:$0xff] %v4212_v52  ;;  %8250 = vst [vmem:[#allocation49_spill] sm:$0xff] %v4215_v45  ;;  %v4233_v52 = vmul.f32 %v4097_v59, %v242_v34  ;;  %v4236_v45 = vmul.f32 %v4099_v60, %v242_v34  ;;  %v4256_v47 = vmul.f32 %v4095_v58, %v262_v27  ;;  %1761 = vperm.xlu0 %3605, %v3957_v8  }
  0xe3   : > { %8251 = vst [vmem:[#allocation50_spill] sm:$0xff] %v4218_v4  ;;  %8252 = vst [vmem:[#allocation51_spill] sm:$0xff] %v4221_v46  ;;  %v4239_v4 = vmul.f32 %v4101_v61, %v242_v34  ;;  %v4245_v46 = vmul.f32 %v4107_v63, %v242_v34  ;;  %v4259_v57 = vmul.f32 %v4097_v59, %v262_v27 }
  0xe4   : > { %8253 = vst [vmem:[#allocation52_spill] sm:$0xff] %v4250_v43  ;;  %8254 = vst [vmem:[#allocation53_spill] sm:$0xff] %v4253_v33  ;;  %v4262_v34 = vmul.f32 %v4099_v60, %v262_v27  ;;  %v4265_v1 = vmul.f32 %v4101_v61, %v262_v27  ;;  %v4268_v6 = vmul.f32 %v4105_v62, %v262_v27 }
  0xe5   : > { %8255 = vst [vmem:[#allocation54_spill] sm:$0xff] %v4256_v47  ;;  %8256 = vst [vmem:[#allocation55_spill] sm:$0xff] %v4259_v57  ;;  %v4271_v43 = vmul.f32 %v4107_v63, %v262_v27  ;;  %v4274_v33 = vmul.f32 %v4089_v54, %v257_v44  ;;  %v4277_v47 = vmul.f32 %v4091_v55, %v257_v44  ;;  %1757 = vperm.xlu1 %3604, %v3946_v5  }
  0xe6   : > { %8257 = vst [vmem:[#allocation56_spill] sm:$0xff] %v4262_v34  ;;  %8258 = vst [vmem:[#allocation57_spill] sm:$0xff] %v4265_v1  ;;  %v4280_v57 = vmul.f32 %v4095_v58, %v257_v44  ;;  %v4283_v34 = vmul.f32 %v4097_v59, %v257_v44  ;;  %v4286_v1 = vmul.f32 %v4099_v60, %v257_v44  ;;  %1769 = vperm.xlu0 %3605, %v3965_v10  }
  0xe7   : > { %8259 = vst [vmem:[#allocation58_spill] sm:$0xff] %v4268_v6  ;;  %8260 = vst [vmem:[#allocation59_spill] sm:$0xff] %v4271_v43  ;;  %v4289_v6 = vmul.f32 %v4101_v61, %v257_v44  ;;  %v4292_v27 = vmul.f32 %v4105_v62, %v257_v44  ;;  %v4295_v43 = vmul.f32 %v4107_v63, %v257_v44 }
  0xe8   : > { %8261 = vst [vmem:[#allocation60_spill] sm:$0xff] %v4274_v33  ;;  %8262 = vst [vmem:[#allocation61_spill] sm:$0xff] %v4277_v47  ;;  %v272_v47 = vpop.permute.xlu1 %271  ;;  %v267_v33 = vpop.permute.xlu0 %266 }
  0xe9   : > { %8263 = vst [vmem:[#allocation62_spill] sm:$0xff] %v4283_v34  ;;  %8264 = vst [vmem:[#allocation63_spill] sm:$0xff] %v4286_v1  ;;  %v4300_v34 = vmul.f32 %v4089_v54, %v272_v47  ;;  %v4303_v1 = vmul.f32 %v4091_v55, %v272_v47  ;;  %v4312_v44 = vmul.f32 %v4099_v60, %v272_v47  ;;  %1765 = vperm.xlu1 %3604, %v3954_v7  }
  0xea   : > { %8265 = vst [vmem:[#allocation64_spill] sm:$0xff] %v4289_v6  ;;  %8266 = vst [vmem:[#allocation65_spill] sm:$0xff] %v4292_v27  ;;  %v4306_v6 = vmul.f32 %v4095_v58, %v272_v47  ;;  %v4309_v27 = vmul.f32 %v4097_v59, %v272_v47  ;;  %v4318_v8 = vmul.f32 %v4105_v62, %v272_v47  ;;  %1777 = vperm.xlu0 %3605, %v3973_v12  }
  0xeb   : > { %8267 = vst [vmem:[#allocation66_spill] sm:$0xff] %v4295_v43  ;;  %8268 = vst [vmem:[#allocation67_spill] sm:$0xff] %v4300_v34  ;;  %v4315_v43 = vmul.f32 %v4101_v61, %v272_v47  ;;  %v4321_v34 = vmul.f32 %v4107_v63, %v272_v47  ;;  %v4342_v47 = vmul.f32 %v4105_v62, %v267_v33 }
  0xec   : > { %8269 = vst [vmem:[#allocation68_spill] sm:$0xff] %v4303_v1  ;;  %8270 = vst [vmem:[#allocation69_spill] sm:$0xff] %v4306_v6  ;;  %v4324_v1 = vmul.f32 %v4089_v54, %v267_v33  ;;  %v4327_v6 = vmul.f32 %v4091_v55, %v267_v33 }
  0xed   : > { %8271 = vst [vmem:[#allocation70_spill] sm:$0xff] %v4309_v27  ;;  %8272 = vst [vmem:[#allocation71_spill] sm:$0xff] %v4312_v44  ;;  %v4330_v27 = vmul.f32 %v4095_v58, %v267_v33  ;;  %v4333_v44 = vmul.f32 %v4097_v59, %v267_v33  ;;  %1773 = vperm.xlu1 %3604, %v3962_v9  }
  0xee   : > { %8273 = vst [vmem:[#allocation72_spill] sm:$0xff] %v4315_v43  ;;  %8274 = vst [vmem:[#allocation73_spill] sm:$0xff] %v4318_v8  ;;  %v4336_v43 = vmul.f32 %v4099_v60, %v267_v33  ;;  %v4339_v8 = vmul.f32 %v4101_v61, %v267_v33  ;;  %1785 = vperm.xlu0 %3605, %v3981_v14  }
  0xef   : > { %8275 = vst [vmem:[#allocation74_spill] sm:$0xff] %v4321_v34  ;;  %8276 = vst [vmem:[#allocation75_spill] sm:$0xff] %v4324_v1  ;;  %v4345_v34 = vmul.f32 %v4107_v63, %v267_v33  ;;  %v277_v1 = vpop.permute.xlu0 %276 }
  0xf0   : > { %8277 = vst [vmem:[#allocation76_spill] sm:$0xff] %v4327_v6  ;;  %8278 = vst [vmem:[#allocation77_spill] sm:$0xff] %v4333_v44  ;;  %v282_v6 = vpop.permute.xlu1 %281 }
  0xf1   : > { %8279 = vst [vmem:[#allocation78_spill] sm:$0xff] %v4336_v43  ;;  %8280 = vst [vmem:[#allocation79_spill] sm:$0xff] %v4339_v8  ;;  %v4350_v44 = vmul.f32 %v4089_v54, %v282_v6  ;;  %v4353_v43 = vmul.f32 %v4091_v55, %v282_v6  ;;  %v4356_v8 = vmul.f32 %v4095_v58, %v282_v6  ;;  %1781 = vperm.xlu1 %3604, %v3970_v11  }
  0xf2   : > { %8281 = vst [vmem:[#allocation80_spill] sm:$0xff] %v4342_v47  ;;  %v4359_v47 = vmul.f32 %v4097_v59, %v282_v6  ;;  %v4362_v33 = vmul.f32 %v4099_v60, %v282_v6  ;;  %v4365_v5 = vmul.f32 %v4101_v61, %v282_v6  ;;  %v4368_v10 = vmul.f32 %v4105_v62, %v282_v6 }
  0xf3   : > { %8282 = vst [vmem:[#allocation81_spill] sm:$0xff] %v4350_v44  ;;  %8283 = vst [vmem:[#allocation82_spill] sm:$0xff] %v4353_v43  ;;  %v4371_v44 = vmul.f32 %v4107_v63, %v282_v6  ;;  %v4374_v43 = vmul.f32 %v4089_v54, %v277_v1  ;;  %v4392_v6 = vmul.f32 %v4105_v62, %v277_v1  ;;  %1793 = vperm.xlu0 %3605, %v3989_v16  }
  0xf4   : > { %8284 = vst [vmem:[#allocation83_spill] sm:$0xff] %v4356_v8  ;;  %8285 = vst [vmem:[#allocation84_spill] sm:$0xff] %v4359_v47  ;;  %v4377_v8 = vmul.f32 %v4091_v55, %v277_v1  ;;  %v4380_v47 = vmul.f32 %v4095_v58, %v277_v1 }
  0xf5   : > { %8286 = vst [vmem:[#allocation85_spill] sm:$0xff] %v4362_v33  ;;  %8287 = vst [vmem:[#allocation86_spill] sm:$0xff] %v4365_v5  ;;  %v4383_v33 = vmul.f32 %v4097_v59, %v277_v1  ;;  %v4386_v5 = vmul.f32 %v4099_v60, %v277_v1  ;;  %1789 = vperm.xlu1 %3604, %v3978_v13  }
  0xf6   : > { %8288 = vst [vmem:[#allocation87_spill] sm:$0xff] %v4368_v10  ;;  %8289 = vst [vmem:[#allocation88_spill] sm:$0xff] %v4371_v44  ;;  %v4389_v10 = vmul.f32 %v4101_v61, %v277_v1  ;;  %v4395_v44 = vmul.f32 %v4107_v63, %v277_v1 }
  0xf7   : > { %8290 = vst [vmem:[#allocation89_spill] sm:$0xff] %v4374_v43  ;;  %8291 = vst [vmem:[#allocation90_spill] sm:$0xff] %v4377_v8  ;;  %v292_v8 = vpop.permute.xlu1 %291  ;;  %v287_v43 = vpop.permute.xlu0 %286  ;;  %1801 = vperm.xlu0 %3605, %v3997_v18  }
  0xf8   : > { %8292 = vst [vmem:[#allocation91_spill] sm:$0xff] %v4383_v33  ;;  %8293 = vst [vmem:[#allocation92_spill] sm:$0xff] %v4386_v5  ;;  %v4400_v33 = vmul.f32 %v4089_v54, %v292_v8  ;;  %v4403_v5 = vmul.f32 %v4091_v55, %v292_v8  ;;  %v4412_v1 = vmul.f32 %v4099_v60, %v292_v8 }
  0xf9   : > { %8294 = vst [vmem:[#allocation93_spill] sm:$0xff] %v4389_v10  ;;  %8295 = vst [vmem:[#allocation94_spill] sm:$0xff] %v4392_v6  ;;  %v4406_v10 = vmul.f32 %v4095_v58, %v292_v8  ;;  %v4409_v6 = vmul.f32 %v4097_v59, %v292_v8  ;;  %v4415_v7 = vmul.f32 %v4101_v61, %v292_v8  ;;  %1797 = vperm.xlu1 %3604, %v3986_v15  }
  0xfa   : > { %8296 = vst [vmem:[#allocation95_spill] sm:$0xff] %v4400_v33  ;;  %8297 = vst [vmem:[#allocation96_spill] sm:$0xff] %v4403_v5  ;;  %v4418_v12 = vmul.f32 %v4105_v62, %v292_v8  ;;  %v4421_v33 = vmul.f32 %v4107_v63, %v292_v8  ;;  %v4424_v5 = vmul.f32 %v4089_v54, %v287_v43 }
  0xfb   : > { %8298 = vst [vmem:[#allocation97_spill] sm:$0xff] %v4406_v10  ;;  %8299 = vst [vmem:[#allocation98_spill] sm:$0xff] %v4409_v6  ;;  %v4427_v10 = vmul.f32 %v4091_v55, %v287_v43  ;;  %v4430_v6 = vmul.f32 %v4095_v58, %v287_v43  ;;  %v4442_v8 = vmul.f32 %v4105_v62, %v287_v43  ;;  %1809 = vperm.xlu0 %3605, %v4005_v20  }
  0xfc   : > { %8300 = vst [vmem:[#allocation99_spill] sm:$0xff] %v4412_v1  ;;  %8301 = vst [vmem:[#allocation100_spill] sm:$0xff] %v4415_v7  ;;  %v4433_v1 = vmul.f32 %v4097_v59, %v287_v43  ;;  %v4436_v7 = vmul.f32 %v4099_v60, %v287_v43 }
  0xfd   : > { %8302 = vst [vmem:[#allocation101_spill] sm:$0xff] %v4418_v12  ;;  %8303 = vst [vmem:[#allocation102_spill] sm:$0xff] %v4421_v33  ;;  %v4439_v12 = vmul.f32 %v4101_v61, %v287_v43  ;;  %v4445_v33 = vmul.f32 %v4107_v63, %v287_v43  ;;  %1805 = vperm.xlu1 %3604, %v3994_v17  }
  0xfe   : > { %8304 = vst [vmem:[#allocation103_spill] sm:$0xff] %v4424_v5  ;;  %8305 = vst [vmem:[#allocation104_spill] sm:$0xff] %v4427_v10  ;;  %v302_v10 = vpop.permute.xlu1 %301  ;;  %v297_v5 = vpop.permute.xlu0 %296 }
  0xff   : > { %8306 = vst [vmem:[#allocation105_spill] sm:$0xff] %v4433_v1  ;;  %8307 = vst [vmem:[#allocation106_spill] sm:$0xff] %v4436_v7  ;;  %v4450_v1 = vmul.f32 %v4089_v54, %v302_v10  ;;  %v4453_v7 = vmul.f32 %v4091_v55, %v302_v10  ;;  %v4462_v43 = vmul.f32 %v4099_v60, %v302_v10  ;;  %1817 = vperm.xlu0 %3605, %v4013_v22  }
 0x100   : > { %8308 = vst [vmem:[#allocation107_spill] sm:$0xff] %v4439_v12  ;;  %8309 = vst [vmem:[#allocation108_spill] sm:$0xff] %v4442_v8  ;;  %v4456_v12 = vmul.f32 %v4095_v58, %v302_v10  ;;  %v4459_v8 = vmul.f32 %v4097_v59, %v302_v10  ;;  %v4465_v9 = vmul.f32 %v4101_v61, %v302_v10 }
 0x101   : > { %8310 = vst [vmem:[#allocation109_spill] sm:$0xff] %v4450_v1  ;;  %8311 = vst [vmem:[#allocation110_spill] sm:$0xff] %v4453_v7  ;;  %v4468_v14 = vmul.f32 %v4105_v62, %v302_v10  ;;  %v4471_v1 = vmul.f32 %v4107_v63, %v302_v10  ;;  %v4474_v7 = vmul.f32 %v4089_v54, %v297_v5  ;;  %1813 = vperm.xlu1 %3604, %v4002_v19  }
 0x102   : > { %8312 = vst [vmem:[#allocation111_spill] sm:$0xff] %v4456_v12  ;;  %8313 = vst [vmem:[#allocation112_spill] sm:$0xff] %v4459_v8  ;;  %v4477_v12 = vmul.f32 %v4091_v55, %v297_v5  ;;  %v4480_v8 = vmul.f32 %v4095_v58, %v297_v5  ;;  %v4492_v10 = vmul.f32 %v4105_v62, %v297_v5 }
 0x103   : > { %8314 = vst [vmem:[#allocation113_spill] sm:$0xff] %v4462_v43  ;;  %8315 = vst [vmem:[#allocation114_spill] sm:$0xff] %v4465_v9  ;;  %v4483_v43 = vmul.f32 %v4097_v59, %v297_v5  ;;  %v4486_v9 = vmul.f32 %v4099_v60, %v297_v5  ;;  %1825 = vperm.xlu0 %3605, %v4021_v24  }
 0x104   : > { %8316 = vst [vmem:[#allocation115_spill] sm:$0xff] %v4468_v14  ;;  %8317 = vst [vmem:[#allocation116_spill] sm:$0xff] %v4471_v1  ;;  %v4489_v14 = vmul.f32 %v4101_v61, %v297_v5  ;;  %v4495_v1 = vmul.f32 %v4107_v63, %v297_v5 }
 0x105   : > { %8318 = vst [vmem:[#allocation117_spill] sm:$0xff] %v4474_v7  ;;  %8319 = vst [vmem:[#allocation118_spill] sm:$0xff] %v4477_v12  ;;  %v312_v12 = vpop.permute.xlu1 %311  ;;  %v307_v7 = vpop.permute.xlu0 %306  ;;  %1821 = vperm.xlu1 %3604, %v4010_v21  }
 0x106   : > { %8320 = vst [vmem:[#allocation119_spill] sm:$0xff] %v4483_v43  ;;  %8321 = vst [vmem:[#allocation120_spill] sm:$0xff] %v4486_v9  ;;  %v4500_v43 = vmul.f32 %v4089_v54, %v312_v12  ;;  %v4503_v9 = vmul.f32 %v4091_v55, %v312_v12  ;;  %v4512_v5 = vmul.f32 %v4099_v60, %v312_v12 }
 0x107   : > { %8322 = vst [vmem:[#allocation121_spill] sm:$0xff] %v4489_v14  ;;  %8323 = vst [vmem:[#allocation122_spill] sm:$0xff] %v4492_v10  ;;  %v4506_v14 = vmul.f32 %v4095_v58, %v312_v12  ;;  %v4509_v10 = vmul.f32 %v4097_v59, %v312_v12  ;;  %v4515_v11 = vmul.f32 %v4101_v61, %v312_v12  ;;  %1833 = vperm.xlu0 %3605, %v4029_v26  }
 0x108   : > { %8324 = vst [vmem:[#allocation123_spill] sm:$0xff] %v4500_v43  ;;  %8325 = vst [vmem:[#allocation124_spill] sm:$0xff] %v4503_v9  ;;  %v4518_v16 = vmul.f32 %v4105_v62, %v312_v12  ;;  %v4521_v43 = vmul.f32 %v4107_v63, %v312_v12  ;;  %v4524_v9 = vmul.f32 %v4089_v54, %v307_v7 }
 0x109   : > { %8326 = vst [vmem:[#allocation125_spill] sm:$0xff] %v4506_v14  ;;  %8327 = vst [vmem:[#allocation126_spill] sm:$0xff] %v4509_v10  ;;  %v4527_v14 = vmul.f32 %v4091_v55, %v307_v7  ;;  %v4530_v10 = vmul.f32 %v4095_v58, %v307_v7  ;;  %v4542_v12 = vmul.f32 %v4105_v62, %v307_v7  ;;  %1829 = vperm.xlu1 %3604, %v4018_v23  }
 0x10a   : > { %8328 = vst [vmem:[#allocation127_spill] sm:$0xff] %v4512_v5  ;;  %8329 = vst [vmem:[#allocation128_spill] sm:$0xff] %v4515_v11  ;;  %v4533_v5 = vmul.f32 %v4097_v59, %v307_v7  ;;  %v4536_v11 = vmul.f32 %v4099_v60, %v307_v7 }
 0x10b   : > { %8330 = vst [vmem:[#allocation129_spill] sm:$0xff] %v4518_v16  ;;  %8331 = vst [vmem:[#allocation130_spill] sm:$0xff] %v4521_v43  ;;  %v4539_v16 = vmul.f32 %v4101_v61, %v307_v7  ;;  %v4545_v43 = vmul.f32 %v4107_v63, %v307_v7  ;;  %1841 = vperm.xlu0 %3605, %v4037_v28  }
 0x10c   : > { %8332 = vst [vmem:[#allocation131_spill] sm:$0xff] %v4524_v9  ;;  %8333 = vst [vmem:[#allocation132_spill] sm:$0xff] %v4527_v14  ;;  %v322_v14 = vpop.permute.xlu1 %321  ;;  %v317_v9 = vpop.permute.xlu0 %316 }
 0x10d   : > { %8334 = vst [vmem:[#allocation133_spill] sm:$0xff] %v4533_v5  ;;  %8335 = vst [vmem:[#allocation134_spill] sm:$0xff] %v4536_v11  ;;  %v4550_v5 = vmul.f32 %v4089_v54, %v322_v14  ;;  %v4553_v11 = vmul.f32 %v4091_v55, %v322_v14  ;;  %v4562_v7 = vmul.f32 %v4099_v60, %v322_v14 }
 0x10e   : > { %8336 = vst [vmem:[#allocation135_spill] sm:$0xff] %v4539_v16  ;;  %8337 = vst [vmem:[#allocation136_spill] sm:$0xff] %v4542_v12  ;;  %v4556_v16 = vmul.f32 %v4095_v58, %v322_v14  ;;  %v4559_v12 = vmul.f32 %v4097_v59, %v322_v14  ;;  %v4565_v13 = vmul.f32 %v4101_v61, %v322_v14 }
 0x10f   : > { %8338 = vst [vmem:[#allocation137_spill] sm:$0xff] %v4550_v5  ;;  %8339 = vst [vmem:[#allocation138_spill] sm:$0xff] %v4553_v11  ;;  %v4568_v18 = vmul.f32 %v4105_v62, %v322_v14  ;;  %v4571_v5 = vmul.f32 %v4107_v63, %v322_v14  ;;  %v4574_v11 = vmul.f32 %v4089_v54, %v317_v9  ;;  %1849 = vperm.xlu0 %3605, %v4045_v30  }
 0x110   : > { %8340 = vst [vmem:[#allocation139_spill] sm:$0xff] %v4556_v16  ;;  %8341 = vst [vmem:[#allocation140_spill] sm:$0xff] %v4559_v12  ;;  %v4577_v16 = vmul.f32 %v4091_v55, %v317_v9  ;;  %v4580_v12 = vmul.f32 %v4095_v58, %v317_v9  ;;  %v4592_v14 = vmul.f32 %v4105_v62, %v317_v9 }
 0x111   : > { %8342 = vst [vmem:[#allocation141_spill] sm:$0xff] %v4562_v7  ;;  %8343 = vst [vmem:[#allocation142_spill] sm:$0xff] %v4565_v13  ;;  %v4583_v7 = vmul.f32 %v4097_v59, %v317_v9  ;;  %v4586_v13 = vmul.f32 %v4099_v60, %v317_v9 }
 0x112   : > { %8344 = vst [vmem:[#allocation143_spill] sm:$0xff] %v4568_v18  ;;  %8345 = vst [vmem:[#allocation144_spill] sm:$0xff] %v4571_v5  ;;  %v4589_v18 = vmul.f32 %v4101_v61, %v317_v9  ;;  %v4595_v5 = vmul.f32 %v4107_v63, %v317_v9 }
 0x113   : > { %8346 = vst [vmem:[#allocation145_spill] sm:$0xff] %v4574_v11  ;;  %8347 = vst [vmem:[#allocation146_spill] sm:$0xff] %v4577_v16  ;;  %v332_v16 = vpop.permute.xlu1 %331  ;;  %v327_v11 = vpop.permute.xlu0 %326  ;;  %1857 = vperm.xlu0 %3605, %v4053_v32  }
 0x114   : > { %8348 = vst [vmem:[#allocation147_spill] sm:$0xff] %v4583_v7  ;;  %8349 = vst [vmem:[#allocation148_spill] sm:$0xff] %v4586_v13  ;;  %v4600_v7 = vmul.f32 %v4089_v54, %v332_v16  ;;  %v4603_v13 = vmul.f32 %v4091_v55, %v332_v16  ;;  %v4612_v9 = vmul.f32 %v4099_v60, %v332_v16 }
 0x115   : > { %8350 = vst [vmem:[#allocation149_spill] sm:$0xff] %v4589_v18  ;;  %8351 = vst [vmem:[#allocation150_spill] sm:$0xff] %v4592_v14  ;;  %v4606_v18 = vmul.f32 %v4095_v58, %v332_v16  ;;  %v4609_v14 = vmul.f32 %v4097_v59, %v332_v16  ;;  %v4615_v15 = vmul.f32 %v4101_v61, %v332_v16 }
 0x116   : > { %8352 = vst [vmem:[#allocation151_spill] sm:$0xff] %v4600_v7  ;;  %8353 = vst [vmem:[#allocation152_spill] sm:$0xff] %v4603_v13  ;;  %v4618_v20 = vmul.f32 %v4105_v62, %v332_v16  ;;  %v4621_v7 = vmul.f32 %v4107_v63, %v332_v16  ;;  %v4624_v13 = vmul.f32 %v4089_v54, %v327_v11 }
 0x117   : > { %8354 = vst [vmem:[#allocation153_spill] sm:$0xff] %v4606_v18  ;;  %8355 = vst [vmem:[#allocation154_spill] sm:$0xff] %v4609_v14  ;;  %v4627_v18 = vmul.f32 %v4091_v55, %v327_v11  ;;  %v4630_v14 = vmul.f32 %v4095_v58, %v327_v11  ;;  %v4642_v16 = vmul.f32 %v4105_v62, %v327_v11 }
 0x118   : > { %8356 = vst [vmem:[#allocation155_spill] sm:$0xff] %v4612_v9  ;;  %8357 = vst [vmem:[#allocation156_spill] sm:$0xff] %v4615_v15  ;;  %v4633_v9 = vmul.f32 %v4097_v59, %v327_v11  ;;  %v4636_v15 = vmul.f32 %v4099_v60, %v327_v11 }
 0x119   : > { %8358 = vst [vmem:[#allocation157_spill] sm:$0xff] %v4618_v20  ;;  %8359 = vst [vmem:[#allocation158_spill] sm:$0xff] %v4621_v7  ;;  %v4639_v20 = vmul.f32 %v4101_v61, %v327_v11  ;;  %v4645_v7 = vmul.f32 %v4107_v63, %v327_v11 }
 0x11a   : > { %8360 = vst [vmem:[#allocation159_spill] sm:$0xff] %v4624_v13  ;;  %8361 = vst [vmem:[#allocation160_spill] sm:$0xff] %v4627_v18  ;;  %v342_v18 = vpop.permute.xlu1 %341  ;;  %v337_v13 = vpop.permute.xlu0 %336 }
 0x11b   : > { %8362 = vst [vmem:[#allocation161_spill] sm:$0xff] %v4633_v9  ;;  %8363 = vst [vmem:[#allocation162_spill] sm:$0xff] %v4636_v15  ;;  %v4650_v9 = vmul.f32 %v4089_v54, %v342_v18  ;;  %v4653_v15 = vmul.f32 %v4091_v55, %v342_v18  ;;  %v4662_v11 = vmul.f32 %v4099_v60, %v342_v18 }
 0x11c   : > { %8364 = vst [vmem:[#allocation163_spill] sm:$0xff] %v4639_v20  ;;  %8365 = vst [vmem:[#allocation164_spill] sm:$0xff] %v4642_v16  ;;  %v4656_v20 = vmul.f32 %v4095_v58, %v342_v18  ;;  %v4659_v16 = vmul.f32 %v4097_v59, %v342_v18  ;;  %v4665_v17 = vmul.f32 %v4101_v61, %v342_v18 }
 0x11d   : > { %8366 = vst [vmem:[#allocation165_spill] sm:$0xff] %v4645_v7  ;;  %8367 = vst [vmem:[#allocation166_spill] sm:$0xff] %v4650_v9  ;;  %v4668_v22 = vmul.f32 %v4105_v62, %v342_v18  ;;  %v4671_v9 = vmul.f32 %v4107_v63, %v342_v18  ;;  %v4692_v18 = vmul.f32 %v4105_v62, %v337_v13 }
 0x11e   : > { %8368 = vst [vmem:[#allocation167_spill] sm:$0xff] %v4653_v15  ;;  %8369 = vst [vmem:[#allocation168_spill] sm:$0xff] %v4656_v20  ;;  %v4674_v15 = vmul.f32 %v4089_v54, %v337_v13  ;;  %v4677_v20 = vmul.f32 %v4091_v55, %v337_v13 }
 0x11f   : > { %8370 = vst [vmem:[#allocation169_spill] sm:$0xff] %v4659_v16  ;;  %8371 = vst [vmem:[#allocation170_spill] sm:$0xff] %v4662_v11  ;;  %v4680_v16 = vmul.f32 %v4095_v58, %v337_v13  ;;  %v4683_v11 = vmul.f32 %v4097_v59, %v337_v13 }
 0x120   : > { %8372 = vst [vmem:[#allocation171_spill] sm:$0xff] %v4665_v17  ;;  %8373 = vst [vmem:[#allocation172_spill] sm:$0xff] %v4668_v22  ;;  %v4686_v17 = vmul.f32 %v4099_v60, %v337_v13  ;;  %v4689_v22 = vmul.f32 %v4101_v61, %v337_v13 }
 0x121   : > { %8374 = vst [vmem:[#allocation173_spill] sm:$0xff] %v4671_v9  ;;  %8375 = vst [vmem:[#allocation174_spill] sm:$0xff] %v4674_v15  ;;  %v4695_v9 = vmul.f32 %v4107_v63, %v337_v13  ;;  %v347_v15 = vpop.permute.xlu0 %346 }
 0x122   : > { %8376 = vst [vmem:[#allocation175_spill] sm:$0xff] %v4677_v20  ;;  %8377 = vst [vmem:[#allocation176_spill] sm:$0xff] %v4680_v16  ;;  %v352_v20 = vpop.permute.xlu1 %351  ;;  %v8441_v16 = vld [vmem:[#allocation23_spill] sm:$0xff] }
 0x123   : > { %8378 = vst [vmem:[#allocation177_spill] sm:$0xff] %v4683_v11  ;;  %8379 = vst [vmem:[#allocation178_spill] sm:$0xff] %v4686_v17  ;;  %v4700_v11 = vmul.f32 %v4089_v54, %v352_v20  ;;  %v4703_v17 = vmul.f32 %v4091_v55, %v352_v20  ;;  %v4712_v13 = vmul.f32 %v4099_v60, %v352_v20 }
 0x124   : > { %8380 = vst [vmem:[#allocation179_spill] sm:$0xff] %v4689_v22  ;;  %8381 = vst [vmem:[#allocation180_spill] sm:$0xff] %v4692_v18  ;;  %v4706_v22 = vmul.f32 %v4095_v58, %v352_v20  ;;  %v4709_v18 = vmul.f32 %v4097_v59, %v352_v20  ;;  %v4715_v19 = vmul.f32 %v4101_v61, %v352_v20 }
 0x125   : > { %8382 = vst [vmem:[#allocation181_spill] sm:$0xff] %v4695_v9  ;;  %8383 = vst [vmem:[#allocation182_spill] sm:$0xff] %v4700_v11  ;;  %v4718_v24 = vmul.f32 %v4105_v62, %v352_v20  ;;  %v4721_v11 = vmul.f32 %v4107_v63, %v352_v20  ;;  %v4742_v20 = vmul.f32 %v4105_v62, %v347_v15 }
 0x126   : > { %8384 = vst [vmem:[#allocation183_spill] sm:$0xff] %v4703_v17  ;;  %8385 = vst [vmem:[#allocation184_spill] sm:$0xff] %v4706_v22  ;;  %v4724_v17 = vmul.f32 %v4089_v54, %v347_v15  ;;  %v4727_v22 = vmul.f32 %v4091_v55, %v347_v15 }
 0x127   : > { %8386 = vst [vmem:[#allocation185_spill] sm:$0xff] %v4709_v18  ;;  %8387 = vst [vmem:[#allocation186_spill] sm:$0xff] %v4712_v13  ;;  %v4730_v18 = vmul.f32 %v4095_v58, %v347_v15  ;;  %v4733_v13 = vmul.f32 %v4097_v59, %v347_v15 }
 0x128   : > { %8388 = vst [vmem:[#allocation187_spill] sm:$0xff] %v4715_v19  ;;  %8389 = vst [vmem:[#allocation188_spill] sm:$0xff] %v4718_v24  ;;  %v4736_v19 = vmul.f32 %v4099_v60, %v347_v15  ;;  %v4739_v24 = vmul.f32 %v4101_v61, %v347_v15 }
 0x129   : > { %8390 = vst [vmem:[#allocation189_spill] sm:$0xff] %v4721_v11  ;;  %8391 = vst [vmem:[#allocation190_spill] sm:$0xff] %v4724_v17  ;;  %v4745_v11 = vmul.f32 %v4107_v63, %v347_v15  ;;  %v357_v17 = vpop.permute.xlu0 %356 }
 0x12a   : > { %8392 = vst [vmem:[#allocation191_spill] sm:$0xff] %v4727_v22  ;;  %8393 = vst [vmem:[#allocation192_spill] sm:$0xff] %v4730_v18  ;;  %v362_v22 = vpop.permute.xlu1 %361 }
 0x12b   : > { %8394 = vst [vmem:[#allocation193_spill] sm:$0xff] %v4733_v13  ;;  %8395 = vst [vmem:[#allocation194_spill] sm:$0xff] %v4736_v19  ;;  %v4750_v13 = vmul.f32 %v4089_v54, %v362_v22  ;;  %v4753_v19 = vmul.f32 %v4091_v55, %v362_v22  ;;  %v4762_v15 = vmul.f32 %v4099_v60, %v362_v22 }
 0x12c   : > { %8396 = vst [vmem:[#allocation195_spill] sm:$0xff] %v4739_v24  ;;  %8397 = vst [vmem:[#allocation196_spill] sm:$0xff] %v4742_v20  ;;  %v4756_v24 = vmul.f32 %v4095_v58, %v362_v22  ;;  %v4759_v20 = vmul.f32 %v4097_v59, %v362_v22  ;;  %v4765_v21 = vmul.f32 %v4101_v61, %v362_v22 }
 0x12d   : > { %8398 = vst [vmem:[#allocation197_spill] sm:$0xff] %v4745_v11  ;;  %8399 = vst [vmem:[#allocation198_spill] sm:$0xff] %v4750_v13  ;;  %v4768_v26 = vmul.f32 %v4105_v62, %v362_v22  ;;  %v4771_v13 = vmul.f32 %v4107_v63, %v362_v22  ;;  %v4792_v22 = vmul.f32 %v4105_v62, %v357_v17 }
 0x12e   : > { %8400 = vst [vmem:[#allocation199_spill] sm:$0xff] %v4753_v19  ;;  %8401 = vst [vmem:[#allocation200_spill] sm:$0xff] %v4756_v24  ;;  %v4774_v19 = vmul.f32 %v4089_v54, %v357_v17  ;;  %v4777_v24 = vmul.f32 %v4091_v55, %v357_v17 }
 0x12f   : > { %8402 = vst [vmem:[#allocation201_spill] sm:$0xff] %v4759_v20  ;;  %8403 = vst [vmem:[#allocation202_spill] sm:$0xff] %v4762_v15  ;;  %v4780_v20 = vmul.f32 %v4095_v58, %v357_v17  ;;  %v4783_v15 = vmul.f32 %v4097_v59, %v357_v17 }
 0x130   : > { %8404 = vst [vmem:[#allocation203_spill] sm:$0xff] %v4765_v21  ;;  %8405 = vst [vmem:[#allocation204_spill] sm:$0xff] %v4768_v26  ;;  %v4786_v21 = vmul.f32 %v4099_v60, %v357_v17  ;;  %v4789_v26 = vmul.f32 %v4101_v61, %v357_v17 }
 0x131   : > { %8406 = vst [vmem:[#allocation205_spill] sm:$0xff] %v4771_v13  ;;  %8407 = vst [vmem:[#allocation206_spill] sm:$0xff] %v4774_v19  ;;  %v4795_v13 = vmul.f32 %v4107_v63, %v357_v17  ;;  %v367_v19 = vpop.permute.xlu0 %366 }
 0x132   : > { %8408 = vst [vmem:[#allocation207_spill] sm:$0xff] %v4777_v24  ;;  %8409 = vst [vmem:[#allocation208_spill] sm:$0xff] %v4780_v20  ;;  %v372_v24 = vpop.permute.xlu1 %371 }
 0x133   : > { %8410 = vst [vmem:[#allocation209_spill] sm:$0xff] %v4783_v15  ;;  %8411 = vst [vmem:[#allocation210_spill] sm:$0xff] %v4786_v21  ;;  %v4800_v15 = vmul.f32 %v4089_v54, %v372_v24  ;;  %v4803_v21 = vmul.f32 %v4091_v55, %v372_v24  ;;  %v4812_v17 = vmul.f32 %v4099_v60, %v372_v24 }
 0x134   : > { %8412 = vst [vmem:[#allocation211_spill] sm:$0xff] %v4789_v26  ;;  %8413 = vst [vmem:[#allocation212_spill] sm:$0xff] %v4792_v22  ;;  %v4806_v26 = vmul.f32 %v4095_v58, %v372_v24  ;;  %v4809_v22 = vmul.f32 %v4097_v59, %v372_v24  ;;  %v4815_v23 = vmul.f32 %v4101_v61, %v372_v24 }
 0x135   : > { %8414 = vst [vmem:[#allocation213_spill] sm:$0xff] %v4795_v13  ;;  %8415 = vst [vmem:[#allocation214_spill] sm:$0xff] %v4800_v15  ;;  %v4818_v28 = vmul.f32 %v4105_v62, %v372_v24  ;;  %v4821_v15 = vmul.f32 %v4107_v63, %v372_v24  ;;  %v4842_v24 = vmul.f32 %v4105_v62, %v367_v19  ;;  %v377_v13 = vpop.permute.xlu0 %376 }
 0x136   : > { %8416 = vst [vmem:[#allocation215_spill] sm:$0xff] %v4803_v21  ;;  %8417 = vst [vmem:[#allocation216_spill] sm:$0xff] %v4806_v26  ;;  %v4824_v21 = vmul.f32 %v4089_v54, %v367_v19  ;;  %v4827_v26 = vmul.f32 %v4091_v55, %v367_v19  ;;  %v701_v20 = vmul.f32 %v4107_v63, %v377_v13 }
 0x137   : > { %8418 = vst [vmem:[#allocation217_spill] sm:$0xff] %v4809_v22  ;;  %8419 = vst [vmem:[#allocation218_spill] sm:$0xff] %v4812_v17  ;;  %v4830_v22 = vmul.f32 %v4095_v58, %v367_v19  ;;  %v4833_v17 = vmul.f32 %v4097_v59, %v367_v19 }
 0x138   : > { %8420 = vst [vmem:[#allocation219_spill] sm:$0xff] %v4815_v23  ;;  %8421 = vst [vmem:[#allocation220_spill] sm:$0xff] %v4818_v28  ;;  %v4836_v23 = vmul.f32 %v4099_v60, %v367_v19  ;;  %v4839_v28 = vmul.f32 %v4101_v61, %v367_v19 }
 0x139   : > { %8422 = vst [vmem:[#allocation221_spill] sm:$0xff] %v4821_v15  ;;  %8423 = vst [vmem:[#allocation222_spill] sm:$0xff] %v4824_v21  ;;  %v4845_v15 = vmul.f32 %v4107_v63, %v367_v19  ;;  %v8431_v21 = vld [vmem:[#allocation11_spill] sm:$0xff] }
 0x13a   : > { %8424 = vst [vmem:[#allocation223_spill] sm:$0xff] %v4827_v26  ;;  %8425 = vst [vmem:[#allocation224_spill] sm:$0xff] %v4830_v22  ;;  %1837 = vperm.xlu1 %3604, %v8431_v21   ;;  %v382_v26 = vpop.permute.xlu1 %381  ;;  %v698_v22 = vmul.f32 %v4099_v60, %v377_v13 }
 0x13b   : > { %8426 = vst [vmem:[#allocation225_spill] sm:$0xff] %v4833_v17  ;;  %8427 = vst [vmem:[#allocation226_spill] sm:$0xff] %v4836_v23  ;;  %v4850_v17 = vmul.f32 %v4089_v54, %v382_v26  ;;  %v4853_v23 = vmul.f32 %v4091_v55, %v382_v26  ;;  %v4862_v19 = vmul.f32 %v4099_v60, %v382_v26 }
 0x13c   : > { %8428 = vst [vmem:[#allocation227_spill] sm:$0xff] %v4839_v28  ;;  %8429 = vst [vmem:[#allocation228_spill] sm:$0xff] %v4842_v24  ;;  %v4856_v28 = vmul.f32 %v4095_v58, %v382_v26  ;;  %v4859_v24 = vmul.f32 %v4097_v59, %v382_v26  ;;  %v4865_v21 = vmul.f32 %v4101_v61, %v382_v26 }
 0x13d   : > { %8430 = vst [vmem:[#allocation229_spill] sm:$0xff] %v4845_v15  ;;  %8432 = vst [vmem:[#allocation11_spill] sm:$0xff] %v4850_v17  ;;  %v4868_v30 = vmul.f32 %v4105_v62, %v382_v26  ;;  %v4871_v17 = vmul.f32 %v4107_v63, %v382_v26  ;;  %v695_v15 = vmul.f32 %v4091_v55, %v377_v13 }
 0x13e   : > { %8433 = vst [vmem:[#allocation230_spill] sm:$0xff] %v4853_v23  ;;  %8434 = vst [vmem:[#allocation231_spill] sm:$0xff] %v4856_v28  ;;  %v694_v23 = vmul.f32 %v4089_v54, %v377_v13  ;;  %v696_v28 = vmul.f32 %v4095_v58, %v377_v13  ;;  %v392_v26 = vpop.permute.xlu1 %391  ;;  %v4896_v7 = vadd.f32 %v8441_v16, %v698_v22 }
 0x13f   : > { %8435 = vst [vmem:[#allocation232_spill] sm:$0xff] %v4859_v24  ;;  %8436 = vst [vmem:[#allocation233_spill] sm:$0xff] %v4862_v19  ;;  %v697_v24 = vmul.f32 %v4097_v59, %v377_v13  ;;  %v699_v19 = vmul.f32 %v4101_v61, %v377_v13  ;;  %v4886_v11 = vadd.f32 %v4113_v25, %v695_v15 }
 0x140   : > { %8437 = vst [vmem:[#allocation234_spill] sm:$0xff] %v4865_v21  ;;  %8438 = vst [vmem:[#allocation235_spill] sm:$0xff] %v4868_v30  ;;  %v700_v21 = vmul.f32 %v4105_v62, %v377_v13  ;;  %v8440_v30 = vld [vmem:[#allocation12_spill] sm:$0xff]  ;;  %v4889_v18 = vadd.f32 %v4116_v29, %v696_v28  ;;  %v4905_v15 = vadd.f32 %v4131_v39, %v701_v20 }
 0x141   : > { %8439 = vst [vmem:[#allocation236_spill] sm:$0xff] %v4871_v17  ;;  %1845 = vperm.xlu1 %3604, %v8440_v30   ;;  %v4883_v17 = vadd.f32 %v4109_v0, %v694_v23  ;;  %v4892_v9 = vadd.f32 %v4119_v48, %v697_v24  ;;  %v4899_v13 = vadd.f32 %v4125_v35, %v699_v19  ;;  %v387_v30 = vpop.permute.xlu0 %386 }
 0x142   : > { %v4902_v23 = vadd.f32 %v4128_v38, %v700_v21  ;;  %8444 = vst [vmem:[#allocation238_spill] sm:$0xff] %v4905_v15  ;;  %v4908_v28 = vmul.f32 %v4089_v54, %v392_v26  ;;  %v4911_v24 = vmul.f32 %v4091_v55, %v392_v26  ;;  %v4914_v32 = vmul.f32 %v4095_v58, %v392_v26  ;;  %v8453_v15 = vld [vmem:[#allocation13_spill] sm:$0xff] }
 0x143   : > { %8442 = vst [vmem:[#allocation12_spill] sm:$0xff] %v4899_v13  ;;  %v4917_v22 = vmul.f32 %v4097_v59, %v392_v26  ;;  %v4920_v19 = vmul.f32 %v4099_v60, %v392_v26  ;;  %v4923_v21 = vmul.f32 %v4101_v61, %v392_v26  ;;  %v4926_v20 = vmul.f32 %v4105_v62, %v392_v26 }
 0x144   : > { %8443 = vst [vmem:[#allocation237_spill] sm:$0xff] %v4902_v23  ;;  %8445 = vst [vmem:[#allocation239_spill] sm:$0xff] %v4908_v28  ;;  %v4929_v28 = vmul.f32 %v4107_v63, %v392_v26  ;;  %v713_v23 = vmul.f32 %v4097_v59, %v387_v30  ;;  %v715_v13 = vmul.f32 %v4101_v61, %v387_v30 }
 0x145   : > { %8446 = vst [vmem:[#allocation240_spill] sm:$0xff] %v4911_v24  ;;  %8447 = vst [vmem:[#allocation241_spill] sm:$0xff] %v4914_v32  ;;  %1853 = vperm.xlu1 %3604, %v8453_v15   ;;  %v710_v24 = vmul.f32 %v4089_v54, %v387_v30  ;;  %v711_v32 = vmul.f32 %v4091_v55, %v387_v30  ;;  %v717_v26 = vmul.f32 %v4107_v63, %v387_v30  ;;  %v1030_v63 = vpop.permute.xlu1 %1029  ;;  %v8462_v15 = vld [vmem:[#allocation14_spill] sm:$0xff] }
 0x146   : > { %8448 = vst [vmem:[#allocation242_spill] sm:$0xff] %v4917_v22  ;;  %8449 = vst [vmem:[#allocation243_spill] sm:$0xff] %v4920_v19  ;;  %v712_v22 = vmul.f32 %v4095_v58, %v387_v30  ;;  %v3779_v19 = vmov 3   ;;  %v4951_v59 = vadd.f32 %v4119_v48, %v713_v23  ;;  %v4957_v61 = vadd.f32 %v4125_v35, %v715_v13 }
 0x147   : > { %8450 = vst [vmem:[#allocation244_spill] sm:$0xff] %v4923_v21  ;;  %8451 = vst [vmem:[#allocation245_spill] sm:$0xff] %v4926_v20  ;;  %3606 = vset.pattern.permute.xlu0 %v3779_v19  ;;  %v714_v21 = vmul.f32 %v4099_v60, %v387_v30  ;;  %v716_v20 = vmul.f32 %v4105_v62, %v387_v30  ;;  %v4942_v54 = vadd.f32 %v4109_v0, %v710_v24 }
 0x148   : > { %8452 = vst [vmem:[#allocation246_spill] sm:$0xff] %v4929_v28  ;;  %2449 = vperm.xlu0 %3606, %v3933_v2   ;;  %v4945_v55 = vadd.f32 %v4113_v25, %v711_v32  ;;  %v4948_v58 = vadd.f32 %v4116_v29, %v712_v22  ;;  %8457 = vst [vmem:[#allocation249_spill] sm:$0xff] %v4951_v59  ;;  %v4963_v62 = vadd.f32 %v4131_v39, %v717_v26  ;;  %v8463_v26 = vld [vmem:[#allocation27_spill] sm:$0xff] }
 0x149   : > { %8454 = vst [vmem:[#allocation13_spill] sm:$0xff] %v4942_v54  ;;  %v4954_v60 = vadd.f32 %v8441_v16, %v714_v21  ;;  %8459 = vst [vmem:[#allocation251_spill] sm:$0xff] %v4957_v61  ;;  %v4960_v2 = vadd.f32 %v4128_v38, %v716_v20  ;;  %1861 = vperm.xlu1 %3604, %v8462_v15   ;;  %v776_v30 = vadd.f32 %v4109_v0, %v4224_v50  ;;  %v3608_v61 = vld [vmem:[%s3927_s9 + $0x8] sm:$0xff] }
 0x14a   : > { %8455 = vst [vmem:[#allocation247_spill] sm:$0xff] %v4945_v55  ;;  %8456 = vst [vmem:[#allocation248_spill] sm:$0xff] %v4948_v58  ;;  %v777_v23 = vadd.f32 %v4113_v25, %v4227_v53  ;;  %v778_v24 = vadd.f32 %v4116_v29, %v4230_v51  ;;  %v779_v13 = vadd.f32 %v4119_v48, %v4233_v52 }
 0x14b   : > { %8458 = vst [vmem:[#allocation250_spill] sm:$0xff] %v4954_v60  ;;  %8460 = vst [vmem:[#allocation252_spill] sm:$0xff] %v4960_v2  ;;  %v780_v32 = vadd.f32 %v8441_v16, %v4236_v45  ;;  %v781_v22 = vadd.f32 %v4125_v35, %v4239_v4  ;;  %v782_v21 = vadd.f32 %v4128_v38, %v4242_v42 }
 0x14c   : > { %8461 = vst [vmem:[#allocation253_spill] sm:$0xff] %v4963_v62  ;;  %v783_v50 = vadd.f32 %v4131_v39, %v4245_v46  ;;  %2461 = vperm.xlu0 %3606, %v3938_v3   ;;  %v1232_v51 = vmul.f32 %v4133_v40, %v1030_v63  ;;  %v1233_v53 = vmul.f32 %v4135_v41, %v1030_v63 }
 0x14d   : > { %v1234_v52 = vmul.f32 %v4137_v49, %v1030_v63  ;;  %v1235_v45 = vmul.f32 %v4139_v37, %v1030_v63  ;;  %v1236_v20 = vmul.f32 %v4141_v36, %v1030_v63  ;;  %v1237_v4 = vmul.f32 %v4143_v56, %v1030_v63  ;;  %3607 = vset.pattern.permute.xlu1 %v3779_v19  ;;  %v1026_v19 = vpop.permute.xlu0 %1025 }
 0x14e   : > { %v1238_v42 = vmul.f32 %v4145_v31, %v1030_v63  ;;  %v1239_v15 = vmul.f32 %v8463_v26, %v1030_v63  ;;  %v4991_v46 = vadd.f32 %v1232_v51, %v776_v30  ;;  %v4993_v3 = vadd.f32 %v1233_v53, %v777_v23  ;;  %2453 = vperm.xlu1 %3607, %v3608_v61   ;;  %v3609_v63 = vld [vmem:[%s3927_s9 + $0x28] sm:$0xff]  ;;  %v8472_v30 = vld [vmem:[#allocation36_spill] sm:$0xff]  ;;  %v8474_v51 = vld [vmem:[#allocation38_spill] sm:$0xff] }
 0x14f   : > { %v4995_v62 = vadd.f32 %v1234_v52, %v778_v24  ;;  %v4997_v2 = vadd.f32 %v1235_v45, %v779_v13  ;;  %v5000_v60 = vadd.f32 %v1236_v20, %v780_v32  ;;  %v5002_v59 = vadd.f32 %v1237_v4, %v781_v22  ;;  %v8473_v24 = vld [vmem:[#allocation37_spill] sm:$0xff]  ;;  %v8475_v32 = vld [vmem:[#allocation39_spill] sm:$0xff]  ;;  %v8478_v45 = vld [vmem:[#allocation42_spill] sm:$0xff] }
 0x150   : > { %8464 = vst [vmem:[#allocation14_spill] sm:$0xff] %v4991_v46  ;;  %8465 = vst [vmem:[#allocation27_spill] sm:$0xff] %v4993_v3  ;;  %v5004_v58 = vadd.f32 %v1238_v42, %v782_v21  ;;  %v5006_v55 = vadd.f32 %v1239_v15, %v783_v50  ;;  %2469 = vperm.xlu0 %3606, %v3609_v63   ;;  %v768_v23 = vadd.f32 %v4109_v0, %v8472_v30  ;;  %v8476_v21 = vld [vmem:[#allocation40_spill] sm:$0xff]  ;;  %v8477_v53 = vld [vmem:[#allocation41_spill] sm:$0xff] }
 0x151   : > { %8466 = vst [vmem:[#allocation254_spill] sm:$0xff] %v4995_v62  ;;  %8467 = vst [vmem:[#allocation255_spill] sm:$0xff] %v4997_v2  ;;  %v769_v13 = vadd.f32 %v4113_v25, %v8473_v24  ;;  %v770_v61 = vadd.f32 %v4116_v29, %v8474_v51  ;;  %v771_v22 = vadd.f32 %v4119_v48, %v8475_v32  ;;  %v8479_v4 = vld [vmem:[#allocation43_spill] sm:$0xff]  ;;  %v3610_v51 = vld [vmem:[%s3927_s9 + $0x10] sm:$0xff] }
 0x152   : > { %8468 = vst [vmem:[#allocation256_spill] sm:$0xff] %v5000_v60  ;;  %8469 = vst [vmem:[#allocation257_spill] sm:$0xff] %v5002_v59  ;;  %v772_v50 = vadd.f32 %v8441_v16, %v8476_v21  ;;  %v773_v52 = vadd.f32 %v4125_v35, %v8477_v53  ;;  %v774_v20 = vadd.f32 %v4128_v38, %v8478_v45  ;;  %2457 = vperm.xlu1 %3607, %v3610_v51   ;;  %v8486_v62 = vld [vmem:[#allocation28_spill] sm:$0xff] }
 0x153   : > { %8470 = vst [vmem:[#allocation258_spill] sm:$0xff] %v5004_v58  ;;  %8471 = vst [vmem:[#allocation259_spill] sm:$0xff] %v5006_v55  ;;  %v775_v42 = vadd.f32 %v4131_v39, %v8479_v4  ;;  %v1224_v15 = vmul.f32 %v4133_v40, %v1026_v19  ;;  %v1225_v63 = vmul.f32 %v4135_v41, %v1026_v19  ;;  %v3611_v4 = vld [vmem:[%s3927_s9 + $0x38] sm:$0xff] }
 0x154   : > { %v1226_v30 = vmul.f32 %v4137_v49, %v1026_v19  ;;  %v1227_v24 = vmul.f32 %v4139_v37, %v1026_v19  ;;  %v1228_v32 = vmul.f32 %v4141_v36, %v1026_v19  ;;  %v1229_v21 = vmul.f32 %v4143_v56, %v1026_v19  ;;  %2477 = vperm.xlu0 %3606, %v3611_v4  }
 0x155   : > { %v1230_v53 = vmul.f32 %v4145_v31, %v1026_v19  ;;  %v1231_v45 = vmul.f32 %v8463_v26, %v1026_v19  ;;  %v5035_v54 = vadd.f32 %v1224_v15, %v768_v23  ;;  %v5037_v28 = vadd.f32 %v1225_v63, %v769_v13  ;;  %v1034_v19 = vpop.permute.xlu1 %1033  ;;  %v8487_v15 = vld [vmem:[#allocation29_spill] sm:$0xff]  ;;  %v8489_v63 = vld [vmem:[#allocation31_spill] sm:$0xff] }
 0x156   : > { %v5039_v55 = vadd.f32 %v1226_v30, %v770_v61  ;;  %v5041_v58 = vadd.f32 %v1227_v24, %v771_v22  ;;  %v5043_v51 = vadd.f32 %v1228_v32, %v772_v50  ;;  %v5045_v59 = vadd.f32 %v1229_v21, %v773_v52  ;;  %v8488_v61 = vld [vmem:[#allocation30_spill] sm:$0xff]  ;;  %v8490_v52 = vld [vmem:[#allocation32_spill] sm:$0xff]  ;;  %v8493_v21 = vld [vmem:[#allocation35_spill] sm:$0xff] }
 0x157   : > { %v5047_v60 = vadd.f32 %v1230_v53, %v774_v20  ;;  %v5049_v2 = vadd.f32 %v1231_v45, %v775_v42  ;;  %v784_v23 = vadd.f32 %v4109_v0, %v8486_v62  ;;  %v785_v13 = vadd.f32 %v4113_v25, %v8487_v15  ;;  %v3612_v30 = vld [vmem:[%s3927_s9 + $0x20] sm:$0xff]  ;;  %v8491_v42 = vld [vmem:[#allocation33_spill] sm:$0xff]  ;;  %v3613_v45 = vld [vmem:[%s3927_s9 + $0x48] sm:$0xff] }
 0x158   : > { %8480 = vst [vmem:[#allocation36_spill] sm:$0xff] %v5039_v55  ;;  %8481 = vst [vmem:[#allocation37_spill] sm:$0xff] %v5041_v58  ;;  %v786_v22 = vadd.f32 %v4116_v29, %v8488_v61  ;;  %v787_v50 = vadd.f32 %v4119_v48, %v8489_v63  ;;  %2465 = vperm.xlu1 %3607, %v3612_v30   ;;  %v788_v20 = vadd.f32 %v8441_v16, %v8490_v52  ;;  %v8492_v32 = vld [vmem:[#allocation34_spill] sm:$0xff]  ;;  %v8518_v55 = vld [vmem:[#allocation60_spill] sm:$0xff] }
 0x159   : > { %8482 = vst [vmem:[#allocation38_spill] sm:$0xff] %v5043_v51  ;;  %8483 = vst [vmem:[#allocation39_spill] sm:$0xff] %v5045_v59  ;;  %v789_v24 = vadd.f32 %v4125_v35, %v8491_v42  ;;  %v790_v62 = vadd.f32 %v4128_v38, %v8492_v32  ;;  %v791_v53 = vadd.f32 %v4131_v39, %v8493_v21  ;;  %2485 = vperm.xlu0 %3606, %v3613_v45  }
 0x15a   : > { %8484 = vst [vmem:[#allocation40_spill] sm:$0xff] %v5047_v60  ;;  %8485 = vst [vmem:[#allocation41_spill] sm:$0xff] %v5049_v2  ;;  %v1240_v4 = vmul.f32 %v4133_v40, %v1034_v19  ;;  %v1241_v15 = vmul.f32 %v4135_v41, %v1034_v19  ;;  %v1242_v61 = vmul.f32 %v4137_v49, %v1034_v19  ;;  %v3614_v2 = vld [vmem:[%s3927_s9 + $0x30] sm:$0xff] }
 0x15b   : > { %v1243_v63 = vmul.f32 %v4139_v37, %v1034_v19  ;;  %v1244_v30 = vmul.f32 %v4141_v36, %v1034_v19  ;;  %v1245_v52 = vmul.f32 %v4143_v56, %v1034_v19  ;;  %v1246_v42 = vmul.f32 %v4145_v31, %v1034_v19 }
 0x15c   : > { %v1247_v32 = vmul.f32 %v8463_v26, %v1034_v19  ;;  %v5077_v21 = vadd.f32 %v1240_v4, %v784_v23  ;;  %v5079_v45 = vadd.f32 %v1241_v15, %v785_v13  ;;  %v5081_v3 = vadd.f32 %v1242_v61, %v786_v22  ;;  %2473 = vperm.xlu1 %3607, %v3614_v2   ;;  %v1038_v19 = vpop.permute.xlu0 %1037  ;;  %v3615_v23 = vld [vmem:[%s3927_s9 + $0x58] sm:$0xff]  ;;  %v8502_v13 = vld [vmem:[#allocation44_spill] sm:$0xff]  ;;  %v8504_v15 = vld [vmem:[#allocation46_spill] sm:$0xff] }
 0x15d   : > { %v5083_v46 = vadd.f32 %v1243_v63, %v787_v50  ;;  %v5086_v60 = vadd.f32 %v1244_v30, %v788_v20  ;;  %v5088_v59 = vadd.f32 %v1245_v52, %v789_v24  ;;  %v5090_v51 = vadd.f32 %v1246_v42, %v790_v62  ;;  %2493 = vperm.xlu0 %3606, %v3615_v23   ;;  %v8503_v4 = vld [vmem:[#allocation45_spill] sm:$0xff]  ;;  %v8505_v20 = vld [vmem:[#allocation47_spill] sm:$0xff]  ;;  %v8506_v62 = vld [vmem:[#allocation48_spill] sm:$0xff] }
 0x15e   : > { %8494 = vst [vmem:[#allocation42_spill] sm:$0xff] %v5077_v21  ;;  %8495 = vst [vmem:[#allocation43_spill] sm:$0xff] %v5079_v45  ;;  %v5092_v58 = vadd.f32 %v1247_v32, %v791_v53  ;;  %v792_v22 = vadd.f32 %v4109_v0, %v8502_v13  ;;  %v793_v50 = vadd.f32 %v4113_v25, %v8503_v4  ;;  %v8507_v61 = vld [vmem:[#allocation49_spill] sm:$0xff]  ;;  %v8508_v30 = vld [vmem:[#allocation50_spill] sm:$0xff] }
 0x15f   : > { %8496 = vst [vmem:[#allocation28_spill] sm:$0xff] %v5081_v3  ;;  %8497 = vst [vmem:[#allocation29_spill] sm:$0xff] %v5083_v46  ;;  %v794_v2 = vadd.f32 %v4116_v29, %v8504_v15  ;;  %v795_v24 = vadd.f32 %v4119_v48, %v8505_v20  ;;  %v796_v53 = vadd.f32 %v8441_v16, %v8506_v62  ;;  %v8509_v42 = vld [vmem:[#allocation51_spill] sm:$0xff]  ;;  %v3616_v20 = vld [vmem:[%s3927_s9 + $0x40] sm:$0xff] }
 0x160   : > { %8498 = vst [vmem:[#allocation30_spill] sm:$0xff] %v5086_v60  ;;  %8499 = vst [vmem:[#allocation31_spill] sm:$0xff] %v5088_v59  ;;  %v797_v63 = vadd.f32 %v4125_v35, %v8507_v61  ;;  %v798_v52 = vadd.f32 %v4128_v38, %v8508_v30  ;;  %v799_v32 = vadd.f32 %v4131_v39, %v8509_v42  ;;  %2481 = vperm.xlu1 %3607, %v3616_v20   ;;  %v3617_v42 = vld [vmem:[%s3927_s9 + $0x68] sm:$0xff] }
 0x161   : > { %8500 = vst [vmem:[#allocation32_spill] sm:$0xff] %v5090_v51  ;;  %8501 = vst [vmem:[#allocation33_spill] sm:$0xff] %v5092_v58  ;;  %v1248_v23 = vmul.f32 %v4133_v40, %v1038_v19  ;;  %v1249_v13 = vmul.f32 %v4135_v41, %v1038_v19  ;;  %v1250_v4 = vmul.f32 %v4137_v49, %v1038_v19  ;;  %2501 = vperm.xlu0 %3606, %v3617_v42  }
 0x162   : > { %v1251_v15 = vmul.f32 %v4139_v37, %v1038_v19  ;;  %v1252_v62 = vmul.f32 %v4141_v36, %v1038_v19  ;;  %v1253_v61 = vmul.f32 %v4143_v56, %v1038_v19  ;;  %v1254_v58 = vmul.f32 %v4145_v31, %v1038_v19 }
 0x163   : > { %v1255_v30 = vmul.f32 %v8463_v26, %v1038_v19  ;;  %v5121_v51 = vadd.f32 %v1248_v23, %v792_v22  ;;  %v5123_v59 = vadd.f32 %v1249_v13, %v793_v50  ;;  %v5125_v60 = vadd.f32 %v1250_v4, %v794_v2  ;;  %v1042_v19 = vpop.permute.xlu1 %1041  ;;  %v8519_v23 = vld [vmem:[#allocation61_spill] sm:$0xff]  ;;  %v3618_v13 = vld [vmem:[%s3927_s9 + $0x50] sm:$0xff] }
 0x164   : > { %v5127_v46 = vadd.f32 %v1251_v15, %v795_v24  ;;  %v5129_v20 = vadd.f32 %v1252_v62, %v796_v53  ;;  %v5131_v3 = vadd.f32 %v1253_v61, %v797_v63  ;;  %v5133_v45 = vadd.f32 %v1254_v58, %v798_v52  ;;  %v8520_v24 = vld [vmem:[#allocation62_spill] sm:$0xff]  ;;  %2489 = vperm.xlu1 %3607, %v3618_v13   ;;  %v8521_v63 = vld [vmem:[#allocation63_spill] sm:$0xff]  ;;  %v8522_v52 = vld [vmem:[#allocation64_spill] sm:$0xff] }
 0x165   : > { %8510 = vst [vmem:[#allocation34_spill] sm:$0xff] %v5121_v51  ;;  %8511 = vst [vmem:[#allocation35_spill] sm:$0xff] %v5123_v59  ;;  %v5135_v21 = vadd.f32 %v1255_v30, %v799_v32  ;;  %v800_v22 = vadd.f32 %v4109_v0, %v8518_v55  ;;  %v801_v50 = vadd.f32 %v4113_v25, %v8519_v23  ;;  %v8523_v4 = vld [vmem:[#allocation65_spill] sm:$0xff]  ;;  %v8524_v15 = vld [vmem:[#allocation66_spill] sm:$0xff] }
 0x166   : > { %8512 = vst [vmem:[#allocation44_spill] sm:$0xff] %v5125_v60  ;;  %8513 = vst [vmem:[#allocation45_spill] sm:$0xff] %v5127_v46  ;;  %v802_v2 = vadd.f32 %v4116_v29, %v4280_v57  ;;  %v803_v53 = vadd.f32 %v4119_v48, %v8520_v24  ;;  %v804_v58 = vadd.f32 %v8441_v16, %v8521_v63  ;;  %v3619_v61 = vld [vmem:[%s3927_s9 + $0x78] sm:$0xff] }
 0x167   : > { %8514 = vst [vmem:[#allocation46_spill] sm:$0xff] %v5129_v20  ;;  %8515 = vst [vmem:[#allocation47_spill] sm:$0xff] %v5131_v3  ;;  %v805_v32 = vadd.f32 %v4125_v35, %v8522_v52  ;;  %v806_v55 = vadd.f32 %v4128_v38, %v8523_v4  ;;  %v807_v62 = vadd.f32 %v4131_v39, %v8524_v15  ;;  %2509 = vperm.xlu0 %3606, %v3619_v61  }
 0x168   : > { %8516 = vst [vmem:[#allocation48_spill] sm:$0xff] %v5133_v45  ;;  %8517 = vst [vmem:[#allocation49_spill] sm:$0xff] %v5135_v21  ;;  %v1256_v57 = vmul.f32 %v4133_v40, %v1042_v19  ;;  %v1257_v30 = vmul.f32 %v4135_v41, %v1042_v19  ;;  %v1258_v42 = vmul.f32 %v4137_v49, %v1042_v19  ;;  %v3620_v45 = vld [vmem:[%s3927_s9 + $0x60] sm:$0xff] }
 0x169   : > { %v1259_v23 = vmul.f32 %v4139_v37, %v1042_v19  ;;  %v1260_v24 = vmul.f32 %v4141_v36, %v1042_v19  ;;  %v1261_v13 = vmul.f32 %v4143_v56, %v1042_v19  ;;  %v1262_v63 = vmul.f32 %v4145_v31, %v1042_v19  ;;  %2497 = vperm.xlu1 %3607, %v3620_v45  }
 0x16a   : > { %v1263_v52 = vmul.f32 %v8463_v26, %v1042_v19  ;;  %v5163_v4 = vadd.f32 %v1256_v57, %v800_v22  ;;  %v5165_v15 = vadd.f32 %v1257_v30, %v801_v50  ;;  %v5167_v61 = vadd.f32 %v1258_v42, %v802_v2  ;;  %v1046_v19 = vpop.permute.xlu0 %1045  ;;  %v3621_v22 = vld [vmem:[%s3927_s9 + $0x88] sm:$0xff]  ;;  %v8532_v50 = vld [vmem:[#allocation52_spill] sm:$0xff]  ;;  %v8533_v57 = vld [vmem:[#allocation53_spill] sm:$0xff] }
 0x16b   : > { %v5169_v21 = vadd.f32 %v1259_v23, %v803_v53  ;;  %v5172_v3 = vadd.f32 %v1260_v24, %v804_v58  ;;  %v5174_v20 = vadd.f32 %v1261_v13, %v805_v32  ;;  %v5176_v46 = vadd.f32 %v1262_v63, %v806_v55  ;;  %2517 = vperm.xlu0 %3606, %v3621_v22   ;;  %v8534_v30 = vld [vmem:[#allocation54_spill] sm:$0xff]  ;;  %v8535_v58 = vld [vmem:[#allocation55_spill] sm:$0xff]  ;;  %v8536_v55 = vld [vmem:[#allocation56_spill] sm:$0xff] }
 0x16c   : > { %8525 = vst [vmem:[#allocation50_spill] sm:$0xff] %v5165_v15  ;;  %8526 = vst [vmem:[#allocation51_spill] sm:$0xff] %v5167_v61  ;;  %v5178_v60 = vadd.f32 %v1263_v52, %v807_v62  ;;  %v808_v2 = vadd.f32 %v4109_v0, %v8532_v50  ;;  %v809_v53 = vadd.f32 %v4113_v25, %v8533_v57  ;;  %v8537_v42 = vld [vmem:[#allocation57_spill] sm:$0xff]  ;;  %v8538_v24 = vld [vmem:[#allocation58_spill] sm:$0xff] }
 0x16d   : > { %8527 = vst [vmem:[#allocation60_spill] sm:$0xff] %v5169_v21  ;;  %8528 = vst [vmem:[#allocation61_spill] sm:$0xff] %v5172_v3  ;;  %v810_v45 = vadd.f32 %v4116_v29, %v8534_v30  ;;  %v811_v32 = vadd.f32 %v4119_v48, %v8535_v58  ;;  %v812_v62 = vadd.f32 %v8441_v16, %v8536_v55  ;;  %v8539_v63 = vld [vmem:[#allocation59_spill] sm:$0xff]  ;;  %v3622_v58 = vld [vmem:[%s3927_s9 + $0x70] sm:$0xff] }
 0x16e   : > { %8529 = vst [vmem:[#allocation62_spill] sm:$0xff] %v5174_v20  ;;  %8530 = vst [vmem:[#allocation63_spill] sm:$0xff] %v5176_v46  ;;  %v813_v23 = vadd.f32 %v4125_v35, %v8537_v42  ;;  %v814_v13 = vadd.f32 %v4128_v38, %v8538_v24  ;;  %v815_v52 = vadd.f32 %v4131_v39, %v8539_v63  ;;  %2505 = vperm.xlu1 %3607, %v3622_v58   ;;  %v3623_v63 = vld [vmem:[%s3927_s9 + $0x98] sm:$0xff]  ;;  %v8548_v15 = vld [vmem:[#allocation75_spill] sm:$0xff] }
 0x16f   : > { %8531 = vst [vmem:[#allocation64_spill] sm:$0xff] %v5178_v60  ;;  %v1264_v22 = vmul.f32 %v4133_v40, %v1046_v19  ;;  %v1265_v50 = vmul.f32 %v4135_v41, %v1046_v19  ;;  %v1266_v57 = vmul.f32 %v4137_v49, %v1046_v19  ;;  %v1267_v30 = vmul.f32 %v4139_v37, %v1046_v19 }
 0x170   : > { %v1268_v55 = vmul.f32 %v4141_v36, %v1046_v19  ;;  %v1269_v42 = vmul.f32 %v4143_v56, %v1046_v19  ;;  %v1270_v59 = vmul.f32 %v4145_v31, %v1046_v19  ;;  %v1271_v24 = vmul.f32 %v8463_v26, %v1046_v19  ;;  %2525 = vperm.xlu0 %3606, %v3623_v63   ;;  %v1050_v19 = vpop.permute.xlu1 %1049 }
 0x171   : > { %v5207_v51 = vadd.f32 %v1264_v22, %v808_v2  ;;  %v5209_v60 = vadd.f32 %v1265_v50, %v809_v53  ;;  %v5211_v46 = vadd.f32 %v1266_v57, %v810_v45  ;;  %v5213_v20 = vadd.f32 %v1267_v30, %v811_v32  ;;  %v8549_v22 = vld [vmem:[#allocation76_spill] sm:$0xff]  ;;  %v8550_v32 = vld [vmem:[#allocation77_spill] sm:$0xff]  ;;  %v3624_v50 = vld [vmem:[%s3927_s9 + $0x80] sm:$0xff] }
 0x172   : > { %v5215_v58 = vadd.f32 %v1268_v55, %v812_v62  ;;  %v5217_v3 = vadd.f32 %v1269_v42, %v813_v23  ;;  %v5219_v21 = vadd.f32 %v1270_v59, %v814_v13  ;;  %v5221_v61 = vadd.f32 %v1271_v24, %v815_v52  ;;  %2513 = vperm.xlu1 %3607, %v3624_v50   ;;  %v8551_v23 = vld [vmem:[#allocation78_spill] sm:$0xff]  ;;  %v8552_v13 = vld [vmem:[#allocation79_spill] sm:$0xff]  ;;  %v8553_v57 = vld [vmem:[#allocation80_spill] sm:$0xff] }
 0x173   : > { %8540 = vst [vmem:[#allocation65_spill] sm:$0xff] %v5207_v51  ;;  %8541 = vst [vmem:[#allocation66_spill] sm:$0xff] %v5209_v60  ;;  %v816_v2 = vadd.f32 %v4109_v0, %v8548_v15  ;;  %v817_v53 = vadd.f32 %v4113_v25, %v8549_v22  ;;  %v818_v45 = vadd.f32 %v4116_v29, %v4330_v27  ;;  %v3625_v55 = vld [vmem:[%s3927_s9 + $0xa8] sm:$0xff] }
 0x174   : > { %8542 = vst [vmem:[#allocation52_spill] sm:$0xff] %v5211_v46  ;;  %8543 = vst [vmem:[#allocation53_spill] sm:$0xff] %v5213_v20  ;;  %v819_v62 = vadd.f32 %v4119_v48, %v8550_v32  ;;  %v820_v59 = vadd.f32 %v8441_v16, %v8551_v23  ;;  %v821_v52 = vadd.f32 %v4125_v35, %v8552_v13  ;;  %2533 = vperm.xlu0 %3606, %v3625_v55  }
 0x175   : > { %8544 = vst [vmem:[#allocation54_spill] sm:$0xff] %v5215_v58  ;;  %8545 = vst [vmem:[#allocation55_spill] sm:$0xff] %v5217_v3  ;;  %v822_v15 = vadd.f32 %v4128_v38, %v8553_v57  ;;  %v823_v30 = vadd.f32 %v4131_v39, %v4345_v34  ;;  %v1272_v27 = vmul.f32 %v4133_v40, %v1050_v19 }
 0x176   : > { %8546 = vst [vmem:[#allocation56_spill] sm:$0xff] %v5219_v21  ;;  %8547 = vst [vmem:[#allocation57_spill] sm:$0xff] %v5221_v61  ;;  %v1273_v42 = vmul.f32 %v4135_v41, %v1050_v19  ;;  %v1274_v24 = vmul.f32 %v4137_v49, %v1050_v19  ;;  %v1275_v63 = vmul.f32 %v4139_v37, %v1050_v19  ;;  %v3626_v61 = vld [vmem:[%s3927_s9 + $0x90] sm:$0xff] }
 0x177   : > { %v1276_v22 = vmul.f32 %v4141_v36, %v1050_v19  ;;  %v1277_v32 = vmul.f32 %v4143_v56, %v1050_v19  ;;  %v1278_v50 = vmul.f32 %v4145_v31, %v1050_v19  ;;  %v1279_v23 = vmul.f32 %v8463_v26, %v1050_v19  ;;  %2521 = vperm.xlu1 %3607, %v3626_v61   ;;  %v1054_v19 = vpop.permute.xlu0 %1053 }
 0x178   : > { %v5249_v34 = vadd.f32 %v1272_v27, %v816_v2  ;;  %v5251_v13 = vadd.f32 %v1273_v42, %v817_v53  ;;  %v5253_v57 = vadd.f32 %v1274_v24, %v818_v45  ;;  %v5255_v55 = vadd.f32 %v1275_v63, %v819_v62  ;;  %v3627_v2 = vld [vmem:[%s3927_s9 + $0xb8] sm:$0xff]  ;;  %v8560_v53 = vld [vmem:[#allocation67_spill] sm:$0xff]  ;;  %v8561_v27 = vld [vmem:[#allocation68_spill] sm:$0xff] }
 0x179   : > { %v5258_v21 = vadd.f32 %v1276_v22, %v820_v59  ;;  %v5260_v3 = vadd.f32 %v1277_v32, %v821_v52  ;;  %v5262_v58 = vadd.f32 %v1278_v50, %v822_v15  ;;  %v5264_v20 = vadd.f32 %v1279_v23, %v823_v30  ;;  %2541 = vperm.xlu0 %3606, %v3627_v2   ;;  %v8562_v42 = vld [vmem:[#allocation69_spill] sm:$0xff]  ;;  %v8563_v59 = vld [vmem:[#allocation70_spill] sm:$0xff]  ;;  %v8564_v15 = vld [vmem:[#allocation71_spill] sm:$0xff] }
 0x17a   : > { %8554 = vst [vmem:[#allocation58_spill] sm:$0xff] %v5253_v57  ;;  %8555 = vst [vmem:[#allocation59_spill] sm:$0xff] %v5255_v55  ;;  %v824_v45 = vadd.f32 %v4109_v0, %v8560_v53  ;;  %v825_v62 = vadd.f32 %v4113_v25, %v8561_v27  ;;  %v826_v61 = vadd.f32 %v4116_v29, %v8562_v42  ;;  %v8565_v24 = vld [vmem:[#allocation72_spill] sm:$0xff]  ;;  %v8566_v22 = vld [vmem:[#allocation73_spill] sm:$0xff] }
 0x17b   : > { %8556 = vst [vmem:[#allocation75_spill] sm:$0xff] %v5258_v21  ;;  %8557 = vst [vmem:[#allocation76_spill] sm:$0xff] %v5260_v3  ;;  %v827_v52 = vadd.f32 %v4119_v48, %v8563_v59  ;;  %v828_v30 = vadd.f32 %v8441_v16, %v8564_v15  ;;  %v829_v63 = vadd.f32 %v4125_v35, %v8565_v24  ;;  %v8567_v50 = vld [vmem:[#allocation74_spill] sm:$0xff]  ;;  %v8576_v57 = vld [vmem:[#allocation89_spill] sm:$0xff] }
 0x17c   : > { %8558 = vst [vmem:[#allocation77_spill] sm:$0xff] %v5262_v58  ;;  %8559 = vst [vmem:[#allocation78_spill] sm:$0xff] %v5264_v20  ;;  %v830_v32 = vadd.f32 %v4128_v38, %v8566_v22  ;;  %v831_v23 = vadd.f32 %v4131_v39, %v8567_v50  ;;  %v1280_v2 = vmul.f32 %v4133_v40, %v1054_v19  ;;  %v3628_v59 = vld [vmem:[%s3927_s9 + $0xa0] sm:$0xff]  ;;  %v3629_v50 = vld [vmem:[%s3927_s9 + $0xc8] sm:$0xff] }
 0x17d   : > { %v1281_v53 = vmul.f32 %v4135_v41, %v1054_v19  ;;  %v1282_v27 = vmul.f32 %v4137_v49, %v1054_v19  ;;  %v1283_v42 = vmul.f32 %v4139_v37, %v1054_v19  ;;  %2529 = vperm.xlu1 %3607, %v3628_v59   ;;  %v1284_v15 = vmul.f32 %v4141_v36, %v1054_v19 }
 0x17e   : > { %v1285_v24 = vmul.f32 %v4143_v56, %v1054_v19  ;;  %v1286_v46 = vmul.f32 %v4145_v31, %v1054_v19  ;;  %v1287_v22 = vmul.f32 %v8463_v26, %v1054_v19  ;;  %2549 = vperm.xlu0 %3606, %v3629_v50   ;;  %v5293_v60 = vadd.f32 %v1280_v2, %v824_v45  ;;  %v1058_v19 = vpop.permute.xlu1 %1057  ;;  %v8577_v2 = vld [vmem:[#allocation90_spill] sm:$0xff] }
 0x17f   : > { %v5295_v51 = vadd.f32 %v1281_v53, %v825_v62  ;;  %v5297_v20 = vadd.f32 %v1282_v27, %v826_v61  ;;  %v5299_v58 = vadd.f32 %v1283_v42, %v827_v52  ;;  %v5301_v59 = vadd.f32 %v1284_v15, %v828_v30  ;;  %v8578_v52 = vld [vmem:[#allocation91_spill] sm:$0xff]  ;;  %v3630_v53 = vld [vmem:[%s3927_s9 + $0xb0] sm:$0xff]  ;;  %v8581_v27 = vld [vmem:[#allocation94_spill] sm:$0xff] }
 0x180   : > { %8568 = vst [vmem:[#allocation79_spill] sm:$0xff] %v5293_v60  ;;  %v5303_v3 = vadd.f32 %v1285_v24, %v829_v63  ;;  %v5305_v21 = vadd.f32 %v1286_v46, %v830_v32  ;;  %v5307_v55 = vadd.f32 %v1287_v22, %v831_v23  ;;  %v832_v45 = vadd.f32 %v4109_v0, %v8576_v57  ;;  %v8579_v63 = vld [vmem:[#allocation92_spill] sm:$0xff]  ;;  %v8580_v32 = vld [vmem:[#allocation93_spill] sm:$0xff] }
 0x181   : > { %8569 = vst [vmem:[#allocation80_spill] sm:$0xff] %v5295_v51  ;;  %8570 = vst [vmem:[#allocation67_spill] sm:$0xff] %v5297_v20  ;;  %v833_v62 = vadd.f32 %v4113_v25, %v8577_v2  ;;  %v834_v61 = vadd.f32 %v4116_v29, %v4380_v47  ;;  %v835_v30 = vadd.f32 %v4119_v48, %v8578_v52  ;;  %2537 = vperm.xlu1 %3607, %v3630_v53   ;;  %v3631_v15 = vld [vmem:[%s3927_s9 + $0xd8] sm:$0xff] }
 0x182   : > { %8571 = vst [vmem:[#allocation68_spill] sm:$0xff] %v5299_v58  ;;  %8572 = vst [vmem:[#allocation69_spill] sm:$0xff] %v5301_v59  ;;  %v836_v46 = vadd.f32 %v8441_v16, %v8579_v63  ;;  %v837_v23 = vadd.f32 %v4125_v35, %v8580_v32  ;;  %v838_v57 = vadd.f32 %v4128_v38, %v8581_v27  ;;  %2557 = vperm.xlu0 %3606, %v3631_v15  }
 0x183   : > { %8573 = vst [vmem:[#allocation70_spill] sm:$0xff] %v5303_v3  ;;  %8574 = vst [vmem:[#allocation71_spill] sm:$0xff] %v5305_v21  ;;  %v839_v42 = vadd.f32 %v4131_v39, %v4395_v44  ;;  %v1288_v47 = vmul.f32 %v4133_v40, %v1058_v19  ;;  %v1289_v24 = vmul.f32 %v4135_v41, %v1058_v19 }
 0x184   : > { %8575 = vst [vmem:[#allocation72_spill] sm:$0xff] %v5307_v55  ;;  %v1290_v22 = vmul.f32 %v4137_v49, %v1058_v19  ;;  %v1291_v50 = vmul.f32 %v4139_v37, %v1058_v19  ;;  %v1292_v2 = vmul.f32 %v4141_v36, %v1058_v19  ;;  %v1293_v52 = vmul.f32 %v4143_v56, %v1058_v19  ;;  %v3632_v55 = vld [vmem:[%s3927_s9 + $0xc0] sm:$0xff] }
 0x185   : > { %v1294_v53 = vmul.f32 %v4145_v31, %v1058_v19  ;;  %v1295_v63 = vmul.f32 %v8463_v26, %v1058_v19  ;;  %v5335_v44 = vadd.f32 %v1288_v47, %v832_v45  ;;  %v5337_v32 = vadd.f32 %v1289_v24, %v833_v62  ;;  %2545 = vperm.xlu1 %3607, %v3632_v55   ;;  %v1062_v19 = vpop.permute.xlu0 %1061  ;;  %v3633_v45 = vld [vmem:[%s3927_s9 + $0xe8] sm:$0xff]  ;;  %v8588_v62 = vld [vmem:[#allocation81_spill] sm:$0xff]  ;;  %v8589_v47 = vld [vmem:[#allocation82_spill] sm:$0xff] }
 0x186   : > { %v5339_v27 = vadd.f32 %v1290_v22, %v834_v61  ;;  %v5341_v15 = vadd.f32 %v1291_v50, %v835_v30  ;;  %v5344_v21 = vadd.f32 %v1292_v2, %v836_v46  ;;  %v5346_v3 = vadd.f32 %v1293_v52, %v837_v23  ;;  %2565 = vperm.xlu0 %3606, %v3633_v45   ;;  %v8590_v24 = vld [vmem:[#allocation83_spill] sm:$0xff]  ;;  %v8591_v46 = vld [vmem:[#allocation84_spill] sm:$0xff]  ;;  %v8593_v22 = vld [vmem:[#allocation86_spill] sm:$0xff] }
 0x187   : > { %v5348_v59 = vadd.f32 %v1294_v53, %v838_v57  ;;  %v5350_v58 = vadd.f32 %v1295_v63, %v839_v42  ;;  %v840_v61 = vadd.f32 %v4109_v0, %v8588_v62  ;;  %v841_v30 = vadd.f32 %v4113_v25, %v8589_v47  ;;  %v8592_v57 = vld [vmem:[#allocation85_spill] sm:$0xff]  ;;  %v8594_v2 = vld [vmem:[#allocation87_spill] sm:$0xff]  ;;  %v8595_v53 = vld [vmem:[#allocation88_spill] sm:$0xff] }
 0x188   : > { %8582 = vst [vmem:[#allocation73_spill] sm:$0xff] %v5339_v27  ;;  %8583 = vst [vmem:[#allocation74_spill] sm:$0xff] %v5341_v15  ;;  %v842_v55 = vadd.f32 %v4116_v29, %v8590_v24  ;;  %v843_v23 = vadd.f32 %v4119_v48, %v8591_v46  ;;  %v844_v42 = vadd.f32 %v8441_v16, %v8592_v57  ;;  %v3634_v46 = vld [vmem:[%s3927_s9 + $0xd0] sm:$0xff]  ;;  %v8604_v27 = vld [vmem:[#allocation103_spill] sm:$0xff] }
 0x189   : > { %8584 = vst [vmem:[#allocation89_spill] sm:$0xff] %v5344_v21  ;;  %8585 = vst [vmem:[#allocation90_spill] sm:$0xff] %v5346_v3  ;;  %v845_v50 = vadd.f32 %v4125_v35, %v8593_v22  ;;  %v846_v52 = vadd.f32 %v4128_v38, %v8594_v2  ;;  %v847_v63 = vadd.f32 %v4131_v39, %v8595_v53  ;;  %2553 = vperm.xlu1 %3607, %v3634_v46   ;;  %v3635_v53 = vld [vmem:[%s3927_s9 + $0xf8] sm:$0xff] }
 0x18a   : > { %8586 = vst [vmem:[#allocation91_spill] sm:$0xff] %v5348_v59  ;;  %8587 = vst [vmem:[#allocation92_spill] sm:$0xff] %v5350_v58  ;;  %v1296_v45 = vmul.f32 %v4133_v40, %v1062_v19  ;;  %v1297_v62 = vmul.f32 %v4135_v41, %v1062_v19  ;;  %v1298_v47 = vmul.f32 %v4137_v49, %v1062_v19  ;;  %2573 = vperm.xlu0 %3606, %v3635_v53  }
 0x18b   : > { %v1299_v24 = vmul.f32 %v4139_v37, %v1062_v19  ;;  %v1300_v57 = vmul.f32 %v4141_v36, %v1062_v19  ;;  %v1301_v22 = vmul.f32 %v4143_v56, %v1062_v19  ;;  %v1302_v20 = vmul.f32 %v4145_v31, %v1062_v19 }
 0x18c   : > { %v1303_v2 = vmul.f32 %v8463_v26, %v1062_v19  ;;  %v5379_v51 = vadd.f32 %v1296_v45, %v840_v61  ;;  %v5381_v60 = vadd.f32 %v1297_v62, %v841_v30  ;;  %v5383_v58 = vadd.f32 %v1298_v47, %v842_v55  ;;  %v1066_v19 = vpop.permute.xlu1 %1065  ;;  %v8605_v61 = vld [vmem:[#allocation104_spill] sm:$0xff]  ;;  %v3636_v45 = vld [vmem:[%s3927_s9 + $0xe0] sm:$0xff] }
 0x18d   : > { %v5385_v59 = vadd.f32 %v1299_v24, %v843_v23  ;;  %v5387_v46 = vadd.f32 %v1300_v57, %v844_v42  ;;  %v5389_v3 = vadd.f32 %v1301_v22, %v845_v50  ;;  %v5391_v21 = vadd.f32 %v1302_v20, %v846_v52  ;;  %v8606_v23 = vld [vmem:[#allocation105_spill] sm:$0xff]  ;;  %2561 = vperm.xlu1 %3607, %v3636_v45   ;;  %v8607_v50 = vld [vmem:[#allocation106_spill] sm:$0xff]  ;;  %v8608_v52 = vld [vmem:[#allocation107_spill] sm:$0xff] }
 0x18e   : > { %8596 = vst [vmem:[#allocation93_spill] sm:$0xff] %v5379_v51  ;;  %8597 = vst [vmem:[#allocation94_spill] sm:$0xff] %v5381_v60  ;;  %v5393_v15 = vadd.f32 %v1303_v2, %v847_v63  ;;  %v848_v53 = vadd.f32 %v4109_v0, %v8604_v27  ;;  %v849_v30 = vadd.f32 %v4113_v25, %v8605_v61  ;;  %v8609_v62 = vld [vmem:[#allocation108_spill] sm:$0xff] }
 0x18f   : > { %8598 = vst [vmem:[#allocation81_spill] sm:$0xff] %v5383_v58  ;;  %8599 = vst [vmem:[#allocation82_spill] sm:$0xff] %v5385_v59  ;;  %v850_v55 = vadd.f32 %v4116_v29, %v4430_v6  ;;  %v851_v42 = vadd.f32 %v4119_v48, %v8606_v23  ;;  %v852_v20 = vadd.f32 %v8441_v16, %v8607_v50  ;;  %v1070_v58 = vpop.permute.xlu0 %1069 }
 0x190   : > { %8600 = vst [vmem:[#allocation83_spill] sm:$0xff] %v5387_v46  ;;  %8601 = vst [vmem:[#allocation84_spill] sm:$0xff] %v5389_v3  ;;  %v853_v63 = vadd.f32 %v4125_v35, %v8608_v52  ;;  %v854_v27 = vadd.f32 %v4128_v38, %v8609_v62  ;;  %v855_v47 = vadd.f32 %v4131_v39, %v4445_v33 }
 0x191   : > { %8602 = vst [vmem:[#allocation85_spill] sm:$0xff] %v5391_v21  ;;  %8603 = vst [vmem:[#allocation86_spill] sm:$0xff] %v5393_v15  ;;  %v1304_v6 = vmul.f32 %v4133_v40, %v1066_v19  ;;  %v1305_v24 = vmul.f32 %v4135_v41, %v1066_v19  ;;  %v1306_v57 = vmul.f32 %v4137_v49, %v1066_v19  ;;  %v3637_v15 = vld [vmem:[%s3927_s9 + $0xf0] sm:$0xff] }
 0x192   : > { %v1307_v22 = vmul.f32 %v4139_v37, %v1066_v19  ;;  %v1308_v2 = vmul.f32 %v4141_v36, %v1066_v19  ;;  %v1309_v61 = vmul.f32 %v4143_v56, %v1066_v19  ;;  %v1310_v23 = vmul.f32 %v4145_v31, %v1066_v19  ;;  %2569 = vperm.xlu1 %3607, %v3637_v15  }
 0x193   : > { %v1311_v45 = vmul.f32 %v8463_v26, %v1066_v19  ;;  %v5420_v50 = vadd.f32 %v1304_v6, %v848_v53  ;;  %v5422_v52 = vadd.f32 %v1305_v24, %v849_v30  ;;  %v5424_v33 = vadd.f32 %v1306_v57, %v850_v55  ;;  %v8616_v19 = vld [vmem:[#allocation95_spill] sm:$0xff]  ;;  %v8617_v30 = vld [vmem:[#allocation96_spill] sm:$0xff]  ;;  %v8618_v6 = vld [vmem:[#allocation97_spill] sm:$0xff] }
 0x194   : > { %v5426_v62 = vadd.f32 %v1307_v22, %v851_v42  ;;  %v5429_v21 = vadd.f32 %v1308_v2, %v852_v20  ;;  %v5431_v3 = vadd.f32 %v1309_v61, %v853_v63  ;;  %v5433_v46 = vadd.f32 %v1310_v23, %v854_v27  ;;  %v8619_v24 = vld [vmem:[#allocation98_spill] sm:$0xff]  ;;  %v8620_v20 = vld [vmem:[#allocation99_spill] sm:$0xff]  ;;  %v8621_v27 = vld [vmem:[#allocation100_spill] sm:$0xff] }
 0x195   : > { %8610 = vst [vmem:[#allocation87_spill] sm:$0xff] %v5424_v33  ;;  %v5435_v59 = vadd.f32 %v1311_v45, %v855_v47  ;;  %v856_v53 = vadd.f32 %v4109_v0, %v8616_v19  ;;  %v857_v55 = vadd.f32 %v4113_v25, %v8617_v30  ;;  %v858_v42 = vadd.f32 %v4116_v29, %v8618_v6  ;;  %v8622_v57 = vld [vmem:[#allocation101_spill] sm:$0xff]  ;;  %v8623_v2 = vld [vmem:[#allocation102_spill] sm:$0xff] }
 0x196   : > { %8611 = vst [vmem:[#allocation88_spill] sm:$0xff] %v5426_v62  ;;  %8612 = vst [vmem:[#allocation103_spill] sm:$0xff] %v5429_v21  ;;  %v859_v15 = vadd.f32 %v4119_v48, %v8619_v24  ;;  %v860_v63 = vadd.f32 %v8441_v16, %v8620_v20  ;;  %v861_v47 = vadd.f32 %v4125_v35, %v8621_v27  ;;  %v1074_v62 = vpop.permute.xlu1 %1073  ;;  %v8632_v33 = vld [vmem:[#allocation117_spill] sm:$0xff] }
 0x197   : > { %8613 = vst [vmem:[#allocation104_spill] sm:$0xff] %v5431_v3  ;;  %8614 = vst [vmem:[#allocation105_spill] sm:$0xff] %v5433_v46  ;;  %v862_v22 = vadd.f32 %v4128_v38, %v8622_v57  ;;  %v863_v61 = vadd.f32 %v4131_v39, %v8623_v2  ;;  %v1312_v23 = vmul.f32 %v4133_v40, %v1070_v58 }
 0x198   : > { %8615 = vst [vmem:[#allocation106_spill] sm:$0xff] %v5435_v59  ;;  %v1313_v45 = vmul.f32 %v4135_v41, %v1070_v58  ;;  %v1314_v19 = vmul.f32 %v4137_v49, %v1070_v58  ;;  %v1315_v30 = vmul.f32 %v4139_v37, %v1070_v58  ;;  %v1316_v6 = vmul.f32 %v4141_v36, %v1070_v58 }
 0x199   : > { %v1317_v24 = vmul.f32 %v4143_v56, %v1070_v58  ;;  %v1318_v20 = vmul.f32 %v4145_v31, %v1070_v58  ;;  %v1319_v27 = vmul.f32 %v8463_v26, %v1070_v58  ;;  %v5461_v57 = vadd.f32 %v1312_v23, %v856_v53  ;;  %v8633_v53 = vld [vmem:[#allocation118_spill] sm:$0xff]  ;;  %v8635_v23 = vld [vmem:[#allocation120_spill] sm:$0xff] }
 0x19a   : > { %v5463_v60 = vadd.f32 %v1313_v45, %v857_v55  ;;  %v5465_v2 = vadd.f32 %v1314_v19, %v858_v42  ;;  %v5467_v51 = vadd.f32 %v1315_v30, %v859_v15  ;;  %v5469_v59 = vadd.f32 %v1316_v6, %v860_v63  ;;  %v8634_v15 = vld [vmem:[#allocation119_spill] sm:$0xff]  ;;  %v8637_v45 = vld [vmem:[#allocation122_spill] sm:$0xff] }
 0x19b   : > { %8624 = vst [vmem:[#allocation107_spill] sm:$0xff] %v5461_v57  ;;  %v5471_v46 = vadd.f32 %v1317_v24, %v861_v47  ;;  %v5473_v3 = vadd.f32 %v1318_v20, %v862_v22  ;;  %v5475_v21 = vadd.f32 %v1319_v27, %v863_v61  ;;  %v864_v58 = vadd.f32 %v4109_v0, %v8632_v33  ;;  %v8636_v22 = vld [vmem:[#allocation121_spill] sm:$0xff] }
 0x19c   : > { %8625 = vst [vmem:[#allocation108_spill] sm:$0xff] %v5463_v60  ;;  %8626 = vst [vmem:[#allocation95_spill] sm:$0xff] %v5465_v2  ;;  %v865_v55 = vadd.f32 %v4113_v25, %v8633_v53  ;;  %v866_v42 = vadd.f32 %v4116_v29, %v4480_v8  ;;  %v867_v63 = vadd.f32 %v4119_v48, %v8634_v15  ;;  %v8644_v2 = vld [vmem:[#allocation109_spill] sm:$0xff] }
 0x19d   : > { %8627 = vst [vmem:[#allocation96_spill] sm:$0xff] %v5467_v51  ;;  %8628 = vst [vmem:[#allocation97_spill] sm:$0xff] %v5469_v59  ;;  %v868_v47 = vadd.f32 %v8441_v16, %v8635_v23  ;;  %v869_v61 = vadd.f32 %v4125_v35, %v8636_v22  ;;  %v870_v19 = vadd.f32 %v4128_v38, %v8637_v45  ;;  %v1078_v51 = vpop.permute.xlu0 %1077 }
 0x19e   : > { %8629 = vst [vmem:[#allocation98_spill] sm:$0xff] %v5471_v46  ;;  %8630 = vst [vmem:[#allocation99_spill] sm:$0xff] %v5473_v3  ;;  %v871_v33 = vadd.f32 %v4131_v39, %v4495_v1  ;;  %v1320_v30 = vmul.f32 %v4133_v40, %v1074_v62  ;;  %v1321_v6 = vmul.f32 %v4135_v41, %v1074_v62 }
 0x19f   : > { %8631 = vst [vmem:[#allocation100_spill] sm:$0xff] %v5475_v21  ;;  %v1322_v8 = vmul.f32 %v4137_v49, %v1074_v62  ;;  %v1323_v24 = vmul.f32 %v4139_v37, %v1074_v62  ;;  %v1324_v20 = vmul.f32 %v4141_v36, %v1074_v62  ;;  %v1325_v27 = vmul.f32 %v4143_v56, %v1074_v62 }
 0x1a0   : > { %v1326_v53 = vmul.f32 %v4145_v31, %v1074_v62  ;;  %v1327_v15 = vmul.f32 %v8463_v26, %v1074_v62  ;;  %v5501_v23 = vadd.f32 %v1320_v30, %v864_v58  ;;  %v5503_v22 = vadd.f32 %v1321_v6, %v865_v55  ;;  %v8645_v58 = vld [vmem:[#allocation110_spill] sm:$0xff]  ;;  %v8646_v30 = vld [vmem:[#allocation111_spill] sm:$0xff]  ;;  %v8648_v6 = vld [vmem:[#allocation113_spill] sm:$0xff] }
 0x1a1   : > { %v5505_v1 = vadd.f32 %v1322_v8, %v866_v42  ;;  %v5507_v45 = vadd.f32 %v1323_v24, %v867_v63  ;;  %v5509_v21 = vadd.f32 %v1324_v20, %v868_v47  ;;  %v5511_v3 = vadd.f32 %v1325_v27, %v869_v61  ;;  %v8647_v63 = vld [vmem:[#allocation112_spill] sm:$0xff]  ;;  %v8650_v8 = vld [vmem:[#allocation115_spill] sm:$0xff] }
 0x1a2   : > { %v5513_v46 = vadd.f32 %v1326_v53, %v870_v19  ;;  %v5515_v59 = vadd.f32 %v1327_v15, %v871_v33  ;;  %v872_v62 = vadd.f32 %v4109_v0, %v8644_v2  ;;  %v873_v55 = vadd.f32 %v4113_v25, %v8645_v58  ;;  %v8649_v19 = vld [vmem:[#allocation114_spill] sm:$0xff]  ;;  %v8651_v20 = vld [vmem:[#allocation116_spill] sm:$0xff] }
 0x1a3   : > { %8638 = vst [vmem:[#allocation101_spill] sm:$0xff] %v5505_v1  ;;  %8639 = vst [vmem:[#allocation102_spill] sm:$0xff] %v5507_v45  ;;  %v874_v42 = vadd.f32 %v4116_v29, %v8646_v30  ;;  %v875_v47 = vadd.f32 %v4119_v48, %v8647_v63  ;;  %v876_v61 = vadd.f32 %v8441_v16, %v8648_v6  ;;  %v1082_v45 = vpop.permute.xlu1 %1081  ;;  %v8660_v1 = vld [vmem:[#allocation131_spill] sm:$0xff] }
 0x1a4   : > { %8640 = vst [vmem:[#allocation117_spill] sm:$0xff] %v5509_v21  ;;  %8641 = vst [vmem:[#allocation118_spill] sm:$0xff] %v5511_v3  ;;  %v877_v33 = vadd.f32 %v4125_v35, %v8649_v19  ;;  %v878_v24 = vadd.f32 %v4128_v38, %v8650_v8  ;;  %v879_v2 = vadd.f32 %v4131_v39, %v8651_v20 }
 0x1a5   : > { %8642 = vst [vmem:[#allocation119_spill] sm:$0xff] %v5513_v46  ;;  %8643 = vst [vmem:[#allocation120_spill] sm:$0xff] %v5515_v59  ;;  %v1328_v27 = vmul.f32 %v4133_v40, %v1078_v51  ;;  %v1329_v53 = vmul.f32 %v4135_v41, %v1078_v51  ;;  %v1330_v15 = vmul.f32 %v4137_v49, %v1078_v51 }
 0x1a6   : > { %v1331_v58 = vmul.f32 %v4139_v37, %v1078_v51  ;;  %v1332_v30 = vmul.f32 %v4141_v36, %v1078_v51  ;;  %v1333_v63 = vmul.f32 %v4143_v56, %v1078_v51  ;;  %v1334_v6 = vmul.f32 %v4145_v31, %v1078_v51 }
 0x1a7   : > { %v1335_v19 = vmul.f32 %v8463_v26, %v1078_v51  ;;  %v5541_v8 = vadd.f32 %v1328_v27, %v872_v62  ;;  %v5543_v60 = vadd.f32 %v1329_v53, %v873_v55  ;;  %v5545_v20 = vadd.f32 %v1330_v15, %v874_v42  ;;  %v8661_v62 = vld [vmem:[#allocation132_spill] sm:$0xff]  ;;  %v8663_v27 = vld [vmem:[#allocation134_spill] sm:$0xff] }
 0x1a8   : > { %v5547_v57 = vadd.f32 %v1331_v58, %v875_v47  ;;  %v5549_v59 = vadd.f32 %v1332_v30, %v876_v61  ;;  %v5551_v46 = vadd.f32 %v1333_v63, %v877_v33  ;;  %v5553_v3 = vadd.f32 %v1334_v6, %v878_v24  ;;  %v8662_v47 = vld [vmem:[#allocation133_spill] sm:$0xff]  ;;  %v8664_v24 = vld [vmem:[#allocation135_spill] sm:$0xff]  ;;  %v8665_v53 = vld [vmem:[#allocation136_spill] sm:$0xff] }
 0x1a9   : > { %8652 = vst [vmem:[#allocation121_spill] sm:$0xff] %v5541_v8  ;;  %8653 = vst [vmem:[#allocation122_spill] sm:$0xff] %v5543_v60  ;;  %v5555_v21 = vadd.f32 %v1335_v19, %v879_v2  ;;  %v880_v51 = vadd.f32 %v4109_v0, %v8660_v1  ;;  %v881_v55 = vadd.f32 %v4113_v25, %v8661_v62 }
 0x1aa   : > { %8654 = vst [vmem:[#allocation109_spill] sm:$0xff] %v5545_v20  ;;  %8655 = vst [vmem:[#allocation110_spill] sm:$0xff] %v5547_v57  ;;  %v882_v42 = vadd.f32 %v4116_v29, %v4530_v10  ;;  %v883_v61 = vadd.f32 %v4119_v48, %v8662_v47  ;;  %v884_v33 = vadd.f32 %v8441_v16, %v8663_v27  ;;  %v1086_v57 = vpop.permute.xlu0 %1085  ;;  %v8672_v20 = vld [vmem:[#allocation123_spill] sm:$0xff] }
 0x1ab   : > { %8656 = vst [vmem:[#allocation111_spill] sm:$0xff] %v5549_v59  ;;  %8657 = vst [vmem:[#allocation112_spill] sm:$0xff] %v5551_v46  ;;  %v885_v2 = vadd.f32 %v4125_v35, %v8664_v24  ;;  %v886_v15 = vadd.f32 %v4128_v38, %v8665_v53  ;;  %v887_v1 = vadd.f32 %v4131_v39, %v4545_v43 }
 0x1ac   : > { %8658 = vst [vmem:[#allocation113_spill] sm:$0xff] %v5553_v3  ;;  %8659 = vst [vmem:[#allocation114_spill] sm:$0xff] %v5555_v21  ;;  %v1336_v58 = vmul.f32 %v4133_v40, %v1082_v45  ;;  %v1337_v30 = vmul.f32 %v4135_v41, %v1082_v45  ;;  %v1338_v10 = vmul.f32 %v4137_v49, %v1082_v45 }
 0x1ad   : > { %v1339_v63 = vmul.f32 %v4139_v37, %v1082_v45  ;;  %v1340_v6 = vmul.f32 %v4141_v36, %v1082_v45  ;;  %v1341_v19 = vmul.f32 %v4143_v56, %v1082_v45  ;;  %v1342_v62 = vmul.f32 %v4145_v31, %v1082_v45 }
 0x1ae   : > { %v1343_v47 = vmul.f32 %v8463_v26, %v1082_v45  ;;  %v5581_v27 = vadd.f32 %v1336_v58, %v880_v51  ;;  %v5583_v24 = vadd.f32 %v1337_v30, %v881_v55  ;;  %v5585_v43 = vadd.f32 %v1338_v10, %v882_v42  ;;  %v8673_v51 = vld [vmem:[#allocation124_spill] sm:$0xff]  ;;  %v8674_v58 = vld [vmem:[#allocation125_spill] sm:$0xff]  ;;  %v8676_v30 = vld [vmem:[#allocation127_spill] sm:$0xff] }
 0x1af   : > { %v5587_v53 = vadd.f32 %v1339_v63, %v883_v61  ;;  %v5589_v21 = vadd.f32 %v1340_v6, %v884_v33  ;;  %v5591_v3 = vadd.f32 %v1341_v19, %v885_v2  ;;  %v5593_v46 = vadd.f32 %v1342_v62, %v886_v15  ;;  %v8675_v61 = vld [vmem:[#allocation126_spill] sm:$0xff]  ;;  %v8677_v15 = vld [vmem:[#allocation128_spill] sm:$0xff]  ;;  %v8678_v10 = vld [vmem:[#allocation129_spill] sm:$0xff] }
 0x1b0   : > { %8666 = vst [vmem:[#allocation115_spill] sm:$0xff] %v5585_v43  ;;  %v5595_v59 = vadd.f32 %v1343_v47, %v887_v1  ;;  %v888_v45 = vadd.f32 %v4109_v0, %v8672_v20  ;;  %v889_v55 = vadd.f32 %v4113_v25, %v8673_v51  ;;  %v890_v42 = vadd.f32 %v4116_v29, %v8674_v58  ;;  %v8679_v6 = vld [vmem:[#allocation130_spill] sm:$0xff]  ;;  %v8688_v43 = vld [vmem:[#allocation145_spill] sm:$0xff] }
 0x1b1   : > { %8667 = vst [vmem:[#allocation116_spill] sm:$0xff] %v5587_v53  ;;  %8668 = vst [vmem:[#allocation131_spill] sm:$0xff] %v5589_v21  ;;  %v891_v33 = vadd.f32 %v4119_v48, %v8675_v61  ;;  %v892_v2 = vadd.f32 %v8441_v16, %v8676_v30  ;;  %v893_v1 = vadd.f32 %v4125_v35, %v8677_v15  ;;  %v1090_v53 = vpop.permute.xlu1 %1089 }
 0x1b2   : > { %8669 = vst [vmem:[#allocation132_spill] sm:$0xff] %v5591_v3  ;;  %8670 = vst [vmem:[#allocation133_spill] sm:$0xff] %v5593_v46  ;;  %v894_v63 = vadd.f32 %v4128_v38, %v8678_v10  ;;  %v895_v20 = vadd.f32 %v4131_v39, %v8679_v6  ;;  %v1344_v19 = vmul.f32 %v4133_v40, %v1086_v57 }
 0x1b3   : > { %8671 = vst [vmem:[#allocation134_spill] sm:$0xff] %v5595_v59  ;;  %v1345_v62 = vmul.f32 %v4135_v41, %v1086_v57  ;;  %v1346_v47 = vmul.f32 %v4137_v49, %v1086_v57  ;;  %v1347_v51 = vmul.f32 %v4139_v37, %v1086_v57  ;;  %v1348_v58 = vmul.f32 %v4141_v36, %v1086_v57 }
 0x1b4   : > { %v1349_v61 = vmul.f32 %v4143_v56, %v1086_v57  ;;  %v1350_v30 = vmul.f32 %v4145_v31, %v1086_v57  ;;  %v1351_v15 = vmul.f32 %v8463_v26, %v1086_v57  ;;  %v5621_v10 = vadd.f32 %v1344_v19, %v888_v45  ;;  %v8689_v45 = vld [vmem:[#allocation146_spill] sm:$0xff]  ;;  %v8691_v19 = vld [vmem:[#allocation148_spill] sm:$0xff] }
 0x1b5   : > { %v5623_v60 = vadd.f32 %v1345_v62, %v889_v55  ;;  %v5625_v6 = vadd.f32 %v1346_v47, %v890_v42  ;;  %v5627_v8 = vadd.f32 %v1347_v51, %v891_v33  ;;  %v5629_v59 = vadd.f32 %v1348_v58, %v892_v2  ;;  %v8690_v33 = vld [vmem:[#allocation147_spill] sm:$0xff]  ;;  %v8693_v62 = vld [vmem:[#allocation150_spill] sm:$0xff] }
 0x1b6   : > { %8680 = vst [vmem:[#allocation135_spill] sm:$0xff] %v5621_v10  ;;  %v5631_v46 = vadd.f32 %v1349_v61, %v893_v1  ;;  %v5633_v3 = vadd.f32 %v1350_v30, %v894_v63  ;;  %v5635_v21 = vadd.f32 %v1351_v15, %v895_v20  ;;  %v896_v57 = vadd.f32 %v4109_v0, %v8688_v43  ;;  %v8692_v63 = vld [vmem:[#allocation149_spill] sm:$0xff] }
 0x1b7   : > { %8681 = vst [vmem:[#allocation136_spill] sm:$0xff] %v5623_v60  ;;  %8682 = vst [vmem:[#allocation123_spill] sm:$0xff] %v5625_v6  ;;  %v897_v55 = vadd.f32 %v4113_v25, %v8689_v45  ;;  %v898_v42 = vadd.f32 %v4116_v29, %v4580_v12  ;;  %v899_v2 = vadd.f32 %v4119_v48, %v8690_v33  ;;  %v8700_v6 = vld [vmem:[#allocation137_spill] sm:$0xff] }
 0x1b8   : > { %8683 = vst [vmem:[#allocation124_spill] sm:$0xff] %v5627_v8  ;;  %8684 = vst [vmem:[#allocation125_spill] sm:$0xff] %v5629_v59  ;;  %v900_v1 = vadd.f32 %v8441_v16, %v8691_v19  ;;  %v901_v20 = vadd.f32 %v4125_v35, %v8692_v63  ;;  %v902_v47 = vadd.f32 %v4128_v38, %v8693_v62  ;;  %v1094_v8 = vpop.permute.xlu0 %1093 }
 0x1b9   : > { %8685 = vst [vmem:[#allocation126_spill] sm:$0xff] %v5631_v46  ;;  %8686 = vst [vmem:[#allocation127_spill] sm:$0xff] %v5633_v3  ;;  %v903_v43 = vadd.f32 %v4131_v39, %v4595_v5  ;;  %v1352_v51 = vmul.f32 %v4133_v40, %v1090_v53  ;;  %v1353_v58 = vmul.f32 %v4135_v41, %v1090_v53 }
 0x1ba   : > { %8687 = vst [vmem:[#allocation128_spill] sm:$0xff] %v5635_v21  ;;  %v1354_v12 = vmul.f32 %v4137_v49, %v1090_v53  ;;  %v1355_v61 = vmul.f32 %v4139_v37, %v1090_v53  ;;  %v1356_v30 = vmul.f32 %v4141_v36, %v1090_v53  ;;  %v1357_v15 = vmul.f32 %v4143_v56, %v1090_v53 }
 0x1bb   : > { %v1358_v45 = vmul.f32 %v4145_v31, %v1090_v53  ;;  %v1359_v33 = vmul.f32 %v8463_v26, %v1090_v53  ;;  %v5661_v19 = vadd.f32 %v1352_v51, %v896_v57  ;;  %v5663_v63 = vadd.f32 %v1353_v58, %v897_v55  ;;  %v8701_v57 = vld [vmem:[#allocation138_spill] sm:$0xff]  ;;  %v8702_v51 = vld [vmem:[#allocation139_spill] sm:$0xff]  ;;  %v8704_v58 = vld [vmem:[#allocation141_spill] sm:$0xff] }
 0x1bc   : > { %v5665_v5 = vadd.f32 %v1354_v12, %v898_v42  ;;  %v5667_v62 = vadd.f32 %v1355_v61, %v899_v2  ;;  %v5669_v21 = vadd.f32 %v1356_v30, %v900_v1  ;;  %v5671_v3 = vadd.f32 %v1357_v15, %v901_v20  ;;  %v8703_v2 = vld [vmem:[#allocation140_spill] sm:$0xff]  ;;  %v8706_v12 = vld [vmem:[#allocation143_spill] sm:$0xff] }
 0x1bd   : > { %v5673_v46 = vadd.f32 %v1358_v45, %v902_v47  ;;  %v5675_v59 = vadd.f32 %v1359_v33, %v903_v43  ;;  %v904_v53 = vadd.f32 %v4109_v0, %v8700_v6  ;;  %v905_v55 = vadd.f32 %v4113_v25, %v8701_v57  ;;  %v8705_v47 = vld [vmem:[#allocation142_spill] sm:$0xff]  ;;  %v8707_v30 = vld [vmem:[#allocation144_spill] sm:$0xff] }
 0x1be   : > { %8694 = vst [vmem:[#allocation129_spill] sm:$0xff] %v5665_v5  ;;  %8695 = vst [vmem:[#allocation130_spill] sm:$0xff] %v5667_v62  ;;  %v906_v42 = vadd.f32 %v4116_v29, %v8702_v51  ;;  %v907_v1 = vadd.f32 %v4119_v48, %v8703_v2  ;;  %v908_v20 = vadd.f32 %v8441_v16, %v8704_v58  ;;  %v1098_v62 = vpop.permute.xlu1 %1097  ;;  %v8716_v5 = vld [vmem:[#allocation159_spill] sm:$0xff] }
 0x1bf   : > { %8696 = vst [vmem:[#allocation145_spill] sm:$0xff] %v5669_v21  ;;  %8697 = vst [vmem:[#allocation146_spill] sm:$0xff] %v5671_v3  ;;  %v909_v43 = vadd.f32 %v4125_v35, %v8705_v47  ;;  %v910_v61 = vadd.f32 %v4128_v38, %v8706_v12  ;;  %v911_v6 = vadd.f32 %v4131_v39, %v8707_v30 }
 0x1c0   : > { %8698 = vst [vmem:[#allocation147_spill] sm:$0xff] %v5673_v46  ;;  %8699 = vst [vmem:[#allocation148_spill] sm:$0xff] %v5675_v59  ;;  %v1360_v15 = vmul.f32 %v4133_v40, %v1094_v8  ;;  %v1361_v45 = vmul.f32 %v4135_v41, %v1094_v8  ;;  %v1362_v33 = vmul.f32 %v4137_v49, %v1094_v8 }
 0x1c1   : > { %v1363_v57 = vmul.f32 %v4139_v37, %v1094_v8  ;;  %v1364_v51 = vmul.f32 %v4141_v36, %v1094_v8  ;;  %v1365_v2 = vmul.f32 %v4143_v56, %v1094_v8  ;;  %v1366_v58 = vmul.f32 %v4145_v31, %v1094_v8 }
 0x1c2   : > { %v1367_v47 = vmul.f32 %v8463_v26, %v1094_v8  ;;  %v5701_v12 = vadd.f32 %v1360_v15, %v904_v53  ;;  %v5703_v60 = vadd.f32 %v1361_v45, %v905_v55  ;;  %v5705_v30 = vadd.f32 %v1362_v33, %v906_v42  ;;  %v8717_v53 = vld [vmem:[#allocation160_spill] sm:$0xff]  ;;  %v8719_v15 = vld [vmem:[#allocation162_spill] sm:$0xff] }
 0x1c3   : > { %v5707_v10 = vadd.f32 %v1363_v57, %v907_v1  ;;  %v5709_v59 = vadd.f32 %v1364_v51, %v908_v20  ;;  %v5711_v46 = vadd.f32 %v1365_v2, %v909_v43  ;;  %v5713_v3 = vadd.f32 %v1366_v58, %v910_v61  ;;  %v8718_v1 = vld [vmem:[#allocation161_spill] sm:$0xff]  ;;  %v8720_v61 = vld [vmem:[#allocation163_spill] sm:$0xff]  ;;  %v8721_v45 = vld [vmem:[#allocation164_spill] sm:$0xff] }
 0x1c4   : > { %8708 = vst [vmem:[#allocation149_spill] sm:$0xff] %v5701_v12  ;;  %8709 = vst [vmem:[#allocation150_spill] sm:$0xff] %v5703_v60  ;;  %v5715_v21 = vadd.f32 %v1367_v47, %v911_v6  ;;  %v912_v8 = vadd.f32 %v4109_v0, %v8716_v5  ;;  %v913_v55 = vadd.f32 %v4113_v25, %v8717_v53  ;;  %v8722_v57 = vld [vmem:[#allocation165_spill] sm:$0xff]  ;;  %v8730_v60 = vld [vmem:[#allocation151_spill] sm:$0xff] }
 0x1c5   : > { %8710 = vst [vmem:[#allocation137_spill] sm:$0xff] %v5705_v30  ;;  %8711 = vst [vmem:[#allocation138_spill] sm:$0xff] %v5707_v10  ;;  %v914_v42 = vadd.f32 %v4116_v29, %v4630_v14  ;;  %v915_v20 = vadd.f32 %v4119_v48, %v8718_v1  ;;  %v916_v43 = vadd.f32 %v8441_v16, %v8719_v15  ;;  %v1102_v30 = vpop.permute.xlu0 %1101 }
 0x1c6   : > { %8712 = vst [vmem:[#allocation139_spill] sm:$0xff] %v5709_v59  ;;  %8713 = vst [vmem:[#allocation140_spill] sm:$0xff] %v5711_v46  ;;  %v917_v6 = vadd.f32 %v4125_v35, %v8720_v61  ;;  %v918_v33 = vadd.f32 %v4128_v38, %v8721_v45  ;;  %v919_v5 = vadd.f32 %v4131_v39, %v8722_v57 }
 0x1c7   : > { %8714 = vst [vmem:[#allocation141_spill] sm:$0xff] %v5713_v3  ;;  %8715 = vst [vmem:[#allocation142_spill] sm:$0xff] %v5715_v21  ;;  %v1368_v51 = vmul.f32 %v4133_v40, %v1098_v62  ;;  %v1369_v2 = vmul.f32 %v4135_v41, %v1098_v62  ;;  %v1370_v14 = vmul.f32 %v4137_v49, %v1098_v62 }
 0x1c8   : > { %v1371_v58 = vmul.f32 %v4139_v37, %v1098_v62  ;;  %v1372_v47 = vmul.f32 %v4141_v36, %v1098_v62  ;;  %v1373_v53 = vmul.f32 %v4143_v56, %v1098_v62  ;;  %v1374_v1 = vmul.f32 %v4145_v31, %v1098_v62 }
 0x1c9   : > { %v1375_v15 = vmul.f32 %v8463_v26, %v1098_v62  ;;  %v5741_v61 = vadd.f32 %v1368_v51, %v912_v8  ;;  %v5743_v45 = vadd.f32 %v1369_v2, %v913_v55  ;;  %v5745_v57 = vadd.f32 %v1370_v14, %v914_v42  ;;  %v8731_v8 = vld [vmem:[#allocation152_spill] sm:$0xff]  ;;  %v8732_v51 = vld [vmem:[#allocation153_spill] sm:$0xff]  ;;  %v8734_v2 = vld [vmem:[#allocation155_spill] sm:$0xff] }
 0x1ca   : > { %v5747_v21 = vadd.f32 %v1371_v58, %v915_v20  ;;  %v5749_v3 = vadd.f32 %v1372_v47, %v916_v43  ;;  %v5751_v46 = vadd.f32 %v1373_v53, %v917_v6  ;;  %v5753_v59 = vadd.f32 %v1374_v1, %v918_v33  ;;  %v8733_v20 = vld [vmem:[#allocation154_spill] sm:$0xff]  ;;  %v8735_v33 = vld [vmem:[#allocation156_spill] sm:$0xff]  ;;  %v8736_v14 = vld [vmem:[#allocation157_spill] sm:$0xff] }
 0x1cb   : > { %8723 = vst [vmem:[#allocation143_spill] sm:$0xff] %v5743_v45  ;;  %8724 = vst [vmem:[#allocation144_spill] sm:$0xff] %v5745_v57  ;;  %v5755_v10 = vadd.f32 %v1375_v15, %v919_v5  ;;  %v920_v62 = vadd.f32 %v4109_v0, %v8730_v60  ;;  %v921_v55 = vadd.f32 %v4113_v25, %v8731_v8  ;;  %v8737_v47 = vld [vmem:[#allocation158_spill] sm:$0xff]  ;;  %v1106_v57 = vpop.permute.xlu1 %1105 }
 0x1cc   : > { %8725 = vst [vmem:[#allocation159_spill] sm:$0xff] %v5747_v21  ;;  %8726 = vst [vmem:[#allocation160_spill] sm:$0xff] %v5749_v3  ;;  %v922_v42 = vadd.f32 %v4116_v29, %v8732_v51  ;;  %v923_v43 = vadd.f32 %v4119_v48, %v8733_v20  ;;  %v924_v6 = vadd.f32 %v8441_v16, %v8734_v2  ;;  %v8746_v45 = vld [vmem:[#allocation174_spill] sm:$0xff] }
 0x1cd   : > { %8727 = vst [vmem:[#allocation161_spill] sm:$0xff] %v5751_v46  ;;  %8728 = vst [vmem:[#allocation162_spill] sm:$0xff] %v5753_v59  ;;  %v925_v5 = vadd.f32 %v4125_v35, %v8735_v33  ;;  %v926_v58 = vadd.f32 %v4128_v38, %v8736_v14  ;;  %v927_v60 = vadd.f32 %v4131_v39, %v8737_v47 }
 0x1ce   : > { %8729 = vst [vmem:[#allocation163_spill] sm:$0xff] %v5755_v10  ;;  %v1376_v53 = vmul.f32 %v4133_v40, %v1102_v30  ;;  %v1377_v1 = vmul.f32 %v4135_v41, %v1102_v30  ;;  %v1378_v15 = vmul.f32 %v4137_v49, %v1102_v30  ;;  %v1379_v8 = vmul.f32 %v4139_v37, %v1102_v30 }
 0x1cf   : > { %v1380_v51 = vmul.f32 %v4141_v36, %v1102_v30  ;;  %v1381_v20 = vmul.f32 %v4143_v56, %v1102_v30  ;;  %v1382_v2 = vmul.f32 %v4145_v31, %v1102_v30  ;;  %v1383_v33 = vmul.f32 %v8463_v26, %v1102_v30 }
 0x1d0   : > { %v5781_v14 = vadd.f32 %v1376_v53, %v920_v62  ;;  %v5783_v12 = vadd.f32 %v1377_v1, %v921_v55  ;;  %v5785_v47 = vadd.f32 %v1378_v15, %v922_v42  ;;  %v5787_v10 = vadd.f32 %v1379_v8, %v923_v43  ;;  %v8747_v62 = vld [vmem:[#allocation175_spill] sm:$0xff]  ;;  %v8748_v53 = vld [vmem:[#allocation176_spill] sm:$0xff]  ;;  %v8749_v43 = vld [vmem:[#allocation177_spill] sm:$0xff] }
 0x1d1   : > { %v5789_v59 = vadd.f32 %v1380_v51, %v924_v6  ;;  %v5791_v46 = vadd.f32 %v1381_v20, %v925_v5  ;;  %v5793_v3 = vadd.f32 %v1382_v2, %v926_v58  ;;  %v5795_v21 = vadd.f32 %v1383_v33, %v927_v60  ;;  %v8750_v1 = vld [vmem:[#allocation178_spill] sm:$0xff]  ;;  %v8751_v58 = vld [vmem:[#allocation179_spill] sm:$0xff]  ;;  %v8752_v15 = vld [vmem:[#allocation180_spill] sm:$0xff] }
 0x1d2   : > { %8738 = vst [vmem:[#allocation164_spill] sm:$0xff] %v5781_v14  ;;  %8739 = vst [vmem:[#allocation165_spill] sm:$0xff] %v5783_v12  ;;  %v928_v30 = vadd.f32 %v4109_v0, %v8746_v45  ;;  %v929_v55 = vadd.f32 %v4113_v25, %v8747_v62  ;;  %v930_v42 = vadd.f32 %v4116_v29, %v8748_v53  ;;  %v8753_v51 = vld [vmem:[#allocation181_spill] sm:$0xff]  ;;  %v1110_v12 = vpop.permute.xlu0 %1109  ;;  %v8762_v14 = vld [vmem:[#allocation166_spill] sm:$0xff] }
 0x1d3   : > { %8740 = vst [vmem:[#allocation151_spill] sm:$0xff] %v5785_v47  ;;  %8741 = vst [vmem:[#allocation152_spill] sm:$0xff] %v5787_v10  ;;  %v931_v6 = vadd.f32 %v4119_v48, %v8749_v43  ;;  %v932_v5 = vadd.f32 %v8441_v16, %v8750_v1  ;;  %v933_v60 = vadd.f32 %v4125_v35, %v8751_v58 }
 0x1d4   : > { %8742 = vst [vmem:[#allocation153_spill] sm:$0xff] %v5789_v59  ;;  %8743 = vst [vmem:[#allocation154_spill] sm:$0xff] %v5791_v46  ;;  %v934_v8 = vadd.f32 %v4128_v38, %v8752_v15  ;;  %v935_v45 = vadd.f32 %v4131_v39, %v8753_v51  ;;  %v1384_v20 = vmul.f32 %v4133_v40, %v1106_v57 }
 0x1d5   : > { %8744 = vst [vmem:[#allocation155_spill] sm:$0xff] %v5793_v3  ;;  %8745 = vst [vmem:[#allocation156_spill] sm:$0xff] %v5795_v21  ;;  %v1385_v2 = vmul.f32 %v4135_v41, %v1106_v57  ;;  %v1386_v33 = vmul.f32 %v4137_v49, %v1106_v57  ;;  %v1387_v62 = vmul.f32 %v4139_v37, %v1106_v57 }
 0x1d6   : > { %v1388_v53 = vmul.f32 %v4141_v36, %v1106_v57  ;;  %v1389_v43 = vmul.f32 %v4143_v56, %v1106_v57  ;;  %v1390_v1 = vmul.f32 %v4145_v31, %v1106_v57  ;;  %v1391_v58 = vmul.f32 %v8463_v26, %v1106_v57 }
 0x1d7   : > { %v5821_v15 = vadd.f32 %v1384_v20, %v928_v30  ;;  %v5823_v21 = vadd.f32 %v1385_v2, %v929_v55  ;;  %v5825_v51 = vadd.f32 %v1386_v33, %v930_v42  ;;  %v5827_v3 = vadd.f32 %v1387_v62, %v931_v6  ;;  %v8763_v30 = vld [vmem:[#allocation167_spill] sm:$0xff]  ;;  %v8764_v20 = vld [vmem:[#allocation168_spill] sm:$0xff]  ;;  %v8765_v6 = vld [vmem:[#allocation169_spill] sm:$0xff] }
 0x1d8   : > { %v5829_v46 = vadd.f32 %v1388_v53, %v932_v5  ;;  %v5831_v59 = vadd.f32 %v1389_v43, %v933_v60  ;;  %v5833_v10 = vadd.f32 %v1390_v1, %v934_v8  ;;  %v5835_v47 = vadd.f32 %v1391_v58, %v935_v45  ;;  %v8766_v2 = vld [vmem:[#allocation170_spill] sm:$0xff]  ;;  %v8767_v8 = vld [vmem:[#allocation171_spill] sm:$0xff]  ;;  %v8768_v33 = vld [vmem:[#allocation172_spill] sm:$0xff] }
 0x1d9   : > { %8754 = vst [vmem:[#allocation157_spill] sm:$0xff] %v5821_v15  ;;  %8755 = vst [vmem:[#allocation158_spill] sm:$0xff] %v5823_v21  ;;  %v936_v57 = vadd.f32 %v4109_v0, %v8762_v14  ;;  %v937_v55 = vadd.f32 %v4113_v25, %v8763_v30  ;;  %v938_v42 = vadd.f32 %v4116_v29, %v8764_v20  ;;  %v8769_v53 = vld [vmem:[#allocation173_spill] sm:$0xff]  ;;  %v1114_v21 = vpop.permute.xlu1 %1113  ;;  %v8778_v15 = vld [vmem:[#allocation190_spill] sm:$0xff] }
 0x1da   : > { %8756 = vst [vmem:[#allocation174_spill] sm:$0xff] %v5825_v51  ;;  %8757 = vst [vmem:[#allocation175_spill] sm:$0xff] %v5827_v3  ;;  %v939_v5 = vadd.f32 %v4119_v48, %v8765_v6  ;;  %v940_v60 = vadd.f32 %v8441_v16, %v8766_v2  ;;  %v941_v45 = vadd.f32 %v4125_v35, %v8767_v8 }
 0x1db   : > { %8758 = vst [vmem:[#allocation176_spill] sm:$0xff] %v5829_v46  ;;  %8759 = vst [vmem:[#allocation177_spill] sm:$0xff] %v5831_v59  ;;  %v942_v62 = vadd.f32 %v4128_v38, %v8768_v33  ;;  %v943_v14 = vadd.f32 %v4131_v39, %v8769_v53  ;;  %v1392_v43 = vmul.f32 %v4133_v40, %v1110_v12 }
 0x1dc   : > { %8760 = vst [vmem:[#allocation178_spill] sm:$0xff] %v5833_v10  ;;  %8761 = vst [vmem:[#allocation179_spill] sm:$0xff] %v5835_v47  ;;  %v1393_v1 = vmul.f32 %v4135_v41, %v1110_v12  ;;  %v1394_v58 = vmul.f32 %v4137_v49, %v1110_v12  ;;  %v1395_v30 = vmul.f32 %v4139_v37, %v1110_v12 }
 0x1dd   : > { %v1396_v20 = vmul.f32 %v4141_v36, %v1110_v12  ;;  %v1397_v6 = vmul.f32 %v4143_v56, %v1110_v12  ;;  %v1398_v2 = vmul.f32 %v4145_v31, %v1110_v12  ;;  %v1399_v8 = vmul.f32 %v8463_v26, %v1110_v12 }
 0x1de   : > { %v5861_v33 = vadd.f32 %v1392_v43, %v936_v57  ;;  %v5863_v47 = vadd.f32 %v1393_v1, %v937_v55  ;;  %v5865_v53 = vadd.f32 %v1394_v58, %v938_v42  ;;  %v5867_v10 = vadd.f32 %v1395_v30, %v939_v5  ;;  %v8779_v57 = vld [vmem:[#allocation191_spill] sm:$0xff]  ;;  %v8780_v43 = vld [vmem:[#allocation192_spill] sm:$0xff]  ;;  %v8781_v5 = vld [vmem:[#allocation193_spill] sm:$0xff] }
 0x1df   : > { %v5869_v59 = vadd.f32 %v1396_v20, %v940_v60  ;;  %v5871_v46 = vadd.f32 %v1397_v6, %v941_v45  ;;  %v5873_v3 = vadd.f32 %v1398_v2, %v942_v62  ;;  %v5875_v51 = vadd.f32 %v1399_v8, %v943_v14  ;;  %v8782_v1 = vld [vmem:[#allocation194_spill] sm:$0xff]  ;;  %v8783_v62 = vld [vmem:[#allocation195_spill] sm:$0xff]  ;;  %v8784_v58 = vld [vmem:[#allocation196_spill] sm:$0xff] }
 0x1e0   : > { %8770 = vst [vmem:[#allocation180_spill] sm:$0xff] %v5861_v33  ;;  %8771 = vst [vmem:[#allocation181_spill] sm:$0xff] %v5863_v47  ;;  %v944_v12 = vadd.f32 %v4109_v0, %v8778_v15  ;;  %v945_v55 = vadd.f32 %v4113_v25, %v8779_v57  ;;  %v946_v42 = vadd.f32 %v4116_v29, %v8780_v43  ;;  %v8785_v20 = vld [vmem:[#allocation197_spill] sm:$0xff]  ;;  %v1118_v47 = vpop.permute.xlu0 %1117  ;;  %v8794_v33 = vld [vmem:[#allocation182_spill] sm:$0xff] }
 0x1e1   : > { %8772 = vst [vmem:[#allocation166_spill] sm:$0xff] %v5865_v53  ;;  %8773 = vst [vmem:[#allocation167_spill] sm:$0xff] %v5867_v10  ;;  %v947_v60 = vadd.f32 %v4119_v48, %v8781_v5  ;;  %v948_v45 = vadd.f32 %v8441_v16, %v8782_v1  ;;  %v949_v14 = vadd.f32 %v4125_v35, %v8783_v62 }
 0x1e2   : > { %8774 = vst [vmem:[#allocation168_spill] sm:$0xff] %v5869_v59  ;;  %8775 = vst [vmem:[#allocation169_spill] sm:$0xff] %v5871_v46  ;;  %v950_v30 = vadd.f32 %v4128_v38, %v8784_v58  ;;  %v951_v15 = vadd.f32 %v4131_v39, %v8785_v20  ;;  %v1400_v6 = vmul.f32 %v4133_v40, %v1114_v21 }
 0x1e3   : > { %8776 = vst [vmem:[#allocation170_spill] sm:$0xff] %v5873_v3  ;;  %8777 = vst [vmem:[#allocation171_spill] sm:$0xff] %v5875_v51  ;;  %v1401_v2 = vmul.f32 %v4135_v41, %v1114_v21  ;;  %v1402_v8 = vmul.f32 %v4137_v49, %v1114_v21  ;;  %v1403_v57 = vmul.f32 %v4139_v37, %v1114_v21 }
 0x1e4   : > { %v1404_v43 = vmul.f32 %v4141_v36, %v1114_v21  ;;  %v1405_v5 = vmul.f32 %v4143_v56, %v1114_v21  ;;  %v1406_v1 = vmul.f32 %v4145_v31, %v1114_v21  ;;  %v1407_v62 = vmul.f32 %v8463_v26, %v1114_v21 }
 0x1e5   : > { %v5901_v58 = vadd.f32 %v1400_v6, %v944_v12  ;;  %v5903_v51 = vadd.f32 %v1401_v2, %v945_v55  ;;  %v5905_v20 = vadd.f32 %v1402_v8, %v946_v42  ;;  %v5907_v3 = vadd.f32 %v1403_v57, %v947_v60  ;;  %v8795_v12 = vld [vmem:[#allocation183_spill] sm:$0xff]  ;;  %v8796_v6 = vld [vmem:[#allocation184_spill] sm:$0xff]  ;;  %v8797_v60 = vld [vmem:[#allocation185_spill] sm:$0xff] }
 0x1e6   : > { %v5909_v46 = vadd.f32 %v1404_v43, %v948_v45  ;;  %v5911_v59 = vadd.f32 %v1405_v5, %v949_v14  ;;  %v5913_v10 = vadd.f32 %v1406_v1, %v950_v30  ;;  %v5915_v53 = vadd.f32 %v1407_v62, %v951_v15  ;;  %v8798_v2 = vld [vmem:[#allocation186_spill] sm:$0xff]  ;;  %v8799_v30 = vld [vmem:[#allocation187_spill] sm:$0xff]  ;;  %v8800_v8 = vld [vmem:[#allocation188_spill] sm:$0xff] }
 0x1e7   : > { %8786 = vst [vmem:[#allocation172_spill] sm:$0xff] %v5901_v58  ;;  %8787 = vst [vmem:[#allocation173_spill] sm:$0xff] %v5903_v51  ;;  %v952_v21 = vadd.f32 %v4109_v0, %v8794_v33  ;;  %v953_v55 = vadd.f32 %v4113_v25, %v8795_v12  ;;  %v954_v42 = vadd.f32 %v4116_v29, %v8796_v6  ;;  %v8801_v43 = vld [vmem:[#allocation189_spill] sm:$0xff]  ;;  %v1122_v51 = vpop.permute.xlu1 %1121  ;;  %v8810_v58 = vld [vmem:[#allocation206_spill] sm:$0xff] }
 0x1e8   : > { %8788 = vst [vmem:[#allocation190_spill] sm:$0xff] %v5905_v20  ;;  %8789 = vst [vmem:[#allocation191_spill] sm:$0xff] %v5907_v3  ;;  %v955_v45 = vadd.f32 %v4119_v48, %v8797_v60  ;;  %v956_v14 = vadd.f32 %v8441_v16, %v8798_v2  ;;  %v957_v15 = vadd.f32 %v4125_v35, %v8799_v30 }
 0x1e9   : > { %8790 = vst [vmem:[#allocation192_spill] sm:$0xff] %v5909_v46  ;;  %8791 = vst [vmem:[#allocation193_spill] sm:$0xff] %v5911_v59  ;;  %v958_v57 = vadd.f32 %v4128_v38, %v8800_v8  ;;  %v959_v33 = vadd.f32 %v4131_v39, %v8801_v43  ;;  %v1408_v5 = vmul.f32 %v4133_v40, %v1118_v47 }
 0x1ea   : > { %8792 = vst [vmem:[#allocation194_spill] sm:$0xff] %v5913_v10  ;;  %8793 = vst [vmem:[#allocation195_spill] sm:$0xff] %v5915_v53  ;;  %v1409_v1 = vmul.f32 %v4135_v41, %v1118_v47  ;;  %v1410_v62 = vmul.f32 %v4137_v49, %v1118_v47  ;;  %v1411_v12 = vmul.f32 %v4139_v37, %v1118_v47 }
 0x1eb   : > { %v1412_v6 = vmul.f32 %v4141_v36, %v1118_v47  ;;  %v1413_v60 = vmul.f32 %v4143_v56, %v1118_v47  ;;  %v1414_v2 = vmul.f32 %v4145_v31, %v1118_v47  ;;  %v1415_v30 = vmul.f32 %v8463_v26, %v1118_v47 }
 0x1ec   : > { %v5941_v8 = vadd.f32 %v1408_v5, %v952_v21  ;;  %v5943_v53 = vadd.f32 %v1409_v1, %v953_v55  ;;  %v5945_v43 = vadd.f32 %v1410_v62, %v954_v42  ;;  %v5947_v10 = vadd.f32 %v1411_v12, %v955_v45  ;;  %v8811_v21 = vld [vmem:[#allocation207_spill] sm:$0xff]  ;;  %v8812_v5 = vld [vmem:[#allocation208_spill] sm:$0xff]  ;;  %v8813_v45 = vld [vmem:[#allocation209_spill] sm:$0xff] }
 0x1ed   : > { %v5949_v59 = vadd.f32 %v1412_v6, %v956_v14  ;;  %v5951_v46 = vadd.f32 %v1413_v60, %v957_v15  ;;  %v5953_v3 = vadd.f32 %v1414_v2, %v958_v57  ;;  %v5955_v20 = vadd.f32 %v1415_v30, %v959_v33  ;;  %v8814_v1 = vld [vmem:[#allocation210_spill] sm:$0xff]  ;;  %v8815_v57 = vld [vmem:[#allocation211_spill] sm:$0xff]  ;;  %v8816_v62 = vld [vmem:[#allocation212_spill] sm:$0xff] }
 0x1ee   : > { %8802 = vst [vmem:[#allocation196_spill] sm:$0xff] %v5941_v8  ;;  %8803 = vst [vmem:[#allocation197_spill] sm:$0xff] %v5943_v53  ;;  %v960_v47 = vadd.f32 %v4109_v0, %v8810_v58  ;;  %v961_v55 = vadd.f32 %v4113_v25, %v8811_v21  ;;  %v962_v42 = vadd.f32 %v4116_v29, %v8812_v5  ;;  %v8817_v6 = vld [vmem:[#allocation213_spill] sm:$0xff]  ;;  %v1126_v53 = vpop.permute.xlu0 %1125  ;;  %v8826_v8 = vld [vmem:[#allocation198_spill] sm:$0xff] }
 0x1ef   : > { %8804 = vst [vmem:[#allocation182_spill] sm:$0xff] %v5945_v43  ;;  %8805 = vst [vmem:[#allocation183_spill] sm:$0xff] %v5947_v10  ;;  %v963_v14 = vadd.f32 %v4119_v48, %v8813_v45  ;;  %v964_v15 = vadd.f32 %v8441_v16, %v8814_v1  ;;  %v965_v33 = vadd.f32 %v4125_v35, %v8815_v57 }
 0x1f0   : > { %8806 = vst [vmem:[#allocation184_spill] sm:$0xff] %v5949_v59  ;;  %8807 = vst [vmem:[#allocation185_spill] sm:$0xff] %v5951_v46  ;;  %v966_v12 = vadd.f32 %v4128_v38, %v8816_v62  ;;  %v967_v58 = vadd.f32 %v4131_v39, %v8817_v6  ;;  %v1416_v60 = vmul.f32 %v4133_v40, %v1122_v51 }
 0x1f1   : > { %8808 = vst [vmem:[#allocation186_spill] sm:$0xff] %v5953_v3  ;;  %8809 = vst [vmem:[#allocation187_spill] sm:$0xff] %v5955_v20  ;;  %v1417_v2 = vmul.f32 %v4135_v41, %v1122_v51  ;;  %v1418_v30 = vmul.f32 %v4137_v49, %v1122_v51  ;;  %v1419_v21 = vmul.f32 %v4139_v37, %v1122_v51 }
 0x1f2   : > { %v1420_v5 = vmul.f32 %v4141_v36, %v1122_v51  ;;  %v1421_v45 = vmul.f32 %v4143_v56, %v1122_v51  ;;  %v1422_v1 = vmul.f32 %v4145_v31, %v1122_v51  ;;  %v1423_v57 = vmul.f32 %v8463_v26, %v1122_v51 }
 0x1f3   : > { %v5981_v62 = vadd.f32 %v1416_v60, %v960_v47  ;;  %v5983_v20 = vadd.f32 %v1417_v2, %v961_v55  ;;  %v5985_v6 = vadd.f32 %v1418_v30, %v962_v42  ;;  %v5987_v3 = vadd.f32 %v1419_v21, %v963_v14  ;;  %v8827_v47 = vld [vmem:[#allocation199_spill] sm:$0xff]  ;;  %v8828_v60 = vld [vmem:[#allocation200_spill] sm:$0xff]  ;;  %v8829_v14 = vld [vmem:[#allocation201_spill] sm:$0xff] }
 0x1f4   : > { %v5989_v46 = vadd.f32 %v1420_v5, %v964_v15  ;;  %v5991_v59 = vadd.f32 %v1421_v45, %v965_v33  ;;  %v5993_v10 = vadd.f32 %v1422_v1, %v966_v12  ;;  %v5995_v43 = vadd.f32 %v1423_v57, %v967_v58  ;;  %v8830_v2 = vld [vmem:[#allocation202_spill] sm:$0xff]  ;;  %v8831_v12 = vld [vmem:[#allocation203_spill] sm:$0xff]  ;;  %v8832_v30 = vld [vmem:[#allocation204_spill] sm:$0xff] }
 0x1f5   : > { %8818 = vst [vmem:[#allocation188_spill] sm:$0xff] %v5981_v62  ;;  %8819 = vst [vmem:[#allocation189_spill] sm:$0xff] %v5983_v20  ;;  %v968_v51 = vadd.f32 %v4109_v0, %v8826_v8  ;;  %v969_v55 = vadd.f32 %v4113_v25, %v8827_v47  ;;  %v970_v42 = vadd.f32 %v4116_v29, %v8828_v60  ;;  %v8833_v5 = vld [vmem:[#allocation205_spill] sm:$0xff]  ;;  %v1130_v20 = vpop.permute.xlu1 %1129  ;;  %v8842_v62 = vld [vmem:[#allocation222_spill] sm:$0xff] }
 0x1f6   : > { %8820 = vst [vmem:[#allocation206_spill] sm:$0xff] %v5985_v6  ;;  %8821 = vst [vmem:[#allocation207_spill] sm:$0xff] %v5987_v3  ;;  %v971_v15 = vadd.f32 %v4119_v48, %v8829_v14  ;;  %v972_v33 = vadd.f32 %v8441_v16, %v8830_v2  ;;  %v973_v58 = vadd.f32 %v4125_v35, %v8831_v12 }
 0x1f7   : > { %8822 = vst [vmem:[#allocation208_spill] sm:$0xff] %v5989_v46  ;;  %8823 = vst [vmem:[#allocation209_spill] sm:$0xff] %v5991_v59  ;;  %v974_v21 = vadd.f32 %v4128_v38, %v8832_v30  ;;  %v975_v8 = vadd.f32 %v4131_v39, %v8833_v5  ;;  %v1424_v45 = vmul.f32 %v4133_v40, %v1126_v53 }
 0x1f8   : > { %8824 = vst [vmem:[#allocation210_spill] sm:$0xff] %v5993_v10  ;;  %8825 = vst [vmem:[#allocation211_spill] sm:$0xff] %v5995_v43  ;;  %v1425_v1 = vmul.f32 %v4135_v41, %v1126_v53  ;;  %v1426_v57 = vmul.f32 %v4137_v49, %v1126_v53  ;;  %v1427_v47 = vmul.f32 %v4139_v37, %v1126_v53 }
 0x1f9   : > { %v1428_v60 = vmul.f32 %v4141_v36, %v1126_v53  ;;  %v1429_v14 = vmul.f32 %v4143_v56, %v1126_v53  ;;  %v1430_v2 = vmul.f32 %v4145_v31, %v1126_v53  ;;  %v1431_v12 = vmul.f32 %v8463_v26, %v1126_v53 }
 0x1fa   : > { %v6021_v30 = vadd.f32 %v1424_v45, %v968_v51  ;;  %v6023_v43 = vadd.f32 %v1425_v1, %v969_v55  ;;  %v6025_v5 = vadd.f32 %v1426_v57, %v970_v42  ;;  %v6027_v10 = vadd.f32 %v1427_v47, %v971_v15  ;;  %v8843_v51 = vld [vmem:[#allocation223_spill] sm:$0xff]  ;;  %v8844_v45 = vld [vmem:[#allocation224_spill] sm:$0xff]  ;;  %v8845_v15 = vld [vmem:[#allocation225_spill] sm:$0xff] }
 0x1fb   : > { %v6029_v59 = vadd.f32 %v1428_v60, %v972_v33  ;;  %v6031_v46 = vadd.f32 %v1429_v14, %v973_v58  ;;  %v6033_v3 = vadd.f32 %v1430_v2, %v974_v21  ;;  %v6035_v6 = vadd.f32 %v1431_v12, %v975_v8  ;;  %v8846_v1 = vld [vmem:[#allocation226_spill] sm:$0xff]  ;;  %v8847_v21 = vld [vmem:[#allocation227_spill] sm:$0xff]  ;;  %v8848_v57 = vld [vmem:[#allocation228_spill] sm:$0xff] }
 0x1fc   : > { %8834 = vst [vmem:[#allocation212_spill] sm:$0xff] %v6021_v30  ;;  %8835 = vst [vmem:[#allocation213_spill] sm:$0xff] %v6023_v43  ;;  %v976_v53 = vadd.f32 %v4109_v0, %v8842_v62  ;;  %v977_v55 = vadd.f32 %v4113_v25, %v8843_v51  ;;  %v978_v42 = vadd.f32 %v4116_v29, %v8844_v45  ;;  %v8849_v60 = vld [vmem:[#allocation229_spill] sm:$0xff]  ;;  %v1134_v43 = vpop.permute.xlu0 %1133  ;;  %v8858_v30 = vld [vmem:[#allocation214_spill] sm:$0xff] }
 0x1fd   : > { %8836 = vst [vmem:[#allocation198_spill] sm:$0xff] %v6025_v5  ;;  %8837 = vst [vmem:[#allocation199_spill] sm:$0xff] %v6027_v10  ;;  %v979_v33 = vadd.f32 %v4119_v48, %v8845_v15  ;;  %v980_v58 = vadd.f32 %v8441_v16, %v8846_v1  ;;  %v981_v8 = vadd.f32 %v4125_v35, %v8847_v21 }
 0x1fe   : > { %8838 = vst [vmem:[#allocation200_spill] sm:$0xff] %v6029_v59  ;;  %8839 = vst [vmem:[#allocation201_spill] sm:$0xff] %v6031_v46  ;;  %v982_v47 = vadd.f32 %v4128_v38, %v8848_v57  ;;  %v983_v62 = vadd.f32 %v4131_v39, %v8849_v60  ;;  %v1432_v14 = vmul.f32 %v4133_v40, %v1130_v20 }
 0x1ff   : > { %8840 = vst [vmem:[#allocation202_spill] sm:$0xff] %v6033_v3  ;;  %8841 = vst [vmem:[#allocation203_spill] sm:$0xff] %v6035_v6  ;;  %v1433_v2 = vmul.f32 %v4135_v41, %v1130_v20  ;;  %v1434_v12 = vmul.f32 %v4137_v49, %v1130_v20  ;;  %v1435_v51 = vmul.f32 %v4139_v37, %v1130_v20 }
 0x200   : > { %v1436_v45 = vmul.f32 %v4141_v36, %v1130_v20  ;;  %v1437_v15 = vmul.f32 %v4143_v56, %v1130_v20  ;;  %v1438_v1 = vmul.f32 %v4145_v31, %v1130_v20  ;;  %v1439_v21 = vmul.f32 %v8463_v26, %v1130_v20 }
 0x201   : > { %v6061_v57 = vadd.f32 %v1432_v14, %v976_v53  ;;  %v6063_v6 = vadd.f32 %v1433_v2, %v977_v55  ;;  %v6065_v60 = vadd.f32 %v1434_v12, %v978_v42  ;;  %v6067_v3 = vadd.f32 %v1435_v51, %v979_v33  ;;  %v8859_v53 = vld [vmem:[#allocation215_spill] sm:$0xff]  ;;  %v8860_v14 = vld [vmem:[#allocation216_spill] sm:$0xff]  ;;  %v8861_v33 = vld [vmem:[#allocation217_spill] sm:$0xff] }
 0x202   : > { %v6069_v46 = vadd.f32 %v1436_v45, %v980_v58  ;;  %v6071_v59 = vadd.f32 %v1437_v15, %v981_v8  ;;  %v6073_v10 = vadd.f32 %v1438_v1, %v982_v47  ;;  %v6075_v5 = vadd.f32 %v1439_v21, %v983_v62  ;;  %v8862_v2 = vld [vmem:[#allocation218_spill] sm:$0xff]  ;;  %v8863_v47 = vld [vmem:[#allocation219_spill] sm:$0xff]  ;;  %v8864_v12 = vld [vmem:[#allocation220_spill] sm:$0xff] }
 0x203   : > { %8850 = vst [vmem:[#allocation204_spill] sm:$0xff] %v6061_v57  ;;  %8851 = vst [vmem:[#allocation205_spill] sm:$0xff] %v6063_v6  ;;  %v984_v20 = vadd.f32 %v4109_v0, %v8858_v30  ;;  %v985_v55 = vadd.f32 %v4113_v25, %v8859_v53  ;;  %v986_v42 = vadd.f32 %v4116_v29, %v8860_v14  ;;  %v8865_v45 = vld [vmem:[#allocation221_spill] sm:$0xff] }
 0x204   : > { %8852 = vst [vmem:[#allocation222_spill] sm:$0xff] %v6065_v60  ;;  %8853 = vst [vmem:[#allocation223_spill] sm:$0xff] %v6067_v3  ;;  %v987_v58 = vadd.f32 %v4119_v48, %v8861_v33  ;;  %v988_v8 = vadd.f32 %v8441_v16, %v8862_v2  ;;  %v989_v62 = vadd.f32 %v4125_v35, %v8863_v47 }
 0x205   : > { %8854 = vst [vmem:[#allocation224_spill] sm:$0xff] %v6069_v46  ;;  %8855 = vst [vmem:[#allocation225_spill] sm:$0xff] %v6071_v59  ;;  %v990_v51 = vadd.f32 %v4128_v38, %v8864_v12  ;;  %v991_v30 = vadd.f32 %v4131_v39, %v8865_v45  ;;  %v1440_v15 = vmul.f32 %v4133_v40, %v1134_v43  ;;  %v1138_v12 = vpop.permute.xlu1 %1137 }
 0x206   : > { %8856 = vst [vmem:[#allocation226_spill] sm:$0xff] %v6073_v10  ;;  %8857 = vst [vmem:[#allocation227_spill] sm:$0xff] %v6075_v5  ;;  %v1441_v1 = vmul.f32 %v4135_v41, %v1134_v43  ;;  %v1442_v21 = vmul.f32 %v4137_v49, %v1134_v43  ;;  %v1443_v53 = vmul.f32 %v4139_v37, %v1134_v43 }
 0x207   : > { %v1444_v14 = vmul.f32 %v4141_v36, %v1134_v43  ;;  %v1445_v33 = vmul.f32 %v4143_v56, %v1134_v43  ;;  %v1446_v2 = vmul.f32 %v4145_v31, %v1134_v43  ;;  %v1447_v47 = vmul.f32 %v8463_v26, %v1134_v43 }
 0x208   : > { %v6101_v5 = vadd.f32 %v1440_v15, %v984_v20  ;;  %v6103_v45 = vadd.f32 %v1441_v1, %v985_v55  ;;  %v6105_v10 = vadd.f32 %v1442_v21, %v986_v42  ;;  %v6107_v59 = vadd.f32 %v1443_v53, %v987_v58  ;;  %v8869_v53 = vld [vmem:[#allocation12_spill] sm:$0xff] }
 0x209   : > { %v6109_v46 = vadd.f32 %v1444_v14, %v988_v8  ;;  %v6111_v3 = vadd.f32 %v1445_v33, %v989_v62  ;;  %v6113_v60 = vadd.f32 %v1446_v2, %v990_v51  ;;  %v6115_v6 = vadd.f32 %v1447_v47, %v991_v30  ;;  %v8870_v33 = vld [vmem:[#allocation237_spill] sm:$0xff]  ;;  %v8872_v47 = vld [vmem:[#allocation11_spill] sm:$0xff] }
 0x20a   : > { %v1448_v57 = vmul.f32 %v4133_v40, %v1138_v12  ;;  %v1449_v43 = vmul.f32 %v4135_v41, %v1138_v12  ;;  %v1450_v20 = vmul.f32 %v4137_v49, %v1138_v12  ;;  %v1451_v55 = vmul.f32 %v4139_v37, %v1138_v12 }
 0x20b   : > { %8866 = vst [vmem:[#allocation228_spill] sm:$0xff] %v6111_v3  ;;  %8867 = vst [vmem:[#allocation229_spill] sm:$0xff] %v6113_v60  ;;  %v1452_v42 = vmul.f32 %v4141_v36, %v1138_v12  ;;  %v1453_v58 = vmul.f32 %v4143_v56, %v1138_v12  ;;  %v1454_v8 = vmul.f32 %v4145_v31, %v1138_v12 }
 0x20c   : > { %8868 = vst [vmem:[#allocation214_spill] sm:$0xff] %v6115_v6  ;;  %v1455_v62 = vmul.f32 %v8463_v26, %v1138_v12  ;;  %v6126_v51 = vadd.f32 %v1448_v57, %v4883_v17  ;;  %v6129_v30 = vadd.f32 %v1449_v43, %v4886_v11  ;;  %v6132_v15 = vadd.f32 %v1450_v20, %v4889_v18  ;;  %v8871_v17 = vld [vmem:[#allocation238_spill] sm:$0xff]  ;;  %v1142_v11 = vpop.permute.xlu0 %1141  ;;  %v8874_v43 = vld [vmem:[#allocation231_spill] sm:$0xff]  ;;  %v8875_v20 = vld [vmem:[#allocation232_spill] sm:$0xff] }
 0x20d   : > { %v6135_v1 = vadd.f32 %v1451_v55, %v4892_v9  ;;  %v6138_v21 = vadd.f32 %v1452_v42, %v4896_v7  ;;  %v6141_v14 = vadd.f32 %v1453_v58, %v8869_v53  ;;  %v6144_v2 = vadd.f32 %v1454_v8, %v8870_v33  ;;  %v8873_v12 = vld [vmem:[#allocation230_spill] sm:$0xff]  ;;  %v8876_v42 = vld [vmem:[#allocation233_spill] sm:$0xff]  ;;  %v8878_v53 = vld [vmem:[#allocation235_spill] sm:$0xff] }
 0x20e   : > { %v6147_v57 = vadd.f32 %v1455_v62, %v8871_v17  ;;  %v1000_v18 = vadd.f32 %v4109_v0, %v8872_v47  ;;  %v1001_v9 = vadd.f32 %v4113_v25, %v8873_v12  ;;  %v1002_v7 = vadd.f32 %v4116_v29, %v8874_v43  ;;  %v8877_v8 = vld [vmem:[#allocation234_spill] sm:$0xff]  ;;  %v8879_v17 = vld [vmem:[#allocation236_spill] sm:$0xff] }
 0x20f   : > { %v1003_v55 = vadd.f32 %v4119_v48, %v8875_v20  ;;  %v1004_v58 = vadd.f32 %v8441_v16, %v8876_v42  ;;  %v1005_v62 = vadd.f32 %v4125_v35, %v8877_v8  ;;  %v1006_v33 = vadd.f32 %v4128_v38, %v8878_v53  ;;  %v1146_v53 = vpop.permute.xlu1 %1145 }
 0x210   : > { %v1007_v47 = vadd.f32 %v4131_v39, %v8879_v17  ;;  %v1456_v12 = vmul.f32 %v4133_v40, %v1142_v11  ;;  %v1457_v25 = vmul.f32 %v4135_v41, %v1142_v11  ;;  %v1458_v43 = vmul.f32 %v4137_v49, %v1142_v11  ;;  %v1150_v3 = vpop.permute.xlu0 %1149 }
 0x211   : > { %v1459_v20 = vmul.f32 %v4139_v37, %v1142_v11  ;;  %v1460_v48 = vmul.f32 %v4141_v36, %v1142_v11  ;;  %v1461_v42 = vmul.f32 %v4143_v56, %v1142_v11  ;;  %v1462_v8 = vmul.f32 %v4145_v31, %v1142_v11 }
 0x212   : > { %v1463_v35 = vmul.f32 %v8463_v26, %v1142_v11  ;;  %v6173_v38 = vadd.f32 %v1456_v12, %v1000_v18  ;;  %v6175_v17 = vadd.f32 %v1457_v25, %v1001_v9  ;;  %v6177_v39 = vadd.f32 %v1458_v43, %v1002_v7 }
 0x213   : > { %v6179_v16 = vadd.f32 %v1459_v20, %v1003_v55  ;;  %v6181_v29 = vadd.f32 %v1460_v48, %v1004_v58  ;;  %v6183_v0 = vadd.f32 %v1461_v42, %v1005_v62  ;;  %v6185_v6 = vadd.f32 %v1462_v8, %v1006_v33  ;;  %v8898_v42 = vld [vmem:[#allocation15_spill] sm:$0xff] }
 0x214   : > { %v6187_v60 = vadd.f32 %v1463_v35, %v1007_v47  ;;  %v6190_v11 = vmul.f32 %v4133_v40, %v1146_v53  ;;  %v6193_v18 = vmul.f32 %v4135_v41, %v1146_v53  ;;  %v6196_v25 = vmul.f32 %v4137_v49, %v1146_v53 }
 0x215   : > { %8880 = vst [vmem:[#allocation215_spill] sm:$0xff] %v6185_v6  ;;  %v6199_v9 = vmul.f32 %v4139_v37, %v1146_v53  ;;  %v6202_v48 = vmul.f32 %v4141_v36, %v1146_v53  ;;  %v6205_v7 = vmul.f32 %v4143_v56, %v1146_v53  ;;  %v6208_v35 = vmul.f32 %v4145_v31, %v1146_v53 }
 0x216   : > { %8881 = vst [vmem:[#allocation216_spill] sm:$0xff] %v6187_v60  ;;  %8882 = vst [vmem:[#allocation217_spill] sm:$0xff] %v6190_v11  ;;  %v6211_v55 = vmul.f32 %v8463_v26, %v1146_v53  ;;  %v6214_v58 = vmul.f32 %v4133_v40, %v1150_v3  ;;  %v6217_v62 = vmul.f32 %v4135_v41, %v1150_v3  ;;  %v3638_v41 = vld [vmem:[#allocation2] sm:$0xff] }
 0x217   : > { %8883 = vst [vmem:[#allocation218_spill] sm:$0xff] %v6193_v18  ;;  %8884 = vst [vmem:[#allocation219_spill] sm:$0xff] %v6196_v25  ;;  %v6220_v33 = vmul.f32 %v4137_v49, %v1150_v3  ;;  %v6223_v47 = vmul.f32 %v4139_v37, %v1150_v3  ;;  %v6226_v12 = vmul.f32 %v4141_v36, %v1150_v3  ;;  %v8899_v49 = vld [vmem:[#allocation17_spill] sm:$0xff] }
 0x218   : > { %8885 = vst [vmem:[#allocation220_spill] sm:$0xff] %v6199_v9  ;;  %8886 = vst [vmem:[#allocation221_spill] sm:$0xff] %v6202_v48  ;;  %v6229_v43 = vmul.f32 %v4143_v56, %v1150_v3  ;;  %v6232_v20 = vmul.f32 %v4145_v31, %v1150_v3  ;;  %v6235_v40 = vmul.f32 %v8463_v26, %v1150_v3  ;;  %v3641_v31 = vld [vmem:[#allocation2 + $0x18] sm:$0xff]  ;;  %v1738_v3 = vpop.permute.xlu1 %1737 }
 0x219   : > { %8887 = vst [vmem:[#allocation12_spill] sm:$0xff] %v6205_v7  ;;  %8888 = vst [vmem:[#allocation237_spill] sm:$0xff] %v6208_v35  ;;  %v1867_v8 = vrot.slane %v3638_v41, %v8898_v42  ;;  %v1871_v53 = vrot.slane %v3638_v41, %v8899_v49  ;;  %v3640_v35 = vld [vmem:[#allocation2 + $0x10] sm:$0xff]  ;;  %v1891_v48 = vrot.slane %v3641_v31, %v8898_v42 }
 0x21a   : > { %8889 = vst [vmem:[#allocation238_spill] sm:$0xff] %v6211_v55  ;;  %8890 = vst [vmem:[#allocation11_spill] sm:$0xff] %v6214_v58  ;;  %v3639_v55 = vld [vmem:[#allocation2 + $0x8] sm:$0xff]  ;;  %v1883_v56 = vrot.slane %v3640_v35, %v8898_v42  ;;  %v1887_v7 = vrot.slane %v3640_v35, %v8899_v49  ;;  %v1895_v26 = vrot.slane %v3641_v31, %v8899_v49 }
 0x21b   : > { %8891 = vst [vmem:[#allocation230_spill] sm:$0xff] %v6217_v62  ;;  %8892 = vst [vmem:[#allocation231_spill] sm:$0xff] %v6220_v33  ;;  %v1875_v37 = vrot.slane %v3639_v55, %v8898_v42  ;;  %v1879_v36 = vrot.slane %v3639_v55, %v8899_v49  ;;  %v6246_v9 = vrot.slane %v1867_v8, %v8898_v42  ;;  %v8906_v33 = vld [vmem:[#allocation38_spill] sm:$0xff]  ;;  %v8908_v58 = vld [vmem:[#allocation39_spill] sm:$0xff] }
 0x21c   : > { %8893 = vst [vmem:[#allocation232_spill] sm:$0xff] %v6223_v47  ;;  %8894 = vst [vmem:[#allocation233_spill] sm:$0xff] %v6226_v12  ;;  %v6249_v41 = vrot.slane %v1871_v53, %v8898_v42  ;;  %v6258_v35 = vrot.slane %v1883_v56, %v8898_v42  ;;  %v6261_v18 = vrot.slane %v1887_v7, %v8898_v42  ;;  %v8904_v12 = vld [vmem:[#allocation37_spill] sm:$0xff] }
 0x21d   : > { %8895 = vst [vmem:[#allocation234_spill] sm:$0xff] %v6229_v43  ;;  %8896 = vst [vmem:[#allocation235_spill] sm:$0xff] %v6232_v20  ;;  %v6252_v25 = vrot.slane %v1875_v37, %v8898_v42  ;;  %v6255_v55 = vrot.slane %v1879_v36, %v8898_v42  ;;  %v6264_v49 = vrot.slane %v1891_v48, %v8898_v42  ;;  %v8902_v20 = vld [vmem:[#allocation36_spill] sm:$0xff] }
 0x21e   : > { %8897 = vst [vmem:[#allocation236_spill] sm:$0xff] %v6235_v40  ;;  %v6267_v8 = vrot.slane %v1895_v26, %v8898_v42  ;;  %v1936_v53 = vmul.f32 %v6246_v9, %v1738_v3  ;;  %v1937_v37 = vmul.f32 %v6249_v41, %v1738_v3  ;;  %v1940_v56 = vmul.f32 %v6258_v35, %v1738_v3  ;;  %v1742_v40 = vpop.permute.xlu0 %1741 }
 0x21f   : > { %v1938_v31 = vmul.f32 %v6252_v25, %v1738_v3  ;;  %v1939_v36 = vmul.f32 %v6255_v55, %v1738_v3  ;;  %v1941_v11 = vmul.f32 %v6261_v18, %v1738_v3  ;;  %v1942_v7 = vmul.f32 %v6264_v49, %v1738_v3 }
 0x220   : > { %v1943_v48 = vmul.f32 %v6267_v8, %v1738_v3  ;;  %v6278_v42 = vadd.f32 %v1936_v53, %v5035_v54  ;;  %v6281_v26 = vadd.f32 %v1937_v37, %v5037_v28  ;;  %v6290_v62 = vadd.f32 %v1940_v56, %v8906_v33  ;;  %v8910_v3 = vld [vmem:[#allocation40_spill] sm:$0xff]  ;;  %v8912_v54 = vld [vmem:[#allocation41_spill] sm:$0xff]  ;;  %v8914_v56 = vld [vmem:[#allocation14_spill] sm:$0xff] }
 0x221   : > { %v6284_v43 = vadd.f32 %v1938_v31, %v8902_v20  ;;  %v6287_v47 = vadd.f32 %v1939_v36, %v8904_v12  ;;  %v6293_v60 = vadd.f32 %v1941_v11, %v8908_v58  ;;  %v6296_v6 = vadd.f32 %v1942_v7, %v8910_v3  ;;  %v1746_v36 = vpop.permute.xlu1 %1745 }
 0x222   : > { %8900 = vst [vmem:[#allocation15_spill] sm:$0xff] %v6278_v42  ;;  %8901 = vst [vmem:[#allocation17_spill] sm:$0xff] %v6281_v26  ;;  %v6299_v53 = vadd.f32 %v1943_v48, %v8912_v54  ;;  %v1944_v28 = vmul.f32 %v6246_v9, %v1742_v40  ;;  %v1945_v20 = vmul.f32 %v6249_v41, %v1742_v40  ;;  %v8916_v48 = vld [vmem:[#allocation27_spill] sm:$0xff]  ;;  %v8918_v54 = vld [vmem:[#allocation254_spill] sm:$0xff] }
 0x223   : > { %8903 = vst [vmem:[#allocation36_spill] sm:$0xff] %v6284_v43  ;;  %8905 = vst [vmem:[#allocation37_spill] sm:$0xff] %v6287_v47  ;;  %v1946_v37 = vmul.f32 %v6252_v25, %v1742_v40  ;;  %v1947_v12 = vmul.f32 %v6255_v55, %v1742_v40  ;;  %v1948_v33 = vmul.f32 %v6258_v35, %v1742_v40  ;;  %v8924_v43 = vld [vmem:[#allocation257_spill] sm:$0xff] }
 0x224   : > { %8907 = vst [vmem:[#allocation38_spill] sm:$0xff] %v6290_v62  ;;  %8909 = vst [vmem:[#allocation39_spill] sm:$0xff] %v6293_v60  ;;  %v1949_v31 = vmul.f32 %v6261_v18, %v1742_v40  ;;  %v1950_v11 = vmul.f32 %v6264_v49, %v1742_v40  ;;  %v1951_v58 = vmul.f32 %v6267_v8, %v1742_v40  ;;  %v8922_v62 = vld [vmem:[#allocation256_spill] sm:$0xff]  ;;  %v8926_v40 = vld [vmem:[#allocation258_spill] sm:$0xff] }
 0x225   : > { %8911 = vst [vmem:[#allocation40_spill] sm:$0xff] %v6296_v6  ;;  %8913 = vst [vmem:[#allocation41_spill] sm:$0xff] %v6299_v53  ;;  %v6310_v7 = vadd.f32 %v1944_v28, %v8914_v56  ;;  %v6313_v3 = vadd.f32 %v1945_v20, %v8916_v48  ;;  %v6316_v53 = vadd.f32 %v1946_v37, %v8918_v54  ;;  %v8920_v6 = vld [vmem:[#allocation255_spill] sm:$0xff] }
 0x226   : > { %v6319_v60 = vadd.f32 %v1947_v12, %v8920_v6  ;;  %v6322_v47 = vadd.f32 %v1948_v33, %v8922_v62  ;;  %v6325_v26 = vadd.f32 %v1949_v31, %v8924_v43  ;;  %v6328_v42 = vadd.f32 %v1950_v11, %v8926_v40  ;;  %v8928_v28 = vld [vmem:[#allocation259_spill] sm:$0xff]  ;;  %v1754_v31 = vpop.permute.xlu0 %1753  ;;  %v8930_v11 = vld [vmem:[#allocation42_spill] sm:$0xff] }
 0x227   : > { %8915 = vst [vmem:[#allocation14_spill] sm:$0xff] %v6310_v7  ;;  %8917 = vst [vmem:[#allocation27_spill] sm:$0xff] %v6313_v3  ;;  %v6331_v56 = vadd.f32 %v1951_v58, %v8928_v28  ;;  %v1952_v20 = vmul.f32 %v6246_v9, %v1746_v36  ;;  %v1953_v37 = vmul.f32 %v6249_v41, %v1746_v36  ;;  %v8932_v54 = vld [vmem:[#allocation43_spill] sm:$0xff]  ;;  %v8934_v28 = vld [vmem:[#allocation28_spill] sm:$0xff] }
 0x228   : > { %8919 = vst [vmem:[#allocation254_spill] sm:$0xff] %v6316_v53  ;;  %8921 = vst [vmem:[#allocation255_spill] sm:$0xff] %v6319_v60  ;;  %v1954_v48 = vmul.f32 %v6252_v25, %v1746_v36  ;;  %v1955_v6 = vmul.f32 %v6255_v55, %v1746_v36  ;;  %v1956_v62 = vmul.f32 %v6258_v35, %v1746_v36  ;;  %v8940_v53 = vld [vmem:[#allocation31_spill] sm:$0xff] }
 0x229   : > { %8923 = vst [vmem:[#allocation256_spill] sm:$0xff] %v6322_v47  ;;  %8925 = vst [vmem:[#allocation257_spill] sm:$0xff] %v6325_v26  ;;  %v1957_v12 = vmul.f32 %v6261_v18, %v1746_v36  ;;  %v1958_v43 = vmul.f32 %v6264_v49, %v1746_v36  ;;  %v1959_v33 = vmul.f32 %v6267_v8, %v1746_v36  ;;  %v8938_v47 = vld [vmem:[#allocation30_spill] sm:$0xff]  ;;  %v8942_v36 = vld [vmem:[#allocation32_spill] sm:$0xff] }
 0x22a   : > { %8927 = vst [vmem:[#allocation258_spill] sm:$0xff] %v6328_v42  ;;  %8929 = vst [vmem:[#allocation259_spill] sm:$0xff] %v6331_v56  ;;  %v6342_v58 = vadd.f32 %v1952_v20, %v8930_v11  ;;  %v6345_v40 = vadd.f32 %v1953_v37, %v8932_v54  ;;  %v6348_v56 = vadd.f32 %v1954_v48, %v8934_v28  ;;  %v8936_v42 = vld [vmem:[#allocation29_spill] sm:$0xff] }
 0x22b   : > { %v6351_v26 = vadd.f32 %v1955_v6, %v8936_v42  ;;  %v6354_v60 = vadd.f32 %v1956_v62, %v8938_v47  ;;  %v6357_v3 = vadd.f32 %v1957_v12, %v8940_v53  ;;  %v6360_v7 = vadd.f32 %v1958_v43, %v8942_v36  ;;  %v8944_v20 = vld [vmem:[#allocation33_spill] sm:$0xff]  ;;  %v1750_v12 = vpop.permute.xlu1 %1749  ;;  %v8949_v36 = vld [vmem:[#allocation51_spill] sm:$0xff] }
 0x22c   : > { %8931 = vst [vmem:[#allocation42_spill] sm:$0xff] %v6342_v58  ;;  %8933 = vst [vmem:[#allocation43_spill] sm:$0xff] %v6345_v40  ;;  %v6363_v11 = vadd.f32 %v1959_v33, %v8944_v20  ;;  %v1968_v37 = vmul.f32 %v6246_v9, %v1754_v31  ;;  %v1969_v48 = vmul.f32 %v6249_v41, %v1754_v31  ;;  %v8947_v33 = vld [vmem:[#allocation50_spill] sm:$0xff] }
 0x22d   : > { %8935 = vst [vmem:[#allocation28_spill] sm:$0xff] %v6348_v56  ;;  %8937 = vst [vmem:[#allocation29_spill] sm:$0xff] %v6351_v26  ;;  %v1970_v54 = vmul.f32 %v6252_v25, %v1754_v31  ;;  %v1971_v42 = vmul.f32 %v6255_v55, %v1754_v31  ;;  %v1972_v47 = vmul.f32 %v6258_v35, %v1754_v31  ;;  %v8955_v26 = vld [vmem:[#allocation62_spill] sm:$0xff] }
 0x22e   : > { %8939 = vst [vmem:[#allocation30_spill] sm:$0xff] %v6354_v60  ;;  %8941 = vst [vmem:[#allocation31_spill] sm:$0xff] %v6357_v3  ;;  %v1973_v6 = vmul.f32 %v6261_v18, %v1754_v31  ;;  %v1974_v53 = vmul.f32 %v6264_v49, %v1754_v31  ;;  %v1975_v62 = vmul.f32 %v6267_v8, %v1754_v31  ;;  %v8953_v3 = vld [vmem:[#allocation61_spill] sm:$0xff]  ;;  %v8957_v31 = vld [vmem:[#allocation63_spill] sm:$0xff] }
 0x22f   : > { %8943 = vst [vmem:[#allocation32_spill] sm:$0xff] %v6360_v7  ;;  %8945 = vst [vmem:[#allocation33_spill] sm:$0xff] %v6363_v11  ;;  %v6374_v43 = vadd.f32 %v1968_v37, %v5163_v4  ;;  %v6377_v28 = vadd.f32 %v1969_v48, %v8947_v33  ;;  %v6380_v20 = vadd.f32 %v1970_v54, %v8949_v36  ;;  %v8951_v11 = vld [vmem:[#allocation60_spill] sm:$0xff]  ;;  %v8962_v36 = vld [vmem:[#allocation35_spill] sm:$0xff] }
 0x230   : > { %v6383_v7 = vadd.f32 %v1971_v42, %v8951_v11  ;;  %v6386_v60 = vadd.f32 %v1972_v47, %v8953_v3  ;;  %v6389_v56 = vadd.f32 %v1973_v6, %v8955_v26  ;;  %v6392_v40 = vadd.f32 %v1974_v53, %v8957_v31  ;;  %v8959_v4 = vld [vmem:[#allocation64_spill] sm:$0xff]  ;;  %v1762_v6 = vpop.permute.xlu0 %1761  ;;  %v8961_v53 = vld [vmem:[#allocation34_spill] sm:$0xff] }
 0x231   : > { %8946 = vst [vmem:[#allocation260_spill] sm:$0xff] %v6374_v43  ;;  %8948 = vst [vmem:[#allocation50_spill] sm:$0xff] %v6377_v28  ;;  %v6395_v37 = vadd.f32 %v1975_v62, %v8959_v4  ;;  %v1960_v48 = vmul.f32 %v6246_v9, %v1750_v12  ;;  %v1961_v54 = vmul.f32 %v6249_v41, %v1750_v12  ;;  %v8963_v4 = vld [vmem:[#allocation44_spill] sm:$0xff] }
 0x232   : > { %8950 = vst [vmem:[#allocation51_spill] sm:$0xff] %v6380_v20  ;;  %8952 = vst [vmem:[#allocation60_spill] sm:$0xff] %v6383_v7  ;;  %v1962_v33 = vmul.f32 %v6252_v25, %v1750_v12  ;;  %v1963_v11 = vmul.f32 %v6255_v55, %v1750_v12  ;;  %v1964_v3 = vmul.f32 %v6258_v35, %v1750_v12  ;;  %v8968_v20 = vld [vmem:[#allocation47_spill] sm:$0xff] }
 0x233   : > { %8954 = vst [vmem:[#allocation61_spill] sm:$0xff] %v6386_v60  ;;  %8956 = vst [vmem:[#allocation62_spill] sm:$0xff] %v6389_v56  ;;  %v1965_v42 = vmul.f32 %v6261_v18, %v1750_v12  ;;  %v1966_v26 = vmul.f32 %v6264_v49, %v1750_v12  ;;  %v1967_v47 = vmul.f32 %v6267_v8, %v1750_v12  ;;  %v8966_v60 = vld [vmem:[#allocation46_spill] sm:$0xff]  ;;  %v8970_v12 = vld [vmem:[#allocation48_spill] sm:$0xff] }
 0x234   : > { %8958 = vst [vmem:[#allocation63_spill] sm:$0xff] %v6392_v40  ;;  %8960 = vst [vmem:[#allocation64_spill] sm:$0xff] %v6395_v37  ;;  %v6406_v62 = vadd.f32 %v1960_v48, %v8961_v53  ;;  %v6409_v31 = vadd.f32 %v1961_v54, %v8962_v36  ;;  %v6412_v37 = vadd.f32 %v1962_v33, %v8963_v4  ;;  %v8964_v40 = vld [vmem:[#allocation45_spill] sm:$0xff]  ;;  %v8976_v4 = vld [vmem:[#allocation58_spill] sm:$0xff] }
 0x235   : > { %v6415_v56 = vadd.f32 %v1963_v11, %v8964_v40  ;;  %v6418_v7 = vadd.f32 %v1964_v3, %v8966_v60  ;;  %v6421_v28 = vadd.f32 %v1965_v42, %v8968_v20  ;;  %v6424_v43 = vadd.f32 %v1966_v26, %v8970_v12  ;;  %v8972_v48 = vld [vmem:[#allocation49_spill] sm:$0xff]  ;;  %v1758_v42 = vpop.permute.xlu1 %1757 }
 0x236   : > { %v6427_v53 = vadd.f32 %v1967_v47, %v8972_v48  ;;  %v1984_v54 = vmul.f32 %v6246_v9, %v1762_v6  ;;  %v1985_v33 = vmul.f32 %v6249_v41, %v1762_v6  ;;  %v1986_v36 = vmul.f32 %v6252_v25, %v1762_v6  ;;  %v8978_v48 = vld [vmem:[#allocation59_spill] sm:$0xff] }
 0x237   : > { %8965 = vst [vmem:[#allocation34_spill] sm:$0xff] %v6415_v56  ;;  %8967 = vst [vmem:[#allocation35_spill] sm:$0xff] %v6418_v7  ;;  %v1987_v40 = vmul.f32 %v6255_v55, %v1762_v6  ;;  %v1988_v60 = vmul.f32 %v6258_v35, %v1762_v6  ;;  %v1989_v11 = vmul.f32 %v6261_v18, %v1762_v6 }
 0x238   : > { %8969 = vst [vmem:[#allocation44_spill] sm:$0xff] %v6421_v28  ;;  %8971 = vst [vmem:[#allocation45_spill] sm:$0xff] %v6424_v43  ;;  %v1990_v20 = vmul.f32 %v6264_v49, %v1762_v6  ;;  %v1991_v3 = vmul.f32 %v6267_v8, %v1762_v6  ;;  %v6438_v26 = vadd.f32 %v1984_v54, %v5249_v34  ;;  %v8982_v28 = vld [vmem:[#allocation76_spill] sm:$0xff]  ;;  %v8984_v6 = vld [vmem:[#allocation77_spill] sm:$0xff] }
 0x239   : > { %8973 = vst [vmem:[#allocation46_spill] sm:$0xff] %v6427_v53  ;;  %v6441_v47 = vadd.f32 %v1985_v33, %v5251_v13  ;;  %v6444_v12 = vadd.f32 %v1986_v36, %v8976_v4  ;;  %v6447_v58 = vadd.f32 %v1987_v40, %v8978_v48  ;;  %v8980_v53 = vld [vmem:[#allocation75_spill] sm:$0xff]  ;;  %v6453_v7 = vadd.f32 %v1989_v11, %v8982_v28  ;;  %v8986_v34 = vld [vmem:[#allocation78_spill] sm:$0xff]  ;;  %v8988_v4 = vld [vmem:[#allocation65_spill] sm:$0xff] }
 0x23a   : > { %8974 = vst [vmem:[#allocation47_spill] sm:$0xff] %v6438_v26  ;;  %v6450_v43 = vadd.f32 %v1988_v60, %v8980_v53  ;;  %v6456_v56 = vadd.f32 %v1990_v20, %v8984_v6  ;;  %v6459_v54 = vadd.f32 %v1991_v3, %v8986_v34  ;;  %v1976_v13 = vmul.f32 %v6246_v9, %v1758_v42  ;;  %v1770_v20 = vpop.permute.xlu0 %1769  ;;  %v8989_v48 = vld [vmem:[#allocation66_spill] sm:$0xff]  ;;  %v8990_v34 = vld [vmem:[#allocation52_spill] sm:$0xff] }
 0x23b   : > { %8975 = vst [vmem:[#allocation48_spill] sm:$0xff] %v6441_v47  ;;  %8977 = vst [vmem:[#allocation49_spill] sm:$0xff] %v6444_v12  ;;  %v1977_v33 = vmul.f32 %v6249_v41, %v1758_v42  ;;  %v1978_v36 = vmul.f32 %v6252_v25, %v1758_v42  ;;  %v1979_v40 = vmul.f32 %v6255_v55, %v1758_v42  ;;  %v8996_v12 = vld [vmem:[#allocation55_spill] sm:$0xff] }
 0x23c   : > { %8979 = vst [vmem:[#allocation58_spill] sm:$0xff] %v6447_v58  ;;  %8981 = vst [vmem:[#allocation59_spill] sm:$0xff] %v6450_v43  ;;  %v1980_v53 = vmul.f32 %v6258_v35, %v1758_v42  ;;  %v1981_v60 = vmul.f32 %v6261_v18, %v1758_v42  ;;  %v1982_v28 = vmul.f32 %v6264_v49, %v1758_v42  ;;  %v8994_v43 = vld [vmem:[#allocation54_spill] sm:$0xff] }
 0x23d   : > { %8983 = vst [vmem:[#allocation75_spill] sm:$0xff] %v6453_v7  ;;  %8985 = vst [vmem:[#allocation76_spill] sm:$0xff] %v6456_v56  ;;  %v1983_v11 = vmul.f32 %v6267_v8, %v1758_v42  ;;  %v6470_v3 = vadd.f32 %v1976_v13, %v8988_v4  ;;  %v6473_v6 = vadd.f32 %v1977_v33, %v8989_v48  ;;  %v8992_v56 = vld [vmem:[#allocation53_spill] sm:$0xff]  ;;  %v8998_v42 = vld [vmem:[#allocation56_spill] sm:$0xff] }
 0x23e   : > { %8987 = vst [vmem:[#allocation77_spill] sm:$0xff] %v6459_v54  ;;  %v6476_v54 = vadd.f32 %v1978_v36, %v8990_v34  ;;  %v6479_v7 = vadd.f32 %v1979_v40, %v8992_v56  ;;  %v6482_v58 = vadd.f32 %v1980_v53, %v8994_v43  ;;  %v6485_v47 = vadd.f32 %v1981_v60, %v8996_v12  ;;  %v9000_v13 = vld [vmem:[#allocation57_spill] sm:$0xff]  ;;  %v1766_v60 = vpop.permute.xlu1 %1765 }
 0x23f   : > { %v6488_v26 = vadd.f32 %v1982_v28, %v8998_v42  ;;  %v6491_v4 = vadd.f32 %v1983_v11, %v9000_v13  ;;  %v2000_v33 = vmul.f32 %v6246_v9, %v1770_v20  ;;  %v2001_v36 = vmul.f32 %v6249_v41, %v1770_v20  ;;  %v9004_v34 = vld [vmem:[#allocation73_spill] sm:$0xff]  ;;  %v9006_v13 = vld [vmem:[#allocation74_spill] sm:$0xff] }
 0x240   : > { %8991 = vst [vmem:[#allocation78_spill] sm:$0xff] %v6476_v54  ;;  %8993 = vst [vmem:[#allocation65_spill] sm:$0xff] %v6479_v7  ;;  %v2002_v48 = vmul.f32 %v6252_v25, %v1770_v20  ;;  %v2003_v56 = vmul.f32 %v6255_v55, %v1770_v20  ;;  %v2004_v43 = vmul.f32 %v6258_v35, %v1770_v20 }
 0x241   : > { %8995 = vst [vmem:[#allocation66_spill] sm:$0xff] %v6482_v58  ;;  %8997 = vst [vmem:[#allocation52_spill] sm:$0xff] %v6485_v47  ;;  %v2005_v40 = vmul.f32 %v6261_v18, %v1770_v20  ;;  %v2006_v12 = vmul.f32 %v6264_v49, %v1770_v20  ;;  %v2007_v53 = vmul.f32 %v6267_v8, %v1770_v20  ;;  %v9010_v58 = vld [vmem:[#allocation90_spill] sm:$0xff]  ;;  %v9012_v20 = vld [vmem:[#allocation91_spill] sm:$0xff] }
 0x242   : > { %8999 = vst [vmem:[#allocation53_spill] sm:$0xff] %v6488_v26  ;;  %9001 = vst [vmem:[#allocation54_spill] sm:$0xff] %v6491_v4  ;;  %v6502_v28 = vadd.f32 %v2000_v33, %v5335_v44  ;;  %v6505_v11 = vadd.f32 %v2001_v36, %v5337_v32  ;;  %v6508_v42 = vadd.f32 %v2002_v48, %v9004_v34  ;;  %v9008_v26 = vld [vmem:[#allocation89_spill] sm:$0xff]  ;;  %v9014_v44 = vld [vmem:[#allocation92_spill] sm:$0xff] }
 0x243   : > { %v6511_v4 = vadd.f32 %v2003_v56, %v9006_v13  ;;  %v6514_v47 = vadd.f32 %v2004_v43, %v9008_v26  ;;  %v6517_v7 = vadd.f32 %v2005_v40, %v9010_v58  ;;  %v6520_v54 = vadd.f32 %v2006_v12, %v9012_v20  ;;  %v1778_v12 = vpop.permute.xlu0 %1777  ;;  %v9016_v34 = vld [vmem:[#allocation79_spill] sm:$0xff]  ;;  %v9017_v13 = vld [vmem:[#allocation80_spill] sm:$0xff] }
 0x244   : > { %9002 = vst [vmem:[#allocation55_spill] sm:$0xff] %v6502_v28  ;;  %9003 = vst [vmem:[#allocation56_spill] sm:$0xff] %v6505_v11  ;;  %v6523_v33 = vadd.f32 %v2007_v53, %v9014_v44  ;;  %v1992_v32 = vmul.f32 %v6246_v9, %v1766_v60  ;;  %v1993_v36 = vmul.f32 %v6249_v41, %v1766_v60  ;;  %v9018_v44 = vld [vmem:[#allocation67_spill] sm:$0xff] }
 0x245   : > { %9005 = vst [vmem:[#allocation57_spill] sm:$0xff] %v6508_v42  ;;  %9007 = vst [vmem:[#allocation73_spill] sm:$0xff] %v6511_v4  ;;  %v1994_v48 = vmul.f32 %v6252_v25, %v1766_v60  ;;  %v1995_v56 = vmul.f32 %v6255_v55, %v1766_v60  ;;  %v1996_v26 = vmul.f32 %v6258_v35, %v1766_v60  ;;  %v9024_v42 = vld [vmem:[#allocation70_spill] sm:$0xff] }
 0x246   : > { %9009 = vst [vmem:[#allocation74_spill] sm:$0xff] %v6514_v47  ;;  %9011 = vst [vmem:[#allocation89_spill] sm:$0xff] %v6517_v7  ;;  %v1997_v43 = vmul.f32 %v6261_v18, %v1766_v60  ;;  %v1998_v58 = vmul.f32 %v6264_v49, %v1766_v60  ;;  %v1999_v40 = vmul.f32 %v6267_v8, %v1766_v60  ;;  %v9022_v47 = vld [vmem:[#allocation69_spill] sm:$0xff]  ;;  %v9026_v60 = vld [vmem:[#allocation71_spill] sm:$0xff] }
 0x247   : > { %9013 = vst [vmem:[#allocation90_spill] sm:$0xff] %v6520_v54  ;;  %9015 = vst [vmem:[#allocation91_spill] sm:$0xff] %v6523_v33  ;;  %v6534_v53 = vadd.f32 %v1992_v32, %v9016_v34  ;;  %v6537_v20 = vadd.f32 %v1993_v36, %v9017_v13  ;;  %v6540_v33 = vadd.f32 %v1994_v48, %v9018_v44  ;;  %v9020_v54 = vld [vmem:[#allocation68_spill] sm:$0xff]  ;;  %v9032_v44 = vld [vmem:[#allocation87_spill] sm:$0xff] }
 0x248   : > { %v6543_v7 = vadd.f32 %v1995_v56, %v9020_v54  ;;  %v6546_v4 = vadd.f32 %v1996_v26, %v9022_v47  ;;  %v6549_v11 = vadd.f32 %v1997_v43, %v9024_v42  ;;  %v6552_v28 = vadd.f32 %v1998_v58, %v9026_v60  ;;  %v9028_v32 = vld [vmem:[#allocation72_spill] sm:$0xff]  ;;  %v1774_v43 = vpop.permute.xlu1 %1773 }
 0x249   : > { %9019 = vst [vmem:[#allocation92_spill] sm:$0xff] %v6540_v33  ;;  %v6555_v34 = vadd.f32 %v1999_v40, %v9028_v32  ;;  %v2016_v36 = vmul.f32 %v6246_v9, %v1778_v12  ;;  %v2017_v48 = vmul.f32 %v6249_v41, %v1778_v12  ;;  %v2018_v13 = vmul.f32 %v6252_v25, %v1778_v12  ;;  %v9034_v32 = vld [vmem:[#allocation88_spill] sm:$0xff] }
 0x24a   : > { %9021 = vst [vmem:[#allocation79_spill] sm:$0xff] %v6543_v7  ;;  %9023 = vst [vmem:[#allocation80_spill] sm:$0xff] %v6546_v4  ;;  %v2019_v54 = vmul.f32 %v6255_v55, %v1778_v12  ;;  %v2020_v47 = vmul.f32 %v6258_v35, %v1778_v12  ;;  %v2021_v56 = vmul.f32 %v6261_v18, %v1778_v12  ;;  %v9038_v4 = vld [vmem:[#allocation104_spill] sm:$0xff] }
 0x24b   : > { %9025 = vst [vmem:[#allocation67_spill] sm:$0xff] %v6549_v11  ;;  %9027 = vst [vmem:[#allocation68_spill] sm:$0xff] %v6552_v28  ;;  %v2022_v42 = vmul.f32 %v6264_v49, %v1778_v12  ;;  %v2023_v26 = vmul.f32 %v6267_v8, %v1778_v12  ;;  %v6566_v58 = vadd.f32 %v2016_v36, %v5420_v50  ;;  %v9036_v28 = vld [vmem:[#allocation103_spill] sm:$0xff]  ;;  %v9040_v12 = vld [vmem:[#allocation105_spill] sm:$0xff] }
 0x24c   : > { %9029 = vst [vmem:[#allocation69_spill] sm:$0xff] %v6555_v34  ;;  %v6569_v40 = vadd.f32 %v2017_v48, %v5422_v52  ;;  %v6572_v60 = vadd.f32 %v2018_v13, %v9032_v44  ;;  %v6575_v34 = vadd.f32 %v2019_v54, %v9034_v32  ;;  %v6578_v11 = vadd.f32 %v2020_v47, %v9036_v28  ;;  %v9042_v50 = vld [vmem:[#allocation106_spill] sm:$0xff]  ;;  %v9044_v44 = vld [vmem:[#allocation93_spill] sm:$0xff] }
 0x24d   : > { %9030 = vst [vmem:[#allocation70_spill] sm:$0xff] %v6566_v58  ;;  %v6581_v7 = vadd.f32 %v2021_v56, %v9038_v4  ;;  %v6584_v33 = vadd.f32 %v2022_v42, %v9040_v12  ;;  %v6587_v36 = vadd.f32 %v2023_v26, %v9042_v50  ;;  %v2008_v52 = vmul.f32 %v6246_v9, %v1774_v43  ;;  %v1786_v42 = vpop.permute.xlu0 %1785  ;;  %v9045_v32 = vld [vmem:[#allocation94_spill] sm:$0xff]  ;;  %v9046_v50 = vld [vmem:[#allocation81_spill] sm:$0xff] }
 0x24e   : > { %9031 = vst [vmem:[#allocation71_spill] sm:$0xff] %v6569_v40  ;;  %9033 = vst [vmem:[#allocation72_spill] sm:$0xff] %v6572_v60  ;;  %v2009_v48 = vmul.f32 %v6249_v41, %v1774_v43  ;;  %v2010_v13 = vmul.f32 %v6252_v25, %v1774_v43  ;;  %v2011_v54 = vmul.f32 %v6255_v55, %v1774_v43  ;;  %v9052_v60 = vld [vmem:[#allocation84_spill] sm:$0xff] }
 0x24f   : > { %9035 = vst [vmem:[#allocation87_spill] sm:$0xff] %v6575_v34  ;;  %9037 = vst [vmem:[#allocation88_spill] sm:$0xff] %v6578_v11  ;;  %v2012_v28 = vmul.f32 %v6258_v35, %v1774_v43  ;;  %v2013_v47 = vmul.f32 %v6261_v18, %v1774_v43  ;;  %v2014_v4 = vmul.f32 %v6264_v49, %v1774_v43  ;;  %v9050_v11 = vld [vmem:[#allocation83_spill] sm:$0xff] }
 0x250   : > { %9039 = vst [vmem:[#allocation103_spill] sm:$0xff] %v6581_v7  ;;  %9041 = vst [vmem:[#allocation104_spill] sm:$0xff] %v6584_v33  ;;  %v2015_v56 = vmul.f32 %v6267_v8, %v1774_v43  ;;  %v6598_v26 = vadd.f32 %v2008_v52, %v9044_v44  ;;  %v6601_v12 = vadd.f32 %v2009_v48, %v9045_v32  ;;  %v9048_v33 = vld [vmem:[#allocation82_spill] sm:$0xff]  ;;  %v9054_v43 = vld [vmem:[#allocation85_spill] sm:$0xff] }
 0x251   : > { %9043 = vst [vmem:[#allocation105_spill] sm:$0xff] %v6587_v36  ;;  %v6604_v36 = vadd.f32 %v2010_v13, %v9046_v50  ;;  %v6607_v7 = vadd.f32 %v2011_v54, %v9048_v33  ;;  %v6610_v34 = vadd.f32 %v2012_v28, %v9050_v11  ;;  %v6613_v40 = vadd.f32 %v2013_v47, %v9052_v60  ;;  %v9056_v52 = vld [vmem:[#allocation86_spill] sm:$0xff]  ;;  %v1782_v47 = vpop.permute.xlu1 %1781  ;;  %v9060_v50 = vld [vmem:[#allocation101_spill] sm:$0xff] }
 0x252   : > { %v6616_v58 = vadd.f32 %v2014_v4, %v9054_v43  ;;  %v6619_v44 = vadd.f32 %v2015_v56, %v9056_v52  ;;  %v2032_v48 = vmul.f32 %v6246_v9, %v1786_v42  ;;  %v2033_v13 = vmul.f32 %v6249_v41, %v1786_v42  ;;  %v9062_v52 = vld [vmem:[#allocation102_spill] sm:$0xff] }
 0x253   : > { %9047 = vst [vmem:[#allocation106_spill] sm:$0xff] %v6604_v36  ;;  %9049 = vst [vmem:[#allocation93_spill] sm:$0xff] %v6607_v7  ;;  %v2034_v32 = vmul.f32 %v6252_v25, %v1786_v42  ;;  %v2035_v33 = vmul.f32 %v6255_v55, %v1786_v42  ;;  %v2036_v11 = vmul.f32 %v6258_v35, %v1786_v42 }
 0x254   : > { %9051 = vst [vmem:[#allocation94_spill] sm:$0xff] %v6610_v34  ;;  %9053 = vst [vmem:[#allocation81_spill] sm:$0xff] %v6613_v40  ;;  %v2037_v54 = vmul.f32 %v6261_v18, %v1786_v42  ;;  %v2038_v60 = vmul.f32 %v6264_v49, %v1786_v42  ;;  %v2039_v28 = vmul.f32 %v6267_v8, %v1786_v42  ;;  %v9066_v34 = vld [vmem:[#allocation118_spill] sm:$0xff]  ;;  %v9068_v42 = vld [vmem:[#allocation119_spill] sm:$0xff] }
 0x255   : > { %9055 = vst [vmem:[#allocation82_spill] sm:$0xff] %v6616_v58  ;;  %9057 = vst [vmem:[#allocation83_spill] sm:$0xff] %v6619_v44  ;;  %v6630_v4 = vadd.f32 %v2032_v48, %v5501_v23  ;;  %v6633_v56 = vadd.f32 %v2033_v13, %v5503_v22  ;;  %v6636_v43 = vadd.f32 %v2034_v32, %v9060_v50  ;;  %v9064_v58 = vld [vmem:[#allocation117_spill] sm:$0xff]  ;;  %v9070_v23 = vld [vmem:[#allocation120_spill] sm:$0xff] }
 0x256   : > { %v6639_v44 = vadd.f32 %v2035_v33, %v9062_v52  ;;  %v6642_v40 = vadd.f32 %v2036_v11, %v9064_v58  ;;  %v6645_v7 = vadd.f32 %v2037_v54, %v9066_v34  ;;  %v6648_v36 = vadd.f32 %v2038_v60, %v9068_v42  ;;  %v1794_v60 = vpop.permute.xlu0 %1793  ;;  %v9072_v50 = vld [vmem:[#allocation107_spill] sm:$0xff]  ;;  %v9073_v52 = vld [vmem:[#allocation108_spill] sm:$0xff] }
 0x257   : > { %9058 = vst [vmem:[#allocation84_spill] sm:$0xff] %v6630_v4  ;;  %9059 = vst [vmem:[#allocation85_spill] sm:$0xff] %v6633_v56  ;;  %v6651_v48 = vadd.f32 %v2039_v28, %v9070_v23  ;;  %v2024_v22 = vmul.f32 %v6246_v9, %v1782_v47  ;;  %v2025_v13 = vmul.f32 %v6249_v41, %v1782_v47  ;;  %v9074_v23 = vld [vmem:[#allocation95_spill] sm:$0xff] }
 0x258   : > { %9061 = vst [vmem:[#allocation86_spill] sm:$0xff] %v6636_v43  ;;  %9063 = vst [vmem:[#allocation101_spill] sm:$0xff] %v6639_v44  ;;  %v2026_v32 = vmul.f32 %v6252_v25, %v1782_v47  ;;  %v2027_v33 = vmul.f32 %v6255_v55, %v1782_v47  ;;  %v2028_v58 = vmul.f32 %v6258_v35, %v1782_v47  ;;  %v9080_v43 = vld [vmem:[#allocation98_spill] sm:$0xff] }
 0x259   : > { %9065 = vst [vmem:[#allocation102_spill] sm:$0xff] %v6642_v40  ;;  %9067 = vst [vmem:[#allocation117_spill] sm:$0xff] %v6645_v7  ;;  %v2029_v11 = vmul.f32 %v6261_v18, %v1782_v47  ;;  %v2030_v34 = vmul.f32 %v6264_v49, %v1782_v47  ;;  %v2031_v54 = vmul.f32 %v6267_v8, %v1782_v47  ;;  %v9078_v40 = vld [vmem:[#allocation97_spill] sm:$0xff]  ;;  %v9082_v47 = vld [vmem:[#allocation99_spill] sm:$0xff] }
 0x25a   : > { %9069 = vst [vmem:[#allocation118_spill] sm:$0xff] %v6648_v36  ;;  %9071 = vst [vmem:[#allocation119_spill] sm:$0xff] %v6651_v48  ;;  %v6662_v28 = vadd.f32 %v2024_v22, %v9072_v50  ;;  %v6665_v42 = vadd.f32 %v2025_v13, %v9073_v52  ;;  %v6668_v48 = vadd.f32 %v2026_v32, %v9074_v23  ;;  %v9076_v36 = vld [vmem:[#allocation96_spill] sm:$0xff]  ;;  %v9088_v23 = vld [vmem:[#allocation115_spill] sm:$0xff] }
 0x25b   : > { %v6671_v7 = vadd.f32 %v2027_v33, %v9076_v36  ;;  %v6674_v44 = vadd.f32 %v2028_v58, %v9078_v40  ;;  %v6677_v56 = vadd.f32 %v2029_v11, %v9080_v43  ;;  %v6680_v4 = vadd.f32 %v2030_v34, %v9082_v47  ;;  %v9084_v22 = vld [vmem:[#allocation100_spill] sm:$0xff]  ;;  %v1790_v11 = vpop.permute.xlu1 %1789 }
 0x25c   : > { %9075 = vst [vmem:[#allocation120_spill] sm:$0xff] %v6668_v48  ;;  %v6683_v50 = vadd.f32 %v2031_v54, %v9084_v22  ;;  %v2048_v13 = vmul.f32 %v6246_v9, %v1794_v60  ;;  %v2049_v32 = vmul.f32 %v6249_v41, %v1794_v60  ;;  %v2050_v52 = vmul.f32 %v6252_v25, %v1794_v60  ;;  %v9090_v22 = vld [vmem:[#allocation116_spill] sm:$0xff] }
 0x25d   : > { %9077 = vst [vmem:[#allocation107_spill] sm:$0xff] %v6671_v7  ;;  %9079 = vst [vmem:[#allocation108_spill] sm:$0xff] %v6674_v44  ;;  %v2051_v36 = vmul.f32 %v6255_v55, %v1794_v60  ;;  %v2052_v40 = vmul.f32 %v6258_v35, %v1794_v60  ;;  %v2053_v33 = vmul.f32 %v6261_v18, %v1794_v60  ;;  %v9094_v44 = vld [vmem:[#allocation132_spill] sm:$0xff] }
 0x25e   : > { %9081 = vst [vmem:[#allocation95_spill] sm:$0xff] %v6677_v56  ;;  %9083 = vst [vmem:[#allocation96_spill] sm:$0xff] %v6680_v4  ;;  %v2054_v43 = vmul.f32 %v6264_v49, %v1794_v60  ;;  %v2055_v58 = vmul.f32 %v6267_v8, %v1794_v60  ;;  %v6694_v34 = vadd.f32 %v2048_v13, %v5581_v27  ;;  %v9092_v4 = vld [vmem:[#allocation131_spill] sm:$0xff]  ;;  %v9096_v60 = vld [vmem:[#allocation133_spill] sm:$0xff] }
 0x25f   : > { %9085 = vst [vmem:[#allocation97_spill] sm:$0xff] %v6683_v50  ;;  %v6697_v54 = vadd.f32 %v2049_v32, %v5583_v24  ;;  %v6700_v47 = vadd.f32 %v2050_v52, %v9088_v23  ;;  %v6703_v50 = vadd.f32 %v2051_v36, %v9090_v22  ;;  %v6706_v56 = vadd.f32 %v2052_v40, %v9092_v4  ;;  %v9098_v27 = vld [vmem:[#allocation134_spill] sm:$0xff]  ;;  %v9100_v23 = vld [vmem:[#allocation121_spill] sm:$0xff] }
 0x260   : > { %9086 = vst [vmem:[#allocation98_spill] sm:$0xff] %v6694_v34  ;;  %v6709_v7 = vadd.f32 %v2053_v33, %v9094_v44  ;;  %v6712_v48 = vadd.f32 %v2054_v43, %v9096_v60  ;;  %v6715_v13 = vadd.f32 %v2055_v58, %v9098_v27  ;;  %v2040_v24 = vmul.f32 %v6246_v9, %v1790_v11  ;;  %v1802_v43 = vpop.permute.xlu0 %1801  ;;  %v9101_v22 = vld [vmem:[#allocation122_spill] sm:$0xff]  ;;  %v9102_v27 = vld [vmem:[#allocation109_spill] sm:$0xff] }
 0x261   : > { %9087 = vst [vmem:[#allocation99_spill] sm:$0xff] %v6697_v54  ;;  %9089 = vst [vmem:[#allocation100_spill] sm:$0xff] %v6700_v47  ;;  %v2041_v32 = vmul.f32 %v6249_v41, %v1790_v11  ;;  %v2042_v52 = vmul.f32 %v6252_v25, %v1790_v11  ;;  %v2043_v36 = vmul.f32 %v6255_v55, %v1790_v11  ;;  %v9108_v47 = vld [vmem:[#allocation112_spill] sm:$0xff] }
 0x262   : > { %9091 = vst [vmem:[#allocation115_spill] sm:$0xff] %v6703_v50  ;;  %9093 = vst [vmem:[#allocation116_spill] sm:$0xff] %v6706_v56  ;;  %v2044_v4 = vmul.f32 %v6258_v35, %v1790_v11  ;;  %v2045_v40 = vmul.f32 %v6261_v18, %v1790_v11  ;;  %v2046_v44 = vmul.f32 %v6264_v49, %v1790_v11  ;;  %v9106_v56 = vld [vmem:[#allocation111_spill] sm:$0xff] }
 0x263   : > { %9095 = vst [vmem:[#allocation131_spill] sm:$0xff] %v6709_v7  ;;  %9097 = vst [vmem:[#allocation132_spill] sm:$0xff] %v6712_v48  ;;  %v2047_v33 = vmul.f32 %v6267_v8, %v1790_v11  ;;  %v6726_v58 = vadd.f32 %v2040_v24, %v9100_v23  ;;  %v6729_v60 = vadd.f32 %v2041_v32, %v9101_v22  ;;  %v9104_v48 = vld [vmem:[#allocation110_spill] sm:$0xff]  ;;  %v9110_v11 = vld [vmem:[#allocation113_spill] sm:$0xff] }
 0x264   : > { %9099 = vst [vmem:[#allocation133_spill] sm:$0xff] %v6715_v13  ;;  %v6732_v13 = vadd.f32 %v2042_v52, %v9102_v27  ;;  %v6735_v7 = vadd.f32 %v2043_v36, %v9104_v48  ;;  %v6738_v50 = vadd.f32 %v2044_v4, %v9106_v56  ;;  %v6741_v54 = vadd.f32 %v2045_v40, %v9108_v47  ;;  %v9112_v24 = vld [vmem:[#allocation114_spill] sm:$0xff]  ;;  %v1798_v40 = vpop.permute.xlu1 %1797  ;;  %v9116_v27 = vld [vmem:[#allocation129_spill] sm:$0xff] }
 0x265   : > { %v6744_v34 = vadd.f32 %v2046_v44, %v9110_v11  ;;  %v6747_v23 = vadd.f32 %v2047_v33, %v9112_v24  ;;  %v2064_v32 = vmul.f32 %v6246_v9, %v1802_v43  ;;  %v2065_v52 = vmul.f32 %v6249_v41, %v1802_v43  ;;  %v9118_v24 = vld [vmem:[#allocation130_spill] sm:$0xff] }
 0x266   : > { %9103 = vst [vmem:[#allocation134_spill] sm:$0xff] %v6732_v13  ;;  %9105 = vst [vmem:[#allocation121_spill] sm:$0xff] %v6735_v7  ;;  %v2066_v22 = vmul.f32 %v6252_v25, %v1802_v43  ;;  %v2067_v48 = vmul.f32 %v6255_v55, %v1802_v43  ;;  %v2068_v56 = vmul.f32 %v6258_v35, %v1802_v43 }
 0x267   : > { %9107 = vst [vmem:[#allocation122_spill] sm:$0xff] %v6738_v50  ;;  %9109 = vst [vmem:[#allocation109_spill] sm:$0xff] %v6741_v54  ;;  %v2069_v36 = vmul.f32 %v6261_v18, %v1802_v43  ;;  %v2070_v47 = vmul.f32 %v6264_v49, %v1802_v43  ;;  %v2071_v4 = vmul.f32 %v6267_v8, %v1802_v43  ;;  %v9122_v50 = vld [vmem:[#allocation146_spill] sm:$0xff]  ;;  %v9124_v43 = vld [vmem:[#allocation147_spill] sm:$0xff] }
 0x268   : > { %9111 = vst [vmem:[#allocation110_spill] sm:$0xff] %v6744_v34  ;;  %9113 = vst [vmem:[#allocation111_spill] sm:$0xff] %v6747_v23  ;;  %v6758_v44 = vadd.f32 %v2064_v32, %v5661_v19  ;;  %v6761_v33 = vadd.f32 %v2065_v52, %v5663_v63  ;;  %v6764_v11 = vadd.f32 %v2066_v22, %v9116_v27  ;;  %v9120_v34 = vld [vmem:[#allocation145_spill] sm:$0xff]  ;;  %v9126_v19 = vld [vmem:[#allocation148_spill] sm:$0xff] }
 0x269   : > { %v6767_v23 = vadd.f32 %v2067_v48, %v9118_v24  ;;  %v6770_v54 = vadd.f32 %v2068_v56, %v9120_v34  ;;  %v6773_v7 = vadd.f32 %v2069_v36, %v9122_v50  ;;  %v6776_v13 = vadd.f32 %v2070_v47, %v9124_v43  ;;  %v1810_v47 = vpop.permute.xlu0 %1809  ;;  %v9128_v27 = vld [vmem:[#allocation135_spill] sm:$0xff]  ;;  %v9129_v24 = vld [vmem:[#allocation136_spill] sm:$0xff] }
 0x26a   : > { %9114 = vst [vmem:[#allocation112_spill] sm:$0xff] %v6758_v44  ;;  %9115 = vst [vmem:[#allocation113_spill] sm:$0xff] %v6761_v33  ;;  %v6779_v32 = vadd.f32 %v2071_v4, %v9126_v19  ;;  %v2056_v63 = vmul.f32 %v6246_v9, %v1798_v40  ;;  %v2057_v52 = vmul.f32 %v6249_v41, %v1798_v40  ;;  %v9131_v19 = vld [vmem:[#allocation123_spill] sm:$0xff] }
 0x26b   : > { %9117 = vst [vmem:[#allocation114_spill] sm:$0xff] %v6764_v11  ;;  %9119 = vst [vmem:[#allocation129_spill] sm:$0xff] %v6767_v23  ;;  %v2058_v22 = vmul.f32 %v6252_v25, %v1798_v40  ;;  %v2059_v48 = vmul.f32 %v6255_v55, %v1798_v40  ;;  %v2060_v34 = vmul.f32 %v6258_v35, %v1798_v40  ;;  %v9137_v11 = vld [vmem:[#allocation126_spill] sm:$0xff] }
 0x26c   : > { %9121 = vst [vmem:[#allocation130_spill] sm:$0xff] %v6770_v54  ;;  %9123 = vst [vmem:[#allocation145_spill] sm:$0xff] %v6773_v7  ;;  %v2061_v56 = vmul.f32 %v6261_v18, %v1798_v40  ;;  %v2062_v50 = vmul.f32 %v6264_v49, %v1798_v40  ;;  %v2063_v36 = vmul.f32 %v6267_v8, %v1798_v40  ;;  %v9135_v54 = vld [vmem:[#allocation125_spill] sm:$0xff]  ;;  %v9139_v40 = vld [vmem:[#allocation127_spill] sm:$0xff] }
 0x26d   : > { %9125 = vst [vmem:[#allocation146_spill] sm:$0xff] %v6776_v13  ;;  %9127 = vst [vmem:[#allocation147_spill] sm:$0xff] %v6779_v32  ;;  %v6790_v4 = vadd.f32 %v2056_v63, %v9128_v27  ;;  %v6793_v43 = vadd.f32 %v2057_v52, %v9129_v24  ;;  %v6796_v32 = vadd.f32 %v2058_v22, %v9131_v19  ;;  %v9133_v13 = vld [vmem:[#allocation124_spill] sm:$0xff] }
 0x26e   : > { %v6799_v7 = vadd.f32 %v2059_v48, %v9133_v13  ;;  %v6802_v23 = vadd.f32 %v2060_v34, %v9135_v54  ;;  %v6805_v33 = vadd.f32 %v2061_v56, %v9137_v11  ;;  %v6808_v44 = vadd.f32 %v2062_v50, %v9139_v40  ;;  %v9141_v63 = vld [vmem:[#allocation128_spill] sm:$0xff]  ;;  %v1806_v56 = vpop.permute.xlu1 %1805 }
 0x26f   : > { %9130 = vst [vmem:[#allocation148_spill] sm:$0xff] %v6793_v43  ;;  %9132 = vst [vmem:[#allocation135_spill] sm:$0xff] %v6796_v32  ;;  %v6811_v27 = vadd.f32 %v2063_v36, %v9141_v63  ;;  %v2080_v52 = vmul.f32 %v6246_v9, %v1810_v47  ;;  %v2081_v22 = vmul.f32 %v6249_v41, %v1810_v47  ;;  %v9144_v36 = vld [vmem:[#allocation143_spill] sm:$0xff]  ;;  %v9146_v40 = vld [vmem:[#allocation144_spill] sm:$0xff] }
 0x270   : > { %9134 = vst [vmem:[#allocation136_spill] sm:$0xff] %v6799_v7  ;;  %9136 = vst [vmem:[#allocation123_spill] sm:$0xff] %v6802_v23  ;;  %v2082_v24 = vmul.f32 %v6252_v25, %v1810_v47  ;;  %v2083_v13 = vmul.f32 %v6255_v55, %v1810_v47  ;;  %v2084_v54 = vmul.f32 %v6258_v35, %v1810_v47  ;;  %v9152_v7 = vld [vmem:[#allocation161_spill] sm:$0xff] }
 0x271   : > { %9138 = vst [vmem:[#allocation124_spill] sm:$0xff] %v6805_v33  ;;  %9140 = vst [vmem:[#allocation125_spill] sm:$0xff] %v6808_v44  ;;  %v2085_v48 = vmul.f32 %v6261_v18, %v1810_v47  ;;  %v2086_v11 = vmul.f32 %v6264_v49, %v1810_v47  ;;  %v2087_v34 = vmul.f32 %v6267_v8, %v1810_v47  ;;  %v9150_v33 = vld [vmem:[#allocation160_spill] sm:$0xff]  ;;  %v9154_v47 = vld [vmem:[#allocation162_spill] sm:$0xff] }
 0x272   : > { %9142 = vst [vmem:[#allocation126_spill] sm:$0xff] %v6811_v27  ;;  %v6822_v50 = vadd.f32 %v2080_v52, %v5741_v61  ;;  %v6825_v19 = vadd.f32 %v2081_v22, %v9144_v36  ;;  %v6828_v63 = vadd.f32 %v2082_v24, %v9146_v40  ;;  %v9148_v27 = vld [vmem:[#allocation159_spill] sm:$0xff]  ;;  %v6834_v23 = vadd.f32 %v2084_v54, %v9150_v33  ;;  %v9160_v40 = vld [vmem:[#allocation150_spill] sm:$0xff] }
 0x273   : > { %v6831_v44 = vadd.f32 %v2083_v13, %v9148_v27  ;;  %v6837_v32 = vadd.f32 %v2085_v48, %v9152_v7  ;;  %v6840_v43 = vadd.f32 %v2086_v11, %v9154_v47  ;;  %v9156_v61 = vld [vmem:[#allocation163_spill] sm:$0xff]  ;;  %v2072_v22 = vmul.f32 %v6246_v9, %v1806_v56  ;;  %v1818_v48 = vpop.permute.xlu0 %1817  ;;  %v9158_v11 = vld [vmem:[#allocation149_spill] sm:$0xff] }
 0x274   : > { %9143 = vst [vmem:[#allocation127_spill] sm:$0xff] %v6822_v50  ;;  %9145 = vst [vmem:[#allocation128_spill] sm:$0xff] %v6825_v19  ;;  %v6843_v52 = vadd.f32 %v2087_v34, %v9156_v61  ;;  %v2073_v24 = vmul.f32 %v6249_v41, %v1806_v56  ;;  %v2074_v36 = vmul.f32 %v6252_v25, %v1806_v56  ;;  %v9162_v61 = vld [vmem:[#allocation137_spill] sm:$0xff] }
 0x275   : > { %9147 = vst [vmem:[#allocation143_spill] sm:$0xff] %v6828_v63  ;;  %9149 = vst [vmem:[#allocation144_spill] sm:$0xff] %v6831_v44  ;;  %v2075_v27 = vmul.f32 %v6255_v55, %v1806_v56  ;;  %v2076_v33 = vmul.f32 %v6258_v35, %v1806_v56  ;;  %v2077_v13 = vmul.f32 %v6261_v18, %v1806_v56  ;;  %v9168_v63 = vld [vmem:[#allocation140_spill] sm:$0xff] }
 0x276   : > { %9151 = vst [vmem:[#allocation159_spill] sm:$0xff] %v6834_v23  ;;  %9153 = vst [vmem:[#allocation160_spill] sm:$0xff] %v6837_v32  ;;  %v2078_v7 = vmul.f32 %v6264_v49, %v1806_v56  ;;  %v2079_v54 = vmul.f32 %v6267_v8, %v1806_v56  ;;  %v6854_v34 = vadd.f32 %v2072_v22, %v9158_v11  ;;  %v9166_v23 = vld [vmem:[#allocation139_spill] sm:$0xff]  ;;  %v9170_v56 = vld [vmem:[#allocation141_spill] sm:$0xff] }
 0x277   : > { %9155 = vst [vmem:[#allocation161_spill] sm:$0xff] %v6840_v43  ;;  %9157 = vst [vmem:[#allocation162_spill] sm:$0xff] %v6843_v52  ;;  %v6857_v47 = vadd.f32 %v2073_v24, %v9160_v40  ;;  %v6860_v52 = vadd.f32 %v2074_v36, %v9162_v61  ;;  %v9164_v43 = vld [vmem:[#allocation138_spill] sm:$0xff]  ;;  %v6866_v44 = vadd.f32 %v2076_v33, %v9166_v23 }
 0x278   : > { %9159 = vst [vmem:[#allocation163_spill] sm:$0xff] %v6854_v34  ;;  %v6863_v32 = vadd.f32 %v2075_v27, %v9164_v43  ;;  %v6869_v19 = vadd.f32 %v2077_v13, %v9168_v63  ;;  %v6872_v50 = vadd.f32 %v2078_v7, %v9170_v56  ;;  %v9172_v22 = vld [vmem:[#allocation142_spill] sm:$0xff]  ;;  %v2096_v24 = vmul.f32 %v6246_v9, %v1818_v48  ;;  %v1814_v13 = vpop.permute.xlu1 %1813  ;;  %v9174_v7 = vld [vmem:[#allocation157_spill] sm:$0xff] }
 0x279   : > { %9161 = vst [vmem:[#allocation149_spill] sm:$0xff] %v6857_v47  ;;  %9163 = vst [vmem:[#allocation150_spill] sm:$0xff] %v6860_v52  ;;  %v6875_v11 = vadd.f32 %v2079_v54, %v9172_v22  ;;  %v2097_v36 = vmul.f32 %v6249_v41, %v1818_v48  ;;  %v2098_v40 = vmul.f32 %v6252_v25, %v1818_v48  ;;  %v9176_v61 = vld [vmem:[#allocation158_spill] sm:$0xff]  ;;  %v9184_v52 = vld [vmem:[#allocation177_spill] sm:$0xff] }
 0x27a   : > { %9165 = vst [vmem:[#allocation137_spill] sm:$0xff] %v6863_v32  ;;  %9167 = vst [vmem:[#allocation138_spill] sm:$0xff] %v6866_v44  ;;  %v2099_v43 = vmul.f32 %v6255_v55, %v1818_v48  ;;  %v2100_v23 = vmul.f32 %v6258_v35, %v1818_v48  ;;  %v2101_v27 = vmul.f32 %v6261_v18, %v1818_v48  ;;  %v9178_v22 = vld [vmem:[#allocation174_spill] sm:$0xff]  ;;  %v9182_v44 = vld [vmem:[#allocation176_spill] sm:$0xff] }
 0x27b   : > { %9169 = vst [vmem:[#allocation139_spill] sm:$0xff] %v6869_v19  ;;  %9171 = vst [vmem:[#allocation140_spill] sm:$0xff] %v6872_v50  ;;  %v2102_v63 = vmul.f32 %v6264_v49, %v1818_v48  ;;  %v2103_v33 = vmul.f32 %v6267_v8, %v1818_v48  ;;  %v6886_v54 = vadd.f32 %v2096_v24, %v9174_v7  ;;  %v9180_v50 = vld [vmem:[#allocation175_spill] sm:$0xff]  ;;  %v9186_v48 = vld [vmem:[#allocation178_spill] sm:$0xff] }
 0x27c   : > { %9173 = vst [vmem:[#allocation141_spill] sm:$0xff] %v6875_v11  ;;  %v6889_v56 = vadd.f32 %v2097_v36, %v9176_v61  ;;  %v6892_v11 = vadd.f32 %v2098_v40, %v9178_v22  ;;  %v6895_v19 = vadd.f32 %v2099_v43, %v9180_v50  ;;  %v6898_v32 = vadd.f32 %v2100_v23, %v9182_v44  ;;  %v9188_v24 = vld [vmem:[#allocation179_spill] sm:$0xff]  ;;  %v9192_v22 = vld [vmem:[#allocation165_spill] sm:$0xff] }
 0x27d   : > { %9175 = vst [vmem:[#allocation142_spill] sm:$0xff] %v6886_v54  ;;  %v6901_v47 = vadd.f32 %v2101_v27, %v9184_v52  ;;  %v6904_v34 = vadd.f32 %v2102_v63, %v9186_v48  ;;  %v6907_v7 = vadd.f32 %v2103_v33, %v9188_v24  ;;  %v2088_v36 = vmul.f32 %v6246_v9, %v1814_v13  ;;  %v1826_v27 = vpop.permute.xlu0 %1825  ;;  %v9190_v63 = vld [vmem:[#allocation164_spill] sm:$0xff]  ;;  %v9194_v24 = vld [vmem:[#allocation151_spill] sm:$0xff] }
 0x27e   : > { %9177 = vst [vmem:[#allocation157_spill] sm:$0xff] %v6889_v56  ;;  %9179 = vst [vmem:[#allocation158_spill] sm:$0xff] %v6892_v11  ;;  %v2089_v40 = vmul.f32 %v6249_v41, %v1814_v13  ;;  %v2090_v61 = vmul.f32 %v6252_v25, %v1814_v13  ;;  %v2091_v50 = vmul.f32 %v6255_v55, %v1814_v13  ;;  %v9200_v11 = vld [vmem:[#allocation154_spill] sm:$0xff] }
 0x27f   : > { %9181 = vst [vmem:[#allocation174_spill] sm:$0xff] %v6895_v19  ;;  %9183 = vst [vmem:[#allocation175_spill] sm:$0xff] %v6898_v32  ;;  %v2092_v44 = vmul.f32 %v6258_v35, %v1814_v13  ;;  %v2093_v43 = vmul.f32 %v6261_v18, %v1814_v13  ;;  %v2094_v52 = vmul.f32 %v6264_v49, %v1814_v13  ;;  %v9198_v32 = vld [vmem:[#allocation153_spill] sm:$0xff] }
 0x280   : > { %9185 = vst [vmem:[#allocation176_spill] sm:$0xff] %v6901_v47  ;;  %9187 = vst [vmem:[#allocation177_spill] sm:$0xff] %v6904_v34  ;;  %v2095_v23 = vmul.f32 %v6267_v8, %v1814_v13  ;;  %v6918_v33 = vadd.f32 %v2088_v36, %v9190_v63  ;;  %v6921_v48 = vadd.f32 %v2089_v40, %v9192_v22  ;;  %v9196_v34 = vld [vmem:[#allocation152_spill] sm:$0xff]  ;;  %v9202_v13 = vld [vmem:[#allocation155_spill] sm:$0xff] }
 0x281   : > { %9189 = vst [vmem:[#allocation178_spill] sm:$0xff] %v6907_v7  ;;  %v6924_v7 = vadd.f32 %v2090_v61, %v9194_v24  ;;  %v6927_v47 = vadd.f32 %v2091_v50, %v9196_v34  ;;  %v6930_v19 = vadd.f32 %v2092_v44, %v9198_v32  ;;  %v6933_v56 = vadd.f32 %v2093_v43, %v9200_v11  ;;  %v9204_v36 = vld [vmem:[#allocation156_spill] sm:$0xff]  ;;  %v1822_v43 = vpop.permute.xlu1 %1821  ;;  %v9208_v24 = vld [vmem:[#allocation173_spill] sm:$0xff] }
 0x282   : > { %9191 = vst [vmem:[#allocation179_spill] sm:$0xff] %v6918_v33  ;;  %9193 = vst [vmem:[#allocation164_spill] sm:$0xff] %v6921_v48  ;;  %v6936_v54 = vadd.f32 %v2094_v52, %v9202_v13  ;;  %v6939_v63 = vadd.f32 %v2095_v23, %v9204_v36  ;;  %v2112_v40 = vmul.f32 %v6246_v9, %v1826_v27  ;;  %v9206_v52 = vld [vmem:[#allocation172_spill] sm:$0xff]  ;;  %v9210_v36 = vld [vmem:[#allocation190_spill] sm:$0xff] }
 0x283   : > { %9195 = vst [vmem:[#allocation165_spill] sm:$0xff] %v6924_v7  ;;  %9197 = vst [vmem:[#allocation151_spill] sm:$0xff] %v6927_v47  ;;  %v2113_v61 = vmul.f32 %v6249_v41, %v1826_v27  ;;  %v2114_v22 = vmul.f32 %v6252_v25, %v1826_v27  ;;  %v2115_v34 = vmul.f32 %v6255_v55, %v1826_v27  ;;  %v9216_v7 = vld [vmem:[#allocation193_spill] sm:$0xff] }
 0x284   : > { %9199 = vst [vmem:[#allocation152_spill] sm:$0xff] %v6930_v19  ;;  %9201 = vst [vmem:[#allocation153_spill] sm:$0xff] %v6933_v56  ;;  %v2116_v32 = vmul.f32 %v6258_v35, %v1826_v27  ;;  %v2117_v50 = vmul.f32 %v6261_v18, %v1826_v27  ;;  %v2118_v11 = vmul.f32 %v6264_v49, %v1826_v27  ;;  %v9214_v19 = vld [vmem:[#allocation192_spill] sm:$0xff] }
 0x285   : > { %9203 = vst [vmem:[#allocation154_spill] sm:$0xff] %v6936_v54  ;;  %9205 = vst [vmem:[#allocation155_spill] sm:$0xff] %v6939_v63  ;;  %v2119_v44 = vmul.f32 %v6267_v8, %v1826_v27  ;;  %v6950_v23 = vadd.f32 %v2112_v40, %v9206_v52  ;;  %v6953_v13 = vadd.f32 %v2113_v61, %v9208_v24  ;;  %v9212_v54 = vld [vmem:[#allocation191_spill] sm:$0xff]  ;;  %v9218_v27 = vld [vmem:[#allocation194_spill] sm:$0xff] }
 0x286   : > { %v6956_v63 = vadd.f32 %v2114_v22, %v9210_v36  ;;  %v6959_v56 = vadd.f32 %v2115_v34, %v9212_v54  ;;  %v6962_v47 = vadd.f32 %v2116_v32, %v9214_v19  ;;  %v6965_v48 = vadd.f32 %v2117_v50, %v9216_v7  ;;  %v9220_v40 = vld [vmem:[#allocation195_spill] sm:$0xff]  ;;  %v1834_v50 = vpop.permute.xlu0 %1833  ;;  %v9224_v36 = vld [vmem:[#allocation181_spill] sm:$0xff] }
 0x287   : > { %9207 = vst [vmem:[#allocation156_spill] sm:$0xff] %v6950_v23  ;;  %9209 = vst [vmem:[#allocation172_spill] sm:$0xff] %v6953_v13  ;;  %v6968_v33 = vadd.f32 %v2118_v11, %v9218_v27  ;;  %v6971_v52 = vadd.f32 %v2119_v44, %v9220_v40  ;;  %v2104_v61 = vmul.f32 %v6246_v9, %v1822_v43  ;;  %v9222_v11 = vld [vmem:[#allocation180_spill] sm:$0xff]  ;;  %v9226_v40 = vld [vmem:[#allocation166_spill] sm:$0xff] }
 0x288   : > { %9211 = vst [vmem:[#allocation173_spill] sm:$0xff] %v6956_v63  ;;  %9213 = vst [vmem:[#allocation190_spill] sm:$0xff] %v6959_v56  ;;  %v2105_v22 = vmul.f32 %v6249_v41, %v1822_v43  ;;  %v2106_v24 = vmul.f32 %v6252_v25, %v1822_v43  ;;  %v2107_v54 = vmul.f32 %v6255_v55, %v1822_v43  ;;  %v9232_v63 = vld [vmem:[#allocation169_spill] sm:$0xff] }
 0x289   : > { %9215 = vst [vmem:[#allocation191_spill] sm:$0xff] %v6962_v47  ;;  %9217 = vst [vmem:[#allocation192_spill] sm:$0xff] %v6965_v48  ;;  %v2108_v19 = vmul.f32 %v6258_v35, %v1822_v43  ;;  %v2109_v34 = vmul.f32 %v6261_v18, %v1822_v43  ;;  %v2110_v7 = vmul.f32 %v6264_v49, %v1822_v43  ;;  %v9230_v47 = vld [vmem:[#allocation168_spill] sm:$0xff] }
 0x28a   : > { %9219 = vst [vmem:[#allocation193_spill] sm:$0xff] %v6968_v33  ;;  %9221 = vst [vmem:[#allocation194_spill] sm:$0xff] %v6971_v52  ;;  %v2111_v32 = vmul.f32 %v6267_v8, %v1822_v43  ;;  %v6982_v44 = vadd.f32 %v2104_v61, %v9222_v11  ;;  %v6985_v27 = vadd.f32 %v2105_v22, %v9224_v36  ;;  %v9228_v33 = vld [vmem:[#allocation167_spill] sm:$0xff]  ;;  %v9234_v43 = vld [vmem:[#allocation170_spill] sm:$0xff] }
 0x28b   : > { %v6988_v52 = vadd.f32 %v2106_v24, %v9226_v40  ;;  %v6991_v48 = vadd.f32 %v2107_v54, %v9228_v33  ;;  %v6994_v56 = vadd.f32 %v2108_v19, %v9230_v47  ;;  %v6997_v13 = vadd.f32 %v2109_v34, %v9232_v63  ;;  %v9236_v61 = vld [vmem:[#allocation171_spill] sm:$0xff]  ;;  %v1830_v34 = vpop.permute.xlu1 %1829  ;;  %v9240_v40 = vld [vmem:[#allocation189_spill] sm:$0xff] }
 0x28c   : > { %9223 = vst [vmem:[#allocation195_spill] sm:$0xff] %v6982_v44  ;;  %9225 = vst [vmem:[#allocation180_spill] sm:$0xff] %v6985_v27  ;;  %v7000_v23 = vadd.f32 %v2110_v7, %v9234_v43  ;;  %v7003_v11 = vadd.f32 %v2111_v32, %v9236_v61  ;;  %v2128_v22 = vmul.f32 %v6246_v9, %v1834_v50  ;;  %v9238_v7 = vld [vmem:[#allocation188_spill] sm:$0xff]  ;;  %v9242_v61 = vld [vmem:[#allocation206_spill] sm:$0xff] }
 0x28d   : > { %9227 = vst [vmem:[#allocation181_spill] sm:$0xff] %v6988_v52  ;;  %9229 = vst [vmem:[#allocation166_spill] sm:$0xff] %v6991_v48  ;;  %v2129_v24 = vmul.f32 %v6249_v41, %v1834_v50  ;;  %v2130_v36 = vmul.f32 %v6252_v25, %v1834_v50  ;;  %v2131_v33 = vmul.f32 %v6255_v55, %v1834_v50  ;;  %v9248_v52 = vld [vmem:[#allocation209_spill] sm:$0xff] }
 0x28e   : > { %9231 = vst [vmem:[#allocation167_spill] sm:$0xff] %v6994_v56  ;;  %9233 = vst [vmem:[#allocation168_spill] sm:$0xff] %v6997_v13  ;;  %v2132_v47 = vmul.f32 %v6258_v35, %v1834_v50  ;;  %v2133_v54 = vmul.f32 %v6261_v18, %v1834_v50  ;;  %v2134_v63 = vmul.f32 %v6264_v49, %v1834_v50  ;;  %v9246_v56 = vld [vmem:[#allocation208_spill] sm:$0xff] }
 0x28f   : > { %9235 = vst [vmem:[#allocation169_spill] sm:$0xff] %v7000_v23  ;;  %9237 = vst [vmem:[#allocation170_spill] sm:$0xff] %v7003_v11  ;;  %v2135_v19 = vmul.f32 %v6267_v8, %v1834_v50  ;;  %v7014_v32 = vadd.f32 %v2128_v22, %v9238_v7  ;;  %v7017_v43 = vadd.f32 %v2129_v24, %v9240_v40  ;;  %v9244_v23 = vld [vmem:[#allocation207_spill] sm:$0xff]  ;;  %v9250_v50 = vld [vmem:[#allocation210_spill] sm:$0xff] }
 0x290   : > { %v7020_v11 = vadd.f32 %v2130_v36, %v9242_v61  ;;  %v7023_v13 = vadd.f32 %v2131_v33, %v9244_v23  ;;  %v7026_v48 = vadd.f32 %v2132_v47, %v9246_v56  ;;  %v7029_v27 = vadd.f32 %v2133_v54, %v9248_v52  ;;  %v9252_v22 = vld [vmem:[#allocation211_spill] sm:$0xff]  ;;  %v1842_v54 = vpop.permute.xlu0 %1841  ;;  %v9256_v61 = vld [vmem:[#allocation197_spill] sm:$0xff] }
 0x291   : > { %9239 = vst [vmem:[#allocation171_spill] sm:$0xff] %v7014_v32  ;;  %9241 = vst [vmem:[#allocation188_spill] sm:$0xff] %v7017_v43  ;;  %v7032_v44 = vadd.f32 %v2134_v63, %v9250_v50  ;;  %v7035_v7 = vadd.f32 %v2135_v19, %v9252_v22  ;;  %v2120_v24 = vmul.f32 %v6246_v9, %v1830_v34  ;;  %v9254_v63 = vld [vmem:[#allocation196_spill] sm:$0xff]  ;;  %v9258_v22 = vld [vmem:[#allocation182_spill] sm:$0xff] }
 0x292   : > { %9243 = vst [vmem:[#allocation189_spill] sm:$0xff] %v7020_v11  ;;  %9245 = vst [vmem:[#allocation206_spill] sm:$0xff] %v7023_v13  ;;  %v2121_v36 = vmul.f32 %v6249_v41, %v1830_v34  ;;  %v2122_v40 = vmul.f32 %v6252_v25, %v1830_v34  ;;  %v2123_v23 = vmul.f32 %v6255_v55, %v1830_v34  ;;  %v9264_v11 = vld [vmem:[#allocation185_spill] sm:$0xff] }
 0x293   : > { %9247 = vst [vmem:[#allocation207_spill] sm:$0xff] %v7026_v48  ;;  %9249 = vst [vmem:[#allocation208_spill] sm:$0xff] %v7029_v27  ;;  %v2124_v56 = vmul.f32 %v6258_v35, %v1830_v34  ;;  %v2125_v33 = vmul.f32 %v6261_v18, %v1830_v34  ;;  %v2126_v52 = vmul.f32 %v6264_v49, %v1830_v34  ;;  %v9262_v48 = vld [vmem:[#allocation184_spill] sm:$0xff] }
 0x294   : > { %9251 = vst [vmem:[#allocation209_spill] sm:$0xff] %v7032_v44  ;;  %9253 = vst [vmem:[#allocation210_spill] sm:$0xff] %v7035_v7  ;;  %v2127_v47 = vmul.f32 %v6267_v8, %v1830_v34  ;;  %v7046_v19 = vadd.f32 %v2120_v24, %v9254_v63  ;;  %v7049_v50 = vadd.f32 %v2121_v36, %v9256_v61  ;;  %v9260_v44 = vld [vmem:[#allocation183_spill] sm:$0xff]  ;;  %v9266_v34 = vld [vmem:[#allocation186_spill] sm:$0xff] }
 0x295   : > { %v7052_v7 = vadd.f32 %v2122_v40, %v9258_v22  ;;  %v7055_v27 = vadd.f32 %v2123_v23, %v9260_v44  ;;  %v7058_v13 = vadd.f32 %v2124_v56, %v9262_v48  ;;  %v7061_v43 = vadd.f32 %v2125_v33, %v9264_v11  ;;  %v9268_v24 = vld [vmem:[#allocation187_spill] sm:$0xff]  ;;  %v1838_v33 = vpop.permute.xlu1 %1837  ;;  %v9272_v22 = vld [vmem:[#allocation205_spill] sm:$0xff] }
 0x296   : > { %9255 = vst [vmem:[#allocation211_spill] sm:$0xff] %v7046_v19  ;;  %9257 = vst [vmem:[#allocation196_spill] sm:$0xff] %v7049_v50  ;;  %v7064_v32 = vadd.f32 %v2126_v52, %v9266_v34  ;;  %v7067_v63 = vadd.f32 %v2127_v47, %v9268_v24  ;;  %v2144_v36 = vmul.f32 %v6246_v9, %v1842_v54  ;;  %v9270_v52 = vld [vmem:[#allocation204_spill] sm:$0xff]  ;;  %v9274_v24 = vld [vmem:[#allocation222_spill] sm:$0xff] }
 0x297   : > { %9259 = vst [vmem:[#allocation197_spill] sm:$0xff] %v7052_v7  ;;  %9261 = vst [vmem:[#allocation182_spill] sm:$0xff] %v7055_v27  ;;  %v2145_v40 = vmul.f32 %v6249_v41, %v1842_v54  ;;  %v2146_v61 = vmul.f32 %v6252_v25, %v1842_v54  ;;  %v2147_v44 = vmul.f32 %v6255_v55, %v1842_v54  ;;  %v9280_v7 = vld [vmem:[#allocation225_spill] sm:$0xff] }
 0x298   : > { %9263 = vst [vmem:[#allocation183_spill] sm:$0xff] %v7058_v13  ;;  %9265 = vst [vmem:[#allocation184_spill] sm:$0xff] %v7061_v43  ;;  %v2148_v48 = vmul.f32 %v6258_v35, %v1842_v54  ;;  %v2149_v23 = vmul.f32 %v6261_v18, %v1842_v54  ;;  %v2150_v11 = vmul.f32 %v6264_v49, %v1842_v54  ;;  %v9278_v13 = vld [vmem:[#allocation224_spill] sm:$0xff] }
 0x299   : > { %9267 = vst [vmem:[#allocation185_spill] sm:$0xff] %v7064_v32  ;;  %9269 = vst [vmem:[#allocation186_spill] sm:$0xff] %v7067_v63  ;;  %v2151_v56 = vmul.f32 %v6267_v8, %v1842_v54  ;;  %v7078_v47 = vadd.f32 %v2144_v36, %v9270_v52  ;;  %v7081_v34 = vadd.f32 %v2145_v40, %v9272_v22  ;;  %v9276_v32 = vld [vmem:[#allocation223_spill] sm:$0xff]  ;;  %v9282_v54 = vld [vmem:[#allocation226_spill] sm:$0xff] }
 0x29a   : > { %v7084_v63 = vadd.f32 %v2146_v61, %v9274_v24  ;;  %v7087_v43 = vadd.f32 %v2147_v44, %v9276_v32  ;;  %v7090_v27 = vadd.f32 %v2148_v48, %v9278_v13  ;;  %v7093_v50 = vadd.f32 %v2149_v23, %v9280_v7  ;;  %v9284_v36 = vld [vmem:[#allocation227_spill] sm:$0xff]  ;;  %v1850_v23 = vpop.permute.xlu0 %1849  ;;  %v9287_v24 = vld [vmem:[#allocation213_spill] sm:$0xff] }
 0x29b   : > { %9271 = vst [vmem:[#allocation187_spill] sm:$0xff] %v7078_v47  ;;  %9273 = vst [vmem:[#allocation204_spill] sm:$0xff] %v7081_v34  ;;  %v7096_v19 = vadd.f32 %v2150_v11, %v9282_v54  ;;  %v7099_v52 = vadd.f32 %v2151_v56, %v9284_v36  ;;  %v2136_v40 = vmul.f32 %v6246_v9, %v1838_v33  ;;  %v9286_v11 = vld [vmem:[#allocation212_spill] sm:$0xff]  ;;  %v9288_v36 = vld [vmem:[#allocation198_spill] sm:$0xff] }
 0x29c   : > { %9275 = vst [vmem:[#allocation205_spill] sm:$0xff] %v7084_v63  ;;  %9277 = vst [vmem:[#allocation222_spill] sm:$0xff] %v7087_v43  ;;  %v2137_v61 = vmul.f32 %v6249_v41, %v1838_v33  ;;  %v2138_v22 = vmul.f32 %v6252_v25, %v1838_v33  ;;  %v2139_v32 = vmul.f32 %v6255_v55, %v1838_v33  ;;  %v9291_v63 = vld [vmem:[#allocation201_spill] sm:$0xff] }
 0x29d   : > { %9279 = vst [vmem:[#allocation223_spill] sm:$0xff] %v7090_v27  ;;  %9281 = vst [vmem:[#allocation224_spill] sm:$0xff] %v7093_v50  ;;  %v2140_v13 = vmul.f32 %v6258_v35, %v1838_v33  ;;  %v2141_v44 = vmul.f32 %v6261_v18, %v1838_v33  ;;  %v2142_v7 = vmul.f32 %v6264_v49, %v1838_v33  ;;  %v9290_v27 = vld [vmem:[#allocation200_spill] sm:$0xff] }
 0x29e   : > { %9283 = vst [vmem:[#allocation225_spill] sm:$0xff] %v7096_v19  ;;  %9285 = vst [vmem:[#allocation226_spill] sm:$0xff] %v7099_v52  ;;  %v2143_v48 = vmul.f32 %v6267_v8, %v1838_v33  ;;  %v7110_v56 = vadd.f32 %v2136_v40, %v9286_v11  ;;  %v7113_v54 = vadd.f32 %v2137_v61, %v9287_v24  ;;  %v9289_v19 = vld [vmem:[#allocation199_spill] sm:$0xff]  ;;  %v9292_v33 = vld [vmem:[#allocation202_spill] sm:$0xff] }
 0x29f   : > { %v7116_v52 = vadd.f32 %v2138_v22, %v9288_v36  ;;  %v7119_v50 = vadd.f32 %v2139_v32, %v9289_v19  ;;  %v7122_v43 = vadd.f32 %v2140_v13, %v9290_v27  ;;  %v7125_v34 = vadd.f32 %v2141_v44, %v9291_v63  ;;  %v9293_v40 = vld [vmem:[#allocation203_spill] sm:$0xff]  ;;  %v1846_v44 = vpop.permute.xlu1 %1845 }
 0x2a0   : > { %v7128_v47 = vadd.f32 %v2142_v7, %v9292_v33  ;;  %v7131_v11 = vadd.f32 %v2143_v48, %v9293_v40  ;;  %v2160_v61 = vmul.f32 %v6246_v9, %v1850_v23  ;;  %v2161_v22 = vmul.f32 %v6249_v41, %v1850_v23 }
 0x2a1   : > { %v2162_v24 = vmul.f32 %v6252_v25, %v1850_v23  ;;  %v2163_v19 = vmul.f32 %v6255_v55, %v1850_v23  ;;  %v2164_v27 = vmul.f32 %v6258_v35, %v1850_v23  ;;  %v2165_v32 = vmul.f32 %v6261_v18, %v1850_v23 }
 0x2a2   : > { %9294 = vst [vmem:[#allocation227_spill] sm:$0xff] %v7131_v11  ;;  %v2166_v63 = vmul.f32 %v6264_v49, %v1850_v23  ;;  %v2167_v13 = vmul.f32 %v6267_v8, %v1850_v23  ;;  %v7142_v7 = vadd.f32 %v2160_v61, %v6126_v51  ;;  %v7145_v48 = vadd.f32 %v2161_v22, %v6129_v30 }
 0x2a3   : > { %v7148_v36 = vadd.f32 %v2162_v24, %v6132_v15  ;;  %v7151_v33 = vadd.f32 %v2163_v19, %v6135_v1  ;;  %v7154_v40 = vadd.f32 %v2164_v27, %v6138_v21  ;;  %v7157_v11 = vadd.f32 %v2165_v32, %v6141_v14  ;;  %v1858_v24 = vpop.permute.xlu0 %1857 }
 0x2a4   : > { %9295 = vst [vmem:[#allocation212_spill] sm:$0xff] %v7142_v7  ;;  %9296 = vst [vmem:[#allocation213_spill] sm:$0xff] %v7145_v48  ;;  %v7160_v23 = vadd.f32 %v2166_v63, %v6144_v2  ;;  %v7163_v51 = vadd.f32 %v2167_v13, %v6147_v57  ;;  %v2152_v30 = vmul.f32 %v6246_v9, %v1846_v44  ;;  %v9308_v13 = vld [vmem:[#allocation228_spill] sm:$0xff] }
 0x2a5   : > { %9297 = vst [vmem:[#allocation198_spill] sm:$0xff] %v7148_v36  ;;  %9298 = vst [vmem:[#allocation199_spill] sm:$0xff] %v7151_v33  ;;  %v2153_v15 = vmul.f32 %v6249_v41, %v1846_v44  ;;  %v2154_v61 = vmul.f32 %v6252_v25, %v1846_v44  ;;  %v2155_v1 = vmul.f32 %v6255_v55, %v1846_v44 }
 0x2a6   : > { %9299 = vst [vmem:[#allocation200_spill] sm:$0xff] %v7154_v40  ;;  %9300 = vst [vmem:[#allocation201_spill] sm:$0xff] %v7157_v11  ;;  %v2156_v21 = vmul.f32 %v6258_v35, %v1846_v44  ;;  %v2157_v22 = vmul.f32 %v6261_v18, %v1846_v44  ;;  %v2158_v14 = vmul.f32 %v6264_v49, %v1846_v44  ;;  %v9328_v11 = vld [vmem:[#allocation215_spill] sm:$0xff] }
 0x2a7   : > { %9301 = vst [vmem:[#allocation202_spill] sm:$0xff] %v7160_v23  ;;  %9302 = vst [vmem:[#allocation203_spill] sm:$0xff] %v7163_v51  ;;  %v2159_v2 = vmul.f32 %v6267_v8, %v1846_v44  ;;  %v7174_v57 = vadd.f32 %v2152_v30, %v6101_v5  ;;  %v7177_v19 = vadd.f32 %v2153_v15, %v6103_v45  ;;  %v9310_v44 = vld [vmem:[#allocation229_spill] sm:$0xff]  ;;  %v9312_v5 = vld [vmem:[#allocation214_spill] sm:$0xff]  ;;  %v1854_v45 = vpop.permute.xlu1 %1853  ;;  %v2450_v40 = vpop.permute.xlu0 %2449 }
 0x2a8   : > { %v7180_v27 = vadd.f32 %v2154_v61, %v6105_v10  ;;  %v7183_v32 = vadd.f32 %v2155_v1, %v6107_v59  ;;  %v7186_v63 = vadd.f32 %v2156_v21, %v6109_v46  ;;  %v7189_v51 = vadd.f32 %v2157_v22, %v9308_v13 }
 0x2a9   : > { %9303 = vst [vmem:[#allocation261_spill] sm:$0xff] %v7174_v57  ;;  %9304 = vst [vmem:[#allocation262_spill] sm:$0xff] %v7177_v19  ;;  %v7192_v23 = vadd.f32 %v2158_v14, %v9310_v44  ;;  %v7195_v30 = vadd.f32 %v2159_v2, %v9312_v5  ;;  %v7198_v15 = vmul.f32 %v6246_v9, %v1858_v24 }
 0x2aa   : > { %9305 = vst [vmem:[#allocation263_spill] sm:$0xff] %v7180_v27  ;;  %9306 = vst [vmem:[#allocation264_spill] sm:$0xff] %v7183_v32  ;;  %v7201_v10 = vmul.f32 %v6249_v41, %v1858_v24  ;;  %v7204_v59 = vmul.f32 %v6252_v25, %v1858_v24  ;;  %v7207_v46 = vmul.f32 %v6255_v55, %v1858_v24  ;;  %v9341_v27 = vld [vmem:[#allocation41_spill] sm:$0xff] }
 0x2ab   : > { %9307 = vst [vmem:[#allocation265_spill] sm:$0xff] %v7186_v63  ;;  %9309 = vst [vmem:[#allocation228_spill] sm:$0xff] %v7189_v51  ;;  %v7210_v61 = vmul.f32 %v6258_v35, %v1858_v24  ;;  %v7213_v1 = vmul.f32 %v6261_v18, %v1858_v24  ;;  %v7216_v21 = vmul.f32 %v6264_v49, %v1858_v24  ;;  %v9340_v63 = vld [vmem:[#allocation40_spill] sm:$0xff]  ;;  %v2462_v57 = vpop.permute.xlu0 %2461 }
 0x2ac   : > { %9311 = vst [vmem:[#allocation229_spill] sm:$0xff] %v7192_v23  ;;  %9313 = vst [vmem:[#allocation214_spill] sm:$0xff] %v7195_v30  ;;  %v7219_v22 = vmul.f32 %v6267_v8, %v1858_v24  ;;  %v2168_v14 = vmul.f32 %v6246_v9, %v1854_v45  ;;  %v2169_v2 = vmul.f32 %v6249_v41, %v1854_v45  ;;  %v9339_v23 = vld [vmem:[#allocation39_spill] sm:$0xff] }
 0x2ad   : > { %9314 = vst [vmem:[#allocation266_spill] sm:$0xff] %v7198_v15  ;;  %9315 = vst [vmem:[#allocation267_spill] sm:$0xff] %v7201_v10  ;;  %v2170_v13 = vmul.f32 %v6252_v25, %v1854_v45  ;;  %v2171_v44 = vmul.f32 %v6255_v55, %v1854_v45  ;;  %v2172_v5 = vmul.f32 %v6258_v35, %v1854_v45 }
 0x2ae   : > { %9316 = vst [vmem:[#allocation268_spill] sm:$0xff] %v7204_v59  ;;  %9317 = vst [vmem:[#allocation269_spill] sm:$0xff] %v7207_v46  ;;  %v7230_v24 = vadd.f32 %v2168_v14, %v6173_v38  ;;  %v9330_v38 = vld [vmem:[#allocation216_spill] sm:$0xff] }
 0x2af   : > { %9318 = vst [vmem:[#allocation270_spill] sm:$0xff] %v7210_v61  ;;  %9319 = vst [vmem:[#allocation271_spill] sm:$0xff] %v7213_v1  ;;  %v2173_v61 = vmul.f32 %v6261_v18, %v1854_v45  ;;  %v2174_v1 = vmul.f32 %v6264_v49, %v1854_v45  ;;  %v7236_v46 = vadd.f32 %v2170_v13, %v6177_v39  ;;  %v9332_v39 = vld [vmem:[#allocation16_spill] sm:$0xff]  ;;  %v9333_v13 = vld [vmem:[#allocation19_spill] sm:$0xff] }
 0x2b0   : > { %9320 = vst [vmem:[#allocation272_spill] sm:$0xff] %v7216_v21  ;;  %9321 = vst [vmem:[#allocation273_spill] sm:$0xff] %v7219_v22  ;;  %v2175_v21 = vmul.f32 %v6267_v8, %v1854_v45  ;;  %v7233_v22 = vadd.f32 %v2169_v2, %v6175_v17  ;;  %v7239_v59 = vadd.f32 %v2171_v44, %v6179_v16  ;;  %v3642_v17 = vld [vmem:[#allocation2] sm:$0xff]  ;;  %v3643_v44 = vld [vmem:[#allocation2 + $0x8] sm:$0xff] }
 0x2b1   : > { %9322 = vst [vmem:[#allocation274_spill] sm:$0xff] %v7230_v24  ;;  %9324 = vst [vmem:[#allocation276_spill] sm:$0xff] %v7236_v46  ;;  %v7242_v10 = vadd.f32 %v2172_v5, %v6181_v29  ;;  %v7245_v15 = vadd.f32 %v2173_v61, %v6183_v0  ;;  %v7248_v45 = vadd.f32 %v2174_v1, %v9328_v11  ;;  %v3644_v0 = vld [vmem:[#allocation2 + $0x10] sm:$0xff]  ;;  %v3645_v1 = vld [vmem:[#allocation2 + $0x18] sm:$0xff] }
 0x2b2   : > { %9323 = vst [vmem:[#allocation275_spill] sm:$0xff] %v7233_v22  ;;  %9325 = vst [vmem:[#allocation277_spill] sm:$0xff] %v7239_v59  ;;  %v7251_v14 = vadd.f32 %v2175_v21, %v9330_v38  ;;  %v2579_v2 = vrot.slane %v3642_v17, %v9332_v39  ;;  %v2583_v16 = vrot.slane %v3642_v17, %v9333_v13  ;;  %v9337_v46 = vld [vmem:[#allocation37_spill] sm:$0xff]  ;;  %v9338_v24 = vld [vmem:[#allocation38_spill] sm:$0xff] }
 0x2b3   : > { %9326 = vst [vmem:[#allocation278_spill] sm:$0xff] %v7242_v10  ;;  %9327 = vst [vmem:[#allocation279_spill] sm:$0xff] %v7245_v15  ;;  %v2587_v29 = vrot.slane %v3643_v44, %v9332_v39  ;;  %v2591_v5 = vrot.slane %v3643_v44, %v9333_v13  ;;  %v2595_v61 = vrot.slane %v3644_v0, %v9332_v39  ;;  %v9336_v10 = vld [vmem:[#allocation36_spill] sm:$0xff] }
 0x2b4   : > { %9329 = vst [vmem:[#allocation215_spill] sm:$0xff] %v7248_v45  ;;  %9331 = vst [vmem:[#allocation216_spill] sm:$0xff] %v7251_v14  ;;  %v2599_v11 = vrot.slane %v3644_v0, %v9333_v13  ;;  %v2603_v21 = vrot.slane %v3645_v1, %v9332_v39  ;;  %v2607_v38 = vrot.slane %v3645_v1, %v9333_v13  ;;  %v1862_v14 = vpop.permute.xlu1 %1861  ;;  %v9334_v45 = vld [vmem:[#allocation15_spill] sm:$0xff] }
 0x2b5   : > { %v7265_v17 = vrot.slane %v2579_v2, %v9332_v39  ;;  %v7268_v33 = vrot.slane %v2583_v16, %v9332_v39  ;;  %v7271_v44 = vrot.slane %v2587_v29, %v9332_v39  ;;  %v7274_v36 = vrot.slane %v2591_v5, %v9332_v39 }
 0x2b6   : > { %v7277_v0 = vrot.slane %v2595_v61, %v9332_v39  ;;  %v7280_v13 = vrot.slane %v2599_v11, %v9332_v39  ;;  %v7283_v1 = vrot.slane %v2603_v21, %v9332_v39  ;;  %v7286_v2 = vrot.slane %v2607_v38, %v9332_v39  ;;  %v9335_v38 = vld [vmem:[#allocation17_spill] sm:$0xff] }
 0x2b7   : > { %v2648_v16 = vmul.f32 %v7265_v17, %v2450_v40  ;;  %v2649_v29 = vmul.f32 %v7268_v33, %v2450_v40  ;;  %v2650_v48 = vmul.f32 %v7271_v44, %v2450_v40  ;;  %v2651_v5 = vmul.f32 %v7274_v36, %v2450_v40 }
 0x2b8   : > { %v2652_v61 = vmul.f32 %v7277_v0, %v2450_v40  ;;  %v2653_v7 = vmul.f32 %v7280_v13, %v2450_v40  ;;  %v2654_v11 = vmul.f32 %v7283_v1, %v2450_v40  ;;  %v2655_v21 = vmul.f32 %v7286_v2, %v2450_v40 }
 0x2b9   : > { %v2904_v39 = vadd.f32 %v2648_v16, %v9334_v45  ;;  %v2905_v15 = vadd.f32 %v2649_v29, %v9335_v38  ;;  %v2906_v59 = vadd.f32 %v2650_v48, %v9336_v10  ;;  %v2907_v22 = vadd.f32 %v2651_v5, %v9337_v46  ;;  %v9344_v45 = vld [vmem:[#allocation44_spill] sm:$0xff]  ;;  %v9345_v16 = vld [vmem:[#allocation45_spill] sm:$0xff] }
 0x2ba   : > { %v2908_v30 = vadd.f32 %v2652_v61, %v9338_v24  ;;  %v2909_v51 = vadd.f32 %v2653_v7, %v9339_v23  ;;  %v2910_v32 = vadd.f32 %v2654_v11, %v9340_v63  ;;  %v2911_v19 = vadd.f32 %v2655_v21, %v9341_v27 }
 0x2bb   : > { %3160 = vst [vmem:[%s7304_s17] sm:$0xff] %v2904_v39  ;;  %3161 = vst [vmem:[%s7304_s17 + $0x8] sm:$0xff] %v2905_v15  ;;  %v7311_v7 = vmul.f32 %v6246_v9, %v1862_v14  ;;  %v7314_v48 = vmul.f32 %v6249_v41, %v1862_v14  ;;  %v7317_v40 = vmul.f32 %v6252_v25, %v1862_v14 }
 0x2bc   : > { %3162 = vst [vmem:[%s7304_s17 + $0x10] sm:$0xff] %v2906_v59  ;;  %3163 = vst [vmem:[%s7304_s17 + $0x18] sm:$0xff] %v2907_v22  ;;  %v7320_v23 = vmul.f32 %v6255_v55, %v1862_v14  ;;  %v7327_v27 = vmul.f32 %v6258_v35, %v1862_v14  ;;  %v7330_v63 = vmul.f32 %v6261_v18, %v1862_v14  ;;  %v9342_v59 = vld [vmem:[#allocation34_spill] sm:$0xff]  ;;  %v9343_v22 = vld [vmem:[#allocation35_spill] sm:$0xff] }
 0x2bd   : > { %3164 = vst [vmem:[%s7304_s17 + $0x20] sm:$0xff] %v2908_v30  ;;  %3165 = vst [vmem:[%s7304_s17 + $0x28] sm:$0xff] %v2909_v51  ;;  %v7333_v9 = vmul.f32 %v6264_v49, %v1862_v14  ;;  %v7336_v41 = vmul.f32 %v6267_v8, %v1862_v14  ;;  %v2672_v25 = vmul.f32 %v7265_v17, %v2462_v57 }
 0x2be   : > { %3166 = vst [vmem:[%s7304_s17 + $0x30] sm:$0xff] %v2910_v32  ;;  %3167 = vst [vmem:[%s7304_s17 + $0x38] sm:$0xff] %v2911_v19  ;;  %v2673_v55 = vmul.f32 %v7268_v33, %v2462_v57  ;;  %v2674_v51 = vmul.f32 %v7271_v44, %v2462_v57  ;;  %v2675_v35 = vmul.f32 %v7274_v36, %v2462_v57  ;;  %v2454_v32 = vpop.permute.xlu1 %2453 }
 0x2bf   : > { %v2676_v18 = vmul.f32 %v7277_v0, %v2462_v57  ;;  %v2677_v49 = vmul.f32 %v7280_v13, %v2462_v57  ;;  %v2678_v19 = vmul.f32 %v7283_v1, %v2462_v57  ;;  %v2679_v8 = vmul.f32 %v7286_v2, %v2462_v57  ;;  %v9346_v57 = vld [vmem:[#allocation46_spill] sm:$0xff] }
 0x2c0   : > { %v2928_v30 = vadd.f32 %v2672_v25, %v6406_v62  ;;  %v2929_v15 = vadd.f32 %v2673_v55, %v6409_v31  ;;  %v2930_v10 = vadd.f32 %v2674_v51, %v6412_v37  ;;  %v2931_v46 = vadd.f32 %v2675_v35, %v9342_v59  ;;  %v2470_v25 = vpop.permute.xlu0 %2469  ;;  %v9347_v55 = vld [vmem:[#allocation14_spill] sm:$0xff]  ;;  %v9348_v35 = vld [vmem:[#allocation27_spill] sm:$0xff]  ;;  %v9352_v59 = vld [vmem:[#allocation257_spill] sm:$0xff] }
 0x2c1   : > { %v2932_v24 = vadd.f32 %v2676_v18, %v9343_v22  ;;  %v2933_v14 = vadd.f32 %v2677_v49, %v9344_v45  ;;  %v2934_v29 = vadd.f32 %v2678_v19, %v9345_v16  ;;  %v2935_v5 = vadd.f32 %v2679_v8, %v9346_v57  ;;  %v9349_v49 = vld [vmem:[#allocation254_spill] sm:$0xff]  ;;  %v9350_v8 = vld [vmem:[#allocation255_spill] sm:$0xff] }
 0x2c2   : > { %3184 = vst [vmem:[%s7304_s17 + $0xc0] sm:$0xff] %v2928_v30  ;;  %3185 = vst [vmem:[%s7304_s17 + $0xc8] sm:$0xff] %v2929_v15  ;;  %v2656_v62 = vmul.f32 %v7265_v17, %v2454_v32  ;;  %v2657_v37 = vmul.f32 %v7268_v33, %v2454_v32  ;;  %v2658_v31 = vmul.f32 %v7271_v44, %v2454_v32  ;;  %v9351_v15 = vld [vmem:[#allocation256_spill] sm:$0xff]  ;;  %v9353_v22 = vld [vmem:[#allocation258_spill] sm:$0xff] }
 0x2c3   : > { %3186 = vst [vmem:[%s7304_s17 + $0xd0] sm:$0xff] %v2930_v10  ;;  %3187 = vst [vmem:[%s7304_s17 + $0xd8] sm:$0xff] %v2931_v46  ;;  %v2659_v61 = vmul.f32 %v7274_v36, %v2454_v32  ;;  %v2660_v11 = vmul.f32 %v7277_v0, %v2454_v32  ;;  %v2661_v21 = vmul.f32 %v7280_v13, %v2454_v32 }
 0x2c4   : > { %3188 = vst [vmem:[%s7304_s17 + $0xe0] sm:$0xff] %v2932_v24  ;;  %3189 = vst [vmem:[%s7304_s17 + $0xe8] sm:$0xff] %v2933_v14  ;;  %v2662_v39 = vmul.f32 %v7283_v1, %v2454_v32  ;;  %v2663_v38 = vmul.f32 %v7286_v2, %v2454_v32  ;;  %v2912_v51 = vadd.f32 %v2656_v62, %v9347_v55  ;;  %v9354_v32 = vld [vmem:[#allocation259_spill] sm:$0xff]  ;;  %v9356_v55 = vld [vmem:[#allocation65_spill] sm:$0xff] }
 0x2c5   : > { %3190 = vst [vmem:[%s7304_s17 + $0xf0] sm:$0xff] %v2934_v29  ;;  %3191 = vst [vmem:[%s7304_s17 + $0xf8] sm:$0xff] %v2935_v5  ;;  %v2913_v18 = vadd.f32 %v2657_v37, %v9348_v35  ;;  %v2914_v19 = vadd.f32 %v2658_v31, %v9349_v49  ;;  %v2915_v30 = vadd.f32 %v2659_v61, %v9350_v8  ;;  %v2458_v61 = vpop.permute.xlu1 %2457  ;;  %v9357_v35 = vld [vmem:[#allocation66_spill] sm:$0xff]  ;;  %v9358_v49 = vld [vmem:[#allocation52_spill] sm:$0xff] }
 0x2c6   : > { %v2916_v10 = vadd.f32 %v2660_v11, %v9351_v15  ;;  %v2917_v46 = vadd.f32 %v2661_v21, %v9352_v59  ;;  %v2918_v24 = vadd.f32 %v2662_v39, %v9353_v22  ;;  %v2919_v45 = vadd.f32 %v2663_v38, %v9354_v32  ;;  %3168 = vst [vmem:[%s7304_s17 + $0x40] sm:$0xff] %v2912_v51  ;;  %v9355_v39 = vld [vmem:[#allocation78_spill] sm:$0xff]  ;;  %v9359_v8 = vld [vmem:[#allocation53_spill] sm:$0xff] }
 0x2c7   : > { %3169 = vst [vmem:[%s7304_s17 + $0x48] sm:$0xff] %v2913_v18  ;;  %3170 = vst [vmem:[%s7304_s17 + $0x50] sm:$0xff] %v2914_v19  ;;  %v2688_v14 = vmul.f32 %v7265_v17, %v2470_v25  ;;  %v2689_v16 = vmul.f32 %v7268_v33, %v2470_v25  ;;  %v2690_v29 = vmul.f32 %v7271_v44, %v2470_v25 }
 0x2c8   : > { %3171 = vst [vmem:[%s7304_s17 + $0x58] sm:$0xff] %v2915_v30  ;;  %v2691_v57 = vmul.f32 %v7274_v36, %v2470_v25  ;;  %3172 = vst [vmem:[%s7304_s17 + $0x60] sm:$0xff] %v2916_v10  ;;  %v2692_v5 = vmul.f32 %v7277_v0, %v2470_v25  ;;  %v2693_v62 = vmul.f32 %v7280_v13, %v2470_v25 }
 0x2c9   : > { %3173 = vst [vmem:[%s7304_s17 + $0x68] sm:$0xff] %v2917_v46  ;;  %3174 = vst [vmem:[%s7304_s17 + $0x70] sm:$0xff] %v2918_v24  ;;  %v2694_v37 = vmul.f32 %v7283_v1, %v2470_v25  ;;  %v2695_v31 = vmul.f32 %v7286_v2, %v2470_v25  ;;  %v2944_v11 = vadd.f32 %v2688_v14, %v6470_v3  ;;  %v9360_v25 = vld [vmem:[#allocation54_spill] sm:$0xff] }
 0x2ca   : > { %3175 = vst [vmem:[%s7304_s17 + $0x78] sm:$0xff] %v2919_v45  ;;  %v2945_v21 = vadd.f32 %v2689_v16, %v6473_v6  ;;  %v2946_v38 = vadd.f32 %v2690_v29, %v9355_v39  ;;  %v2947_v51 = vadd.f32 %v2691_v57, %v9356_v55  ;;  %v2948_v18 = vadd.f32 %v2692_v5, %v9357_v35  ;;  %v2478_v45 = vpop.permute.xlu0 %2477  ;;  %v9361_v14 = vld [vmem:[#allocation42_spill] sm:$0xff]  ;;  %v9362_v29 = vld [vmem:[#allocation43_spill] sm:$0xff]  ;;  %v9363_v5 = vld [vmem:[#allocation28_spill] sm:$0xff] }
 0x2cb   : > { %v2949_v19 = vadd.f32 %v2693_v62, %v9358_v49  ;;  %v2950_v30 = vadd.f32 %v2694_v37, %v9359_v8  ;;  %v2951_v15 = vadd.f32 %v2695_v31, %v9360_v25  ;;  %3200 = vst [vmem:[%s7304_s17 + $0x140] sm:$0xff] %v2944_v11  ;;  %v2664_v3 = vmul.f32 %v7265_v17, %v2458_v61  ;;  %v9364_v37 = vld [vmem:[#allocation29_spill] sm:$0xff]  ;;  %v9365_v11 = vld [vmem:[#allocation30_spill] sm:$0xff]  ;;  %v9366_v39 = vld [vmem:[#allocation31_spill] sm:$0xff] }
 0x2cc   : > { %3201 = vst [vmem:[%s7304_s17 + $0x148] sm:$0xff] %v2945_v21  ;;  %3202 = vst [vmem:[%s7304_s17 + $0x150] sm:$0xff] %v2946_v38  ;;  %v2665_v6 = vmul.f32 %v7268_v33, %v2458_v61  ;;  %v2666_v10 = vmul.f32 %v7271_v44, %v2458_v61  ;;  %v2667_v59 = vmul.f32 %v7274_v36, %v2458_v61  ;;  %v9367_v55 = vld [vmem:[#allocation32_spill] sm:$0xff] }
 0x2cd   : > { %3203 = vst [vmem:[%s7304_s17 + $0x158] sm:$0xff] %v2947_v51  ;;  %3204 = vst [vmem:[%s7304_s17 + $0x160] sm:$0xff] %v2948_v18  ;;  %v2668_v46 = vmul.f32 %v7277_v0, %v2458_v61  ;;  %v2669_v22 = vmul.f32 %v7280_v13, %v2458_v61  ;;  %v2670_v24 = vmul.f32 %v7283_v1, %v2458_v61 }
 0x2ce   : > { %3205 = vst [vmem:[%s7304_s17 + $0x168] sm:$0xff] %v2949_v19  ;;  %3206 = vst [vmem:[%s7304_s17 + $0x170] sm:$0xff] %v2950_v30  ;;  %v2671_v32 = vmul.f32 %v7286_v2, %v2458_v61  ;;  %v2920_v16 = vadd.f32 %v2664_v3, %v9361_v14  ;;  %v2921_v57 = vadd.f32 %v2665_v6, %v9362_v29  ;;  %v9368_v61 = vld [vmem:[#allocation33_spill] sm:$0xff]  ;;  %v2466_v6 = vpop.permute.xlu1 %2465  ;;  %v9371_v14 = vld [vmem:[#allocation80_spill] sm:$0xff] }
 0x2cf   : > { %3207 = vst [vmem:[%s7304_s17 + $0x178] sm:$0xff] %v2951_v15  ;;  %v2922_v62 = vadd.f32 %v2666_v10, %v9363_v5  ;;  %v2923_v31 = vadd.f32 %v2667_v59, %v9364_v37  ;;  %v2924_v21 = vadd.f32 %v2668_v46, %v9365_v11  ;;  %v2925_v38 = vadd.f32 %v2669_v22, %v9366_v39  ;;  %v9369_v46 = vld [vmem:[#allocation92_spill] sm:$0xff]  ;;  %v9372_v29 = vld [vmem:[#allocation67_spill] sm:$0xff] }
 0x2d0   : > { %v2926_v51 = vadd.f32 %v2670_v24, %v9367_v55  ;;  %v2927_v35 = vadd.f32 %v2671_v32, %v9368_v61  ;;  %3176 = vst [vmem:[%s7304_s17 + $0x80] sm:$0xff] %v2920_v16  ;;  %3177 = vst [vmem:[%s7304_s17 + $0x88] sm:$0xff] %v2921_v57  ;;  %v2704_v18 = vmul.f32 %v7265_v17, %v2478_v45  ;;  %v9370_v24 = vld [vmem:[#allocation79_spill] sm:$0xff]  ;;  %v9373_v5 = vld [vmem:[#allocation68_spill] sm:$0xff] }
 0x2d1   : > { %3178 = vst [vmem:[%s7304_s17 + $0x90] sm:$0xff] %v2922_v62  ;;  %3179 = vst [vmem:[%s7304_s17 + $0x98] sm:$0xff] %v2923_v31  ;;  %v2705_v49 = vmul.f32 %v7268_v33, %v2478_v45  ;;  %v2706_v19 = vmul.f32 %v7271_v44, %v2478_v45  ;;  %v2707_v8 = vmul.f32 %v7274_v36, %v2478_v45  ;;  %v9375_v61 = vld [vmem:[#allocation260_spill] sm:$0xff] }
 0x2d2   : > { %3180 = vst [vmem:[%s7304_s17 + $0xa0] sm:$0xff] %v2924_v21  ;;  %3181 = vst [vmem:[%s7304_s17 + $0xa8] sm:$0xff] %v2925_v38  ;;  %v2708_v30 = vmul.f32 %v7277_v0, %v2478_v45  ;;  %v2709_v25 = vmul.f32 %v7280_v13, %v2478_v45  ;;  %v2710_v15 = vmul.f32 %v7283_v1, %v2478_v45 }
 0x2d3   : > { %3182 = vst [vmem:[%s7304_s17 + $0xb0] sm:$0xff] %v2926_v51  ;;  %3183 = vst [vmem:[%s7304_s17 + $0xb8] sm:$0xff] %v2927_v35  ;;  %v2711_v3 = vmul.f32 %v7286_v2, %v2478_v45  ;;  %v2960_v10 = vadd.f32 %v2704_v18, %v6534_v53  ;;  %v2961_v59 = vadd.f32 %v2705_v49, %v6537_v20  ;;  %v9374_v45 = vld [vmem:[#allocation69_spill] sm:$0xff]  ;;  %v2486_v51 = vpop.permute.xlu0 %2485  ;;  %v9376_v18 = vld [vmem:[#allocation50_spill] sm:$0xff] }
 0x2d4   : > { %v2962_v22 = vadd.f32 %v2706_v19, %v9369_v46  ;;  %v2963_v32 = vadd.f32 %v2707_v8, %v9370_v24  ;;  %v2964_v16 = vadd.f32 %v2708_v30, %v9371_v14  ;;  %v2965_v57 = vadd.f32 %v2709_v25, %v9372_v29  ;;  %v9377_v19 = vld [vmem:[#allocation51_spill] sm:$0xff]  ;;  %v9378_v30 = vld [vmem:[#allocation60_spill] sm:$0xff] }
 0x2d5   : > { %v2966_v62 = vadd.f32 %v2710_v15, %v9373_v5  ;;  %v2967_v37 = vadd.f32 %v2711_v3, %v9374_v45  ;;  %3216 = vst [vmem:[%s7304_s17 + $0x1c0] sm:$0xff] %v2960_v10  ;;  %3217 = vst [vmem:[%s7304_s17 + $0x1c8] sm:$0xff] %v2961_v59  ;;  %v2680_v53 = vmul.f32 %v7265_v17, %v2466_v6  ;;  %v9379_v15 = vld [vmem:[#allocation61_spill] sm:$0xff]  ;;  %v9380_v10 = vld [vmem:[#allocation62_spill] sm:$0xff] }
 0x2d6   : > { %3218 = vst [vmem:[%s7304_s17 + $0x1d0] sm:$0xff] %v2962_v22  ;;  %3219 = vst [vmem:[%s7304_s17 + $0x1d8] sm:$0xff] %v2963_v32  ;;  %v2681_v20 = vmul.f32 %v7268_v33, %v2466_v6  ;;  %v2682_v31 = vmul.f32 %v7271_v44, %v2466_v6  ;;  %v2683_v11 = vmul.f32 %v7274_v36, %v2466_v6  ;;  %v9381_v46 = vld [vmem:[#allocation63_spill] sm:$0xff] }
 0x2d7   : > { %3220 = vst [vmem:[%s7304_s17 + $0x1e0] sm:$0xff] %v2964_v16  ;;  %3221 = vst [vmem:[%s7304_s17 + $0x1e8] sm:$0xff] %v2965_v57  ;;  %v2684_v21 = vmul.f32 %v7277_v0, %v2466_v6  ;;  %v2685_v39 = vmul.f32 %v7280_v13, %v2466_v6  ;;  %v2686_v38 = vmul.f32 %v7283_v1, %v2466_v6 }
 0x2d8   : > { %3222 = vst [vmem:[%s7304_s17 + $0x1f0] sm:$0xff] %v2966_v62  ;;  %3223 = vst [vmem:[%s7304_s17 + $0x1f8] sm:$0xff] %v2967_v37  ;;  %v2687_v55 = vmul.f32 %v7286_v2, %v2466_v6  ;;  %v2936_v35 = vadd.f32 %v2680_v53, %v9375_v61  ;;  %v2937_v49 = vadd.f32 %v2681_v20, %v9376_v18  ;;  %v9382_v6 = vld [vmem:[#allocation64_spill] sm:$0xff]  ;;  %v2474_v37 = vpop.permute.xlu1 %2473  ;;  %v9386_v61 = vld [vmem:[#allocation81_spill] sm:$0xff] }
 0x2d9   : > { %v2938_v8 = vadd.f32 %v2682_v31, %v9377_v19  ;;  %v2939_v25 = vadd.f32 %v2683_v11, %v9378_v30  ;;  %v2940_v3 = vadd.f32 %v2684_v21, %v9379_v15  ;;  %v2941_v59 = vadd.f32 %v2685_v39, %v9380_v10  ;;  %v9383_v31 = vld [vmem:[#allocation106_spill] sm:$0xff]  ;;  %v9384_v21 = vld [vmem:[#allocation93_spill] sm:$0xff] }
 0x2da   : > { %v2942_v22 = vadd.f32 %v2686_v38, %v9381_v46  ;;  %v2943_v24 = vadd.f32 %v2687_v55, %v9382_v6  ;;  %3192 = vst [vmem:[%s7304_s17 + $0x100] sm:$0xff] %v2936_v35  ;;  %3193 = vst [vmem:[%s7304_s17 + $0x108] sm:$0xff] %v2937_v49  ;;  %v2720_v32 = vmul.f32 %v7265_v17, %v2486_v51  ;;  %v9385_v38 = vld [vmem:[#allocation94_spill] sm:$0xff]  ;;  %v9389_v46 = vld [vmem:[#allocation47_spill] sm:$0xff] }
 0x2db   : > { %3194 = vst [vmem:[%s7304_s17 + $0x110] sm:$0xff] %v2938_v8  ;;  %3195 = vst [vmem:[%s7304_s17 + $0x118] sm:$0xff] %v2939_v25  ;;  %v2721_v14 = vmul.f32 %v7268_v33, %v2486_v51  ;;  %v2722_v16 = vmul.f32 %v7271_v44, %v2486_v51  ;;  %v2723_v29 = vmul.f32 %v7274_v36, %v2486_v51  ;;  %v9387_v18 = vld [vmem:[#allocation82_spill] sm:$0xff]  ;;  %v9390_v6 = vld [vmem:[#allocation48_spill] sm:$0xff] }
 0x2dc   : > { %3196 = vst [vmem:[%s7304_s17 + $0x120] sm:$0xff] %v2940_v3  ;;  %3197 = vst [vmem:[%s7304_s17 + $0x128] sm:$0xff] %v2941_v59  ;;  %v2724_v57 = vmul.f32 %v7277_v0, %v2486_v51  ;;  %v2725_v5 = vmul.f32 %v7280_v13, %v2486_v51  ;;  %v2726_v62 = vmul.f32 %v7283_v1, %v2486_v51  ;;  %v2494_v59 = vpop.permute.xlu0 %2493 }
 0x2dd   : > { %3198 = vst [vmem:[%s7304_s17 + $0x130] sm:$0xff] %v2942_v22  ;;  %3199 = vst [vmem:[%s7304_s17 + $0x138] sm:$0xff] %v2943_v24  ;;  %v2727_v45 = vmul.f32 %v7286_v2, %v2486_v51  ;;  %v2976_v53 = vadd.f32 %v2720_v32, %v6598_v26  ;;  %v2977_v20 = vadd.f32 %v2721_v14, %v6601_v12  ;;  %v9388_v51 = vld [vmem:[#allocation83_spill] sm:$0xff]  ;;  %v9391_v32 = vld [vmem:[#allocation49_spill] sm:$0xff] }
 0x2de   : > { %v2978_v11 = vadd.f32 %v2722_v16, %v9383_v31  ;;  %v2979_v39 = vadd.f32 %v2723_v29, %v9384_v21  ;;  %v2980_v55 = vadd.f32 %v2724_v57, %v9385_v38  ;;  %v2981_v35 = vadd.f32 %v2725_v5, %v9386_v61  ;;  %v9392_v16 = vld [vmem:[#allocation58_spill] sm:$0xff]  ;;  %v9393_v57 = vld [vmem:[#allocation59_spill] sm:$0xff] }
 0x2df   : > { %v2982_v49 = vadd.f32 %v2726_v62, %v9387_v18  ;;  %v2983_v19 = vadd.f32 %v2727_v45, %v9388_v51  ;;  %3232 = vst [vmem:[%s7304_s17 + $0x240] sm:$0xff] %v2976_v53  ;;  %3233 = vst [vmem:[%s7304_s17 + $0x248] sm:$0xff] %v2977_v20  ;;  %v2696_v26 = vmul.f32 %v7265_v17, %v2474_v37  ;;  %v9394_v62 = vld [vmem:[#allocation75_spill] sm:$0xff]  ;;  %v9395_v53 = vld [vmem:[#allocation76_spill] sm:$0xff] }
 0x2e0   : > { %3234 = vst [vmem:[%s7304_s17 + $0x250] sm:$0xff] %v2978_v11  ;;  %3235 = vst [vmem:[%s7304_s17 + $0x258] sm:$0xff] %v2979_v39  ;;  %v2697_v12 = vmul.f32 %v7268_v33, %v2474_v37  ;;  %v2698_v8 = vmul.f32 %v7271_v44, %v2474_v37  ;;  %v2699_v30 = vmul.f32 %v7274_v36, %v2474_v37 }
 0x2e1   : > { %3236 = vst [vmem:[%s7304_s17 + $0x260] sm:$0xff] %v2980_v55  ;;  %3237 = vst [vmem:[%s7304_s17 + $0x268] sm:$0xff] %v2981_v35  ;;  %v2700_v25 = vmul.f32 %v7277_v0, %v2474_v37  ;;  %v2701_v15 = vmul.f32 %v7280_v13, %v2474_v37  ;;  %v2702_v3 = vmul.f32 %v7283_v1, %v2474_v37 }
 0x2e2   : > { %3238 = vst [vmem:[%s7304_s17 + $0x270] sm:$0xff] %v2982_v49  ;;  %3239 = vst [vmem:[%s7304_s17 + $0x278] sm:$0xff] %v2983_v19  ;;  %v2703_v10 = vmul.f32 %v7286_v2, %v2474_v37  ;;  %v2952_v22 = vadd.f32 %v2696_v26, %v9389_v46  ;;  %v2953_v24 = vadd.f32 %v2697_v12, %v9390_v6  ;;  %v9396_v37 = vld [vmem:[#allocation77_spill] sm:$0xff]  ;;  %v2482_v49 = vpop.permute.xlu1 %2481  ;;  %v9397_v26 = vld [vmem:[#allocation120_spill] sm:$0xff] }
 0x2e3   : > { %v2954_v14 = vadd.f32 %v2698_v8, %v9391_v32  ;;  %v2955_v29 = vadd.f32 %v2699_v30, %v9392_v16  ;;  %v2956_v5 = vadd.f32 %v2700_v25, %v9393_v57  ;;  %v2957_v45 = vadd.f32 %v2701_v15, %v9394_v62  ;;  %v9398_v8 = vld [vmem:[#allocation107_spill] sm:$0xff]  ;;  %v9399_v25 = vld [vmem:[#allocation108_spill] sm:$0xff] }
 0x2e4   : > { %v2958_v20 = vadd.f32 %v2702_v3, %v9395_v53  ;;  %v2959_v31 = vadd.f32 %v2703_v10, %v9396_v37  ;;  %3208 = vst [vmem:[%s7304_s17 + $0x180] sm:$0xff] %v2952_v22  ;;  %3209 = vst [vmem:[%s7304_s17 + $0x188] sm:$0xff] %v2953_v24  ;;  %v2736_v11 = vmul.f32 %v7265_v17, %v2494_v59  ;;  %v9400_v3 = vld [vmem:[#allocation95_spill] sm:$0xff]  ;;  %v9401_v46 = vld [vmem:[#allocation96_spill] sm:$0xff] }
 0x2e5   : > { %3210 = vst [vmem:[%s7304_s17 + $0x190] sm:$0xff] %v2954_v14  ;;  %3211 = vst [vmem:[%s7304_s17 + $0x198] sm:$0xff] %v2955_v29  ;;  %v2737_v21 = vmul.f32 %v7268_v33, %v2494_v59  ;;  %v2738_v39 = vmul.f32 %v7271_v44, %v2494_v59  ;;  %v2739_v38 = vmul.f32 %v7274_v36, %v2494_v59  ;;  %v9403_v62 = vld [vmem:[#allocation55_spill] sm:$0xff]  ;;  %v9404_v53 = vld [vmem:[#allocation56_spill] sm:$0xff] }
 0x2e6   : > { %3212 = vst [vmem:[%s7304_s17 + $0x1a0] sm:$0xff] %v2956_v5  ;;  %3213 = vst [vmem:[%s7304_s17 + $0x1a8] sm:$0xff] %v2957_v45  ;;  %v2740_v55 = vmul.f32 %v7277_v0, %v2494_v59  ;;  %v2741_v61 = vmul.f32 %v7280_v13, %v2494_v59  ;;  %v2742_v35 = vmul.f32 %v7283_v1, %v2494_v59  ;;  %v2502_v5 = vpop.permute.xlu0 %2501  ;;  %v9405_v37 = vld [vmem:[#allocation57_spill] sm:$0xff] }
 0x2e7   : > { %3214 = vst [vmem:[%s7304_s17 + $0x1b0] sm:$0xff] %v2958_v20  ;;  %3215 = vst [vmem:[%s7304_s17 + $0x1b8] sm:$0xff] %v2959_v31  ;;  %v2743_v18 = vmul.f32 %v7286_v2, %v2494_v59  ;;  %v2992_v51 = vadd.f32 %v2736_v11, %v6662_v28  ;;  %v2993_v19 = vadd.f32 %v2737_v21, %v6665_v42  ;;  %v9402_v59 = vld [vmem:[#allocation97_spill] sm:$0xff] }
 0x2e8   : > { %v2994_v12 = vadd.f32 %v2738_v39, %v9397_v26  ;;  %v2995_v30 = vadd.f32 %v2739_v38, %v9398_v8  ;;  %v2996_v15 = vadd.f32 %v2740_v55, %v9399_v25  ;;  %v2997_v10 = vadd.f32 %v2741_v61, %v9400_v3  ;;  %v9406_v11 = vld [vmem:[#allocation73_spill] sm:$0xff]  ;;  %v9407_v39 = vld [vmem:[#allocation74_spill] sm:$0xff] }
 0x2e9   : > { %v2998_v22 = vadd.f32 %v2742_v35, %v9401_v46  ;;  %v2999_v6 = vadd.f32 %v2743_v18, %v9402_v59  ;;  %3248 = vst [vmem:[%s7304_s17 + $0x2c0] sm:$0xff] %v2992_v51  ;;  %3249 = vst [vmem:[%s7304_s17 + $0x2c8] sm:$0xff] %v2993_v19  ;;  %v2712_v28 = vmul.f32 %v7265_v17, %v2482_v49  ;;  %v9408_v55 = vld [vmem:[#allocation89_spill] sm:$0xff]  ;;  %v9409_v35 = vld [vmem:[#allocation90_spill] sm:$0xff] }
 0x2ea   : > { %3250 = vst [vmem:[%s7304_s17 + $0x2d0] sm:$0xff] %v2994_v12  ;;  %3251 = vst [vmem:[%s7304_s17 + $0x2d8] sm:$0xff] %v2995_v30  ;;  %v2713_v42 = vmul.f32 %v7268_v33, %v2482_v49  ;;  %v2714_v24 = vmul.f32 %v7271_v44, %v2482_v49  ;;  %v2715_v32 = vmul.f32 %v7274_v36, %v2482_v49  ;;  %v9411_v59 = vld [vmem:[#allocation134_spill] sm:$0xff] }
 0x2eb   : > { %3252 = vst [vmem:[%s7304_s17 + $0x2e0] sm:$0xff] %v2996_v15  ;;  %3253 = vst [vmem:[%s7304_s17 + $0x2e8] sm:$0xff] %v2997_v10  ;;  %v2716_v14 = vmul.f32 %v7277_v0, %v2482_v49  ;;  %v2717_v16 = vmul.f32 %v7280_v13, %v2482_v49  ;;  %v2718_v29 = vmul.f32 %v7283_v1, %v2482_v49  ;;  %v2490_v10 = vpop.permute.xlu1 %2489 }
 0x2ec   : > { %3254 = vst [vmem:[%s7304_s17 + $0x2f0] sm:$0xff] %v2998_v22  ;;  %3255 = vst [vmem:[%s7304_s17 + $0x2f8] sm:$0xff] %v2999_v6  ;;  %v2719_v57 = vmul.f32 %v7286_v2, %v2482_v49  ;;  %v2968_v45 = vadd.f32 %v2712_v28, %v9403_v62  ;;  %v2969_v20 = vadd.f32 %v2713_v42, %v9404_v53  ;;  %v9410_v49 = vld [vmem:[#allocation91_spill] sm:$0xff]  ;;  %v9412_v28 = vld [vmem:[#allocation121_spill] sm:$0xff] }
 0x2ed   : > { %v2970_v31 = vadd.f32 %v2714_v24, %v9405_v37  ;;  %v2971_v21 = vadd.f32 %v2715_v32, %v9406_v11  ;;  %v2972_v38 = vadd.f32 %v2716_v14, %v9407_v39  ;;  %v2973_v61 = vadd.f32 %v2717_v16, %v9408_v55  ;;  %v9413_v24 = vld [vmem:[#allocation122_spill] sm:$0xff]  ;;  %v9414_v14 = vld [vmem:[#allocation109_spill] sm:$0xff]  ;;  %v9418_v55 = vld [vmem:[#allocation71_spill] sm:$0xff] }
 0x2ee   : > { %v2974_v18 = vadd.f32 %v2718_v29, %v9409_v35  ;;  %v2975_v51 = vadd.f32 %v2719_v57, %v9410_v49  ;;  %3224 = vst [vmem:[%s7304_s17 + $0x200] sm:$0xff] %v2968_v45  ;;  %3225 = vst [vmem:[%s7304_s17 + $0x208] sm:$0xff] %v2969_v20  ;;  %v2752_v19 = vmul.f32 %v7265_v17, %v2502_v5  ;;  %v9415_v29 = vld [vmem:[#allocation110_spill] sm:$0xff]  ;;  %v9419_v35 = vld [vmem:[#allocation72_spill] sm:$0xff] }
 0x2ef   : > { %3226 = vst [vmem:[%s7304_s17 + $0x210] sm:$0xff] %v2970_v31  ;;  %3227 = vst [vmem:[%s7304_s17 + $0x218] sm:$0xff] %v2971_v21  ;;  %v2753_v26 = vmul.f32 %v7268_v33, %v2502_v5  ;;  %v2754_v12 = vmul.f32 %v7271_v44, %v2502_v5  ;;  %v2755_v8 = vmul.f32 %v7274_v36, %v2502_v5  ;;  %v2510_v21 = vpop.permute.xlu0 %2509  ;;  %v9417_v39 = vld [vmem:[#allocation70_spill] sm:$0xff]  ;;  %v9420_v49 = vld [vmem:[#allocation87_spill] sm:$0xff] }
 0x2f0   : > { %3228 = vst [vmem:[%s7304_s17 + $0x220] sm:$0xff] %v2972_v38  ;;  %3229 = vst [vmem:[%s7304_s17 + $0x228] sm:$0xff] %v2973_v61  ;;  %v2756_v30 = vmul.f32 %v7277_v0, %v2502_v5  ;;  %v2757_v25 = vmul.f32 %v7280_v13, %v2502_v5  ;;  %v2758_v15 = vmul.f32 %v7283_v1, %v2502_v5 }
 0x2f1   : > { %3230 = vst [vmem:[%s7304_s17 + $0x230] sm:$0xff] %v2974_v18  ;;  %3231 = vst [vmem:[%s7304_s17 + $0x238] sm:$0xff] %v2975_v51  ;;  %v2759_v3 = vmul.f32 %v7286_v2, %v2502_v5  ;;  %v3008_v46 = vadd.f32 %v2752_v19, %v6726_v58  ;;  %v3009_v22 = vadd.f32 %v2753_v26, %v6729_v60  ;;  %v9416_v5 = vld [vmem:[#allocation111_spill] sm:$0xff]  ;;  %v9421_v19 = vld [vmem:[#allocation88_spill] sm:$0xff] }
 0x2f2   : > { %v3010_v6 = vadd.f32 %v2754_v12, %v9411_v59  ;;  %v3011_v42 = vadd.f32 %v2755_v8, %v9412_v28  ;;  %v3012_v32 = vadd.f32 %v2756_v30, %v9413_v24  ;;  %v3013_v16 = vadd.f32 %v2757_v25, %v9414_v14  ;;  %v9422_v12 = vld [vmem:[#allocation103_spill] sm:$0xff]  ;;  %v9423_v30 = vld [vmem:[#allocation104_spill] sm:$0xff] }
 0x2f3   : > { %v3014_v57 = vadd.f32 %v2758_v15, %v9415_v29  ;;  %v3015_v62 = vadd.f32 %v2759_v3, %v9416_v5  ;;  %3264 = vst [vmem:[%s7304_s17 + $0x340] sm:$0xff] %v3008_v46  ;;  %3265 = vst [vmem:[%s7304_s17 + $0x348] sm:$0xff] %v3009_v22  ;;  %v2728_v58 = vmul.f32 %v7265_v17, %v2490_v10  ;;  %v9424_v15 = vld [vmem:[#allocation105_spill] sm:$0xff] }
 0x2f4   : > { %3266 = vst [vmem:[%s7304_s17 + $0x350] sm:$0xff] %v3010_v6  ;;  %3267 = vst [vmem:[%s7304_s17 + $0x358] sm:$0xff] %v3011_v42  ;;  %v2729_v60 = vmul.f32 %v7268_v33, %v2490_v10  ;;  %v2730_v45 = vmul.f32 %v7271_v44, %v2490_v10  ;;  %v2731_v53 = vmul.f32 %v7274_v36, %v2490_v10 }
 0x2f5   : > { %3268 = vst [vmem:[%s7304_s17 + $0x360] sm:$0xff] %v3012_v32  ;;  %3269 = vst [vmem:[%s7304_s17 + $0x368] sm:$0xff] %v3013_v16  ;;  %v2732_v20 = vmul.f32 %v7277_v0, %v2490_v10  ;;  %v2733_v37 = vmul.f32 %v7280_v13, %v2490_v10  ;;  %v2734_v31 = vmul.f32 %v7283_v1, %v2490_v10  ;;  %v2498_v32 = vpop.permute.xlu1 %2497  ;;  %v9425_v16 = vld [vmem:[#allocation148_spill] sm:$0xff] }
 0x2f6   : > { %3270 = vst [vmem:[%s7304_s17 + $0x370] sm:$0xff] %v3014_v57  ;;  %3271 = vst [vmem:[%s7304_s17 + $0x378] sm:$0xff] %v3015_v62  ;;  %v2735_v11 = vmul.f32 %v7286_v2, %v2490_v10  ;;  %v2984_v38 = vadd.f32 %v2728_v58, %v9417_v39  ;;  %v2985_v61 = vadd.f32 %v2729_v60, %v9418_v55  ;;  %v9426_v57 = vld [vmem:[#allocation135_spill] sm:$0xff]  ;;  %v9427_v62 = vld [vmem:[#allocation136_spill] sm:$0xff] }
 0x2f7   : > { %v2986_v18 = vadd.f32 %v2730_v45, %v9419_v35  ;;  %v2987_v51 = vadd.f32 %v2731_v53, %v9420_v49  ;;  %v2988_v26 = vadd.f32 %v2732_v20, %v9421_v19  ;;  %v2989_v8 = vadd.f32 %v2733_v37, %v9422_v12  ;;  %v9428_v60 = vld [vmem:[#allocation123_spill] sm:$0xff]  ;;  %v9429_v53 = vld [vmem:[#allocation124_spill] sm:$0xff]  ;;  %v9430_v37 = vld [vmem:[#allocation125_spill] sm:$0xff] }
 0x2f8   : > { %v2990_v25 = vadd.f32 %v2734_v31, %v9423_v30  ;;  %v2991_v3 = vadd.f32 %v2735_v11, %v9424_v15  ;;  %3240 = vst [vmem:[%s7304_s17 + $0x280] sm:$0xff] %v2984_v38  ;;  %3241 = vst [vmem:[%s7304_s17 + $0x288] sm:$0xff] %v2985_v61  ;;  %v2768_v10 = vmul.f32 %v7265_v17, %v2510_v21  ;;  %v9431_v11 = vld [vmem:[#allocation126_spill] sm:$0xff]  ;;  %v9432_v19 = vld [vmem:[#allocation84_spill] sm:$0xff] }
 0x2f9   : > { %3242 = vst [vmem:[%s7304_s17 + $0x290] sm:$0xff] %v2986_v18  ;;  %3243 = vst [vmem:[%s7304_s17 + $0x298] sm:$0xff] %v2987_v51  ;;  %v2769_v46 = vmul.f32 %v7268_v33, %v2510_v21  ;;  %v2770_v22 = vmul.f32 %v7271_v44, %v2510_v21  ;;  %v2771_v59 = vmul.f32 %v7274_v36, %v2510_v21  ;;  %v2518_v51 = vpop.permute.xlu0 %2517  ;;  %v9433_v12 = vld [vmem:[#allocation85_spill] sm:$0xff]  ;;  %v9434_v30 = vld [vmem:[#allocation86_spill] sm:$0xff] }
 0x2fa   : > { %3244 = vst [vmem:[%s7304_s17 + $0x2a0] sm:$0xff] %v2988_v26  ;;  %3245 = vst [vmem:[%s7304_s17 + $0x2a8] sm:$0xff] %v2989_v8  ;;  %v2772_v6 = vmul.f32 %v7277_v0, %v2510_v21  ;;  %v2773_v28 = vmul.f32 %v7280_v13, %v2510_v21  ;;  %v2774_v42 = vmul.f32 %v7283_v1, %v2510_v21  ;;  %v9435_v15 = vld [vmem:[#allocation101_spill] sm:$0xff] }
 0x2fb   : > { %3246 = vst [vmem:[%s7304_s17 + $0x2b0] sm:$0xff] %v2990_v25  ;;  %3247 = vst [vmem:[%s7304_s17 + $0x2b8] sm:$0xff] %v2991_v3  ;;  %v2775_v24 = vmul.f32 %v7286_v2, %v2510_v21  ;;  %v3024_v14 = vadd.f32 %v2768_v10, %v6790_v4  ;;  %v3025_v29 = vadd.f32 %v2769_v46, %v9425_v16  ;;  %v9436_v10 = vld [vmem:[#allocation102_spill] sm:$0xff] }
 0x2fc   : > { %v3026_v5 = vadd.f32 %v2770_v22, %v9426_v57  ;;  %v3027_v58 = vadd.f32 %v2771_v59, %v9427_v62  ;;  %v3028_v45 = vadd.f32 %v2772_v6, %v9428_v60  ;;  %v3029_v20 = vadd.f32 %v2773_v28, %v9429_v53  ;;  %v9437_v22 = vld [vmem:[#allocation117_spill] sm:$0xff]  ;;  %v9438_v6 = vld [vmem:[#allocation118_spill] sm:$0xff]  ;;  %v2506_v60 = vpop.permute.xlu1 %2505 }
 0x2fd   : > { %v3030_v31 = vadd.f32 %v2774_v42, %v9430_v37  ;;  %v3031_v21 = vadd.f32 %v2775_v24, %v9431_v11  ;;  %3280 = vst [vmem:[%s7304_s17 + $0x3c0] sm:$0xff] %v3024_v14  ;;  %3281 = vst [vmem:[%s7304_s17 + $0x3c8] sm:$0xff] %v3025_v29  ;;  %v2744_v4 = vmul.f32 %v7265_v17, %v2498_v32  ;;  %v9439_v42 = vld [vmem:[#allocation119_spill] sm:$0xff] }
 0x2fe   : > { %3282 = vst [vmem:[%s7304_s17 + $0x3d0] sm:$0xff] %v3026_v5  ;;  %3283 = vst [vmem:[%s7304_s17 + $0x3d8] sm:$0xff] %v3027_v58  ;;  %v2745_v39 = vmul.f32 %v7268_v33, %v2498_v32  ;;  %v2746_v38 = vmul.f32 %v7271_v44, %v2498_v32  ;;  %v2747_v55 = vmul.f32 %v7274_v36, %v2498_v32 }
 0x2ff   : > { %3284 = vst [vmem:[%s7304_s17 + $0x3e0] sm:$0xff] %v3028_v45  ;;  %3285 = vst [vmem:[%s7304_s17 + $0x3e8] sm:$0xff] %v3029_v20  ;;  %v2748_v61 = vmul.f32 %v7277_v0, %v2498_v32  ;;  %v2749_v35 = vmul.f32 %v7280_v13, %v2498_v32  ;;  %v2750_v18 = vmul.f32 %v7283_v1, %v2498_v32  ;;  %v9440_v45 = vld [vmem:[#allocation163_spill] sm:$0xff]  ;;  %v9441_v20 = vld [vmem:[#allocation149_spill] sm:$0xff] }
 0x300   : > { %3286 = vst [vmem:[%s7304_s17 + $0x3f0] sm:$0xff] %v3030_v31  ;;  %3287 = vst [vmem:[%s7304_s17 + $0x3f8] sm:$0xff] %v3031_v21  ;;  %v2751_v49 = vmul.f32 %v7286_v2, %v2498_v32  ;;  %v3000_v26 = vadd.f32 %v2744_v4, %v9432_v19  ;;  %v3001_v8 = vadd.f32 %v2745_v39, %v9433_v12  ;;  %v9442_v31 = vld [vmem:[#allocation150_spill] sm:$0xff]  ;;  %v9443_v21 = vld [vmem:[#allocation137_spill] sm:$0xff] }
 0x301   : > { %v3002_v25 = vadd.f32 %v2746_v38, %v9434_v30  ;;  %v3003_v3 = vadd.f32 %v2747_v55, %v9435_v15  ;;  %v3004_v46 = vadd.f32 %v2748_v61, %v9436_v10  ;;  %v3005_v59 = vadd.f32 %v2749_v35, %v9437_v22  ;;  %v9444_v39 = vld [vmem:[#allocation138_spill] sm:$0xff]  ;;  %v9445_v55 = vld [vmem:[#allocation139_spill] sm:$0xff]  ;;  %v9446_v35 = vld [vmem:[#allocation140_spill] sm:$0xff]  ;;  %v2526_v10 = vpop.permute.xlu0 %2525 }
 0x302   : > { %v3006_v28 = vadd.f32 %v2750_v18, %v9438_v6  ;;  %v3007_v24 = vadd.f32 %v2751_v49, %v9439_v42  ;;  %3256 = vst [vmem:[%s7304_s17 + $0x300] sm:$0xff] %v3000_v26  ;;  %3257 = vst [vmem:[%s7304_s17 + $0x308] sm:$0xff] %v3001_v8  ;;  %v2784_v32 = vmul.f32 %v7265_v17, %v2518_v51  ;;  %v9447_v49 = vld [vmem:[#allocation141_spill] sm:$0xff] }
 0x303   : > { %3258 = vst [vmem:[%s7304_s17 + $0x310] sm:$0xff] %v3002_v25  ;;  %3259 = vst [vmem:[%s7304_s17 + $0x318] sm:$0xff] %v3003_v3  ;;  %v2785_v14 = vmul.f32 %v7268_v33, %v2518_v51  ;;  %v2786_v16 = vmul.f32 %v7271_v44, %v2518_v51  ;;  %v2787_v29 = vmul.f32 %v7274_v36, %v2518_v51 }
 0x304   : > { %3260 = vst [vmem:[%s7304_s17 + $0x320] sm:$0xff] %v3004_v46  ;;  %3261 = vst [vmem:[%s7304_s17 + $0x328] sm:$0xff] %v3005_v59  ;;  %v2788_v57 = vmul.f32 %v7277_v0, %v2518_v51  ;;  %v2789_v5 = vmul.f32 %v7280_v13, %v2518_v51  ;;  %v2790_v62 = vmul.f32 %v7283_v1, %v2518_v51  ;;  %v9448_v46 = vld [vmem:[#allocation98_spill] sm:$0xff]  ;;  %v9449_v59 = vld [vmem:[#allocation99_spill] sm:$0xff] }
 0x305   : > { %3262 = vst [vmem:[%s7304_s17 + $0x330] sm:$0xff] %v3006_v28  ;;  %3263 = vst [vmem:[%s7304_s17 + $0x338] sm:$0xff] %v3007_v24  ;;  %v2791_v58 = vmul.f32 %v7286_v2, %v2518_v51  ;;  %v3040_v53 = vadd.f32 %v2784_v32, %v9440_v45  ;;  %v3041_v37 = vadd.f32 %v2785_v14, %v9441_v20  ;;  %v9450_v28 = vld [vmem:[#allocation100_spill] sm:$0xff]  ;;  %v9451_v24 = vld [vmem:[#allocation115_spill] sm:$0xff] }
 0x306   : > { %v3042_v11 = vadd.f32 %v2786_v16, %v9442_v31  ;;  %v3043_v4 = vadd.f32 %v2787_v29, %v9443_v21  ;;  %v3044_v38 = vadd.f32 %v2788_v57, %v9444_v39  ;;  %v3045_v61 = vadd.f32 %v2789_v5, %v9445_v55  ;;  %v9452_v14 = vld [vmem:[#allocation116_spill] sm:$0xff]  ;;  %v9453_v29 = vld [vmem:[#allocation131_spill] sm:$0xff]  ;;  %v2514_v39 = vpop.permute.xlu1 %2513 }
 0x307   : > { %v3046_v18 = vadd.f32 %v2790_v62, %v9446_v35  ;;  %v3047_v51 = vadd.f32 %v2791_v58, %v9447_v49  ;;  %3296 = vst [vmem:[%s7304_s17 + $0x440] sm:$0xff] %v3040_v53  ;;  %3297 = vst [vmem:[%s7304_s17 + $0x448] sm:$0xff] %v3041_v37  ;;  %v2760_v19 = vmul.f32 %v7265_v17, %v2506_v60  ;;  %v9454_v5 = vld [vmem:[#allocation132_spill] sm:$0xff]  ;;  %v9455_v58 = vld [vmem:[#allocation133_spill] sm:$0xff] }
 0x308   : > { %3298 = vst [vmem:[%s7304_s17 + $0x450] sm:$0xff] %v3042_v11  ;;  %3299 = vst [vmem:[%s7304_s17 + $0x458] sm:$0xff] %v3043_v4  ;;  %v2761_v26 = vmul.f32 %v7268_v33, %v2506_v60  ;;  %v2762_v12 = vmul.f32 %v7271_v44, %v2506_v60  ;;  %v2763_v8 = vmul.f32 %v7274_v36, %v2506_v60 }
 0x309   : > { %3300 = vst [vmem:[%s7304_s17 + $0x460] sm:$0xff] %v3044_v38  ;;  %3301 = vst [vmem:[%s7304_s17 + $0x468] sm:$0xff] %v3045_v61  ;;  %v2764_v30 = vmul.f32 %v7277_v0, %v2506_v60  ;;  %v2765_v25 = vmul.f32 %v7280_v13, %v2506_v60  ;;  %v2766_v15 = vmul.f32 %v7283_v1, %v2506_v60  ;;  %v9456_v38 = vld [vmem:[#allocation179_spill] sm:$0xff]  ;;  %v9457_v61 = vld [vmem:[#allocation164_spill] sm:$0xff] }
 0x30a   : > { %3302 = vst [vmem:[%s7304_s17 + $0x470] sm:$0xff] %v3046_v18  ;;  %3303 = vst [vmem:[%s7304_s17 + $0x478] sm:$0xff] %v3047_v51  ;;  %v2767_v3 = vmul.f32 %v7286_v2, %v2506_v60  ;;  %v3016_v22 = vadd.f32 %v2760_v19, %v9448_v46  ;;  %v3017_v6 = vadd.f32 %v2761_v26, %v9449_v59  ;;  %v9458_v18 = vld [vmem:[#allocation165_spill] sm:$0xff]  ;;  %v9459_v51 = vld [vmem:[#allocation151_spill] sm:$0xff] }
 0x30b   : > { %v3018_v42 = vadd.f32 %v2762_v12, %v9450_v28  ;;  %v3019_v32 = vadd.f32 %v2763_v8, %v9451_v24  ;;  %v3020_v16 = vadd.f32 %v2764_v30, %v9452_v14  ;;  %v3021_v57 = vadd.f32 %v2765_v25, %v9453_v29  ;;  %v9460_v26 = vld [vmem:[#allocation152_spill] sm:$0xff]  ;;  %v9461_v8 = vld [vmem:[#allocation153_spill] sm:$0xff]  ;;  %v9462_v25 = vld [vmem:[#allocation154_spill] sm:$0xff]  ;;  %v2534_v14 = vpop.permute.xlu0 %2533 }
 0x30c   : > { %v3022_v62 = vadd.f32 %v2766_v15, %v9454_v5  ;;  %v3023_v60 = vadd.f32 %v2767_v3, %v9455_v58  ;;  %3272 = vst [vmem:[%s7304_s17 + $0x380] sm:$0xff] %v3016_v22  ;;  %3273 = vst [vmem:[%s7304_s17 + $0x388] sm:$0xff] %v3017_v6  ;;  %v2800_v45 = vmul.f32 %v7265_v17, %v2526_v10  ;;  %v9463_v3 = vld [vmem:[#allocation155_spill] sm:$0xff] }
 0x30d   : > { %3274 = vst [vmem:[%s7304_s17 + $0x390] sm:$0xff] %v3018_v42  ;;  %3275 = vst [vmem:[%s7304_s17 + $0x398] sm:$0xff] %v3019_v32  ;;  %v2801_v53 = vmul.f32 %v7268_v33, %v2526_v10  ;;  %v2802_v20 = vmul.f32 %v7271_v44, %v2526_v10  ;;  %v2803_v37 = vmul.f32 %v7274_v36, %v2526_v10 }
 0x30e   : > { %3276 = vst [vmem:[%s7304_s17 + $0x3a0] sm:$0xff] %v3020_v16  ;;  %3277 = vst [vmem:[%s7304_s17 + $0x3a8] sm:$0xff] %v3021_v57  ;;  %v2804_v31 = vmul.f32 %v7277_v0, %v2526_v10  ;;  %v2805_v11 = vmul.f32 %v7280_v13, %v2526_v10  ;;  %v2806_v21 = vmul.f32 %v7283_v1, %v2526_v10  ;;  %v9464_v16 = vld [vmem:[#allocation112_spill] sm:$0xff]  ;;  %v9465_v57 = vld [vmem:[#allocation113_spill] sm:$0xff] }
 0x30f   : > { %3278 = vst [vmem:[%s7304_s17 + $0x3b0] sm:$0xff] %v3022_v62  ;;  %3279 = vst [vmem:[%s7304_s17 + $0x3b8] sm:$0xff] %v3023_v60  ;;  %v2807_v4 = vmul.f32 %v7286_v2, %v2526_v10  ;;  %v3056_v55 = vadd.f32 %v2800_v45, %v9456_v38  ;;  %v3057_v35 = vadd.f32 %v2801_v53, %v9457_v61  ;;  %v9466_v62 = vld [vmem:[#allocation114_spill] sm:$0xff]  ;;  %v9467_v60 = vld [vmem:[#allocation129_spill] sm:$0xff] }
 0x310   : > { %v3058_v49 = vadd.f32 %v2802_v20, %v9458_v18  ;;  %v3059_v19 = vadd.f32 %v2803_v37, %v9459_v51  ;;  %v3060_v12 = vadd.f32 %v2804_v31, %v9460_v26  ;;  %v3061_v30 = vadd.f32 %v2805_v11, %v9461_v8  ;;  %v9468_v53 = vld [vmem:[#allocation130_spill] sm:$0xff]  ;;  %v9469_v37 = vld [vmem:[#allocation145_spill] sm:$0xff]  ;;  %v2522_v26 = vpop.permute.xlu1 %2521 }
 0x311   : > { %v3062_v15 = vadd.f32 %v2806_v21, %v9462_v25  ;;  %v3063_v10 = vadd.f32 %v2807_v4, %v9463_v3  ;;  %3312 = vst [vmem:[%s7304_s17 + $0x4c0] sm:$0xff] %v3056_v55  ;;  %3313 = vst [vmem:[%s7304_s17 + $0x4c8] sm:$0xff] %v3057_v35  ;;  %v2776_v46 = vmul.f32 %v7265_v17, %v2514_v39  ;;  %v9470_v11 = vld [vmem:[#allocation146_spill] sm:$0xff]  ;;  %v9471_v4 = vld [vmem:[#allocation147_spill] sm:$0xff] }
 0x312   : > { %3314 = vst [vmem:[%s7304_s17 + $0x4d0] sm:$0xff] %v3058_v49  ;;  %3315 = vst [vmem:[%s7304_s17 + $0x4d8] sm:$0xff] %v3059_v19  ;;  %v2777_v22 = vmul.f32 %v7268_v33, %v2514_v39  ;;  %v2778_v59 = vmul.f32 %v7271_v44, %v2514_v39  ;;  %v2779_v6 = vmul.f32 %v7274_v36, %v2514_v39 }
 0x313   : > { %3316 = vst [vmem:[%s7304_s17 + $0x4e0] sm:$0xff] %v3060_v12  ;;  %3317 = vst [vmem:[%s7304_s17 + $0x4e8] sm:$0xff] %v3061_v30  ;;  %v2780_v28 = vmul.f32 %v7277_v0, %v2514_v39  ;;  %v2781_v42 = vmul.f32 %v7280_v13, %v2514_v39  ;;  %v2782_v24 = vmul.f32 %v7283_v1, %v2514_v39  ;;  %v9472_v12 = vld [vmem:[#allocation195_spill] sm:$0xff]  ;;  %v9473_v30 = vld [vmem:[#allocation180_spill] sm:$0xff] }
 0x314   : > { %3318 = vst [vmem:[%s7304_s17 + $0x4f0] sm:$0xff] %v3062_v15  ;;  %3319 = vst [vmem:[%s7304_s17 + $0x4f8] sm:$0xff] %v3063_v10  ;;  %v2783_v32 = vmul.f32 %v7286_v2, %v2514_v39  ;;  %v3032_v29 = vadd.f32 %v2776_v46, %v9464_v16  ;;  %v3033_v5 = vadd.f32 %v2777_v22, %v9465_v57  ;;  %v9474_v15 = vld [vmem:[#allocation181_spill] sm:$0xff]  ;;  %v9475_v10 = vld [vmem:[#allocation166_spill] sm:$0xff] }
 0x315   : > { %v3034_v58 = vadd.f32 %v2778_v59, %v9466_v62  ;;  %v3035_v45 = vadd.f32 %v2779_v6, %v9467_v60  ;;  %v3036_v20 = vadd.f32 %v2780_v28, %v9468_v53  ;;  %v3037_v31 = vadd.f32 %v2781_v42, %v9469_v37  ;;  %v9476_v22 = vld [vmem:[#allocation167_spill] sm:$0xff]  ;;  %v9477_v6 = vld [vmem:[#allocation168_spill] sm:$0xff]  ;;  %v9478_v42 = vld [vmem:[#allocation169_spill] sm:$0xff]  ;;  %v2542_v53 = vpop.permute.xlu0 %2541 }
 0x316   : > { %v3038_v21 = vadd.f32 %v2782_v24, %v9470_v11  ;;  %v3039_v39 = vadd.f32 %v2783_v32, %v9471_v4  ;;  %3288 = vst [vmem:[%s7304_s17 + $0x400] sm:$0xff] %v3032_v29  ;;  %3289 = vst [vmem:[%s7304_s17 + $0x408] sm:$0xff] %v3033_v5  ;;  %v2816_v38 = vmul.f32 %v7265_v17, %v2534_v14  ;;  %v9479_v32 = vld [vmem:[#allocation170_spill] sm:$0xff] }
 0x317   : > { %3290 = vst [vmem:[%s7304_s17 + $0x410] sm:$0xff] %v3034_v58  ;;  %3291 = vst [vmem:[%s7304_s17 + $0x418] sm:$0xff] %v3035_v45  ;;  %v2817_v55 = vmul.f32 %v7268_v33, %v2534_v14  ;;  %v2818_v61 = vmul.f32 %v7271_v44, %v2534_v14  ;;  %v2819_v35 = vmul.f32 %v7274_v36, %v2534_v14 }
 0x318   : > { %3292 = vst [vmem:[%s7304_s17 + $0x420] sm:$0xff] %v3036_v20  ;;  %3293 = vst [vmem:[%s7304_s17 + $0x428] sm:$0xff] %v3037_v31  ;;  %v2820_v18 = vmul.f32 %v7277_v0, %v2534_v14  ;;  %v2821_v49 = vmul.f32 %v7280_v13, %v2534_v14  ;;  %v2822_v51 = vmul.f32 %v7283_v1, %v2534_v14  ;;  %v9480_v20 = vld [vmem:[#allocation127_spill] sm:$0xff]  ;;  %v9481_v31 = vld [vmem:[#allocation128_spill] sm:$0xff] }
 0x319   : > { %3294 = vst [vmem:[%s7304_s17 + $0x430] sm:$0xff] %v3038_v21  ;;  %3295 = vst [vmem:[%s7304_s17 + $0x438] sm:$0xff] %v3039_v39  ;;  %v2823_v19 = vmul.f32 %v7286_v2, %v2534_v14  ;;  %v3072_v8 = vadd.f32 %v2816_v38, %v9472_v12  ;;  %v3073_v25 = vadd.f32 %v2817_v55, %v9473_v30  ;;  %v9482_v21 = vld [vmem:[#allocation143_spill] sm:$0xff]  ;;  %v9483_v39 = vld [vmem:[#allocation144_spill] sm:$0xff] }
 0x31a   : > { %v3074_v3 = vadd.f32 %v2818_v61, %v9474_v15  ;;  %v3075_v46 = vadd.f32 %v2819_v35, %v9475_v10  ;;  %v3076_v59 = vadd.f32 %v2820_v18, %v9476_v22  ;;  %v3077_v28 = vadd.f32 %v2821_v49, %v9477_v6  ;;  %v9484_v55 = vld [vmem:[#allocation159_spill] sm:$0xff]  ;;  %v9485_v35 = vld [vmem:[#allocation160_spill] sm:$0xff]  ;;  %v9486_v49 = vld [vmem:[#allocation161_spill] sm:$0xff]  ;;  %v2530_v22 = vpop.permute.xlu1 %2529 }
 0x31b   : > { %v3078_v24 = vadd.f32 %v2822_v51, %v9478_v42  ;;  %v3079_v14 = vadd.f32 %v2823_v19, %v9479_v32  ;;  %3328 = vst [vmem:[%s7304_s17 + $0x540] sm:$0xff] %v3072_v8  ;;  %3329 = vst [vmem:[%s7304_s17 + $0x548] sm:$0xff] %v3073_v25  ;;  %v2792_v16 = vmul.f32 %v7265_v17, %v2522_v26  ;;  %v9487_v19 = vld [vmem:[#allocation162_spill] sm:$0xff] }
 0x31c   : > { %3330 = vst [vmem:[%s7304_s17 + $0x550] sm:$0xff] %v3074_v3  ;;  %3331 = vst [vmem:[%s7304_s17 + $0x558] sm:$0xff] %v3075_v46  ;;  %v2793_v29 = vmul.f32 %v7268_v33, %v2522_v26  ;;  %v2794_v57 = vmul.f32 %v7271_v44, %v2522_v26  ;;  %v2795_v5 = vmul.f32 %v7274_v36, %v2522_v26 }
 0x31d   : > { %3332 = vst [vmem:[%s7304_s17 + $0x560] sm:$0xff] %v3076_v59  ;;  %3333 = vst [vmem:[%s7304_s17 + $0x568] sm:$0xff] %v3077_v28  ;;  %v2796_v62 = vmul.f32 %v7277_v0, %v2522_v26  ;;  %v2797_v58 = vmul.f32 %v7280_v13, %v2522_v26  ;;  %v2798_v60 = vmul.f32 %v7283_v1, %v2522_v26  ;;  %v9488_v59 = vld [vmem:[#allocation211_spill] sm:$0xff]  ;;  %v9489_v28 = vld [vmem:[#allocation196_spill] sm:$0xff] }
 0x31e   : > { %3334 = vst [vmem:[%s7304_s17 + $0x570] sm:$0xff] %v3078_v24  ;;  %3335 = vst [vmem:[%s7304_s17 + $0x578] sm:$0xff] %v3079_v14  ;;  %v2799_v45 = vmul.f32 %v7286_v2, %v2522_v26  ;;  %v3048_v37 = vadd.f32 %v2792_v16, %v9480_v20  ;;  %v3049_v11 = vadd.f32 %v2793_v29, %v9481_v31  ;;  %v9490_v24 = vld [vmem:[#allocation197_spill] sm:$0xff]  ;;  %v9491_v14 = vld [vmem:[#allocation182_spill] sm:$0xff] }
 0x31f   : > { %v3050_v4 = vadd.f32 %v2794_v57, %v9482_v21  ;;  %v3051_v38 = vadd.f32 %v2795_v5, %v9483_v39  ;;  %v3052_v61 = vadd.f32 %v2796_v62, %v9484_v55  ;;  %v3053_v18 = vadd.f32 %v2797_v58, %v9485_v35  ;;  %v9492_v29 = vld [vmem:[#allocation183_spill] sm:$0xff]  ;;  %v9493_v5 = vld [vmem:[#allocation184_spill] sm:$0xff]  ;;  %v9494_v58 = vld [vmem:[#allocation185_spill] sm:$0xff]  ;;  %v2550_v55 = vpop.permute.xlu0 %2549 }
 0x320   : > { %v3054_v51 = vadd.f32 %v2798_v60, %v9486_v49  ;;  %v3055_v26 = vadd.f32 %v2799_v45, %v9487_v19  ;;  %3304 = vst [vmem:[%s7304_s17 + $0x480] sm:$0xff] %v3048_v37  ;;  %3305 = vst [vmem:[%s7304_s17 + $0x488] sm:$0xff] %v3049_v11  ;;  %v2832_v12 = vmul.f32 %v7265_v17, %v2542_v53  ;;  %v9495_v45 = vld [vmem:[#allocation186_spill] sm:$0xff] }
 0x321   : > { %3306 = vst [vmem:[%s7304_s17 + $0x490] sm:$0xff] %v3050_v4  ;;  %3307 = vst [vmem:[%s7304_s17 + $0x498] sm:$0xff] %v3051_v38  ;;  %v2833_v8 = vmul.f32 %v7268_v33, %v2542_v53  ;;  %v2834_v30 = vmul.f32 %v7271_v44, %v2542_v53  ;;  %v2835_v25 = vmul.f32 %v7274_v36, %v2542_v53 }
 0x322   : > { %3308 = vst [vmem:[%s7304_s17 + $0x4a0] sm:$0xff] %v3052_v61  ;;  %3309 = vst [vmem:[%s7304_s17 + $0x4a8] sm:$0xff] %v3053_v18  ;;  %v2836_v15 = vmul.f32 %v7277_v0, %v2542_v53  ;;  %v2837_v3 = vmul.f32 %v7280_v13, %v2542_v53  ;;  %v2838_v10 = vmul.f32 %v7283_v1, %v2542_v53  ;;  %v9496_v61 = vld [vmem:[#allocation142_spill] sm:$0xff]  ;;  %v9497_v18 = vld [vmem:[#allocation157_spill] sm:$0xff] }
 0x323   : > { %3310 = vst [vmem:[%s7304_s17 + $0x4b0] sm:$0xff] %v3054_v51  ;;  %3311 = vst [vmem:[%s7304_s17 + $0x4b8] sm:$0xff] %v3055_v26  ;;  %v2839_v46 = vmul.f32 %v7286_v2, %v2542_v53  ;;  %v3088_v6 = vadd.f32 %v2832_v12, %v9488_v59  ;;  %v3089_v42 = vadd.f32 %v2833_v8, %v9489_v28  ;;  %v9498_v51 = vld [vmem:[#allocation158_spill] sm:$0xff]  ;;  %v9500_v8 = vld [vmem:[#allocation175_spill] sm:$0xff] }
 0x324   : > { %v3090_v32 = vadd.f32 %v2834_v30, %v9490_v24  ;;  %v3091_v16 = vadd.f32 %v2835_v25, %v9491_v14  ;;  %v3092_v57 = vadd.f32 %v2836_v15, %v9492_v29  ;;  %v3093_v62 = vadd.f32 %v2837_v3, %v9493_v5  ;;  %v9499_v26 = vld [vmem:[#allocation174_spill] sm:$0xff]  ;;  %v9501_v25 = vld [vmem:[#allocation176_spill] sm:$0xff]  ;;  %v9502_v3 = vld [vmem:[#allocation177_spill] sm:$0xff]  ;;  %v2538_v29 = vpop.permute.xlu1 %2537 }
 0x325   : > { %v3094_v60 = vadd.f32 %v2838_v10, %v9494_v58  ;;  %v3095_v53 = vadd.f32 %v2839_v46, %v9495_v45  ;;  %3344 = vst [vmem:[%s7304_s17 + $0x5c0] sm:$0xff] %v3088_v6  ;;  %3345 = vst [vmem:[%s7304_s17 + $0x5c8] sm:$0xff] %v3089_v42  ;;  %v2808_v20 = vmul.f32 %v7265_v17, %v2530_v22  ;;  %v9503_v46 = vld [vmem:[#allocation178_spill] sm:$0xff] }
 0x326   : > { %3346 = vst [vmem:[%s7304_s17 + $0x5d0] sm:$0xff] %v3090_v32  ;;  %3347 = vst [vmem:[%s7304_s17 + $0x5d8] sm:$0xff] %v3091_v16  ;;  %v2809_v37 = vmul.f32 %v7268_v33, %v2530_v22  ;;  %v2810_v31 = vmul.f32 %v7271_v44, %v2530_v22  ;;  %v2811_v11 = vmul.f32 %v7274_v36, %v2530_v22 }
 0x327   : > { %3348 = vst [vmem:[%s7304_s17 + $0x5e0] sm:$0xff] %v3092_v57  ;;  %3349 = vst [vmem:[%s7304_s17 + $0x5e8] sm:$0xff] %v3093_v62  ;;  %v2812_v21 = vmul.f32 %v7277_v0, %v2530_v22  ;;  %v2813_v4 = vmul.f32 %v7280_v13, %v2530_v22  ;;  %v2814_v39 = vmul.f32 %v7283_v1, %v2530_v22 }
 0x328   : > { %3350 = vst [vmem:[%s7304_s17 + $0x5f0] sm:$0xff] %v3094_v60  ;;  %3351 = vst [vmem:[%s7304_s17 + $0x5f8] sm:$0xff] %v3095_v53  ;;  %v2815_v38 = vmul.f32 %v7286_v2, %v2530_v22  ;;  %v3064_v35 = vadd.f32 %v2808_v20, %v9496_v61  ;;  %v3065_v49 = vadd.f32 %v2809_v37, %v9497_v18  ;;  %v9504_v20 = vld [vmem:[#allocation227_spill] sm:$0xff] }
 0x329   : > { %v3066_v19 = vadd.f32 %v2810_v31, %v9498_v51  ;;  %v3067_v12 = vadd.f32 %v2811_v11, %v9499_v26  ;;  %v3068_v30 = vadd.f32 %v2812_v21, %v9500_v8  ;;  %v3069_v15 = vadd.f32 %v2813_v4, %v9501_v25  ;;  %v2558_v11 = vpop.permute.xlu0 %2557  ;;  %v9505_v21 = vld [vmem:[#allocation156_spill] sm:$0xff] }
 0x32a   : > { %v3070_v10 = vadd.f32 %v2814_v39, %v9502_v3  ;;  %v3071_v22 = vadd.f32 %v2815_v38, %v9503_v46  ;;  %3320 = vst [vmem:[%s7304_s17 + $0x500] sm:$0xff] %v3064_v35  ;;  %3321 = vst [vmem:[%s7304_s17 + $0x508] sm:$0xff] %v3065_v49  ;;  %v2848_v59 = vmul.f32 %v7265_v17, %v2550_v55  ;;  %v9506_v39 = vld [vmem:[#allocation172_spill] sm:$0xff]  ;;  %v9508_v35 = vld [vmem:[#allocation190_spill] sm:$0xff] }
 0x32b   : > { %3322 = vst [vmem:[%s7304_s17 + $0x510] sm:$0xff] %v3066_v19  ;;  %3323 = vst [vmem:[%s7304_s17 + $0x518] sm:$0xff] %v3067_v12  ;;  %v2849_v6 = vmul.f32 %v7268_v33, %v2550_v55  ;;  %v2850_v28 = vmul.f32 %v7271_v44, %v2550_v55  ;;  %v2851_v42 = vmul.f32 %v7274_v36, %v2550_v55  ;;  %v9509_v49 = vld [vmem:[#allocation191_spill] sm:$0xff]  ;;  %v9510_v19 = vld [vmem:[#allocation192_spill] sm:$0xff] }
 0x32c   : > { %3324 = vst [vmem:[%s7304_s17 + $0x520] sm:$0xff] %v3068_v30  ;;  %3325 = vst [vmem:[%s7304_s17 + $0x528] sm:$0xff] %v3069_v15  ;;  %v2852_v24 = vmul.f32 %v7277_v0, %v2550_v55  ;;  %v2853_v32 = vmul.f32 %v7280_v13, %v2550_v55  ;;  %v2854_v14 = vmul.f32 %v7283_v1, %v2550_v55  ;;  %v9511_v12 = vld [vmem:[#allocation193_spill] sm:$0xff]  ;;  %v9512_v30 = vld [vmem:[#allocation194_spill] sm:$0xff] }
 0x32d   : > { %3326 = vst [vmem:[%s7304_s17 + $0x530] sm:$0xff] %v3070_v10  ;;  %3327 = vst [vmem:[%s7304_s17 + $0x538] sm:$0xff] %v3071_v22  ;;  %v2855_v16 = vmul.f32 %v7286_v2, %v2550_v55  ;;  %v3104_v57 = vadd.f32 %v2848_v59, %v7110_v56  ;;  %v3105_v5 = vadd.f32 %v2849_v6, %v7113_v54  ;;  %v9507_v55 = vld [vmem:[#allocation173_spill] sm:$0xff] }
 0x32e   : > { %v3106_v62 = vadd.f32 %v2850_v28, %v7116_v52  ;;  %v3107_v58 = vadd.f32 %v2851_v42, %v7119_v50  ;;  %v3108_v60 = vadd.f32 %v2852_v24, %v7122_v43  ;;  %v3109_v45 = vadd.f32 %v2853_v32, %v7125_v34  ;;  %v2546_v42 = vpop.permute.xlu1 %2545  ;;  %v9513_v24 = vld [vmem:[#allocation261_spill] sm:$0xff] }
 0x32f   : > { %v3110_v53 = vadd.f32 %v2854_v14, %v7128_v47  ;;  %v3111_v37 = vadd.f32 %v2855_v16, %v9504_v20  ;;  %3360 = vst [vmem:[%s7304_s17 + $0x640] sm:$0xff] %v3104_v57  ;;  %3361 = vst [vmem:[%s7304_s17 + $0x648] sm:$0xff] %v3105_v5  ;;  %v2824_v56 = vmul.f32 %v7265_v17, %v2538_v29  ;;  %v9514_v14 = vld [vmem:[#allocation262_spill] sm:$0xff]  ;;  %v9516_v5 = vld [vmem:[#allocation264_spill] sm:$0xff] }
 0x330   : > { %3362 = vst [vmem:[%s7304_s17 + $0x650] sm:$0xff] %v3106_v62  ;;  %3363 = vst [vmem:[%s7304_s17 + $0x658] sm:$0xff] %v3107_v58  ;;  %v2825_v52 = vmul.f32 %v7268_v33, %v2538_v29  ;;  %v2826_v54 = vmul.f32 %v7271_v44, %v2538_v29  ;;  %v2827_v50 = vmul.f32 %v7274_v36, %v2538_v29  ;;  %v9517_v58 = vld [vmem:[#allocation265_spill] sm:$0xff] }
 0x331   : > { %3364 = vst [vmem:[%s7304_s17 + $0x660] sm:$0xff] %v3108_v60  ;;  %3365 = vst [vmem:[%s7304_s17 + $0x668] sm:$0xff] %v3109_v45  ;;  %v2828_v43 = vmul.f32 %v7277_v0, %v2538_v29  ;;  %v2829_v47 = vmul.f32 %v7280_v13, %v2538_v29  ;;  %v2830_v34 = vmul.f32 %v7283_v1, %v2538_v29  ;;  %v9518_v45 = vld [vmem:[#allocation228_spill] sm:$0xff]  ;;  %v9519_v20 = vld [vmem:[#allocation229_spill] sm:$0xff] }
 0x332   : > { %3366 = vst [vmem:[%s7304_s17 + $0x670] sm:$0xff] %v3110_v53  ;;  %3367 = vst [vmem:[%s7304_s17 + $0x678] sm:$0xff] %v3111_v37  ;;  %v2831_v31 = vmul.f32 %v7286_v2, %v2538_v29  ;;  %v3080_v4 = vadd.f32 %v2824_v56, %v9505_v21  ;;  %v3081_v38 = vadd.f32 %v2825_v52, %v9506_v39  ;;  %v9515_v29 = vld [vmem:[#allocation263_spill] sm:$0xff]  ;;  %v9520_v56 = vld [vmem:[#allocation214_spill] sm:$0xff] }
 0x333   : > { %v3082_v61 = vadd.f32 %v2826_v54, %v9507_v55  ;;  %v3083_v18 = vadd.f32 %v2827_v50, %v9508_v35  ;;  %v3084_v51 = vadd.f32 %v2828_v43, %v9509_v49  ;;  %v3085_v26 = vadd.f32 %v2829_v47, %v9510_v19  ;;  %v9521_v39 = vld [vmem:[#allocation171_spill] sm:$0xff]  ;;  %v9522_v55 = vld [vmem:[#allocation188_spill] sm:$0xff]  ;;  %v9523_v35 = vld [vmem:[#allocation189_spill] sm:$0xff] }
 0x334   : > { %v3086_v8 = vadd.f32 %v2830_v34, %v9511_v12  ;;  %v3087_v25 = vadd.f32 %v2831_v31, %v9512_v30  ;;  %3336 = vst [vmem:[%s7304_s17 + $0x580] sm:$0xff] %v3080_v4  ;;  %3337 = vst [vmem:[%s7304_s17 + $0x588] sm:$0xff] %v3081_v38  ;;  %v2864_v15 = vmul.f32 %v7265_v17, %v2558_v11  ;;  %v2566_v4 = vpop.permute.xlu0 %2565  ;;  %v9524_v49 = vld [vmem:[#allocation206_spill] sm:$0xff]  ;;  %v9525_v19 = vld [vmem:[#allocation207_spill] sm:$0xff] }
 0x335   : > { %3338 = vst [vmem:[%s7304_s17 + $0x590] sm:$0xff] %v3082_v61  ;;  %3339 = vst [vmem:[%s7304_s17 + $0x598] sm:$0xff] %v3083_v18  ;;  %v2865_v3 = vmul.f32 %v7268_v33, %v2558_v11  ;;  %v2866_v10 = vmul.f32 %v7271_v44, %v2558_v11  ;;  %v2867_v46 = vmul.f32 %v7274_v36, %v2558_v11  ;;  %v9526_v12 = vld [vmem:[#allocation208_spill] sm:$0xff]  ;;  %v9527_v30 = vld [vmem:[#allocation209_spill] sm:$0xff] }
 0x336   : > { %3340 = vst [vmem:[%s7304_s17 + $0x5a0] sm:$0xff] %v3084_v51  ;;  %3341 = vst [vmem:[%s7304_s17 + $0x5a8] sm:$0xff] %v3085_v26  ;;  %v2868_v22 = vmul.f32 %v7277_v0, %v2558_v11  ;;  %v2869_v59 = vmul.f32 %v7280_v13, %v2558_v11  ;;  %v2870_v6 = vmul.f32 %v7283_v1, %v2558_v11 }
 0x337   : > { %3342 = vst [vmem:[%s7304_s17 + $0x5b0] sm:$0xff] %v3086_v8  ;;  %3343 = vst [vmem:[%s7304_s17 + $0x5b8] sm:$0xff] %v3087_v25  ;;  %v2871_v28 = vmul.f32 %v7286_v2, %v2558_v11  ;;  %v3120_v32 = vadd.f32 %v2864_v15, %v9513_v24  ;;  %v3121_v16 = vadd.f32 %v2865_v3, %v9514_v14  ;;  %v9528_v15 = vld [vmem:[#allocation210_spill] sm:$0xff] }
 0x338   : > { %v3122_v57 = vadd.f32 %v2866_v10, %v9515_v29  ;;  %v3123_v62 = vadd.f32 %v2867_v46, %v9516_v5  ;;  %v3124_v60 = vadd.f32 %v2868_v22, %v9517_v58  ;;  %v3125_v53 = vadd.f32 %v2869_v59, %v9518_v45  ;;  %v9529_v14 = vld [vmem:[#allocation274_spill] sm:$0xff]  ;;  %v9530_v29 = vld [vmem:[#allocation275_spill] sm:$0xff]  ;;  %v9531_v5 = vld [vmem:[#allocation276_spill] sm:$0xff] }
 0x339   : > { %v3126_v37 = vadd.f32 %v2870_v6, %v9519_v20  ;;  %v3127_v52 = vadd.f32 %v2871_v28, %v9520_v56  ;;  %3376 = vst [vmem:[%s7304_s17 + $0x6c0] sm:$0xff] %v3120_v32  ;;  %3377 = vst [vmem:[%s7304_s17 + $0x6c8] sm:$0xff] %v3121_v16  ;;  %v2840_v54 = vmul.f32 %v7265_v17, %v2546_v42  ;;  %v2554_v32 = vpop.permute.xlu1 %2553  ;;  %v9532_v58 = vld [vmem:[#allocation277_spill] sm:$0xff]  ;;  %v9533_v45 = vld [vmem:[#allocation278_spill] sm:$0xff] }
 0x33a   : > { %3378 = vst [vmem:[%s7304_s17 + $0x6d0] sm:$0xff] %v3122_v57  ;;  %3379 = vst [vmem:[%s7304_s17 + $0x6d8] sm:$0xff] %v3123_v62  ;;  %v2841_v50 = vmul.f32 %v7268_v33, %v2546_v42  ;;  %v2842_v43 = vmul.f32 %v7271_v44, %v2546_v42  ;;  %v2843_v47 = vmul.f32 %v7274_v36, %v2546_v42  ;;  %v9534_v20 = vld [vmem:[#allocation279_spill] sm:$0xff] }
 0x33b   : > { %3380 = vst [vmem:[%s7304_s17 + $0x6e0] sm:$0xff] %v3124_v60  ;;  %3381 = vst [vmem:[%s7304_s17 + $0x6e8] sm:$0xff] %v3125_v53  ;;  %v2844_v34 = vmul.f32 %v7277_v0, %v2546_v42  ;;  %v2845_v31 = vmul.f32 %v7280_v13, %v2546_v42  ;;  %v2846_v11 = vmul.f32 %v7283_v1, %v2546_v42  ;;  %v9535_v56 = vld [vmem:[#allocation215_spill] sm:$0xff] }
 0x33c   : > { %3382 = vst [vmem:[%s7304_s17 + $0x6f0] sm:$0xff] %v3126_v37  ;;  %3383 = vst [vmem:[%s7304_s17 + $0x6f8] sm:$0xff] %v3127_v52  ;;  %v2847_v21 = vmul.f32 %v7286_v2, %v2546_v42  ;;  %v3096_v38 = vadd.f32 %v2840_v54, %v9521_v39  ;;  %v3097_v61 = vadd.f32 %v2841_v50, %v9522_v55  ;;  %v9536_v54 = vld [vmem:[#allocation216_spill] sm:$0xff] }
 0x33d   : > { %v3098_v18 = vadd.f32 %v2842_v43, %v9523_v35  ;;  %v3099_v51 = vadd.f32 %v2843_v47, %v9524_v49  ;;  %v3100_v26 = vadd.f32 %v2844_v34, %v9525_v19  ;;  %v3101_v8 = vadd.f32 %v2845_v31, %v9526_v12 }
 0x33e   : > { %v3102_v25 = vadd.f32 %v2846_v11, %v9527_v30  ;;  %v3103_v3 = vadd.f32 %v2847_v21, %v9528_v15  ;;  %3352 = vst [vmem:[%s7304_s17 + $0x600] sm:$0xff] %v3096_v38  ;;  %3353 = vst [vmem:[%s7304_s17 + $0x608] sm:$0xff] %v3097_v61  ;;  %v2880_v10 = vmul.f32 %v7265_v17, %v2566_v4  ;;  %v9537_v38 = vld [vmem:[#allocation187_spill] sm:$0xff]  ;;  %v9538_v61 = vld [vmem:[#allocation204_spill] sm:$0xff] }
 0x33f   : > { %3354 = vst [vmem:[%s7304_s17 + $0x610] sm:$0xff] %v3098_v18  ;;  %3355 = vst [vmem:[%s7304_s17 + $0x618] sm:$0xff] %v3099_v51  ;;  %v2881_v46 = vmul.f32 %v7268_v33, %v2566_v4  ;;  %v2882_v22 = vmul.f32 %v7271_v44, %v2566_v4  ;;  %v2883_v59 = vmul.f32 %v7274_v36, %v2566_v4  ;;  %v9539_v18 = vld [vmem:[#allocation205_spill] sm:$0xff]  ;;  %v9540_v51 = vld [vmem:[#allocation222_spill] sm:$0xff] }
 0x340   : > { %3356 = vst [vmem:[%s7304_s17 + $0x620] sm:$0xff] %v3100_v26  ;;  %3357 = vst [vmem:[%s7304_s17 + $0x628] sm:$0xff] %v3101_v8  ;;  %v2884_v6 = vmul.f32 %v7277_v0, %v2566_v4  ;;  %v2885_v28 = vmul.f32 %v7280_v13, %v2566_v4  ;;  %v2886_v42 = vmul.f32 %v7283_v1, %v2566_v4  ;;  %v9541_v26 = vld [vmem:[#allocation223_spill] sm:$0xff]  ;;  %v9542_v8 = vld [vmem:[#allocation224_spill] sm:$0xff] }
 0x341   : > { %3358 = vst [vmem:[%s7304_s17 + $0x630] sm:$0xff] %v3102_v25  ;;  %3359 = vst [vmem:[%s7304_s17 + $0x638] sm:$0xff] %v3103_v3  ;;  %v2887_v24 = vmul.f32 %v7286_v2, %v2566_v4  ;;  %v3136_v16 = vadd.f32 %v2880_v10, %v9529_v14  ;;  %v3137_v57 = vadd.f32 %v2881_v46, %v9530_v29  ;;  %v9543_v25 = vld [vmem:[#allocation225_spill] sm:$0xff]  ;;  %v9544_v3 = vld [vmem:[#allocation226_spill] sm:$0xff] }
 0x342   : > { %v3138_v62 = vadd.f32 %v2882_v22, %v9531_v5  ;;  %v3139_v60 = vadd.f32 %v2883_v59, %v9532_v58  ;;  %v3140_v53 = vadd.f32 %v2884_v6, %v9533_v45  ;;  %v3141_v37 = vadd.f32 %v2885_v28, %v9534_v20  ;;  %v9545_v46 = vld [vmem:[#allocation239_spill] sm:$0xff]  ;;  %v9546_v22 = vld [vmem:[#allocation18_spill] sm:$0xff]  ;;  %v9547_v6 = vld [vmem:[#allocation240_spill] sm:$0xff] }
 0x343   : > { %v3142_v52 = vadd.f32 %v2886_v42, %v9535_v56  ;;  %v3143_v50 = vadd.f32 %v2887_v24, %v9536_v54  ;;  %3392 = vst [vmem:[%s7304_s17 + $0x740] sm:$0xff] %v3136_v16  ;;  %3393 = vst [vmem:[%s7304_s17 + $0x748] sm:$0xff] %v3137_v57  ;;  %v2856_v43 = vmul.f32 %v7265_v17, %v2554_v32  ;;  %v9548_v28 = vld [vmem:[#allocation20_spill] sm:$0xff]  ;;  %v9549_v24 = vld [vmem:[#allocation241_spill] sm:$0xff] }
 0x344   : > { %3394 = vst [vmem:[%s7304_s17 + $0x750] sm:$0xff] %v3138_v62  ;;  %3395 = vst [vmem:[%s7304_s17 + $0x758] sm:$0xff] %v3139_v60  ;;  %v2857_v47 = vmul.f32 %v7268_v33, %v2554_v32  ;;  %v2858_v34 = vmul.f32 %v7271_v44, %v2554_v32  ;;  %v2859_v31 = vmul.f32 %v7274_v36, %v2554_v32  ;;  %v9551_v16 = vld [vmem:[#allocation242_spill] sm:$0xff]  ;;  %v9553_v5 = vld [vmem:[#allocation243_spill] sm:$0xff] }
 0x345   : > { %3396 = vst [vmem:[%s7304_s17 + $0x760] sm:$0xff] %v3140_v53  ;;  %3397 = vst [vmem:[%s7304_s17 + $0x768] sm:$0xff] %v3141_v37  ;;  %v2860_v11 = vmul.f32 %v7277_v0, %v2554_v32  ;;  %v2861_v21 = vmul.f32 %v7280_v13, %v2554_v32  ;;  %v2862_v4 = vmul.f32 %v7283_v1, %v2554_v32  ;;  %v9552_v29 = vld [vmem:[#allocation22_spill] sm:$0xff]  ;;  %v9554_v62 = vld [vmem:[#allocation23_spill] sm:$0xff] }
 0x346   : > { %3398 = vst [vmem:[%s7304_s17 + $0x770] sm:$0xff] %v3142_v52  ;;  %3399 = vst [vmem:[%s7304_s17 + $0x778] sm:$0xff] %v3143_v50  ;;  %v2863_v39 = vmul.f32 %v7286_v2, %v2554_v32  ;;  %v3112_v55 = vadd.f32 %v2856_v43, %v9537_v38  ;;  %v3113_v35 = vadd.f32 %v2857_v47, %v9538_v61  ;;  %v9550_v32 = vld [vmem:[#allocation21_spill] sm:$0xff]  ;;  %v9555_v60 = vld [vmem:[#allocation244_spill] sm:$0xff] }
 0x347   : > { %v3114_v49 = vadd.f32 %v2858_v34, %v9539_v18  ;;  %v3115_v19 = vadd.f32 %v2859_v31, %v9540_v51  ;;  %v3116_v12 = vadd.f32 %v2860_v11, %v9541_v26  ;;  %v3117_v30 = vadd.f32 %v2861_v21, %v9542_v8  ;;  %v9556_v45 = vld [vmem:[#allocation24_spill] sm:$0xff]  ;;  %v9557_v20 = vld [vmem:[#allocation245_spill] sm:$0xff]  ;;  %v9559_v52 = vld [vmem:[#allocation246_spill] sm:$0xff]  ;;  %v2574_v26 = vpop.permute.xlu0 %2573 }
 0x348   : > { %v3118_v15 = vadd.f32 %v2862_v4, %v9543_v25  ;;  %v3119_v10 = vadd.f32 %v2863_v39, %v9544_v3  ;;  %3368 = vst [vmem:[%s7304_s17 + $0x680] sm:$0xff] %v3112_v55  ;;  %3369 = vst [vmem:[%s7304_s17 + $0x688] sm:$0xff] %v3113_v35  ;;  %v1016_v59 = vadd.f32 %v9546_v22, %v9545_v46  ;;  %v9558_v37 = vld [vmem:[#allocation25_spill] sm:$0xff]  ;;  %v9560_v54 = vld [vmem:[#allocation26_spill] sm:$0xff] }
 0x349   : > { %3370 = vst [vmem:[%s7304_s17 + $0x690] sm:$0xff] %v3114_v49  ;;  %3371 = vst [vmem:[%s7304_s17 + $0x698] sm:$0xff] %v3115_v19  ;;  %v1017_v42 = vadd.f32 %v9548_v28, %v9547_v6  ;;  %v1018_v14 = vadd.f32 %v9550_v32, %v9549_v24  ;;  %v1019_v57 = vadd.f32 %v9552_v29, %v9551_v16  ;;  %v9561_v43 = vld [vmem:[#allocation11_spill] sm:$0xff]  ;;  %v9562_v34 = vld [vmem:[#allocation230_spill] sm:$0xff] }
 0x34a   : > { %3372 = vst [vmem:[%s7304_s17 + $0x6a0] sm:$0xff] %v3116_v12  ;;  %3373 = vst [vmem:[%s7304_s17 + $0x6a8] sm:$0xff] %v3117_v30  ;;  %v1020_v58 = vadd.f32 %v9554_v62, %v9553_v5  ;;  %v1021_v53 = vadd.f32 %v9556_v45, %v9555_v60  ;;  %v1022_v56 = vadd.f32 %v9558_v37, %v9557_v20  ;;  %v9563_v11 = vld [vmem:[#allocation231_spill] sm:$0xff]  ;;  %v9564_v4 = vld [vmem:[#allocation232_spill] sm:$0xff] }
 0x34b   : > { %3374 = vst [vmem:[%s7304_s17 + $0x6b0] sm:$0xff] %v3118_v15  ;;  %3375 = vst [vmem:[%s7304_s17 + $0x6b8] sm:$0xff] %v3119_v10  ;;  %v1023_v50 = vadd.f32 %v9560_v54, %v9559_v52  ;;  %v1728_v47 = vadd.f32 %v9561_v43, %v1016_v59  ;;  %v1729_v31 = vadd.f32 %v9562_v34, %v1017_v42  ;;  %v9565_v38 = vld [vmem:[#allocation233_spill] sm:$0xff]  ;;  %v9566_v61 = vld [vmem:[#allocation234_spill] sm:$0xff] }
 0x34c   : > { %v1730_v21 = vadd.f32 %v9563_v11, %v1018_v14  ;;  %v1731_v39 = vadd.f32 %v9564_v4, %v1019_v57  ;;  %v1732_v55 = vadd.f32 %v9565_v38, %v1020_v58  ;;  %v1733_v35 = vadd.f32 %v9566_v61, %v1021_v53  ;;  %v9567_v18 = vld [vmem:[#allocation235_spill] sm:$0xff]  ;;  %v9568_v51 = vld [vmem:[#allocation236_spill] sm:$0xff]  ;;  %v9571_v54 = vld [vmem:[#allocation198_spill] sm:$0xff] }
 0x34d   : > { %v1734_v49 = vadd.f32 %v9567_v18, %v1022_v56  ;;  %v1735_v19 = vadd.f32 %v9568_v51, %v1023_v50  ;;  %v2440_v12 = vadd.f32 %v7311_v7, %v1728_v47  ;;  %v2441_v8 = vadd.f32 %v7314_v48, %v1729_v31  ;;  %v9569_v20 = vld [vmem:[#allocation212_spill] sm:$0xff]  ;;  %v9570_v56 = vld [vmem:[#allocation213_spill] sm:$0xff]  ;;  %v9572_v43 = vld [vmem:[#allocation199_spill] sm:$0xff] }
 0x34e   : > { %v2442_v30 = vadd.f32 %v7317_v40, %v1730_v21  ;;  %v2443_v25 = vadd.f32 %v7320_v23, %v1731_v39  ;;  %v2444_v15 = vadd.f32 %v7327_v27, %v1732_v55  ;;  %v2445_v3 = vadd.f32 %v7330_v63, %v1733_v35  ;;  %v9573_v34 = vld [vmem:[#allocation200_spill] sm:$0xff]  ;;  %v9574_v11 = vld [vmem:[#allocation201_spill] sm:$0xff]  ;;  %v9575_v4 = vld [vmem:[#allocation202_spill] sm:$0xff] }
 0x34f   : > { %v2446_v10 = vadd.f32 %v7333_v9, %v1734_v49  ;;  %v2447_v46 = vadd.f32 %v7336_v41, %v1735_v19  ;;  %v2896_v22 = vmul.f32 %v7265_v17, %v2574_v26  ;;  %v2897_v59 = vmul.f32 %v7268_v33, %v2574_v26  ;;  %v2562_v9 = vpop.permute.xlu1 %2561  ;;  %v9576_v38 = vld [vmem:[#allocation203_spill] sm:$0xff]  ;;  %v9577_v61 = vld [vmem:[#allocation13_spill] sm:$0xff]  ;;  %v9580_v51 = vld [vmem:[#allocation218_spill] sm:$0xff] }
 0x350   : > { %v2898_v7 = vmul.f32 %v7271_v44, %v2574_v26  ;;  %v2899_v48 = vmul.f32 %v7274_v36, %v2574_v26  ;;  %v2900_v40 = vmul.f32 %v7277_v0, %v2574_v26  ;;  %v2901_v23 = vmul.f32 %v7280_v13, %v2574_v26  ;;  %v9578_v35 = vld [vmem:[#allocation217_spill] sm:$0xff]  ;;  %v9579_v49 = vld [vmem:[#allocation247_spill] sm:$0xff] }
 0x351   : > { %v2902_v27 = vmul.f32 %v7283_v1, %v2574_v26  ;;  %v2903_v63 = vmul.f32 %v7286_v2, %v2574_v26  ;;  %v3152_v41 = vadd.f32 %v2896_v22, %v2440_v12  ;;  %v3153_v6 = vadd.f32 %v2897_v59, %v2441_v8  ;;  %v9581_v26 = vld [vmem:[#allocation248_spill] sm:$0xff]  ;;  %v9582_v12 = vld [vmem:[#allocation219_spill] sm:$0xff] }
 0x352   : > { %v3154_v28 = vadd.f32 %v2898_v7, %v2442_v30  ;;  %v3155_v42 = vadd.f32 %v2899_v48, %v2443_v25  ;;  %v3156_v24 = vadd.f32 %v2900_v40, %v2444_v15  ;;  %v3157_v32 = vadd.f32 %v2901_v23, %v2445_v3  ;;  %v9583_v30 = vld [vmem:[#allocation249_spill] sm:$0xff]  ;;  %v9584_v25 = vld [vmem:[#allocation220_spill] sm:$0xff]  ;;  %v9587_v59 = vld [vmem:[#allocation251_spill] sm:$0xff] }
 0x353   : > { %v3158_v14 = vadd.f32 %v2902_v27, %v2446_v10  ;;  %v3159_v16 = vadd.f32 %v2903_v63, %v2447_v46  ;;  %3408 = vst [vmem:[%s7304_s17 + $0x7c0] sm:$0xff] %v3152_v41  ;;  %3409 = vst [vmem:[%s7304_s17 + $0x7c8] sm:$0xff] %v3153_v6  ;;  %v2872_v29 = vmul.f32 %v7265_v17, %v2562_v9  ;;  %v2570_v3 = vpop.permute.xlu1 %2569  ;;  %v9585_v10 = vld [vmem:[#allocation250_spill] sm:$0xff]  ;;  %v9586_v46 = vld [vmem:[#allocation221_spill] sm:$0xff] }
 0x354   : > { %3410 = vst [vmem:[%s7304_s17 + $0x7d0] sm:$0xff] %v3154_v28  ;;  %3411 = vst [vmem:[%s7304_s17 + $0x7d8] sm:$0xff] %v3155_v42  ;;  %v2873_v57 = vmul.f32 %v7268_v33, %v2562_v9  ;;  %v2874_v5 = vmul.f32 %v7271_v44, %v2562_v9  ;;  %v2875_v62 = vmul.f32 %v7274_v36, %v2562_v9  ;;  %v9588_v7 = vld [vmem:[#allocation12_spill] sm:$0xff]  ;;  %v9590_v23 = vld [vmem:[#allocation237_spill] sm:$0xff] }
 0x355   : > { %3412 = vst [vmem:[%s7304_s17 + $0x7e0] sm:$0xff] %v3156_v24  ;;  %3413 = vst [vmem:[%s7304_s17 + $0x7e8] sm:$0xff] %v3157_v32  ;;  %v2876_v58 = vmul.f32 %v7277_v0, %v2562_v9  ;;  %v2877_v60 = vmul.f32 %v7280_v13, %v2562_v9  ;;  %v2878_v45 = vmul.f32 %v7283_v1, %v2562_v9  ;;  %v9589_v40 = vld [vmem:[#allocation252_spill] sm:$0xff]  ;;  %v9591_v63 = vld [vmem:[#allocation253_spill] sm:$0xff] }
 0x356   : > { %3414 = vst [vmem:[%s7304_s17 + $0x7f0] sm:$0xff] %v3158_v14  ;;  %3415 = vst [vmem:[%s7304_s17 + $0x7f8] sm:$0xff] %v3159_v16  ;;  %v2879_v53 = vmul.f32 %v7286_v2, %v2562_v9  ;;  %v3128_v37 = vadd.f32 %v2872_v29, %v9569_v20  ;;  %v3129_v52 = vadd.f32 %v2873_v57, %v9570_v56  ;;  %v9592_v9 = vld [vmem:[#allocation238_spill] sm:$0xff]  ;;  %v9594_v42 = vld [vmem:[#allocation267_spill] sm:$0xff] }
 0x357   : > { %v3130_v50 = vadd.f32 %v2874_v5, %v9571_v54  ;;  %v3131_v47 = vadd.f32 %v2875_v62, %v9572_v43  ;;  %v3132_v31 = vadd.f32 %v2876_v58, %v9573_v34  ;;  %v3133_v21 = vadd.f32 %v2877_v60, %v9574_v11  ;;  %v9593_v6 = vld [vmem:[#allocation266_spill] sm:$0xff]  ;;  %v9595_v32 = vld [vmem:[#allocation268_spill] sm:$0xff]  ;;  %v9596_v16 = vld [vmem:[#allocation269_spill] sm:$0xff] }
 0x358   : > { %v3134_v39 = vadd.f32 %v2878_v45, %v9575_v4  ;;  %v3135_v55 = vadd.f32 %v2879_v53, %v9576_v38  ;;  %3384 = vst [vmem:[%s7304_s17 + $0x700] sm:$0xff] %v3128_v37  ;;  %3385 = vst [vmem:[%s7304_s17 + $0x708] sm:$0xff] %v3129_v52  ;;  %v1720_v18 = vadd.f32 %v9578_v35, %v9577_v61  ;;  %v9597_v57 = vld [vmem:[#allocation270_spill] sm:$0xff]  ;;  %v9598_v62 = vld [vmem:[#allocation271_spill] sm:$0xff] }
 0x359   : > { %3386 = vst [vmem:[%s7304_s17 + $0x710] sm:$0xff] %v3130_v50  ;;  %3387 = vst [vmem:[%s7304_s17 + $0x718] sm:$0xff] %v3131_v47  ;;  %v1721_v19 = vadd.f32 %v9580_v51, %v9579_v49  ;;  %v1722_v8 = vadd.f32 %v9582_v12, %v9581_v26  ;;  %v1723_v15 = vadd.f32 %v9584_v25, %v9583_v30  ;;  %v9599_v60 = vld [vmem:[#allocation272_spill] sm:$0xff]  ;;  %v9600_v53 = vld [vmem:[#allocation273_spill] sm:$0xff] }
 0x35a   : > { %3388 = vst [vmem:[%s7304_s17 + $0x720] sm:$0xff] %v3132_v31  ;;  %3389 = vst [vmem:[%s7304_s17 + $0x728] sm:$0xff] %v3133_v21  ;;  %v1724_v22 = vadd.f32 %v9586_v46, %v9585_v10  ;;  %v1725_v48 = vadd.f32 %v9588_v7, %v9587_v59  ;;  %v1726_v27 = vadd.f32 %v9590_v23, %v9589_v40 }
 0x35b   : > { %3390 = vst [vmem:[%s7304_s17 + $0x730] sm:$0xff] %v3134_v39  ;;  %3391 = vst [vmem:[%s7304_s17 + $0x738] sm:$0xff] %v3135_v55  ;;  %v1727_v41 = vadd.f32 %v9592_v9, %v9591_v63  ;;  %v2432_v28 = vadd.f32 %v9593_v6, %v1720_v18  ;;  %v2433_v24 = vadd.f32 %v9594_v42, %v1721_v19 }
 0x35c   : > { %v2434_v14 = vadd.f32 %v9595_v32, %v1722_v8  ;;  %v2435_v29 = vadd.f32 %v9596_v16, %v1723_v15  ;;  %v2436_v5 = vadd.f32 %v9597_v57, %v1724_v22  ;;  %v2437_v58 = vadd.f32 %v9598_v62, %v1725_v48 }
 0x35d   : > { %v2438_v45 = vadd.f32 %v9599_v60, %v1726_v27  ;;  %v2439_v20 = vadd.f32 %v9600_v53, %v1727_v41  ;;  %v2888_v37 = vmul.f32 %v7265_v17, %v2570_v3  ;;  %v2889_v56 = vmul.f32 %v7268_v33, %v2570_v3 }
 0x35e   : > { %v2890_v52 = vmul.f32 %v7271_v44, %v2570_v3  ;;  %v2891_v54 = vmul.f32 %v7274_v36, %v2570_v3  ;;  %v2892_v50 = vmul.f32 %v7277_v0, %v2570_v3  ;;  %v2893_v43 = vmul.f32 %v7280_v13, %v2570_v3 }
 0x35f   : > { %v2894_v47 = vmul.f32 %v7283_v1, %v2570_v3  ;;  %v2895_v34 = vmul.f32 %v7286_v2, %v2570_v3  ;;  %v3144_v17 = vadd.f32 %v2888_v37, %v2432_v28  ;;  %v3145_v33 = vadd.f32 %v2889_v56, %v2433_v24 }
 0x360   : > { %v3146_v44 = vadd.f32 %v2890_v52, %v2434_v14  ;;  %v3147_v36 = vadd.f32 %v2891_v54, %v2435_v29  ;;  %v3148_v0 = vadd.f32 %v2892_v50, %v2436_v5  ;;  %v3149_v13 = vadd.f32 %v2893_v43, %v2437_v58 }
 0x361   : > { %v3150_v1 = vadd.f32 %v2894_v47, %v2438_v45  ;;  %v3151_v2 = vadd.f32 %v2895_v34, %v2439_v20  ;;  %3400 = vst [vmem:[%s7304_s17 + $0x780] sm:$0xff] %v3144_v17  ;;  %3401 = vst [vmem:[%s7304_s17 + $0x788] sm:$0xff] %v3145_v33 }
 0x362   : > { %3402 = vst [vmem:[%s7304_s17 + $0x790] sm:$0xff] %v3146_v44  ;;  %3403 = vst [vmem:[%s7304_s17 + $0x798] sm:$0xff] %v3147_v36 }
 0x363   : > { %3404 = vst [vmem:[%s7304_s17 + $0x7a0] sm:$0xff] %v3148_v0  ;;  %3405 = vst [vmem:[%s7304_s17 + $0x7a8] sm:$0xff] %v3149_v13 }
 0x364   : > { %3406 = vst [vmem:[%s7304_s17 + $0x7b0] sm:$0xff] %v3150_v1  ;;  %3407 = vst [vmem:[%s7304_s17 + $0x7b8] sm:$0xff] %v3151_v2 }
 0x365   : > { %3715 = shalt.err (!%p3712_p11)
}
 0x366   : > { %s3716_s7 = scalar_lea.hbm %s8119_s27, 32768  ;;  %s3720_s28 = scalar_lea.hbm %s8177_s3, 65536 }
 0x367   : > { %p3717_p13 = scmp.ne.s32.totalorder %s8119_s27, %s3716_s7  ;;  %p3721_p5 = scmp.lt.u32.totalorder %s8119_s27, %s8177_s3 }
 0x368   : > { %p3722_p9 = scmp.lt.u32.totalorder %s3720_s28, %s3716_s7  ;;  %p3724_p10 = scmp.lt.u32.totalorder %s3716_s7, %s8119_s27 }
 0x369   : > { %p3718_p6 = pnand %p3717_p13, %p9601_p1 }
 0x36a   : > { %p3723_p12 = por %p3722_p9, %p3721_p5 }
 0x36b   : > { %p3719_p0 = pneg %p3718_p6 }
 0x36c   : > { %p3725_p2 = por %p3724_p10, %p3723_p12 }
 0x36e   : > { %p3726_p3 = pnand %p3725_p2, %p3719_p0 }
 0x370   : > { %3729 = shalt.err (!%p3726_p3)
}
 0x371   : > { %s3781_s10 = smov 1024   ;;  %s3782_s11 = smov 64  }
 0x372   : > { %3542 = dma.vmem_to_hbm [thread:$0]  (%p9601_p1), %s8121_s20, 32768, %s8119_s27, %s8133_s30, %s3781_s10, %s3781_s10, %s3782_s11  }
 0x373 PF: > { %p3559_p4 = scmp.ge.s32.totalorder %s3772_s15, 2  ;;  %s3446_s17 = sand.u32 1, %s3760_s12  }
 0x374   : > { %p9602_p7 = scmp.ne.s32.totalorder %s8204_s23, 0  ;;  %s3447_s19 = scalar_lea.sflag [#allocation4], %s3446_s17 }
 0x376   : > { %p3552_p8 = pnand %p3559_p4, %p9602_p7 }
 0x378   : > { %3755 = dma.done.wait (!%p3552_p8), %s3447_s19, 32768  }
 0x379   : > { %3757 = vsyncadd (!%p3552_p8), %s3447_s19, 4294934528  ;;  %p15_p11 = scmp.ge.s32.totalorder %s3828_s18, 4   ;;  %s9603_s12 = smov %s3764_s13 }
 0x37a   : > { %s9604_s13 = smov %s3768_s14  ;;  %s9605_s14 = smov %s3839_s21 }
 0x37b   : > { %s9606_s15 = smov %s3828_s18  ;;  %17 = sbr.rel (!%p15_p11) target bundleno = 5 (0x5), region = 76 }
 0x382   :  { %3452 = vsyncpa [#allocation3], 1 }
 0x383   :  { %3454 = vsyncpa [#allocation3 + $0x1], 1 }
 0x384   :  { %3455 = vsyncpa [#allocation6], 1 }
 0x385   :  { %3456 = vsyncpa [#allocation4], 1 }
 0x386   :  { %3458 = vsyncpa [#allocation4 + $0x1], 1 }

</bundles_post_ra>
